<compile_context>
chip_gen: v7x
topology: tpu7x:2x2x1
jax: 0.10.0
libtpu: 0.0.40
codegen_flags: <defaults>
</compile_context>

<pallas_src>
import math
import functools

import jax
import jax.numpy as jnp
from jax.experimental import pallas as pl
from jax.experimental.pallas import tpu as pltpu


# ----------------------------------------------------------------------------
# helpers
# ----------------------------------------------------------------------------
def _round_up(x, m):
    return ((x + m - 1) // m) * m


def _cdiv(a, b):
    return -(-a // b)


def _act(x, kind):
    if kind == "leaky_relu":
        return jnp.where(x >= 0.0, x, 0.2 * x)
    if kind == "relu":
        return jnp.maximum(x, 0.0)
    return x


def _vmem_limit_bytes():
    """Generation-aware scoped-VMEM limit (v5e/v6e: 128 MiB phys, v7x: 64 MiB)."""
    try:
        cap = int(pltpu.get_tpu_info().vmem_capacity_bytes)
    except Exception:
        cap = 64 * 2**20
    return int(min(max(cap // 2, 32 * 2**20), 64 * 2**20))


_VMEM_LIMIT = _vmem_limit_bytes()
_VMEM_BUDGET = (_VMEM_LIMIT * 2) // 3     # headroom for Pallas double-buffering slack
_LANE_TARGET = 256                        # fills v6e/v7x 256-wide MXU N; 2 vregs on v5e


# ----------------------------------------------------------------------------
# Pallas kernels: bf16 MXU matmul with fused bias / ReLU / residual / tanh
# ----------------------------------------------------------------------------
def _make_kernel(post_act, has_residual, res_scale, final_act, k_tiled):
    def epilogue(y, bias, res):
        y = y + bias                              # f32
        if post_act == "relu":
            y = jnp.maximum(y, 0.0)
        if has_residual:
            y = res.astype(jnp.float32) + res_scale * y
        if final_act == "tanh":
            y = jnp.tanh(y)
        return y

    if not k_tiled:
        def kernel(*refs):
            if has_residual:
                x_ref, w_ref, b_ref, r_ref, o_ref = refs
            else:
                x_ref, w_ref, b_ref, o_ref = refs
            y = jnp.dot(x_ref[...], w_ref[...], preferred_element_type=jnp.float32)
            y = epilogue(y, b_ref[...], r_ref[...] if has_residual else None)
            o_ref[...] = y.astype(o_ref.dtype)
        return kernel

    def kernel(*refs):
        if has_residual:
            x_ref, w_ref, b_ref, r_ref, o_ref, acc_ref = refs
        else:
            x_ref, w_ref, b_ref, o_ref, acc_ref = refs
        k = pl.program_id(1)

        @pl.when(k == 0)
        def _():
            acc_ref[...] = jnp.zeros_like(acc_ref)

        acc_ref[...] += jnp.dot(x_ref[...], w_ref[...],
                                preferred_element_type=jnp.float32)

        @pl.when(k == pl.num_programs(1) - 1)
        def _():
            y = epilogue(acc_ref[...], b_ref[...],
                         r_ref[...] if has_residual else None)
            o_ref[...] = y.astype(o_ref.dtype)

    return kernel


def _pick_tiles(M, K, C, has_res, out_itemsize):
    """(tm, tk, nk): row tile, K tile, number of K steps — VMEM-budgeted."""
    # K tiling only when the full-K bf16 weight block would be uncomfortably big.
    max_w_bytes = min(8 * 2**20, _VMEM_BUDGET // 4)
    if 2 * K * C <= max_w_bytes:
        tk, nk = K, 1
    else:
        nk = _cdiv(2 * K * C, max_w_bytes)
        tk = _round_up(_cdiv(K, nk), 128)
        nk = _cdiv(K, tk)

    # Row tile: as big as the budget allows (weight/bias/residual/acc included).
    fixed = 2 * (2 * tk * C) + 2 * 4 * 8 * _round_up(C, 128)     # w (2 bufs) + bias
    per_row = (2 * (2 * tk)                                      # bf16 LHS, 2 bufs
               + 2 * out_itemsize * C                            # output, 2 bufs
               + (2 * 2 * C if has_res else 0)                   # bf16 residual, 2 bufs
               + (4 * C if nk > 1 else 0))                       # f32 accumulator
    avail = max(_VMEM_BUDGET - fixed, 2 * 2**20)
    m16 = _round_up(max(M, 1), 16)
    cap = max(16, (avail // per_row) // 16 * 16)
    tm = min(2048, cap, m16)
    if m16 >= 256:                       # keep >=2 parallel grid steps (v7x megacore)
        tm = min(tm, _round_up((m16 + 1) // 2, 16))
    return tm, tk, nk


def pallas_matmul(x, w, b, *, post_act="none", residual=None, res_scale=0.0,
                  final_act="none", out_dtype=jnp.bfloat16):
    """x: [M, K] patches, w: [K, C], b: [C] -> [M, C] in `out_dtype`.
    bf16 MXU operands, f32 accumulation and f32 epilogue math."""
    M, K = x.shape
    C = w.shape[1]
    has_res = residual is not None

    x = x.astype(jnp.bfloat16)
    w = w.astype(jnp.bfloat16)
    b = b.astype(jnp.float32).reshape(1, C)

    out_itemsize = jnp.dtype(out_dtype).itemsize
    tm, tk, nk = _pick_tiles(M, K, C, has_res, out_itemsize)

    k_pad = tk * nk
    if k_pad != K:
        x = jnp.pad(x, ((0, 0), (0, k_pad - K)))
        w = jnp.pad(w, ((0, k_pad - K), (0, 0)))

    m_pad = _round_up(M, tm)
    if m_pad != M:
        x = jnp.pad(x, ((0, m_pad - M), (0, 0)))
    if has_res:
        residual = residual.astype(jnp.bfloat16)
        if m_pad != M:
            residual = jnp.pad(residual, ((0, m_pad - M), (0, 0)))

    kernel = _make_kernel(post_act, has_res, res_scale, final_act, k_tiled=(nk > 1))

    if nk == 1:
        in_specs = [
            pl.BlockSpec((tm, k_pad), lambda i: (i, 0)),     # patch row-tile (bf16)
            pl.BlockSpec((k_pad, C), lambda i: (0, 0)),      # full weight (bf16)
            pl.BlockSpec((1, C), lambda i: (0, 0)),          # bias (f32)
        ]
        if has_res:
            in_specs.append(pl.BlockSpec((tm, C), lambda i: (i, 0)))
        out_spec = pl.BlockSpec((tm, C), lambda i: (i, 0))
        grid = (m_pad // tm,)
        scratch = []
        dims = ("parallel",)
    else:
        in_specs = [
            pl.BlockSpec((tm, tk), lambda i, k: (i, k)),
            pl.BlockSpec((tk, C), lambda i, k: (k, 0)),
            pl.BlockSpec((1, C), lambda i, k: (0, 0)),
        ]
        if has_res:
            in_specs.append(pl.BlockSpec((tm, C), lambda i, k: (i, 0)))
        out_spec = pl.BlockSpec((tm, C), lambda i, k: (i, 0))
        grid = (m_pad // tm, nk)
        scratch = [pltpu.VMEM((tm, C), jnp.float32)]
        dims = ("parallel", "arbitrary")

    args = [x, w, b] + ([residual] if has_res else [])

    bytes_accessed = (2 * m_pad * k_pad + 2 * k_pad * C + 4 * C
                      + out_itemsize * m_pad * C
                      + (2 * m_pad * C if has_res else 0))
    cost = pl.CostEstimate(
        flops=2 * m_pad * k_pad * C,
        transcendentals=(m_pad * C if final_act == "tanh" else 0),
        bytes_accessed=bytes_accessed,
    )

    out = pl.pallas_call(
        kernel,
        out_shape=jax.ShapeDtypeStruct((m_pad, C), out_dtype),
        grid=grid,
        in_specs=in_specs,
        out_specs=out_spec,
        scratch_shapes=scratch,
        compiler_params=pltpu.CompilerParams(
            dimension_semantics=dims, vmem_limit_bytes=_VMEM_LIMIT),
        cost_estimate=cost,
    )(*args)
    return out[:M] if m_pad != M else out


# ----------------------------------------------------------------------------
# Grouped im2col glue (plain JAX; done in bf16, fused by XLA with the pre-act)
# ----------------------------------------------------------------------------
def _pick_group(width, c, target=_LANE_TARGET, cap=128):
    """Smallest power-of-two G (dividing `width`, <= cap) with G*c >= target."""
    G = 1
    while G < cap and width % (2 * G) == 0 and G * c < target:
        G *= 2
    return G


def _extract_patches_grouped(x, kh, sh, kwb, swb, G):
    """Grouped im2col for a (kh x kwb, strides (sh,swb), pad 1) conv: each output
    row covers G horizontally adjacent output pixels sharing a kh x (swb*G+kwb-swb)
    window.  x: [N,H,W,C] -> patches [N*oh*(ow/G), kh*wwin*C], column order
    (kh, window-pos, C).  Built from kh*(kwb-swb+1) slices only."""
    N, H, W, C = x.shape
    xp = jnp.pad(x, ((0, 0), (1, 1), (1, 1), (0, 0)))
    Hp, Wp = H + 2, W + 2
    oh = (Hp - kh) // sh + 1
    ow = (Wp - kwb) // swb + 1
    e = kwb - swb
    wwin = swb * G + e
    assert ow % G == 0 and swb * G * (ow // G) == W
    ng = ow // G
    parts = []
    for i in range(kh):
        rows = xp[:, i:i + sh * (oh - 1) + 1:sh, :, :]            # (N, oh, Wp, C)
        win = [rows[:, :, 0:W, :].reshape(N, oh, ng, swb * G, C)]  # window pos 0..swb*G-1
        for t in range(e):                                         # window pos swb*G+t
            ex = rows[:, :, swb * G + t:W + t + 1:swb * G, :]      # (N, oh, ng, C)
            win.append(ex[:, :, :, None, :])
        parts.append(jnp.concatenate(win, axis=3))                 # (N, oh, ng, wwin, C)
    patches = jnp.stack(parts, axis=3)                             # (N, oh, ng, kh, wwin, C)
    return patches.reshape(N * oh * ng, kh * wwin * C), (N, oh, ow)


def _widen_weight(w, G, swb):
    """(kh, kwb, Cin, Cc) -> (kh*(swb*G+kwb-swb)*Cin, G*Cc): G adjacent output
    columns (input stride swb) share one window -> lane-dense output columns."""
    kh, kwb, cin, cc = w.shape
    wwin = swb * G + (kwb - swb)
    wp = jnp.pad(w, ((0, 0), (0, wwin - kwb), (0, 0), (0, 0)))
    cols = [jnp.roll(wp, swb * g, axis=1) for g in range(G)]
    ww = jnp.stack(cols, axis=3)                                   # (kh, wwin, cin, G, cc)
    return ww.reshape(kh * wwin * cin, G * cc)


# ----------------------------------------------------------------------------
# Conv2d(k=4, s=2, p=1) — grouped output columns (lane-dense)
# ----------------------------------------------------------------------------
def conv4x4_s2(x, params, *, pre_act="none", out_dtype=jnp.bfloat16):
    w, b = params                                   # w: (Cout, Cin, 4, 4)
    cout = w.shape[0]
    xb = _act(x, pre_act).astype(jnp.bfloat16)      # act once per element, then bf16
    N, H, W, _ = xb.shape
    G = _pick_group(W // 2, cout)
    w44 = jnp.transpose(w, (2, 3, 1, 0))            # (4,4,Cin,Cout)
    patches, (n, oh, ow) = _extract_patches_grouped(xb, 4, 2, 4, 2, G)
    out = pallas_matmul(patches, _widen_weight(w44, G, 2), jnp.tile(b, G),
                        out_dtype=out_dtype)
    return out.reshape(N, oh, ow, cout)


# ----------------------------------------------------------------------------
# 3x3 stride-1 pad-1 conv with grouped output columns
# ----------------------------------------------------------------------------
def conv3x3_s1(x_bf16, w33, b, *, post_act="none", residual=None,
               res_scale=0.0, final_act="none", out_dtype=jnp.bfloat16):
    """x_bf16: NHWC bf16; w33: (3,3,Cin,Cc); residual (if any): NHWC bf16."""
    N, H, W, _ = x_bf16.shape
    cc = w33.shape[-1]
    G = _pick_group(W, cc)
    patches, (n, oh, ow) = _extract_patches_grouped(x_bf16, 3, 1, 3, 1, G)
    res2 = None
    if residual is not None:
        res2 = residual.reshape(n * oh * (ow // G), G * cc)   # same memory layout
    out = pallas_matmul(patches, _widen_weight(w33, G, 1), jnp.tile(b, G),
                        post_act=post_act, residual=res2, res_scale=res_scale,
                        final_act=final_act, out_dtype=out_dtype)
    return out.reshape(N, H, W, cc)


# ----------------------------------------------------------------------------
# ConvTranspose2d(k=4, s=2, p=1) via subpixel decomposition
# ----------------------------------------------------------------------------
def _deconv_as_conv3_w33(w_ct):
    """ConvTranspose2d weight (Cin,Cout,4,4) -> equivalent 3x3 conv weight
    (3,3,Cin,4*Cout); output-channel order is (row parity r, col parity s, cout).
    1-D derivation (upsampled index j = 2m + r):
      r=0: y = w[3]*x[m-1] + w[1]*x[m]   -> window pos 0 -> tap 3, pos 1 -> tap 1
      r=1: y = w[2]*x[m]   + w[0]*x[m+1] -> window pos 1 -> tap 2, pos 2 -> tap 0
    """
    cin, cout = w_ct.shape[0], w_ct.shape[1]
    taps = {(0, 0): 3, (0, 1): 1, (1, 1): 2, (1, 2): 0}   # (parity, window pos) -> tap
    ww = jnp.zeros((3, 3, cin, 2, 2, cout), w_ct.dtype)
    for (r, kh), th in taps.items():
        for (s, kw), tw in taps.items():
            ww = ww.at[kh, kw, :, r, s, :].set(w_ct[:, :, th, tw])
    return ww.reshape(3, 3, cin, 4 * cout)


def conv_transpose2d(x, params, *, pre_act="relu"):
    w_ct, b = params                               # w_ct: (Cin, Cout, 4, 4)
    cout = w_ct.shape[1]
    xb = _act(x, pre_act).astype(jnp.bfloat16)     # relu(0)=0 -> commutes with zero pad
    w33 = _deconv_as_conv3_w33(w_ct)
    y = conv3x3_s1(xb, w33, jnp.tile(b, 4))        # (N,H,W,4*Cout), channel order (r,s,c)
    N, H, W, _ = y.shape
    # Pixel shuffle (bf16): XLA fuses the minor-dim transpose into the consumers.
    y = jnp.transpose(y.reshape(N, H, W, 2, 2, cout), (0, 1, 3, 2, 4, 5))
    return y.reshape(N, 2 * H, 2 * W, cout)


# ----------------------------------------------------------------------------
# ResBlock: x + 0.1 * conv(relu(conv(x)))   (both convs 3x3, s=1, p=1)
# ----------------------------------------------------------------------------
def resblock(x_bf16, params, final_act="none", out_dtype=jnp.bfloat16):
    w1, b1, w2, b2 = params
    w1_33 = jnp.transpose(w1, (2, 3, 1, 0))        # (3,3,Cin,Cout)
    w2_33 = jnp.transpose(w2, (2, 3, 1, 0))
    h = conv3x3_s1(x_bf16, w1_33, b1, post_act="relu")
    return conv3x3_s1(h, w2_33, b2, residual=x_bf16, res_scale=0.1,
                      final_act=final_act, out_dtype=out_dtype)


# ----------------------------------------------------------------------------
# Parameter init (deterministic, PyTorch-like uniform(+-1/sqrt(fan_in)))
# ----------------------------------------------------------------------------
def init_params(key, input_nc, output_nc, ngf):
    keys = iter(jax.random.split(key, 128))

    def conv_p(cin, cout, k):
        k1, k2 = jax.random.split(next(keys))
        bound = 1.0 / math.sqrt(cin * k * k)
        return (jax.random.uniform(k1, (cout, cin, k, k), jnp.float32, -bound, bound),
                jax.random.uniform(k2, (cout,), jnp.float32, -bound, bound))

    def deconv_p(cin, cout, k):
        k1, k2 = jax.random.split(next(keys))
        bound = 1.0 / math.sqrt(cin * k * k)
        return (jax.random.uniform(k1, (cin, cout, k, k), jnp.float32, -bound, bound),
                jax.random.uniform(k2, (cout,), jnp.float32, -bound, bound))

    def resblock_p(dim):
        w1, b1 = conv_p(dim, dim, 3)
        w2, b2 = conv_p(dim, dim, 3)
        return (w1, b1, w2, b2)

    P = {}
    P["conv1"] = conv_p(input_nc, ngf, 4)
    P["conv2"] = conv_p(ngf, ngf * 2, 4)
    P["conv3"] = conv_p(ngf * 2, ngf * 4, 4)
    P["conv4"] = conv_p(ngf * 4, ngf * 8, 4)
    for i in range(5, 9):
        P[f"conv{i}"] = conv_p(ngf * 8, ngf * 8, 4)
    P["dconv1"] = deconv_p(ngf * 8, ngf * 8, 4)
    P["dconv2"] = deconv_p(ngf * 8 * 2, ngf * 8, 4)
    P["dconv3"] = deconv_p(ngf * 8 * 2, ngf * 8, 4)
    P["dconv4"] = deconv_p(ngf * 8 * 2, ngf * 8, 4)
    P["dconv5"] = deconv_p(ngf * 8 * 2, ngf * 4, 4)
    P["dconv6"] = deconv_p(ngf * 4 * 2, ngf * 2, 4)
    P["dconv7"] = deconv_p(ngf * 2 * 2, ngf, 4)
    P["dconv8"] = deconv_p(ngf * 2, output_nc, 4)
    P["eblock1"] = resblock_p(ngf)
    P["eblock2"] = resblock_p(ngf * 2)
    P["eblock3"] = resblock_p(ngf * 4)
    for i in range(4, 9):
        P[f"eblock{i}"] = resblock_p(ngf * 8)
    for i in range(1, 5):
        P[f"dblock{i}"] = resblock_p(ngf * 8)
    P["dblock5"] = resblock_p(ngf * 4)
    P["dblock6"] = resblock_p(ngf * 2)
    P["dblock7"] = resblock_p(ngf)
    P["dblock8"] = resblock_p(output_nc)
    return P


# ----------------------------------------------------------------------------
# Forward pass (mirrors Generator.forward exactly, incl. the eblock6 reuse for e7)
# ----------------------------------------------------------------------------
def generator_forward(x_nchw, P):
    x = jnp.transpose(x_nchw, (0, 2, 3, 1)).astype(jnp.float32)  # NCHW -> NHWC

    # TODO(synk): nn.Dropout(0.5) is stochastic in train mode; identity here (eval semantics).
    dropout = lambda t: t
    cat = lambda a, b: jnp.concatenate([a, b], axis=-1)  # torch.cat(dim=1) in NHWC (bf16)

    e1 = resblock(conv4x4_s2(x, P["conv1"]), P["eblock1"])
    e2 = resblock(conv4x4_s2(e1, P["conv2"], pre_act="leaky_relu"), P["eblock2"])
    e3 = resblock(conv4x4_s2(e2, P["conv3"], pre_act="leaky_relu"), P["eblock3"])
    e4 = resblock(conv4x4_s2(e3, P["conv4"], pre_act="leaky_relu"), P["eblock4"])
    e5 = resblock(conv4x4_s2(e4, P["conv5"], pre_act="leaky_relu"), P["eblock5"])
    e6 = resblock(conv4x4_s2(e5, P["conv6"], pre_act="leaky_relu"), P["eblock6"])
    # NOTE: the reference module uses eblock6 (not eblock7) for e7 — reproduced.
    e7 = resblock(conv4x4_s2(e6, P["conv7"], pre_act="leaky_relu"), P["eblock6"])
    e8 = resblock(conv4x4_s2(e7, P["conv8"], pre_act="leaky_relu"), P["eblock8"])

    d1_ = resblock(dropout(conv_transpose2d(e8, P["dconv1"], pre_act="relu")), P["dblock1"])
    d1 = cat(d1_, e7)
    d2_ = resblock(dropout(conv_transpose2d(d1, P["dconv2"], pre_act="relu")), P["dblock2"])
    d2 = cat(d2_, e6)
    d3_ = resblock(dropout(conv_transpose2d(d2, P["dconv3"], pre_act="relu")), P["dblock3"])
    d3 = cat(d3_, e5)
    d4_ = resblock(conv_transpose2d(d3, P["dconv4"], pre_act="relu"), P["dblock4"])
    d4 = cat(d4_, e4)
    d5_ = resblock(conv_transpose2d(d4, P["dconv5"], pre_act="relu"), P["dblock5"])
    d5 = cat(d5_, e3)
    d6_ = resblock(conv_transpose2d(d5, P["dconv6"], pre_act="relu"), P["dblock6"])
    d6 = cat(d6_, e2)
    d7_ = resblock(conv_transpose2d(d6, P["dconv7"], pre_act="relu"), P["dblock7"])
    d7 = cat(d7_, e1)
    # tanh fused into the final ResBlock's second conv kernel (applied after residual)
    out = resblock(conv_transpose2d(d7, P["dconv8"], pre_act="relu"),
                   P["dblock8"], final_act="tanh", out_dtype=jnp.float32)

    return jnp.transpose(out, (0, 3, 1, 2))  # NHWC -> NCHW


# ----------------------------------------------------------------------------
if __name__ == "__main__":
    key = jax.random.PRNGKey(0)
    k1, k2, k3, k_param, k_input = jax.random.split(key, 5)

    # --- tiny self-check of the K-tiled matmul path (not hit at ngf=8) ---
    Mt, Kt, Ct = 256, 18432, 256
    xt = jax.random.normal(k1, (Mt, Kt), jnp.float32) * 0.05
    wt = jax.random.normal(k2, (Kt, Ct), jnp.float32) * 0.05
    bt = jax.random.normal(k3, (Ct,), jnp.float32)
    yt = pallas_matmul(xt, wt, bt, out_dtype=jnp.float32)
    ref = jnp.dot(xt.astype(jnp.bfloat16).astype(jnp.float32),
                  wt.astype(jnp.bfloat16).astype(jnp.float32)) + bt
    assert bool(jnp.allclose(yt, ref, rtol=2e-2, atol=2e-2))

    # --- full generator forward ---
    input_nc, output_nc, ngf = 3, 3, 8
    N, H, W = 1, 256, 256   # 8 stride-2 downsamplings require >= 256 spatial

    params = init_params(k_param, input_nc, output_nc, ngf)
    x = jax.random.normal(k_input, (N, input_nc, H, W), jnp.float32)

    fwd = jax.jit(functools.partial(generator_forward, P=params))
    y = jax.block_until_ready(fwd(x))

    assert y.shape == (N, output_nc, H, W), y.shape
    assert bool(jnp.all(jnp.isfinite(y)))
    assert bool(jnp.all(jnp.abs(y) <= 1.0))  # tanh output range
    print("KERNEL_OK")
</pallas_src>

<mosaic_0001>
module attributes {stable_mosaic.version = 11 : i64} {
  func.func @kernel(%arg0: i32, %arg1: i32, %arg2: memref<128x9216xbf16, #tpu.memory_space<vmem>>, %arg3: memref<9216x256xbf16, #tpu.memory_space<vmem>>, %arg4: memref<1x256xf32, #tpu.memory_space<vmem>>, %arg5: memref<128x256xf32, #tpu.memory_space<vmem>>, %arg6: memref<128x256xf32, #tpu.memory_space<vmem>>) attributes {dimension_semantics = [#tpu.dimension_semantics<parallel>, #tpu.dimension_semantics<arbitrary>], iteration_bounds = array<i64: 2, 2>, scalar_prefetch = 0 : i64, scratch_operands = 1 : i64, tpu.core_type = #tpu.core_type<tc>, window_params = [{transform_indices = @transform_0, window_bounds = array<i64: 128, 9216>}, {transform_indices = @transform_1, window_bounds = array<i64: 9216, 256>}, {pipeline_mode = #tpu.pipeline_mode<synchronous>, transform_indices = @transform_2, window_bounds = array<i64: 1, 256>}, {transform_indices = @transform_3, window_bounds = array<i64: 128, 256>}]} {
    %c0_i32 = arith.constant 0 : i32
    %0 = arith.cmpi eq, %arg1, %c0_i32 : i32
    %1 = arith.extui %0 : i1 to i32
    %c0_i32_0 = arith.constant 0 : i32
    %2 = arith.cmpi ne, %1, %c0_i32_0 : i32
    scf.if %2 {
      %cst_9 = arith.constant 0.000000e+00 : f32
      %12 = vector.broadcast %cst_9 : f32 to vector<128x256xf32>
      %c0_10 = arith.constant 0 : index
      %c0_11 = arith.constant 0 : index
      %13 = vector.load %arg6[%c0_10, %c0_11] : memref<128x256xf32, #tpu.memory_space<vmem>>, vector<128x256xf32>
      tpu.vector_store %arg6[%c0_10, %c0_11], %12 {strides = array<i32>} : memref<128x256xf32, #tpu.memory_space<vmem>>, vector<128x256xf32>,
    } else {
    }
    %c0 = arith.constant 0 : index
    %c0_1 = arith.constant 0 : index
    %3 = vector.load %arg6[%c0, %c0_1] : memref<128x256xf32, #tpu.memory_space<vmem>>, vector<128x256xf32>
    %c0_2 = arith.constant 0 : index
    %c0_3 = arith.constant 0 : index
    %4 = vector.load %arg2[%c0_2, %c0_3] : memref<128x9216xbf16, #tpu.memory_space<vmem>>, vector<128x9216xbf16>
    %c0_4 = arith.constant 0 : index
    %c0_5 = arith.constant 0 : index
    %5 = vector.load %arg3[%c0_4, %c0_5] : memref<9216x256xbf16, #tpu.memory_space<vmem>>, vector<9216x256xbf16>
    %cst = arith.constant dense<0.000000e+00> : vector<128x256xf32>
    %6 = tpu.matmul %4, %5, %cst {dimension_numbers = #tpu.dot_dimension_numbers<[1], [0], [0], [1], [0, 0, 1, 1], [], []>} : vector<128x9216xbf16>, vector<9216x256xbf16>, vector<128x256xf32> -> vector<128x256xf32>
    %7 = arith.addf %3, %6 : vector<128x256xf32>
    %c0_6 = arith.constant 0 : index
    %c0_7 = arith.constant 0 : index
    %8 = vector.load %arg6[%c0_6, %c0_7] : memref<128x256xf32, #tpu.memory_space<vmem>>, vector<128x256xf32>
    tpu.vector_store %arg6[%c0_6, %c0_7], %7 {strides = array<i32>} : memref<128x256xf32, #tpu.memory_space<vmem>>, vector<128x256xf32>,
    %c1_i32 = arith.constant 1 : i32
    %9 = arith.cmpi eq, %arg1, %c1_i32 : i32
    %10 = arith.extui %9 : i1 to i32
    %c0_i32_8 = arith.constant 0 : i32
    %11 = arith.cmpi ne, %10, %c0_i32_8 : i32
    scf.if %11 {
      %c0_9 = arith.constant 0 : index
      %c0_10 = arith.constant 0 : index
      %12 = vector.load %arg6[%c0_9, %c0_10] : memref<128x256xf32, #tpu.memory_space<vmem>>, vector<128x256xf32>
      %c0_11 = arith.constant 0 : index
      %c0_12 = arith.constant 0 : index
      %13 = vector.load %arg4[%c0_11, %c0_12] : memref<1x256xf32, #tpu.memory_space<vmem>>, vector<1x256xf32>
      %14 = vector.broadcast %13 : vector<1x256xf32> to vector<128x256xf32>
      %15 = arith.addf %12, %14 : vector<128x256xf32>
      %c0_13 = arith.constant 0 : index
      %c0_14 = arith.constant 0 : index
      %16 = vector.load %arg5[%c0_13, %c0_14] : memref<128x256xf32, #tpu.memory_space<vmem>>, vector<128x256xf32>
      tpu.vector_store %arg5[%c0_13, %c0_14], %15 {strides = array<i32>} : memref<128x256xf32, #tpu.memory_space<vmem>>, vector<128x256xf32>,
    } else {
    }
    return
  }
  func.func @transform_0(%arg0: i32, %arg1: i32) -> (i32, i32) {
    %c0_i32 = arith.constant 0 : i32
    return %arg0, %arg1 : i32, i32
  }
  func.func @transform_1(%arg0: i32, %arg1: i32) -> (i32, i32) {
    %c0_i32 = arith.constant 0 : i32
    %c0_i32_0 = arith.constant 0 : i32
    return %arg1, %c0_i32 : i32, i32
  }
  func.func @transform_2(%arg0: i32, %arg1: i32) -> (i32, i32) {
    %c0_i32 = arith.constant 0 : i32
    %c0_i32_0 = arith.constant 0 : i32
    %c0_i32_1 = arith.constant 0 : i32
    return %c0_i32, %c0_i32_0 : i32, i32
  }
  func.func @transform_3(%arg0: i32, %arg1: i32) -> (i32, i32) {
    %c0_i32 = arith.constant 0 : i32
    %c0_i32_0 = arith.constant 0 : i32
    return %arg0, %c0_i32 : i32, i32
  }
}

</mosaic_0001>

<bundles_post_ra>
// kernel: tpu_custom_call.1
= control target key start
LH: loop header
LB: loop body
LE: loop exit
PB: predicated region body
PF: predicated region fallthrough
CT: control target
= control target key end

     0   :  { %s22282_s0 = inlined_call_operand.hbm [shape: bf16[256,18432], index: 0, kind: input, shape index: {}]   ;;  %s22283_s1 = inlined_call_operand.hbm [shape: bf16[18432,256], index: 1, kind: input, shape index: {}]   ;;  %s22284_s2 = inlined_call_operand.hbm [shape: f32[1,256], index: 2, kind: input, shape index: {}]   ;;  %s22285_s3 = inlined_call_operand.hbm [shape: f32[256,256], index: 3, kind: output, shape index: {}]  }
   0x1   :  { %22305 = sst [smem:[#allocation25_spill]] %s22282_s0 }
   0x2   :  { %22306 = sst [smem:[#allocation26_spill]] %s22284_s2 }
   0x3   :  { %22307 = sst [smem:[#allocation27_spill]] %s22285_s3 }
   0x4   :  { %8 = vsyncpa [#allocation4], 0 }
   0x5   :  { %10 = vsyncpa [#allocation4 + $0x1], 0 }
   0x6   :  { %11 = vsyncpa [#allocation7], 0 }
   0x7   :  { %13 = vsyncpa [#allocation7 + $0x1], 0 }
   0x8   :  { %14 = vsyncpa [#allocation5], 0 }
   0x9   :  { %16 = vsyncpa [#allocation5 + $0x1], 0  ;;  %s20110_s12 = smov 0   ;;  %s20112_s13 = smov 0  }
   0xa   :  { %s20114_s14 = smov 0   ;;  %s20116_s15 = smov 0  }
   0xb   :  { %s20118_s16 = smov 0   ;;  %s20120_s17 = smov 0  }
   0xc   :  { %s20122_s18 = smov 0   ;;  %s20124_s19 = smov 0  }
   0xd   :  { %s20126_s20 = smov 0   ;;  %s20128_s21 = smov 0  }
   0xe   :  { %s20130_s22 = smov 0   ;;  %s20132_s23 = smov 0  }
   0xf   :  { %s20134_s24 = smov 0   ;;  %s20136_s25 = smov 0  }
  0x10 LB: > { %22308 = sst [smem:[#allocation14_spill]] %s20024_s12  ;;  %s20177_s26 = sadd.s32 4294967295, %s20076_s25   ;;  %s20076_s25 = sphi %s20136_s25, %s22_s25   ;;  %s20072_s24 = sphi %s20134_s24, %s22373_s24   ;;  %s20068_s23 = sphi %s20132_s23, %s22372_s23   ;;  %s20064_s22 = sphi %s20130_s22, %s22371_s22   ;;  %s20060_s21 = sphi %s20128_s21, %s22370_s21   ;;  %s20056_s20 = sphi %s20126_s20, %s22369_s20   ;;  %s20052_s19 = sphi %s20124_s19, %s22368_s19   ;;  %s20048_s18 = sphi %s20122_s18, %s22367_s18   ;;  %s20044_s17 = sphi %s20120_s17, %s22366_s17   ;;  %s20040_s16 = sphi %s20118_s16, %s22365_s16   ;;  %s20036_s15 = sphi %s20116_s15, %s22359_s15   ;;  %s20032_s14 = sphi %s20114_s14, %s22364_s14   ;;  %s20028_s13 = sphi %s20112_s13, %s22363_s13   ;;  %s20024_s12 = sphi %s20110_s12, %s22357_s12  }
  0x11   : > { %22309 = sst [smem:[#allocation15_spill]] %s20028_s13  ;;  %s15078_s27 = sadd.s32 4294967294, %s20076_s25  }
  0x12   : > { %22310 = sst [smem:[#allocation16_spill]] %s20040_s16  ;;  %p50_p0 = scmp.ne.s32.totalorder %s20056_s20, %s20052_s19 }
  0x13   : > { %22311 = sst [smem:[#allocation17_spill]] %s20060_s21  ;;  %p51_p1 = scmp.eq.s32.totalorder %s20076_s25, 0 }
  0x14   : > { %22312 = sst [smem:[#allocation18_spill]] %s20064_s22  ;;  %p56_p2 = scmp.ne.s32.totalorder %s20052_s19, %s20048_s18 }
  0x15   : > { %p22286_p3 = scmp.eq.s32.totalorder %s20177_s26, 0  ;;  %p20187_p4 = por %p51_p1, %p50_p0 }
  0x16   : > { %p76_p5 = scmp.ne.s32.totalorder %s20044_s17, %s20040_s16  ;;  %p82_p7 = scmp.ne.s32.totalorder %s20040_s16, %s20036_s15 }
  0x17   : > { %p20195_p6 = por %p22286_p3, %p56_p2  ;;  %p126_p10 = scmp.ne.s32.totalorder %s20032_s14, %s20028_s13 }
  0x18   : > { %p20200_p8 = por %p76_p5, %p51_p1  ;;  %p20207_p9 = por %p82_p7, %p22286_p3 }
  0x19   : > { %s22314_s4 = scalar_select %p20195_p6, 1, 0 }
  0x1a   : > { %s22316_s7 = scalar_select %p20207_p9, 1, 0 }
  0x1b   : > { %p127_p11 = scmp.eq.s32.totalorder %s20177_s26, 3  ;;  %p132_p12 = scmp.ne.s32.totalorder %s20028_s13, %s20024_s12 }
  0x1c   : > { %22317 = sst [smem:[#allocation19_spill]] %s22316_s7  ;;  %p133_p13 = scmp.eq.s32.totalorder %s15078_s27, 3 }
  0x1d   : > { %p15079_p0 = scmp.ge.s32.totalorder %s20076_s25, 1  ;;  %p20217_p2 = por %p127_p11, %p126_p10 }
  0x1e   : > { %p140_p1 = scmp.lt.s32.totalorder %s20076_s25, 5  ;;  %p20222_p5 = por %p133_p13, %p132_p12 }
  0x1f   : > { %s22318_s8 = scalar_select %p20217_p2, 1, 0 }
  0x20   : > { %s22320_s9 = scalar_select %p20222_p5, 1, 0 }
  0x21   : > { %22319 = sst [smem:[#allocation20_spill]] %s22318_s8  ;;  %p20226_p7 = pnand %p15079_p0, %p140_p1 }
  0x22   : > { %22321 = sst [smem:[#allocation21_spill]] %s22320_s9  ;;  %s20078_s11 = smov [#allocation8]  }
  0x23   : > { %s22322_s10 = scalar_select %p20226_p7, 1, 0 }
  0x24   : > { %s153_s15 = sshll.u32 %s20078_s11, 4  ;;  %p17966_p3 = pneg %p20226_p7  ;;  %s154_s15 = int_to_ptr.vmem [resolvable:$true] %s153_s15 }
  0x25   : > { %p17982_p9 = scmp.lt.s32.totalorder %s20076_s25, 4  ;;  %p22323_p10 = scmp.eq.s32.totalorder %s20177_s26, 0 }
  0x26   : > { %s22327_s2 = sld [smem:[#allocation26_spill]] }
  0x27   : > { %p20235_p11 = pnand %p17966_p3, %p22323_p10  ;;  %p20241_p12 = pnand %p17982_p9, %p20187_p4 }
  0x28   : > { %p20247_p13 = pnand %p17982_p9, %p20200_p8 }
  0x29   : > { %s22325_s27 = scalar_select %p20241_p12, 1, 0 }
  0x2a   : > { %s22326_s28 = scalar_select %p20247_p13, 1, 0 }
  0x2b   : > { %p19836_p0 = pneg %p20235_p11 }
  0x2c   : > { %s19834_s29 = scalar_lea.hbm %s22327_s2, 32 }
  0x2d   : > { %p19835_p3 = scmp.ne.s32.totalorder %s22327_s2, %s19834_s29  ;;  %p19841_p10 = scmp.lt.u32.totalorder %s19834_s29, %s22327_s2 }
  0x2f   : > { %p19837_p1 = pnand %p19836_p0, %p19835_p3 }
  0x31   : > { %p19838_p4 = pneg %p19837_p1 }
  0x33   : > { %p19843_p8 = pnand %p19841_p10, %p19838_p4 }
  0x35   : > { %19846 = shalt.err (!%p19843_p8)
}
  0x36   : > { %s19847_s5 = scalar_lea.vmem %s154_s15, 32  ;;  %p19855_p6 = scmp.lt.s32.totalorder %s154_s15, %s154_s15 }
  0x37   : > { %p19848_p9 = scmp.ne.s32.totalorder %s154_s15, %s19847_s5  ;;  %p19856_p7 = scmp.lt.s32.totalorder %s19847_s5, %s19847_s5 }
  0x39   : > { %p19850_p5 = pnand %p19848_p9, %p19836_p0  ;;  %p19857_p13 = por %p19856_p7, %p19855_p6 }
  0x3b   : > { %p19851_p2 = pneg %p19850_p5 }
  0x3d   : > { %p19858_p12 = pnand %p19857_p13, %p19851_p2 }
  0x3f   : > { %19861 = shalt.err (!%p19858_p12)
}
  0x40   : > { %17969 = dma.hbm_to_vmem [thread:$0]  (!%p20235_p11), %s22327_s2, 32, %s154_s15, [#allocation7]  }
  0x41   : > { %s34_s3 = sadd.s32 1, %s20072_s24  ;;  %s31_s29 = sadd.s32 1, %s20068_s23 }
  0x42   : > { %s164_s9 = sand.u32 1, %s20056_s20   ;;  %p32_p6 = scmp.ge.s32.totalorder %s31_s29, 2 }
  0x43   : > { %s17951_s11 = smul.u32 4608, %s164_s9  ;;  %s22330_s12 = sadd.s32 1, %s20044_s17 }
  0x44   : > { %s22375_s29 = smov (%p32_p6, %s31_s29), 0  ;;  %s22377_s3 = smov (!%p32_p6, %s34_s3), %s20072_s24 }
  0x45   : > { %22328 = sst [smem:[#allocation22_spill]] %s22375_s29  ;;  %s39_s18 = ssub.s32 %s20068_s23, %s22375_s29 }
  0x46   : > { %p36_p2 = scmp.ge.s32.totalorder %s22377_s3, 2  ;;  %p67_p5 = scmp.eq.s32.totalorder %s39_s18, 0 }
  0x47   : > { %s170_s30 = smul.u32 72, %s20068_s23  ;;  %s168_s15 = scalar_lea.vmem [#allocation3], %s17951_s11 }
  0x48   : > { %s178_s5 = sshll.u32 %s168_s15, 4  ;;  %s22379_s3 = smov (%p36_p2, %s22377_s3), 0  ;;  %s20296_s5 = int_to_ptr.vmem [resolvable:$true] %s178_s5 }
  0x49   : > { %22329 = sst [smem:[#allocation23_spill]] %s22379_s3  ;;  %s38_s2 = ssub.s32 %s20072_s24, %s22379_s3 }
  0x4a   : > { %s20281_s6 = scalar_select %p67_p5, %s20044_s17, %s22330_s12  }
  0x4b   : > { %s17952_s8 = smul.u32 2304, %s20072_s24  ;;  %s40_s22 = sor.u32 %s39_s18, %s38_s2 }
  0x4c   : > { %22331 = sst [smem:[#allocation24_spill]] %s20281_s6  ;;  %p114_p7 = scmp.eq.s32.totalorder %s38_s2, 0 }
  0x4d   : > { %p41_p11 = scmp.eq.s32.totalorder %s40_s22, 0  ;;  %s175_s29 = sadd.s32 %s17952_s8, %s170_s30 }
  0x4e   : > { %s22332_s21 = sadd.s32 1, %s20032_s14  ;;  %s22333_s7 = sadd.s32 1, %s20056_s20 }
  0x4f   : > { %s20289_s13 = scalar_select %p114_p7, %s20032_s14, %s22332_s21  }
  0x50   : > { %s20294_s11 = scalar_select %p41_p11, %s20056_s20, %s22333_s7  }
  0x51   : > { %s15084_s15 = sshll.u32 %s175_s29, 6  ;;  %s22334_s0 = sld [smem:[#allocation25_spill]] }
  0x52   : > { %s20304_s22 = scalar_lea.sflag [#allocation4], %s164_s9  ;;  %p22335_p13 = scmp.ne.s32.totalorder %s22325_s27, 0 }
  0x54   : > { %p19864_p3 = pneg %p22335_p13 }
  0x57   : > { %s20301_s6 = scalar_lea.hbm %s22334_s0, %s15084_s15  ;;  %s19867_s16 = scalar_lea.hbm %s22334_s0, 294912 }
  0x58   : > { %s19862_s21 = scalar_lea.hbm %s20301_s6, 73728  ;;  %p19868_p4 = scmp.lt.u32.totalorder %s20301_s6, %s22334_s0 }
  0x59   : > { %p19863_p12 = scmp.ne.s32.totalorder %s20301_s6, %s19862_s21  ;;  %p19869_p10 = scmp.lt.u32.totalorder %s19867_s16, %s19862_s21 }
  0x5a   : > { %p19871_p9 = scmp.lt.u32.totalorder %s19862_s21, %s20301_s6 }
  0x5b   : > { %p19865_p0 = pnand %p19864_p3, %p19863_p12  ;;  %p19870_p8 = por %p19869_p10, %p19868_p4 }
  0x5d   : > { %p19866_p1 = pneg %p19865_p0  ;;  %p19872_p6 = por %p19871_p9, %p19870_p8 }
  0x5f   : > { %p19873_p2 = pnand %p19872_p6, %p19866_p1 }
  0x61   : > { %19876 = shalt.err (!%p19873_p2)
}
  0x62   : > { %s19877_s9 = scalar_lea.vmem %s20296_s5, 73728  ;;  %s20079_s30 = smov [#allocation3]  }
  0x63   : > { %p19878_p5 = scmp.ne.s32.totalorder %s20296_s5, %s19877_s9  ;;  %s19882_s15 = sshll.u32 %s20079_s30, 4  ;;  %s19883_s15 = int_to_ptr.vmem [resolvable:$false] %s19882_s15 }
  0x64   : > { %s19884_s12 = scalar_lea.vmem %s19883_s15, 147456  ;;  %p19885_p12 = scmp.lt.s32.totalorder %s20296_s5, %s19883_s15 }
  0x65   : > { %p19880_p7 = pnand %p19878_p5, %p19864_p3  ;;  %p19886_p0 = scmp.lt.s32.totalorder %s19884_s12, %s19877_s9 }
  0x67   : > { %p19881_p11 = pneg %p19880_p7  ;;  %p19887_p4 = por %p19886_p0, %p19885_p12 }
  0x69   : > { %p19888_p10 = pnand %p19887_p4, %p19881_p11 }
  0x6b   : > { %19891 = shalt.err (!%p19888_p10)
}
  0x6c   : > { %s20080_s21 = smov 9216   ;;  %s20081_s7 = smov 4608  }
  0x6d   : > { %s20082_s8 = smov 288   ;;  %s190_s16 = sand.u32 1, %s20044_s17  }
  0x6e   : > { %17973 = dma.hbm_to_vmem [thread:$0]  (!%p22335_p13), %s20301_s6, 73728, %s20296_s5, %s20304_s22, %s20080_s21, %s20081_s7, %s20082_s8  }
  0x6f   : > { %s17953_s29 = smul.u32 9216, %s190_s16  ;;  %s22336_s0 = sand.u32 1, %s20076_s25  }
  0x70   : > { %s16830_s18 = smul.u32 147456, %s20068_s23  ;;  %s20343_s3 = scalar_lea.sflag [#allocation7], %s22336_s0 }
  0x71   : > { %s192_s12 = scalar_lea.vmem [#allocation6], %s17953_s29  ;;  %p22337_p3 = scmp.ne.s32.totalorder %s22326_s28, 0 }
  0x72   : > { %s20337_s15 = scalar_lea.hbm %s22283_s1, %s16830_s18  ;;  %s200_s2 = sshll.u32 %s192_s12, 4  ;;  %s20339_s2 = int_to_ptr.vmem [resolvable:$true] %s200_s2 }
  0x73   : > { %s19892_s27 = scalar_lea.hbm %s20337_s15, 147456  ;;  %p19894_p1 = pneg %p22337_p3 }
  0x74   : > { %p19893_p13 = scmp.ne.s32.totalorder %s20337_s15, %s19892_s27  ;;  %s19897_s22 = scalar_lea.hbm %s22283_s1, 294912 }
  0x75   : > { %p19898_p6 = scmp.lt.u32.totalorder %s20337_s15, %s22283_s1  ;;  %p19899_p2 = scmp.lt.u32.totalorder %s19897_s22, %s19892_s27 }
  0x76   : > { %p19895_p8 = pnand %p19894_p1, %p19893_p13  ;;  %p19901_p7 = scmp.lt.u32.totalorder %s19892_s27, %s20337_s15 }
  0x77   : > { %p19900_p5 = por %p19899_p2, %p19898_p6 }
  0x78   : > { %p19896_p9 = pneg %p19895_p8 }
  0x79   : > { %p19902_p11 = por %p19901_p7, %p19900_p5 }
  0x7b   : > { %p19903_p12 = pnand %p19902_p11, %p19896_p9 }
  0x7d   : > { %19906 = shalt.err (!%p19903_p12)
}
  0x7e   : > { %s19907_s0 = scalar_lea.vmem %s20339_s2, 147456  ;;  %s20083_s8 = smov [#allocation6]  }
  0x7f   : > { %p19908_p0 = scmp.ne.s32.totalorder %s20339_s2, %s19907_s0  ;;  %s19912_s16 = sshll.u32 %s20083_s8, 4  ;;  %s19913_s16 = int_to_ptr.vmem [resolvable:$false] %s19912_s16 }
  0x80   : > { %s19914_s29 = scalar_lea.vmem %s19913_s16, 294912  ;;  %p19915_p13 = scmp.lt.s32.totalorder %s20339_s2, %s19913_s16 }
  0x81   : > { %p19910_p4 = pnand %p19908_p0, %p19894_p1  ;;  %p19916_p8 = scmp.lt.s32.totalorder %s19914_s29, %s19907_s0 }
  0x83   : > { %p19911_p10 = pneg %p19910_p4  ;;  %p19917_p6 = por %p19916_p8, %p19915_p13 }
  0x85   : > { %p19918_p2 = pnand %p19917_p6, %p19911_p10 }
  0x87   : > { %19921 = shalt.err (!%p19918_p2)
}
  0x88   : > { %s20084_s18 = smov 128   ;;  %s20085_s9 = smov 8  }
  0x89   : > { %17976 = dma.hbm_to_vmem [thread:$0]  (!%p22337_p3), %s20337_s15, 147456, %s20339_s2, %s20343_s3, %s20084_s18, %s20084_s18, %s20085_s9  }
  0x8a   : > { %p22338_p1 = scmp.ne.s32.totalorder %s22322_s10, 0 }
  0x8b   : > { %s214_s30 = sand.u32 (!%p22338_p1), 1, %s20052_s19   ;;  %p22339_p9 = scmp.ne.s32.totalorder (!%p22338_p1), %s22314_s4, 0 }
  0x8c   : > { %212 = sbr.rel (%p22338_p1) target bundleno = 1654 (0x676), region = 32  ;;  %s215_s27 = scalar_lea.sflag (!%p22338_p1), [#allocation4], %s214_s30 }
  0x8d   : > { %s17954_s12 = smul.u32 (!%p22338_p1), 4608, %s214_s30 }
  0x8f   : > { %s20374_s5 = scalar_lea.vmem (!%p22338_p1), [#allocation3], %s17954_s12 }
  0x93   : > { %20007 = dma.done.wait (%p22339_p9), %s215_s27, 73728  }
  0x94   : > { %20009 = vsyncadd (%p22339_p9), %s215_s27, 4294893568  ;;  %s22340_s6 = sld [smem:[#allocation16_spill]]  ;;  %s22341_s22 = sld [smem:[#allocation19_spill]] }
  0x95   : > { %s223_s28 = sand.u32 1, %s20177_s26  }
  0x96   : > { %s224_s10 = scalar_lea.sflag [#allocation7], %s223_s28 }
  0x9a   : > { %s225_s3 = sand.u32 1, %s22340_s6   ;;  %p22342_p3 = scmp.ne.s32.totalorder %s22341_s22, 0 }
  0x9b   : > { %s17955_s2 = smul.u32 9216, %s225_s3 }
  0x9d   : > { %s20382_s15 = scalar_lea.vmem [#allocation6], %s17955_s2 }
  0x9e   : > { %20011 = dma.done.wait (%p22342_p3), %s224_s10, 147456  }
  0x9f   : > { %20013 = vsyncadd (%p22342_p3), %s224_s10, 4294819840  ;;  %p22343_p5 = scmp.eq.s32.totalorder %s20177_s26, 0 }
  0xa1   : > { %20015 = dma.done.wait (%p22343_p5), [#allocation7], 32   ;;  %p22344_p7 = pmov %p22343_p5 }
  0xa2   : > { %s22345_s4 = sld [smem:[#allocation15_spill]]  ;;  %s22346_s8 = sld [smem:[#allocation17_spill]] }
  0xa3   : > { %20017 = vsyncadd (%p22344_p7), [#allocation7], 4294967264 }
  0xa8   : > { %s256_s21 = sand.u32 1, %s22345_s4   ;;  %p15090_p11 = scmp.ne.s32.totalorder %s22346_s8, 0 }
  0xa9   : > { %s15089_s7 = sshll.u32 %s256_s21, 8  ;;  %v20086_v0 = vmov (!%p15090_p11), 0.0  }
  0xaa   : > { %s20395_s0 = scalar_lea.vmem [#allocation9], %s15089_s7  ;;  %266 = sbr.rel (%p15090_p11) target bundleno = 186 (0xba), region = 48  ;;  %267 = vst [vmem:[#allocation2] sm:$0xff] (!%p15090_p11), %v20086_v0  ;;  %268 = vst [vmem:[#allocation2 + $0x8] sm:$0xff] (!%p15090_p11), %v20086_v0 }
  0xab   : > { %269 = vst [vmem:[#allocation2 + $0x10] sm:$0xff] (!%p15090_p11), %v20086_v0  ;;  %270 = vst [vmem:[#allocation2 + $0x18] sm:$0xff] (!%p15090_p11), %v20086_v0 }
  0xac   : > { %271 = vst [vmem:[#allocation2 + $0x20] sm:$0xff] (!%p15090_p11), %v20086_v0  ;;  %272 = vst [vmem:[#allocation2 + $0x28] sm:$0xff] (!%p15090_p11), %v20086_v0 }
  0xad   : > { %273 = vst [vmem:[#allocation2 + $0x30] sm:$0xff] (!%p15090_p11), %v20086_v0  ;;  %274 = vst [vmem:[#allocation2 + $0x38] sm:$0xff] (!%p15090_p11), %v20086_v0 }
  0xae   : > { %275 = vst [vmem:[#allocation2 + $0x40] sm:$0xff] (!%p15090_p11), %v20086_v0  ;;  %276 = vst [vmem:[#allocation2 + $0x48] sm:$0xff] (!%p15090_p11), %v20086_v0 }
  0xaf   : > { %277 = vst [vmem:[#allocation2 + $0x50] sm:$0xff] (!%p15090_p11), %v20086_v0  ;;  %278 = vst [vmem:[#allocation2 + $0x58] sm:$0xff] (!%p15090_p11), %v20086_v0 }
  0xb0   : > { %279 = vst [vmem:[#allocation2 + $0x60] sm:$0xff] (!%p15090_p11), %v20086_v0  ;;  %280 = vst [vmem:[#allocation2 + $0x68] sm:$0xff] (!%p15090_p11), %v20086_v0 }
  0xb1   : > { %281 = vst [vmem:[#allocation2 + $0x70] sm:$0xff] %v20086_v0  ;;  %282 = vst [vmem:[#allocation2 + $0x78] sm:$0xff] %v20086_v0 }
  0xb2   : > { %283 = vst [vmem:[#allocation2 + $0x80] sm:$0xff] %v20086_v0  ;;  %284 = vst [vmem:[#allocation2 + $0x88] sm:$0xff] %v20086_v0 }
  0xb3   : > { %285 = vst [vmem:[#allocation2 + $0x90] sm:$0xff] %v20086_v0  ;;  %286 = vst [vmem:[#allocation2 + $0x98] sm:$0xff] %v20086_v0 }
  0xb4   : > { %287 = vst [vmem:[#allocation2 + $0xa0] sm:$0xff] %v20086_v0  ;;  %288 = vst [vmem:[#allocation2 + $0xa8] sm:$0xff] %v20086_v0 }
  0xb5   : > { %289 = vst [vmem:[#allocation2 + $0xb0] sm:$0xff] %v20086_v0  ;;  %290 = vst [vmem:[#allocation2 + $0xb8] sm:$0xff] %v20086_v0 }
  0xb6   : > { %291 = vst [vmem:[#allocation2 + $0xc0] sm:$0xff] %v20086_v0  ;;  %292 = vst [vmem:[#allocation2 + $0xc8] sm:$0xff] %v20086_v0 }
  0xb7   : > { %293 = vst [vmem:[#allocation2 + $0xd0] sm:$0xff] %v20086_v0  ;;  %294 = vst [vmem:[#allocation2 + $0xd8] sm:$0xff] %v20086_v0 }
  0xb8   : > { %295 = vst [vmem:[#allocation2 + $0xe0] sm:$0xff] %v20086_v0  ;;  %296 = vst [vmem:[#allocation2 + $0xe8] sm:$0xff] %v20086_v0 }
  0xb9   : > { %297 = vst [vmem:[#allocation2 + $0xf0] sm:$0xff] %v20086_v0  ;;  %298 = vst [vmem:[#allocation2 + $0xf8] sm:$0xff] %v20086_v0 }
  0xba PF: > { %v18106_v1 = vld [vmem:[%s20382_s15 + $0x4] ss:$8 sps:$4 sm:$0xff]   ;;  %v18110_v3 = vld [vmem:[%s20382_s15] ss:$8 sps:$4 sm:$0xff]   ;;  %v18112_v5 = vld [vmem:[%s20382_s15 + $0x14] ss:$8 sps:$4 sm:$0xff]  }
  0xbb   : > { %v18108_v2 = vld [vmem:[%s20382_s15 + $0x1204] ss:$8 sps:$4 sm:$0xff]   ;;  %10699 = vmatprep.subr.bf16.mxu1 %v18106_v1  ;;  %v18111_v4 = vld [vmem:[%s20382_s15 + $0x1200] ss:$8 sps:$4 sm:$0xff]   ;;  %v18114_v6 = vld [vmem:[%s20382_s15 + $0x1214] ss:$8 sps:$4 sm:$0xff]  }
  0xbc   : > { %12733 = vmatprep.subr.bf16.mxu0 %v18108_v2  ;;  %10700 = vmatpush1.bf16.msra.mxu1 %v18110_v3  ;;  %v18116_v7 = vld [vmem:[%s20382_s15 + $0x10] ss:$8 sps:$4 sm:$0xff]   ;;  %v18118_v9 = vld [vmem:[%s20382_s15 + $0x24] ss:$8 sps:$4 sm:$0xff]   ;;  %v18122_v11 = vld [vmem:[%s20382_s15 + $0x20] ss:$8 sps:$4 sm:$0xff]  }
  0xbd   : > { %12734 = vmatpush1.bf16.msra.mxu0 %v18111_v4  ;;  %10701 = vmatprep.subr.bf16.mxu1 %v18112_v5  ;;  %v18117_v8 = vld [vmem:[%s20382_s15 + $0x1210] ss:$8 sps:$4 sm:$0xff]   ;;  %v18120_v10 = vld [vmem:[%s20382_s15 + $0x1224] ss:$8 sps:$4 sm:$0xff]   ;;  %v18123_v12 = vld [vmem:[%s20382_s15 + $0x1220] ss:$8 sps:$4 sm:$0xff]  }
  0xbe   : > { %12735 = vmatprep.subr.bf16.mxu0 %v18114_v6  ;;  %v18124_v13 = vld [vmem:[%s20382_s15 + $0x34] ss:$8 sps:$4 sm:$0xff]   ;;  %v18128_v15 = vld [vmem:[%s20382_s15 + $0x30] ss:$8 sps:$4 sm:$0xff]   ;;  %v18130_v17 = vld [vmem:[%s20382_s15 + $0x44] ss:$8 sps:$4 sm:$0xff]  }
  0xbf   : > { %v18126_v14 = vld [vmem:[%s20382_s15 + $0x1234] ss:$8 sps:$4 sm:$0xff]   ;;  %v18129_v16 = vld [vmem:[%s20382_s15 + $0x1230] ss:$8 sps:$4 sm:$0xff]   ;;  %v18132_v18 = vld [vmem:[%s20382_s15 + $0x1244] ss:$8 sps:$4 sm:$0xff]  }
  0xc0   : > { %10702 = vmatpush1.bf16.msra.mxu1 %v18116_v7  ;;  %v18134_v19 = vld [vmem:[%s20382_s15 + $0x40] ss:$8 sps:$4 sm:$0xff]   ;;  %v18136_v21 = vld [vmem:[%s20382_s15 + $0x54] ss:$8 sps:$4 sm:$0xff]   ;;  %v18140_v23 = vld [vmem:[%s20382_s15 + $0x50] ss:$8 sps:$4 sm:$0xff]  }
  0xc1   : > { %12736 = vmatpush1.bf16.msra.mxu0 %v18117_v8  ;;  %10703 = vmatprep.subr.bf16.mxu1 %v18118_v9  ;;  %v18135_v20 = vld [vmem:[%s20382_s15 + $0x1240] ss:$8 sps:$4 sm:$0xff]   ;;  %v18138_v22 = vld [vmem:[%s20382_s15 + $0x1254] ss:$8 sps:$4 sm:$0xff]   ;;  %v18141_v24 = vld [vmem:[%s20382_s15 + $0x1250] ss:$8 sps:$4 sm:$0xff]  }
  0xc2   : > { %12737 = vmatprep.subr.bf16.mxu0 %v18120_v10  ;;  %v18142_v25 = vld [vmem:[%s20382_s15 + $0x64] ss:$8 sps:$4 sm:$0xff]   ;;  %v18146_v27 = vld [vmem:[%s20382_s15 + $0x60] ss:$8 sps:$4 sm:$0xff]   ;;  %v18148_v29 = vld [vmem:[%s20382_s15 + $0x74] ss:$8 sps:$4 sm:$0xff]  }
  0xc3   : > { %v18144_v26 = vld [vmem:[%s20382_s15 + $0x1264] ss:$8 sps:$4 sm:$0xff]   ;;  %v18147_v28 = vld [vmem:[%s20382_s15 + $0x1260] ss:$8 sps:$4 sm:$0xff]   ;;  %v18150_v30 = vld [vmem:[%s20382_s15 + $0x1274] ss:$8 sps:$4 sm:$0xff]  }
  0xc4   : > { %10704 = vmatpush1.bf16.msra.mxu1 %v18122_v11  ;;  %v18152_v31 = vld [vmem:[%s20382_s15 + $0x70] ss:$8 sps:$4 sm:$0xff]   ;;  %v18154_v33 = vld [vmem:[%s20382_s15 + $0x84] ss:$8 sps:$4 sm:$0xff]   ;;  %v18158_v35 = vld [vmem:[%s20382_s15 + $0x80] ss:$8 sps:$4 sm:$0xff]  }
  0xc5   : > { %12738 = vmatpush1.bf16.msra.mxu0 %v18123_v12  ;;  %10705 = vmatprep.subr.bf16.mxu1 %v18124_v13  ;;  %v18153_v32 = vld [vmem:[%s20382_s15 + $0x1270] ss:$8 sps:$4 sm:$0xff]   ;;  %v18156_v34 = vld [vmem:[%s20382_s15 + $0x1284] ss:$8 sps:$4 sm:$0xff]   ;;  %v18159_v36 = vld [vmem:[%s20382_s15 + $0x1280] ss:$8 sps:$4 sm:$0xff]  }
  0xc6   : > { %12739 = vmatprep.subr.bf16.mxu0 %v18126_v14  ;;  %v18160_v37 = vld [vmem:[%s20382_s15 + $0x94] ss:$8 sps:$4 sm:$0xff]   ;;  %v18164_v39 = vld [vmem:[%s20382_s15 + $0x90] ss:$8 sps:$4 sm:$0xff]   ;;  %v18166_v41 = vld [vmem:[%s20382_s15 + $0xa4] ss:$8 sps:$4 sm:$0xff]  }
  0xc7   : > { %v18162_v38 = vld [vmem:[%s20382_s15 + $0x1294] ss:$8 sps:$4 sm:$0xff]   ;;  %v18165_v40 = vld [vmem:[%s20382_s15 + $0x1290] ss:$8 sps:$4 sm:$0xff]   ;;  %v18168_v42 = vld [vmem:[%s20382_s15 + $0x12a4] ss:$8 sps:$4 sm:$0xff]  }
  0xc8   : > { %10706 = vmatpush1.bf16.msra.mxu1 %v18128_v15  ;;  %v18170_v43 = vld [vmem:[%s20382_s15 + $0xa0] ss:$8 sps:$4 sm:$0xff]   ;;  %v18172_v45 = vld [vmem:[%s20382_s15 + $0xb4] ss:$8 sps:$4 sm:$0xff]   ;;  %v18176_v47 = vld [vmem:[%s20382_s15 + $0xb0] ss:$8 sps:$4 sm:$0xff]  }
  0xc9   : > { %12740 = vmatpush1.bf16.msra.mxu0 %v18129_v16  ;;  %10707 = vmatprep.subr.bf16.mxu1 %v18130_v17  ;;  %v18171_v44 = vld [vmem:[%s20382_s15 + $0x12a0] ss:$8 sps:$4 sm:$0xff]   ;;  %v18174_v46 = vld [vmem:[%s20382_s15 + $0x12b4] ss:$8 sps:$4 sm:$0xff]   ;;  %v18177_v48 = vld [vmem:[%s20382_s15 + $0x12b0] ss:$8 sps:$4 sm:$0xff]  }
  0xca   : > { %12741 = vmatprep.subr.bf16.mxu0 %v18132_v18  ;;  %v331_v49 = vld [vmem:[%s20374_s5] sm:$0xff]  ;;  %v349_v51 = vld [vmem:[%s20374_s5 + $0x90] sm:$0xff]  ;;  %s22347_s26 = sld [smem:[#allocation17_spill]] }
  0xcb   : > { %v367_v50 = vld [vmem:[%s20374_s5 + $0x120] sm:$0xff]  ;;  %v385_v52 = vld [vmem:[%s20374_s5 + $0x1b0] sm:$0xff] }
  0xcc   : > { %10708 = vmatpush1.bf16.msra.mxu1 %v18134_v19  ;;  %v18178_v53 = vld [vmem:[%s20382_s15 + $0xc4] ss:$8 sps:$4 sm:$0xff]   ;;  %v15092_v54 = vcombine.high %v331_v49, %v367_v50  ;;  %v15128_v56 = vcombine.high %v349_v51, %v385_v52  ;;  %v18182_v57 = vld [vmem:[%s20382_s15 + $0xc0] ss:$8 sps:$4 sm:$0xff]   ;;  %v18184_v59 = vld [vmem:[%s20382_s15 + $0xd4] ss:$8 sps:$4 sm:$0xff]   ;;  %v15091_v12 = vcombine.low %v331_v49, %v367_v50  ;;  %v15127_v13 = vcombine.low %v349_v51, %v385_v52 }
  0xcd   : > { %12742 = vmatpush1.bf16.msra.mxu0 %v18135_v20  ;;  %10709 = vmatprep.subr.bf16.mxu1 %v18136_v21  ;;  %v18180_v55 = vld [vmem:[%s20382_s15 + $0x12c4] ss:$8 sps:$4 sm:$0xff]   ;;  %v18183_v58 = vld [vmem:[%s20382_s15 + $0x12c0] ss:$8 sps:$4 sm:$0xff]   ;;  %v18186_v60 = vld [vmem:[%s20382_s15 + $0x12d4] ss:$8 sps:$4 sm:$0xff]  }
  0xce   : > { %12743 = vmatprep.subr.bf16.mxu0 %v18138_v22  ;;  %10731 = vmatprep.mubr.bf16.mxu1 %v15092_v54  ;;  %v18188_v61 = vld [vmem:[%s20382_s15 + $0xd0] ss:$8 sps:$4 sm:$0xff]   ;;  %v18190_v63 = vld [vmem:[%s20382_s15 + $0xe4] ss:$8 sps:$4 sm:$0xff]   ;;  %v18194_v1 = vld [vmem:[%s20382_s15 + $0xe0] ss:$8 sps:$4 sm:$0xff]  }
  0xcf   : > { %12765 = vmatprep.mubr.bf16.mxu0 %v15128_v56  ;;  %v18189_v62 = vld [vmem:[%s20382_s15 + $0x12d0] ss:$8 sps:$4 sm:$0xff]   ;;  %v18192_v0 = vld [vmem:[%s20382_s15 + $0x12e4] ss:$8 sps:$4 sm:$0xff]   ;;  %v18195_v2 = vld [vmem:[%s20382_s15 + $0x12e0] ss:$8 sps:$4 sm:$0xff]  }
  0xd0   : > { %10710 = vmatpush1.bf16.msra.mxu1 %v18140_v23  ;;  %v18196_v3 = vld [vmem:[%s20382_s15 + $0xf4] ss:$8 sps:$4 sm:$0xff]   ;;  %v18200_v5 = vld [vmem:[%s20382_s15 + $0xf0] ss:$8 sps:$4 sm:$0xff]   ;;  %v18204_v7 = vld [vmem:[%s20382_s15 + $0x104] ss:$8 sps:$4 sm:$0xff]  }
  0xd1   : > { %12744 = vmatpush1.bf16.msra.mxu0 %v18141_v24  ;;  %10711 = vmatprep.subr.bf16.mxu1 %v18142_v25  ;;  %v18198_v4 = vld [vmem:[%s20382_s15 + $0x12f4] ss:$8 sps:$4 sm:$0xff]   ;;  %v18201_v6 = vld [vmem:[%s20382_s15 + $0x12f0] ss:$8 sps:$4 sm:$0xff]   ;;  %v18207_v8 = vld [vmem:[%s20382_s15 + $0x1304] ss:$8 sps:$4 sm:$0xff]  }
  0xd2   : > { %12745 = vmatprep.subr.bf16.mxu0 %v18144_v26  ;;  %v18202_v9 = vld [vmem:[%s20382_s15 + $0x100] ss:$8 sps:$4 sm:$0xff]   ;;  %v421_v15 = vld [vmem:[%s20374_s5 + $0x2d0] sm:$0xff]  ;;  %v18216_v23 = vld [vmem:[%s20382_s15 + $0x124] ss:$8 sps:$4 sm:$0xff]   ;;  %p16819_p12 = scmp.ne.s32.totalorder %s22347_s26, 1 }
  0xd3   : > { %v18205_v10 = vld [vmem:[%s20382_s15 + $0x1300] ss:$8 sps:$4 sm:$0xff]   ;;  %v457_v16 = vld [vmem:[%s20374_s5 + $0x3f0] sm:$0xff]  ;;  %v18219_v24 = vld [vmem:[%s20382_s15 + $0x1324] ss:$8 sps:$4 sm:$0xff]  }
  0xd4   : > { %10712 = vmatpush1.bf16.msra.mxu1 %v18146_v27  ;;  %v403_v11 = vld [vmem:[%s20374_s5 + $0x240] sm:$0xff]  ;;  %v18210_v17 = vld [vmem:[%s20382_s15 + $0x114] ss:$8 sps:$4 sm:$0xff]   ;;  %v15200_v20 = vcombine.high %v421_v15, %v457_v16  ;;  %v18208_v21 = vld [vmem:[%s20382_s15 + $0x110] ss:$8 sps:$4 sm:$0xff]  }
  0xd5   : > { %12746 = vmatpush1.bf16.msra.mxu0 %v18147_v28  ;;  %10713 = vmatprep.subr.bf16.mxu1 %v18148_v29  ;;  %v439_v14 = vld [vmem:[%s20374_s5 + $0x360] sm:$0xff]  ;;  %v18213_v18 = vld [vmem:[%s20382_s15 + $0x1314] ss:$8 sps:$4 sm:$0xff]   ;;  %v18211_v22 = vld [vmem:[%s20382_s15 + $0x1310] ss:$8 sps:$4 sm:$0xff]  }
  0xd6   : > { %12747 = vmatprep.subr.bf16.mxu0 %v18150_v30  ;;  %v15164_v19 = vcombine.high %v403_v11, %v439_v14  ;;  %v18214_v25 = vld [vmem:[%s20382_s15 + $0x120] ss:$8 sps:$4 sm:$0xff]   ;;  %v15163_v29 = vcombine.low %v403_v11, %v439_v14  ;;  %v15199_v30 = vcombine.low %v421_v15, %v457_v16  ;;  %v18234_v49 = vld [vmem:[%s20382_s15 + $0x154] ss:$8 sps:$4 sm:$0xff]   ;;  %v18235_v54 = vld [vmem:[%s20382_s15 + $0x1350] ss:$8 sps:$4 sm:$0xff]  }
  0xd7   : > { %v18217_v26 = vld [vmem:[%s20382_s15 + $0x1320] ss:$8 sps:$4 sm:$0xff]   ;;  %v18237_v50 = vld [vmem:[%s20382_s15 + $0x1354] ss:$8 sps:$4 sm:$0xff]   ;;  %v18243_v56 = vld [vmem:[%s20382_s15 + $0x1364] ss:$8 sps:$4 sm:$0xff]  }
  0xd8   : > { %10714 = vmatpush1.bf16.msra.mxu1 %v18152_v31  ;;  %v475_v27 = vld [vmem:[%s20374_s5 + $0x480] sm:$0xff]  ;;  %v493_v31 = vld [vmem:[%s20374_s5 + $0x510] sm:$0xff] }
  0xd9   : > { %12748 = vmatpush1.bf16.msra.mxu0 %v18153_v32  ;;  %10715 = vmatprep.subr.bf16.mxu1 %v18154_v33  ;;  %v511_v28 = vld [vmem:[%s20374_s5 + $0x5a0] sm:$0xff]  ;;  %v529_v32 = vld [vmem:[%s20374_s5 + $0x630] sm:$0xff] }
  0xda   : > { %12749 = vmatprep.subr.bf16.mxu0 %v18156_v34  ;;  %v18222_v33 = vld [vmem:[%s20382_s15 + $0x134] ss:$8 sps:$4 sm:$0xff]   ;;  %v18250_v15 = vld [vmem:[%s20382_s15 + $0x180] ss:$8 sps:$4 sm:$0xff]  }
  0xdb   : > { %v18225_v34 = vld [vmem:[%s20382_s15 + $0x1334] ss:$8 sps:$4 sm:$0xff]   ;;  %v18253_v16 = vld [vmem:[%s20382_s15 + $0x1380] ss:$8 sps:$4 sm:$0xff]  }
  0xdc   : > { %10716 = vmatpush1.bf16.msra.mxu1 %v18158_v35  ;;  %v15236_v35 = vcombine.high %v475_v27, %v511_v28  ;;  %v745_v14 = vld [vmem:[%s20374_s5 + $0xcf0] sm:$0xff] }
  0xdd   : > { %12750 = vmatpush1.bf16.msra.mxu0 %v18159_v36  ;;  %10717 = vmatprep.subr.bf16.mxu1 %v18160_v37  ;;  %v15272_v36 = vcombine.high %v493_v31, %v529_v32  ;;  %v18220_v37 = vld [vmem:[%s20382_s15 + $0x130] ss:$8 sps:$4 sm:$0xff]  }
  0xde   : > { %12751 = vmatprep.subr.bf16.mxu0 %v18162_v38  ;;  %v18223_v38 = vld [vmem:[%s20382_s15 + $0x1330] ss:$8 sps:$4 sm:$0xff]  }
  0xe0   : > { %10718 = vmatpush1.bf16.msra.mxu1 %v18164_v39  ;;  %v18228_v39 = vld [vmem:[%s20382_s15 + $0x144] ss:$8 sps:$4 sm:$0xff]  }
  0xe1   : > { %12752 = vmatpush1.bf16.msra.mxu0 %v18165_v40  ;;  %10719 = vmatprep.subr.bf16.mxu1 %v18166_v41  ;;  %v18231_v40 = vld [vmem:[%s20382_s15 + $0x1344] ss:$8 sps:$4 sm:$0xff]   ;;  %v18226_v41 = vld [vmem:[%s20382_s15 + $0x140] ss:$8 sps:$4 sm:$0xff]  }
  0xe2   : > { %12753 = vmatprep.subr.bf16.mxu0 %v18168_v42  ;;  %v18229_v42 = vld [vmem:[%s20382_s15 + $0x1340] ss:$8 sps:$4 sm:$0xff]  }
  0xe4   : > { %10720 = vmatpush1.bf16.msra.mxu1 %v18170_v43  ;;  %v547_v43 = vld [vmem:[%s20374_s5 + $0x6c0] sm:$0xff] }
  0xe5   : > { %12754 = vmatpush1.bf16.msra.mxu0 %v18171_v44  ;;  %10721 = vmatprep.subr.bf16.mxu1 %v18172_v45  ;;  %v583_v44 = vld [vmem:[%s20374_s5 + $0x7e0] sm:$0xff]  ;;  %v15235_v45 = vcombine.low %v475_v27, %v511_v28 }
  0xe6   : > { %12755 = vmatprep.subr.bf16.mxu0 %v18174_v46  ;;  %v15271_v46 = vcombine.low %v493_v31, %v529_v32  ;;  %v15308_v51 = vcombine.high %v547_v43, %v583_v44  ;;  %v763_v27 = vld [vmem:[%s20374_s5 + $0xd80] sm:$0xff]  ;;  %v781_v31 = vld [vmem:[%s20374_s5 + $0xe10] sm:$0xff] }
  0xe7   : > { %v817_v32 = vld [vmem:[%s20374_s5 + $0xf30] sm:$0xff] }
  0xe8   : > { %10722 = vmatpush1.bf16.msra.mxu1 %v18176_v47  ;;  %v565_v47 = vld [vmem:[%s20374_s5 + $0x750] sm:$0xff] }
  0xe9   : > { %12756 = vmatpush1.bf16.msra.mxu0 %v18177_v48  ;;  %10723 = vmatprep.subr.bf16.mxu1 %v18178_v53  ;;  %v601_v48 = vld [vmem:[%s20374_s5 + $0x870] sm:$0xff] }
  0xea   : > { %12757 = vmatprep.subr.bf16.mxu0 %v18180_v55  ;;  %v15344_v52 = vcombine.high %v565_v47, %v601_v48  ;;  %v18232_v53 = vld [vmem:[%s20382_s15 + $0x150] ss:$8 sps:$4 sm:$0xff]   ;;  %v18240_v55 = vld [vmem:[%s20382_s15 + $0x164] ss:$8 sps:$4 sm:$0xff]  }
  0xec   : > { %10724 = vmatpush1.bf16.msra.mxu1 %v18182_v57  ;;  %v18238_v57 = vld [vmem:[%s20382_s15 + $0x160] ss:$8 sps:$4 sm:$0xff]  }
  0xed   : > { %12758 = vmatpush1.bf16.msra.mxu0 %v18183_v58  ;;  %10725 = vmatprep.subr.bf16.mxu1 %v18184_v59  ;;  %v619_v58 = vld [vmem:[%s20374_s5 + $0x900] sm:$0xff] }
  0xee   : > { %12759 = vmatprep.subr.bf16.mxu0 %v18186_v60  ;;  %v655_v59 = vld [vmem:[%s20374_s5 + $0xa20] sm:$0xff]  ;;  %v15307_v60 = vcombine.low %v547_v43, %v583_v44 }
  0xef   : > { %v15379_v11 = vcombine.low %v619_v58, %v655_v59  ;;  %v835_v43 = vld [vmem:[%s20374_s5 + $0xfc0] sm:$0xff] }
  0xf0   : > { %10726 = vmatpush1.bf16.msra.mxu1 %v18188_v61  ;;  %v15343_v61 = vcombine.low %v565_v47, %v601_v48  ;;  %v871_v44 = vld [vmem:[%s20374_s5 + $0x10e0] sm:$0xff]  ;;  %v853_v47 = vld [vmem:[%s20374_s5 + $0x1050] sm:$0xff] }
  0xf1   : > { %12760 = vmatpush1.bf16.msra.mxu0 %v18189_v62  ;;  %10727 = vmatprep.subr.bf16.mxu1 %v18190_v63  ;;  %v637_v62 = vld [vmem:[%s20374_s5 + $0x990] sm:$0xff] }
  0xf2   : > { %12761 = vmatprep.subr.bf16.mxu0 %v18192_v0  ;;  %v673_v63 = vld [vmem:[%s20374_s5 + $0xab0] sm:$0xff]  ;;  %v18241_v0 = vld [vmem:[%s20382_s15 + $0x1360] ss:$8 sps:$4 sm:$0xff]  }
  0xf3   : > { %v889_v48 = vld [vmem:[%s20374_s5 + $0x1170] sm:$0xff] }
  0xf4   : > { %10728 = vmatpush1.bf16.msra.mxu1 %v18194_v1  ;;  %v18246_v1 = vld [vmem:[%s20382_s15 + $0x174] ss:$8 sps:$4 sm:$0xff]  }
  0xf5   : > { %12762 = vmatpush1.bf16.msra.mxu0 %v18195_v2  ;;  %10729 = vmatprep.subr.bf16.mxu1 %v18196_v3  ;;  %v18249_v2 = vld [vmem:[%s20382_s15 + $0x1374] ss:$8 sps:$4 sm:$0xff]   ;;  %v15380_v3 = vcombine.high %v619_v58, %v655_v59  ;;  %v18289_v58 = vld [vmem:[%s20382_s15 + $0x13e0] ss:$8 sps:$4 sm:$0xff]  }
  0xf6   : > { %12763 = vmatprep.subr.bf16.mxu0 %v18198_v4  ;;  %v15416_v4 = vcombine.high %v637_v62, %v673_v63  ;;  %v332_v59 = vld [vmem:[%s20374_s5 + $0x8] sm:$0xff] }
  0xf8   : > { %10730 = vmatpush1.bf16.msra.mxu1 %v18200_v5  ;;  %v18244_v5 = vld [vmem:[%s20382_s15 + $0x170] ss:$8 sps:$4 sm:$0xff]  }
  0xf9   : > { %12764 = vmatpush1.bf16.msra.mxu0 %v18201_v6  ;;  %10812 = vmatprep.subr.bf16.mxu1 %v18204_v7  ;;  %v18247_v6 = vld [vmem:[%s20382_s15 + $0x1370] ss:$8 sps:$4 sm:$0xff]   ;;  %v18252_v7 = vld [vmem:[%s20382_s15 + $0x184] ss:$8 sps:$4 sm:$0xff]  }
  0xfa   : > { %12846 = vmatprep.subr.bf16.mxu0 %v18207_v8  ;;  %v18255_v8 = vld [vmem:[%s20382_s15 + $0x1384] ss:$8 sps:$4 sm:$0xff]  }
  0xfb   : > { %10732 = vmatmul.mubr.bf16.vlgmr.msra.gmra.mrb[0].mxu1 %v15091_v12  ;;  %v15415_v12 = vcombine.low %v637_v62, %v673_v63  ;;  %v15631_v62 = vcombine.low %v853_v47, %v889_v48  ;;  %v350_v63 = vld [vmem:[%s20374_s5 + $0x98] sm:$0xff] }
  0xfc   : > { %12766 = vmatmul.mubr.bf16.vlgmr.msra.gmra.mrb[0].mxu0 %v15127_v13  ;;  %10813 = vmatpush1.bf16.msra.mxu1 %v18202_v9  ;;  %v691_v9 = vld [vmem:[%s20374_s5 + $0xb40] sm:$0xff]  ;;  %v709_v13 = vld [vmem:[%s20374_s5 + $0xbd0] sm:$0xff] }
  0xfd   : > { %12847 = vmatpush1.bf16.msra.mxu0 %v18205_v10  ;;  %10814 = vmatprep.subr.bf16.mxu1 %v18210_v17  ;;  %v727_v10 = vld [vmem:[%s20374_s5 + $0xc60] sm:$0xff]  ;;  %v18258_v17 = vld [vmem:[%s20382_s15 + $0x194] ss:$8 sps:$4 sm:$0xff]  }
  0xfe   : > { %12848 = vmatprep.subr.bf16.mxu0 %v18213_v18  ;;  %10741 = vmatprep.mubr.bf16.mxu1 %v15164_v19  ;;  %v18261_v18 = vld [vmem:[%s20382_s15 + $0x1394] ss:$8 sps:$4 sm:$0xff]   ;;  %v15452_v19 = vcombine.high %v691_v9, %v727_v10  ;;  %v15451_v28 = vcombine.low %v691_v9, %v727_v10  ;;  %v18298_v9 = vld [vmem:[%s20382_s15 + $0x200] ss:$8 sps:$4 sm:$0xff]  }
  0xff   : > { %12775 = vmatprep.mubr.bf16.mxu0 %v15200_v20  ;;  %v15488_v20 = vcombine.high %v709_v13, %v745_v14  ;;  %v404_v10 = vld [vmem:[%s20374_s5 + $0x248] sm:$0xff] }
 0x100   : > { %10815 = vmatpush1.bf16.msra.mxu1 %v18208_v21  ;;  %v18256_v21 = vld [vmem:[%s20382_s15 + $0x190] ss:$8 sps:$4 sm:$0xff]  }
 0x101   : > { %12849 = vmatpush1.bf16.msra.mxu0 %v18211_v22  ;;  %10816 = vmatprep.subr.bf16.mxu1 %v18216_v23  ;;  %v18259_v22 = vld [vmem:[%s20382_s15 + $0x1390] ss:$8 sps:$4 sm:$0xff]   ;;  %v18264_v23 = vld [vmem:[%s20382_s15 + $0x1a4] ss:$8 sps:$4 sm:$0xff]  }
 0x102   : > { %12850 = vmatprep.subr.bf16.mxu0 %v18219_v24  ;;  %v18267_v24 = vld [vmem:[%s20382_s15 + $0x13a4] ss:$8 sps:$4 sm:$0xff]  }
 0x103   : > { %10742 = vmatmul.mubr.bf16.gmra.mrb[4].mxu1 %v15163_v29  ;;  %v15487_v29 = vcombine.low %v709_v13, %v745_v14  ;;  %v422_v14 = vld [vmem:[%s20374_s5 + $0x2d8] sm:$0xff] }
 0x104   : > { %12776 = vmatmul.mubr.bf16.gmra.mrb[4].mxu0 %v15199_v30  ;;  %10817 = vmatpush1.bf16.msra.mxu1 %v18214_v25  ;;  %v18262_v25 = vld [vmem:[%s20382_s15 + $0x1a0] ss:$8 sps:$4 sm:$0xff]  }
 0x105   : > { %12851 = vmatpush1.bf16.msra.mxu0 %v18217_v26  ;;  %10818 = vmatprep.subr.bf16.mxu1 %v18222_v33  ;;  %v18265_v26 = vld [vmem:[%s20382_s15 + $0x13a0] ss:$8 sps:$4 sm:$0xff]   ;;  %v18270_v33 = vld [vmem:[%s20382_s15 + $0x1b4] ss:$8 sps:$4 sm:$0xff]  }
 0x106   : > { %12852 = vmatprep.subr.bf16.mxu0 %v18225_v34  ;;  %10751 = vmatprep.mubr.bf16.mxu1 %v15236_v35  ;;  %v799_v30 = vld [vmem:[%s20374_s5 + $0xea0] sm:$0xff]  ;;  %v18273_v34 = vld [vmem:[%s20382_s15 + $0x13b4] ss:$8 sps:$4 sm:$0xff]  }
 0x107   : > { %12785 = vmatprep.mubr.bf16.mxu0 %v15272_v36  ;;  %v15524_v35 = vcombine.high %v763_v27, %v799_v30  ;;  %v15560_v36 = vcombine.high %v781_v31, %v817_v32 }
 0x108   : > { %10819 = vmatpush1.bf16.msra.mxu1 %v18220_v37  ;;  %v18268_v37 = vld [vmem:[%s20382_s15 + $0x1b0] ss:$8 sps:$4 sm:$0xff]  }
 0x109   : > { %12853 = vmatpush1.bf16.msra.mxu0 %v18223_v38  ;;  %10820 = vmatprep.subr.bf16.mxu1 %v18228_v39  ;;  %v18271_v38 = vld [vmem:[%s20382_s15 + $0x13b0] ss:$8 sps:$4 sm:$0xff]   ;;  %v18276_v39 = vld [vmem:[%s20382_s15 + $0x1c4] ss:$8 sps:$4 sm:$0xff]  }
 0x10a   : > { %12854 = vmatprep.subr.bf16.mxu0 %v18231_v40  ;;  %v18279_v40 = vld [vmem:[%s20382_s15 + $0x13c4] ss:$8 sps:$4 sm:$0xff]  }
 0x10b   : > { %10752 = vmatmul.mubr.bf16.gmra.mrb[8].mxu1 %v15235_v45  ;;  %v15523_v45 = vcombine.low %v763_v27, %v799_v30  ;;  %v530_v30 = vld [vmem:[%s20374_s5 + $0x638] sm:$0xff] }
 0x10c   : > { %12786 = vmatmul.mubr.bf16.gmra.mrb[8].mxu0 %v15271_v46  ;;  %10821 = vmatpush1.bf16.msra.mxu1 %v18226_v41  ;;  %v18274_v41 = vld [vmem:[%s20382_s15 + $0x1c0] ss:$8 sps:$4 sm:$0xff]   ;;  %v15559_v46 = vcombine.low %v781_v31, %v817_v32 }
 0x10d   : > { %12855 = vmatpush1.bf16.msra.mxu0 %v18229_v42  ;;  %10822 = vmatprep.subr.bf16.mxu1 %v18234_v49  ;;  %v18277_v42 = vld [vmem:[%s20382_s15 + $0x13c0] ss:$8 sps:$4 sm:$0xff]   ;;  %v18282_v49 = vld [vmem:[%s20382_s15 + $0x1d4] ss:$8 sps:$4 sm:$0xff]  }
 0x10e   : > { %12856 = vmatprep.subr.bf16.mxu0 %v18237_v50  ;;  %10761 = vmatprep.mubr.bf16.mxu1 %v15308_v51  ;;  %v18285_v50 = vld [vmem:[%s20382_s15 + $0x13d4] ss:$8 sps:$4 sm:$0xff]   ;;  %v15596_v51 = vcombine.high %v835_v43, %v871_v44  ;;  %v18310_v31 = vld [vmem:[%s20382_s15 + $0x220] ss:$8 sps:$4 sm:$0xff]  }
 0x10f   : > { %12795 = vmatprep.mubr.bf16.mxu0 %v15344_v52  ;;  %v15632_v52 = vcombine.high %v853_v47, %v889_v48  ;;  %v18313_v32 = vld [vmem:[%s20382_s15 + $0x1420] ss:$8 sps:$4 sm:$0xff]   ;;  %v566_v47 = vld [vmem:[%s20374_s5 + $0x758] sm:$0xff] }
 0x110   : > { %10823 = vmatpush1.bf16.msra.mxu1 %v18232_v53  ;;  %v18280_v53 = vld [vmem:[%s20382_s15 + $0x1d0] ss:$8 sps:$4 sm:$0xff]  }
 0x111   : > { %12857 = vmatpush1.bf16.msra.mxu0 %v18235_v54  ;;  %10824 = vmatprep.subr.bf16.mxu1 %v18240_v55  ;;  %v18283_v54 = vld [vmem:[%s20382_s15 + $0x13d0] ss:$8 sps:$4 sm:$0xff]   ;;  %v18288_v55 = vld [vmem:[%s20382_s15 + $0x1e4] ss:$8 sps:$4 sm:$0xff]  }
 0x112   : > { %12858 = vmatprep.subr.bf16.mxu0 %v18243_v56  ;;  %v18291_v56 = vld [vmem:[%s20382_s15 + $0x13e4] ss:$8 sps:$4 sm:$0xff]   ;;  %v602_v48 = vld [vmem:[%s20374_s5 + $0x878] sm:$0xff] }
 0x113   : > { %10762 = vmatmul.mubr.bf16.gmra.mrb[12].mxu1 %v15307_v60  ;;  %v368_v60 = vld [vmem:[%s20374_s5 + $0x128] sm:$0xff] }
 0x114   : > { %12796 = vmatmul.mubr.bf16.gmra.mrb[12].mxu0 %v15343_v61  ;;  %10825 = vmatpush1.bf16.msra.mxu1 %v18238_v57  ;;  %v18286_v57 = vld [vmem:[%s20382_s15 + $0x1e0] ss:$8 sps:$4 sm:$0xff]   ;;  %v15595_v61 = vcombine.low %v835_v43, %v871_v44 }
 0x115   : > { %12859 = vmatpush1.bf16.msra.mxu0 %v18241_v0  ;;  %10826 = vmatprep.subr.bf16.mxu1 %v18246_v1  ;;  %v386_v0 = vld [vmem:[%s20374_s5 + $0x1b8] sm:$0xff]  ;;  %v548_v43 = vld [vmem:[%s20374_s5 + $0x6c8] sm:$0xff] }
 0x116   : > { %12860 = vmatprep.subr.bf16.mxu0 %v18249_v2  ;;  %10771 = vmatprep.mubr.bf16.mxu1 %v15380_v3  ;;  %v18294_v1 = vld [vmem:[%s20382_s15 + $0x1f4] ss:$8 sps:$4 sm:$0xff]   ;;  %v15094_v3 = vcombine.high %v332_v59, %v368_v60  ;;  %v15129_v13 = vcombine.low %v350_v63, %v386_v0 }
 0x117   : > { %12805 = vmatprep.mubr.bf16.mxu0 %v15416_v4  ;;  %v18297_v2 = vld [vmem:[%s20382_s15 + $0x13f4] ss:$8 sps:$4 sm:$0xff]   ;;  %v15130_v4 = vcombine.high %v350_v63, %v386_v0 }
 0x118   : > { %10827 = vmatpush1.bf16.msra.mxu1 %v18244_v5  ;;  %v18292_v5 = vld [vmem:[%s20382_s15 + $0x1f0] ss:$8 sps:$4 sm:$0xff]  }
 0x119   : > { %12861 = vmatpush1.bf16.msra.mxu0 %v18247_v6  ;;  %10828 = vmatprep.subr.bf16.mxu1 %v18252_v7  ;;  %v18295_v6 = vld [vmem:[%s20382_s15 + $0x13f0] ss:$8 sps:$4 sm:$0xff]   ;;  %v18300_v7 = vld [vmem:[%s20382_s15 + $0x204] ss:$8 sps:$4 sm:$0xff]  }
 0x11a   : > { %12862 = vmatprep.subr.bf16.mxu0 %v18255_v8  ;;  %v18303_v8 = vld [vmem:[%s20382_s15 + $0x1404] ss:$8 sps:$4 sm:$0xff]   ;;  %v638_v63 = vld [vmem:[%s20374_s5 + $0x998] sm:$0xff] }
 0x11b   : > { %10772 = vmatmul.mubr.bf16.gmra.mrb[16].mxu1 %v15379_v11  ;;  %v440_v11 = vld [vmem:[%s20374_s5 + $0x368] sm:$0xff]  ;;  %v674_v0 = vld [vmem:[%s20374_s5 + $0xab8] sm:$0xff] }
 0x11c   : > { %12806 = vmatmul.mubr.bf16.gmra.mrb[16].mxu0 %v15415_v12  ;;  %10829 = vmatpush1.bf16.msra.mxu1 %v18250_v15  ;;  %v15093_v12 = vcombine.low %v332_v59, %v368_v60  ;;  %v458_v15 = vld [vmem:[%s20374_s5 + $0x3f8] sm:$0xff]  ;;  %v15165_v27 = vcombine.low %v404_v10, %v440_v11  ;;  %v620_v59 = vld [vmem:[%s20374_s5 + $0x908] sm:$0xff] }
 0x11d   : > { %12863 = vmatpush1.bf16.msra.mxu0 %v18253_v16  ;;  %10830 = vmatprep.subr.bf16.mxu1 %v18258_v17  ;;  %v18301_v16 = vld [vmem:[%s20382_s15 + $0x1400] ss:$8 sps:$4 sm:$0xff]   ;;  %v18306_v17 = vld [vmem:[%s20382_s15 + $0x214] ss:$8 sps:$4 sm:$0xff]  }
 0x11e   : > { %12864 = vmatprep.subr.bf16.mxu0 %v18261_v18  ;;  %10781 = vmatprep.mubr.bf16.mxu1 %v15452_v19  ;;  %v18309_v18 = vld [vmem:[%s20382_s15 + $0x1414] ss:$8 sps:$4 sm:$0xff]   ;;  %v15166_v19 = vcombine.high %v404_v10, %v440_v11  ;;  %v656_v60 = vld [vmem:[%s20374_s5 + $0xa28] sm:$0xff] }
 0x11f   : > { %12815 = vmatprep.mubr.bf16.mxu0 %v15488_v20  ;;  %v15202_v20 = vcombine.high %v422_v14, %v458_v15  ;;  %v18349_v10 = vld [vmem:[%s20382_s15 + $0x1480] ss:$8 sps:$4 sm:$0xff]  }
 0x120   : > { %10831 = vmatpush1.bf16.msra.mxu1 %v18256_v21  ;;  %v18304_v21 = vld [vmem:[%s20382_s15 + $0x210] ss:$8 sps:$4 sm:$0xff]   ;;  %v692_v11 = vld [vmem:[%s20374_s5 + $0xb48] sm:$0xff] }
 0x121   : > { %12865 = vmatpush1.bf16.msra.mxu0 %v18259_v22  ;;  %10832 = vmatprep.subr.bf16.mxu1 %v18264_v23  ;;  %v18307_v22 = vld [vmem:[%s20382_s15 + $0x1410] ss:$8 sps:$4 sm:$0xff]   ;;  %v18312_v23 = vld [vmem:[%s20382_s15 + $0x224] ss:$8 sps:$4 sm:$0xff]  }
 0x122   : > { %12866 = vmatprep.subr.bf16.mxu0 %v18267_v24  ;;  %v18315_v24 = vld [vmem:[%s20382_s15 + $0x1424] ss:$8 sps:$4 sm:$0xff]  }
 0x123   : > { %10782 = vmatmul.mubr.bf16.gmra.mrb[20].mxu1 %v15451_v28  ;;  %v15201_v28 = vcombine.low %v422_v14, %v458_v15  ;;  %v15417_v14 = vcombine.low %v638_v63, %v674_v0  ;;  %v710_v15 = vld [vmem:[%s20374_s5 + $0xbd8] sm:$0xff] }
 0x124   : > { %12816 = vmatmul.mubr.bf16.gmra.mrb[20].mxu0 %v15487_v29  ;;  %10833 = vmatpush1.bf16.msra.mxu1 %v18262_v25  ;;  %v476_v25 = vld [vmem:[%s20374_s5 + $0x488] sm:$0xff]  ;;  %v494_v29 = vld [vmem:[%s20374_s5 + $0x518] sm:$0xff] }
 0x125   : > { %12867 = vmatpush1.bf16.msra.mxu0 %v18265_v26  ;;  %10834 = vmatprep.subr.bf16.mxu1 %v18270_v33  ;;  %v512_v26 = vld [vmem:[%s20374_s5 + $0x5a8] sm:$0xff]  ;;  %v18318_v33 = vld [vmem:[%s20382_s15 + $0x234] ss:$8 sps:$4 sm:$0xff]  }
 0x126   : > { %12868 = vmatprep.subr.bf16.mxu0 %v18273_v34  ;;  %10791 = vmatprep.mubr.bf16.mxu1 %v15524_v35  ;;  %v18321_v34 = vld [vmem:[%s20382_s15 + $0x1434] ss:$8 sps:$4 sm:$0xff]   ;;  %v15238_v35 = vcombine.high %v476_v25, %v512_v26  ;;  %v15237_v44 = vcombine.low %v476_v25, %v512_v26  ;;  %v18358_v25 = vld [vmem:[%s20382_s15 + $0x2a0] ss:$8 sps:$4 sm:$0xff]  }
 0x127   : > { %12825 = vmatprep.mubr.bf16.mxu0 %v15560_v36  ;;  %v15274_v36 = vcombine.high %v494_v29, %v530_v30  ;;  %v764_v26 = vld [vmem:[%s20374_s5 + $0xd88] sm:$0xff] }
 0x128   : > { %10835 = vmatpush1.bf16.msra.mxu1 %v18268_v37  ;;  %v18316_v37 = vld [vmem:[%s20382_s15 + $0x230] ss:$8 sps:$4 sm:$0xff]  }
 0x129   : > { %12869 = vmatpush1.bf16.msra.mxu0 %v18271_v38  ;;  %10836 = vmatprep.subr.bf16.mxu1 %v18276_v39  ;;  %v18319_v38 = vld [vmem:[%s20382_s15 + $0x1430] ss:$8 sps:$4 sm:$0xff]   ;;  %v18324_v39 = vld [vmem:[%s20382_s15 + $0x244] ss:$8 sps:$4 sm:$0xff]  }
 0x12a   : > { %12870 = vmatprep.subr.bf16.mxu0 %v18279_v40  ;;  %v18327_v40 = vld [vmem:[%s20382_s15 + $0x1444] ss:$8 sps:$4 sm:$0xff]  }
 0x12b   : > { %10792 = vmatmul.mubr.bf16.gmra.mrb[24].mxu1 %v15523_v45  ;;  %v15273_v45 = vcombine.low %v494_v29, %v530_v30  ;;  %v782_v30 = vld [vmem:[%s20374_s5 + $0xe18] sm:$0xff] }
 0x12c   : > { %12826 = vmatmul.mubr.bf16.gmra.mrb[24].mxu0 %v15559_v46  ;;  %10837 = vmatpush1.bf16.msra.mxu1 %v18274_v41  ;;  %v18322_v41 = vld [vmem:[%s20382_s15 + $0x240] ss:$8 sps:$4 sm:$0xff]  }
 0x12d   : > { %12871 = vmatpush1.bf16.msra.mxu0 %v18277_v42  ;;  %10838 = vmatprep.subr.bf16.mxu1 %v18282_v49  ;;  %v18325_v42 = vld [vmem:[%s20382_s15 + $0x1440] ss:$8 sps:$4 sm:$0xff]   ;;  %v18330_v49 = vld [vmem:[%s20382_s15 + $0x254] ss:$8 sps:$4 sm:$0xff]  }
 0x12e   : > { %12872 = vmatprep.subr.bf16.mxu0 %v18285_v50  ;;  %10801 = vmatprep.mubr.bf16.mxu1 %v15596_v51  ;;  %v584_v46 = vld [vmem:[%s20374_s5 + $0x7e8] sm:$0xff]  ;;  %v18333_v50 = vld [vmem:[%s20382_s15 + $0x1454] ss:$8 sps:$4 sm:$0xff]  }
 0x12f   : > { %12835 = vmatprep.mubr.bf16.mxu0 %v15632_v52  ;;  %v15310_v51 = vcombine.high %v548_v43, %v584_v46  ;;  %v15346_v52 = vcombine.high %v566_v47, %v602_v48 }
 0x130   : > { %10839 = vmatpush1.bf16.msra.mxu1 %v18280_v53  ;;  %v18328_v53 = vld [vmem:[%s20382_s15 + $0x250] ss:$8 sps:$4 sm:$0xff]  }
 0x131   : > { %12873 = vmatpush1.bf16.msra.mxu0 %v18283_v54  ;;  %10840 = vmatprep.subr.bf16.mxu1 %v18288_v55  ;;  %v18331_v54 = vld [vmem:[%s20382_s15 + $0x1450] ss:$8 sps:$4 sm:$0xff]   ;;  %v18336_v55 = vld [vmem:[%s20382_s15 + $0x264] ss:$8 sps:$4 sm:$0xff]  }
 0x132   : > { %12874 = vmatprep.subr.bf16.mxu0 %v18291_v56  ;;  %v18339_v56 = vld [vmem:[%s20382_s15 + $0x1464] ss:$8 sps:$4 sm:$0xff]  }
 0x133   : > { %10802 = vmatmul.mubr.bf16.gmra.mrb[28].mxu1 %v15595_v61  ;;  %v15309_v61 = vcombine.low %v548_v43, %v584_v46  ;;  %v890_v46 = vld [vmem:[%s20374_s5 + $0x1178] sm:$0xff] }
 0x134   : > { %12836 = vmatmul.mubr.bf16.gmra.mrb[28].mxu0 %v15631_v62  ;;  %10841 = vmatpush1.bf16.msra.mxu1 %v18286_v57  ;;  %v18334_v57 = vld [vmem:[%s20382_s15 + $0x260] ss:$8 sps:$4 sm:$0xff]   ;;  %v15345_v62 = vcombine.low %v566_v47, %v602_v48 }
 0x135   : > { %12875 = vmatpush1.bf16.msra.mxu0 %v18289_v58  ;;  %10842 = vmatprep.subr.bf16.mxu1 %v18294_v1  ;;  %v18337_v58 = vld [vmem:[%s20382_s15 + $0x1460] ss:$8 sps:$4 sm:$0xff]   ;;  %v18342_v1 = vld [vmem:[%s20382_s15 + $0x274] ss:$8 sps:$4 sm:$0xff]  }
 0x136   : > { %12876 = vmatprep.subr.bf16.mxu0 %v18297_v2  ;;  %10844 = vmatprep.mubr.bf16.mxu1 %v15094_v3  ;;  %v18345_v2 = vld [vmem:[%s20382_s15 + $0x1474] ss:$8 sps:$4 sm:$0xff]   ;;  %v15382_v3 = vcombine.high %v620_v59, %v656_v60  ;;  %v18370_v47 = vld [vmem:[%s20382_s15 + $0x2c0] ss:$8 sps:$4 sm:$0xff]  }
 0x137   : > { %12878 = vmatprep.mubr.bf16.mxu0 %v15130_v4  ;;  %v15418_v4 = vcombine.high %v638_v63, %v674_v0  ;;  %v18373_v48 = vld [vmem:[%s20382_s15 + $0x14c0] ss:$8 sps:$4 sm:$0xff]  }
 0x138   : > { %10843 = vmatpush1.bf16.msra.mxu1 %v18292_v5  ;;  %v18340_v5 = vld [vmem:[%s20382_s15 + $0x270] ss:$8 sps:$4 sm:$0xff]   ;;  %v351_v63 = vld [vmem:[%s20374_s5 + $0xa0] sm:$0xff] }
 0x139   : > { %12877 = vmatpush1.bf16.msra.mxu0 %v18295_v6  ;;  %10925 = vmatprep.subr.bf16.mxu1 %v18300_v7  ;;  %v18343_v6 = vld [vmem:[%s20382_s15 + $0x1470] ss:$8 sps:$4 sm:$0xff]   ;;  %v18348_v7 = vld [vmem:[%s20382_s15 + $0x284] ss:$8 sps:$4 sm:$0xff]  }
 0x13a   : > { %12959 = vmatprep.subr.bf16.mxu0 %v18303_v8  ;;  %v18351_v8 = vld [vmem:[%s20382_s15 + $0x1484] ss:$8 sps:$4 sm:$0xff]  }
 0x13b   : > { %10845 = vmatmul.mubr.bf16.vlgmr.msra.gmra.mrb[0].mxu1 %v15093_v12  ;;  %v728_v12 = vld [vmem:[%s20374_s5 + $0xc68] sm:$0xff]  ;;  %v387_v0 = vld [vmem:[%s20374_s5 + $0x1c0] sm:$0xff] }
 0x13c   : > { %12879 = vmatmul.mubr.bf16.vlgmr.msra.gmra.mrb[0].mxu0 %v15129_v13  ;;  %10926 = vmatpush1.bf16.msra.mxu1 %v18298_v9  ;;  %v18346_v9 = vld [vmem:[%s20382_s15 + $0x280] ss:$8 sps:$4 sm:$0xff]   ;;  %v15381_v13 = vcombine.low %v620_v59, %v656_v60  ;;  %v333_v59 = vld [vmem:[%s20374_s5 + $0x10] sm:$0xff] }
 0x13d   : > { %12960 = vmatpush1.bf16.msra.mxu0 %v18301_v16  ;;  %10927 = vmatprep.subr.bf16.mxu1 %v18306_v17  ;;  %v746_v16 = vld [vmem:[%s20374_s5 + $0xcf8] sm:$0xff] }
 0x13e   : > { %12961 = vmatprep.subr.bf16.mxu0 %v18309_v18  ;;  %10854 = vmatprep.mubr.bf16.mxu1 %v15166_v19  ;;  %v18354_v17 = vld [vmem:[%s20382_s15 + $0x294] ss:$8 sps:$4 sm:$0xff]   ;;  %v15454_v19 = vcombine.high %v692_v11, %v728_v12  ;;  %v15489_v29 = vcombine.low %v710_v15, %v746_v16 }
 0x13f   : > { %12888 = vmatprep.mubr.bf16.mxu0 %v15202_v20  ;;  %v18357_v18 = vld [vmem:[%s20382_s15 + $0x1494] ss:$8 sps:$4 sm:$0xff]   ;;  %v15490_v20 = vcombine.high %v710_v15, %v746_v16  ;;  %v423_v15 = vld [vmem:[%s20374_s5 + $0x2e0] sm:$0xff] }
 0x140   : > { %10928 = vmatpush1.bf16.msra.mxu1 %v18304_v21  ;;  %v18352_v21 = vld [vmem:[%s20382_s15 + $0x290] ss:$8 sps:$4 sm:$0xff]   ;;  %v459_v16 = vld [vmem:[%s20374_s5 + $0x400] sm:$0xff] }
 0x141   : > { %12962 = vmatpush1.bf16.msra.mxu0 %v18307_v22  ;;  %10929 = vmatprep.subr.bf16.mxu1 %v18312_v23  ;;  %v18355_v22 = vld [vmem:[%s20382_s15 + $0x1490] ss:$8 sps:$4 sm:$0xff]   ;;  %v18360_v23 = vld [vmem:[%s20382_s15 + $0x2a4] ss:$8 sps:$4 sm:$0xff]  }
 0x142   : > { %12963 = vmatprep.subr.bf16.mxu0 %v18315_v24  ;;  %v18363_v24 = vld [vmem:[%s20382_s15 + $0x14a4] ss:$8 sps:$4 sm:$0xff]  }
 0x143   : > { %10855 = vmatmul.mubr.bf16.gmra.mrb[4].mxu1 %v15165_v27  ;;  %v800_v27 = vld [vmem:[%s20374_s5 + $0xea8] sm:$0xff] }
 0x144   : > { %12889 = vmatmul.mubr.bf16.gmra.mrb[4].mxu0 %v15201_v28  ;;  %10930 = vmatpush1.bf16.msra.mxu1 %v18310_v31  ;;  %v15453_v28 = vcombine.low %v692_v11, %v728_v12  ;;  %v818_v31 = vld [vmem:[%s20374_s5 + $0xf38] sm:$0xff]  ;;  %v15525_v43 = vcombine.low %v764_v26, %v800_v27  ;;  %v405_v11 = vld [vmem:[%s20374_s5 + $0x250] sm:$0xff] }
 0x145   : > { %12964 = vmatpush1.bf16.msra.mxu0 %v18313_v32  ;;  %10931 = vmatprep.subr.bf16.mxu1 %v18318_v33  ;;  %v18361_v32 = vld [vmem:[%s20382_s15 + $0x14a0] ss:$8 sps:$4 sm:$0xff]   ;;  %v18366_v33 = vld [vmem:[%s20382_s15 + $0x2b4] ss:$8 sps:$4 sm:$0xff]  }
 0x146   : > { %12965 = vmatprep.subr.bf16.mxu0 %v18321_v34  ;;  %10864 = vmatprep.mubr.bf16.mxu1 %v15238_v35  ;;  %v18369_v34 = vld [vmem:[%s20382_s15 + $0x14b4] ss:$8 sps:$4 sm:$0xff]   ;;  %v15526_v35 = vcombine.high %v764_v26, %v800_v27  ;;  %v18409_v26 = vld [vmem:[%s20382_s15 + $0x1520] ss:$8 sps:$4 sm:$0xff]  }
 0x147   : > { %12898 = vmatprep.mubr.bf16.mxu0 %v15274_v36  ;;  %v15562_v36 = vcombine.high %v782_v30, %v818_v31  ;;  %v441_v12 = vld [vmem:[%s20374_s5 + $0x370] sm:$0xff] }
 0x148   : > { %10932 = vmatpush1.bf16.msra.mxu1 %v18316_v37  ;;  %v18364_v37 = vld [vmem:[%s20382_s15 + $0x2b0] ss:$8 sps:$4 sm:$0xff]  }
 0x149   : > { %12966 = vmatpush1.bf16.msra.mxu0 %v18319_v38  ;;  %10933 = vmatprep.subr.bf16.mxu1 %v18324_v39  ;;  %v18367_v38 = vld [vmem:[%s20382_s15 + $0x14b0] ss:$8 sps:$4 sm:$0xff]   ;;  %v18372_v39 = vld [vmem:[%s20382_s15 + $0x2c4] ss:$8 sps:$4 sm:$0xff]  }
 0x14a   : > { %12967 = vmatprep.subr.bf16.mxu0 %v18327_v40  ;;  %v18375_v40 = vld [vmem:[%s20382_s15 + $0x14c4] ss:$8 sps:$4 sm:$0xff]   ;;  %v477_v27 = vld [vmem:[%s20374_s5 + $0x490] sm:$0xff] }
 0x14b   : > { %10865 = vmatmul.mubr.bf16.gmra.mrb[8].mxu1 %v15237_v44  ;;  %v15561_v44 = vcombine.low %v782_v30, %v818_v31  ;;  %v15203_v30 = vcombine.low %v423_v15, %v459_v16  ;;  %v495_v31 = vld [vmem:[%s20374_s5 + $0x520] sm:$0xff] }
 0x14c   : > { %12899 = vmatmul.mubr.bf16.gmra.mrb[8].mxu0 %v15273_v45  ;;  %10934 = vmatpush1.bf16.msra.mxu1 %v18322_v41  ;;  %v836_v41 = vld [vmem:[%s20374_s5 + $0xfc8] sm:$0xff]  ;;  %v854_v45 = vld [vmem:[%s20374_s5 + $0x1058] sm:$0xff] }
 0x14d   : > { %12968 = vmatpush1.bf16.msra.mxu0 %v18325_v42  ;;  %10935 = vmatprep.subr.bf16.mxu1 %v18330_v49  ;;  %v872_v42 = vld [vmem:[%s20374_s5 + $0x10e8] sm:$0xff]  ;;  %v18378_v49 = vld [vmem:[%s20382_s15 + $0x2d4] ss:$8 sps:$4 sm:$0xff]  }
 0x14e   : > { %12969 = vmatprep.subr.bf16.mxu0 %v18333_v50  ;;  %10874 = vmatprep.mubr.bf16.mxu1 %v15310_v51  ;;  %v18381_v50 = vld [vmem:[%s20382_s15 + $0x14d4] ss:$8 sps:$4 sm:$0xff]   ;;  %v15598_v51 = vcombine.high %v836_v41, %v872_v42  ;;  %v15597_v60 = vcombine.low %v836_v41, %v872_v42  ;;  %v18418_v41 = vld [vmem:[%s20382_s15 + $0x340] ss:$8 sps:$4 sm:$0xff]  }
 0x14f   : > { %12908 = vmatprep.mubr.bf16.mxu0 %v15346_v52  ;;  %v15634_v52 = vcombine.high %v854_v45, %v890_v46  ;;  %v549_v42 = vld [vmem:[%s20374_s5 + $0x6d0] sm:$0xff] }
 0x150   : > { %10936 = vmatpush1.bf16.msra.mxu1 %v18328_v53  ;;  %v18376_v53 = vld [vmem:[%s20382_s15 + $0x2d0] ss:$8 sps:$4 sm:$0xff]  }
 0x151   : > { %12970 = vmatpush1.bf16.msra.mxu0 %v18331_v54  ;;  %10937 = vmatprep.subr.bf16.mxu1 %v18336_v55  ;;  %v18379_v54 = vld [vmem:[%s20382_s15 + $0x14d0] ss:$8 sps:$4 sm:$0xff]   ;;  %v18384_v55 = vld [vmem:[%s20382_s15 + $0x2e4] ss:$8 sps:$4 sm:$0xff]  }
 0x152   : > { %12971 = vmatprep.subr.bf16.mxu0 %v18339_v56  ;;  %v18387_v56 = vld [vmem:[%s20382_s15 + $0x14e4] ss:$8 sps:$4 sm:$0xff]  }
 0x153   : > { %10875 = vmatmul.mubr.bf16.gmra.mrb[12].mxu1 %v15309_v61  ;;  %v15633_v61 = vcombine.low %v854_v45, %v890_v46  ;;  %v567_v46 = vld [vmem:[%s20374_s5 + $0x760] sm:$0xff] }
 0x154   : > { %12909 = vmatmul.mubr.bf16.gmra.mrb[12].mxu0 %v15345_v62  ;;  %10938 = vmatpush1.bf16.msra.mxu1 %v18334_v57  ;;  %v18382_v57 = vld [vmem:[%s20382_s15 + $0x2e0] ss:$8 sps:$4 sm:$0xff]   ;;  %v369_v62 = vld [vmem:[%s20374_s5 + $0x130] sm:$0xff] }
 0x155   : > { %12972 = vmatpush1.bf16.msra.mxu0 %v18337_v58  ;;  %10939 = vmatprep.subr.bf16.mxu1 %v18342_v1  ;;  %v18385_v58 = vld [vmem:[%s20382_s15 + $0x14e0] ss:$8 sps:$4 sm:$0xff]   ;;  %v18390_v1 = vld [vmem:[%s20382_s15 + $0x2f4] ss:$8 sps:$4 sm:$0xff]  }
 0x156   : > { %12973 = vmatprep.subr.bf16.mxu0 %v18345_v2  ;;  %10884 = vmatprep.mubr.bf16.mxu1 %v15382_v3  ;;  %v18393_v2 = vld [vmem:[%s20382_s15 + $0x14f4] ss:$8 sps:$4 sm:$0xff]   ;;  %v15096_v3 = vcombine.high %v333_v59, %v369_v62 }
 0x157   : > { %12918 = vmatprep.mubr.bf16.mxu0 %v15418_v4  ;;  %v15132_v4 = vcombine.high %v351_v63, %v387_v0 }
 0x158   : > { %10940 = vmatpush1.bf16.msra.mxu1 %v18340_v5  ;;  %v18388_v5 = vld [vmem:[%s20382_s15 + $0x2f0] ss:$8 sps:$4 sm:$0xff]  }
 0x159   : > { %12974 = vmatpush1.bf16.msra.mxu0 %v18343_v6  ;;  %10941 = vmatprep.subr.bf16.mxu1 %v18348_v7  ;;  %v18391_v6 = vld [vmem:[%s20382_s15 + $0x14f0] ss:$8 sps:$4 sm:$0xff]   ;;  %v18396_v7 = vld [vmem:[%s20382_s15 + $0x304] ss:$8 sps:$4 sm:$0xff]  }
 0x15a   : > { %12975 = vmatprep.subr.bf16.mxu0 %v18351_v8  ;;  %v18399_v8 = vld [vmem:[%s20382_s15 + $0x1504] ss:$8 sps:$4 sm:$0xff]  }
 0x15b   : > { %10885 = vmatmul.mubr.bf16.gmra.mrb[16].mxu1 %v15381_v13  ;;  %v15095_v13 = vcombine.low %v333_v59, %v369_v62  ;;  %v675_v62 = vld [vmem:[%s20374_s5 + $0xac0] sm:$0xff] }
 0x15c   : > { %12919 = vmatmul.mubr.bf16.gmra.mrb[16].mxu0 %v15417_v14  ;;  %10942 = vmatpush1.bf16.msra.mxu1 %v18346_v9  ;;  %v18394_v9 = vld [vmem:[%s20382_s15 + $0x300] ss:$8 sps:$4 sm:$0xff]   ;;  %v15131_v14 = vcombine.low %v351_v63, %v387_v0 }
 0x15d   : > { %12976 = vmatpush1.bf16.msra.mxu0 %v18349_v10  ;;  %10943 = vmatprep.subr.bf16.mxu1 %v18354_v17  ;;  %v18397_v10 = vld [vmem:[%s20382_s15 + $0x1500] ss:$8 sps:$4 sm:$0xff]   ;;  %v18402_v17 = vld [vmem:[%s20382_s15 + $0x314] ss:$8 sps:$4 sm:$0xff]  }
 0x15e   : > { %12977 = vmatprep.subr.bf16.mxu0 %v18357_v18  ;;  %10894 = vmatprep.mubr.bf16.mxu1 %v15454_v19  ;;  %v18405_v18 = vld [vmem:[%s20382_s15 + $0x1514] ss:$8 sps:$4 sm:$0xff]   ;;  %v15168_v19 = vcombine.high %v405_v11, %v441_v12  ;;  %v18430_v63 = vld [vmem:[%s20382_s15 + $0x360] ss:$8 sps:$4 sm:$0xff]  }
 0x15f   : > { %12928 = vmatprep.mubr.bf16.mxu0 %v15490_v20  ;;  %v15204_v20 = vcombine.high %v423_v15, %v459_v16  ;;  %v18433_v0 = vld [vmem:[%s20382_s15 + $0x1560] ss:$8 sps:$4 sm:$0xff]  }
 0x160   : > { %10944 = vmatpush1.bf16.msra.mxu1 %v18352_v21  ;;  %v18400_v21 = vld [vmem:[%s20382_s15 + $0x310] ss:$8 sps:$4 sm:$0xff]   ;;  %v711_v15 = vld [vmem:[%s20374_s5 + $0xbe0] sm:$0xff] }
 0x161   : > { %12978 = vmatpush1.bf16.msra.mxu0 %v18355_v22  ;;  %10945 = vmatprep.subr.bf16.mxu1 %v18360_v23  ;;  %v18403_v22 = vld [vmem:[%s20382_s15 + $0x1510] ss:$8 sps:$4 sm:$0xff]   ;;  %v18408_v23 = vld [vmem:[%s20382_s15 + $0x324] ss:$8 sps:$4 sm:$0xff]  }
 0x162   : > { %12979 = vmatprep.subr.bf16.mxu0 %v18363_v24  ;;  %v18411_v24 = vld [vmem:[%s20382_s15 + $0x1524] ss:$8 sps:$4 sm:$0xff]  }
 0x163   : > { %10895 = vmatmul.mubr.bf16.gmra.mrb[20].mxu1 %v15453_v28  ;;  %v513_v28 = vld [vmem:[%s20374_s5 + $0x5b0] sm:$0xff]  ;;  %v747_v16 = vld [vmem:[%s20374_s5 + $0xd00] sm:$0xff] }
 0x164   : > { %12929 = vmatmul.mubr.bf16.gmra.mrb[20].mxu0 %v15489_v29  ;;  %10946 = vmatpush1.bf16.msra.mxu1 %v18358_v25  ;;  %v18406_v25 = vld [vmem:[%s20382_s15 + $0x320] ss:$8 sps:$4 sm:$0xff]   ;;  %v15167_v29 = vcombine.low %v405_v11, %v441_v12  ;;  %v693_v11 = vld [vmem:[%s20374_s5 + $0xb50] sm:$0xff] }
 0x165   : > { %12980 = vmatpush1.bf16.msra.mxu0 %v18361_v32  ;;  %10947 = vmatprep.subr.bf16.mxu1 %v18366_v33  ;;  %v531_v32 = vld [vmem:[%s20374_s5 + $0x640] sm:$0xff]  ;;  %v18414_v33 = vld [vmem:[%s20382_s15 + $0x334] ss:$8 sps:$4 sm:$0xff]  }
 0x166   : > { %12981 = vmatprep.subr.bf16.mxu0 %v18369_v34  ;;  %10904 = vmatprep.mubr.bf16.mxu1 %v15526_v35  ;;  %v18417_v34 = vld [vmem:[%s20382_s15 + $0x1534] ss:$8 sps:$4 sm:$0xff]   ;;  %v15240_v35 = vcombine.high %v477_v27, %v513_v28  ;;  %v15275_v45 = vcombine.low %v495_v31, %v531_v32 }
 0x167   : > { %12938 = vmatprep.mubr.bf16.mxu0 %v15562_v36  ;;  %v15276_v36 = vcombine.high %v495_v31, %v531_v32  ;;  %v783_v31 = vld [vmem:[%s20374_s5 + $0xe20] sm:$0xff] }
 0x168   : > { %10948 = vmatpush1.bf16.msra.mxu1 %v18364_v37  ;;  %v18412_v37 = vld [vmem:[%s20382_s15 + $0x330] ss:$8 sps:$4 sm:$0xff]   ;;  %v819_v32 = vld [vmem:[%s20374_s5 + $0xf40] sm:$0xff] }
 0x169   : > { %12982 = vmatpush1.bf16.msra.mxu0 %v18367_v38  ;;  %10949 = vmatprep.subr.bf16.mxu1 %v18372_v39  ;;  %v18415_v38 = vld [vmem:[%s20382_s15 + $0x1530] ss:$8 sps:$4 sm:$0xff]   ;;  %v18420_v39 = vld [vmem:[%s20382_s15 + $0x344] ss:$8 sps:$4 sm:$0xff]  }
 0x16a   : > { %12983 = vmatprep.subr.bf16.mxu0 %v18375_v40  ;;  %v18423_v40 = vld [vmem:[%s20382_s15 + $0x1544] ss:$8 sps:$4 sm:$0xff]  }
 0x16b   : > { %10905 = vmatmul.mubr.bf16.gmra.mrb[24].mxu1 %v15525_v43  ;;  %v585_v43 = vld [vmem:[%s20374_s5 + $0x7f0] sm:$0xff] }
 0x16c   : > { %12939 = vmatmul.mubr.bf16.gmra.mrb[24].mxu0 %v15561_v44  ;;  %10950 = vmatpush1.bf16.msra.mxu1 %v18370_v47  ;;  %v15239_v44 = vcombine.low %v477_v27, %v513_v28  ;;  %v603_v47 = vld [vmem:[%s20374_s5 + $0x880] sm:$0xff]  ;;  %v15311_v59 = vcombine.low %v549_v42, %v585_v43  ;;  %v765_v27 = vld [vmem:[%s20374_s5 + $0xd90] sm:$0xff] }
 0x16d   : > { %12984 = vmatpush1.bf16.msra.mxu0 %v18373_v48  ;;  %10951 = vmatprep.subr.bf16.mxu1 %v18378_v49  ;;  %v18421_v48 = vld [vmem:[%s20382_s15 + $0x1540] ss:$8 sps:$4 sm:$0xff]   ;;  %v18426_v49 = vld [vmem:[%s20382_s15 + $0x354] ss:$8 sps:$4 sm:$0xff]  }
 0x16e   : > { %12985 = vmatprep.subr.bf16.mxu0 %v18381_v50  ;;  %10914 = vmatprep.mubr.bf16.mxu1 %v15598_v51  ;;  %v18429_v50 = vld [vmem:[%s20382_s15 + $0x1554] ss:$8 sps:$4 sm:$0xff]   ;;  %v15312_v51 = vcombine.high %v549_v42, %v585_v43  ;;  %v18469_v42 = vld [vmem:[%s20382_s15 + $0x15c0] ss:$8 sps:$4 sm:$0xff]  }
 0x16f   : > { %12948 = vmatprep.mubr.bf16.mxu0 %v15634_v52  ;;  %v15348_v52 = vcombine.high %v567_v46, %v603_v47  ;;  %v801_v28 = vld [vmem:[%s20374_s5 + $0xeb0] sm:$0xff] }
 0x170   : > { %10952 = vmatpush1.bf16.msra.mxu1 %v18376_v53  ;;  %v18424_v53 = vld [vmem:[%s20382_s15 + $0x350] ss:$8 sps:$4 sm:$0xff]  }
 0x171   : > { %12986 = vmatpush1.bf16.msra.mxu0 %v18379_v54  ;;  %10953 = vmatprep.subr.bf16.mxu1 %v18384_v55  ;;  %v18427_v54 = vld [vmem:[%s20382_s15 + $0x1550] ss:$8 sps:$4 sm:$0xff]   ;;  %v18432_v55 = vld [vmem:[%s20382_s15 + $0x364] ss:$8 sps:$4 sm:$0xff]  }
 0x172   : > { %12987 = vmatprep.subr.bf16.mxu0 %v18387_v56  ;;  %v18435_v56 = vld [vmem:[%s20382_s15 + $0x1564] ss:$8 sps:$4 sm:$0xff]   ;;  %v837_v43 = vld [vmem:[%s20374_s5 + $0xfd0] sm:$0xff] }
 0x173   : > { %10915 = vmatmul.mubr.bf16.gmra.mrb[28].mxu1 %v15597_v60  ;;  %v15347_v60 = vcombine.low %v567_v46, %v603_v47  ;;  %v15563_v46 = vcombine.low %v783_v31, %v819_v32  ;;  %v855_v47 = vld [vmem:[%s20374_s5 + $0x1060] sm:$0xff] }
 0x174   : > { %12949 = vmatmul.mubr.bf16.gmra.mrb[28].mxu0 %v15633_v61  ;;  %10954 = vmatpush1.bf16.msra.mxu1 %v18382_v57  ;;  %v621_v57 = vld [vmem:[%s20374_s5 + $0x910] sm:$0xff]  ;;  %v639_v61 = vld [vmem:[%s20374_s5 + $0x9a0] sm:$0xff] }
 0x175   : > { %12988 = vmatpush1.bf16.msra.mxu0 %v18385_v58  ;;  %10955 = vmatprep.subr.bf16.mxu1 %v18390_v1  ;;  %v657_v58 = vld [vmem:[%s20374_s5 + $0xa30] sm:$0xff] }
 0x176   : > { %12989 = vmatprep.subr.bf16.mxu0 %v18393_v2  ;;  %10957 = vmatprep.mubr.bf16.mxu1 %v15096_v3  ;;  %v18438_v1 = vld [vmem:[%s20382_s15 + $0x374] ss:$8 sps:$4 sm:$0xff]   ;;  %v15384_v3 = vcombine.high %v621_v57, %v657_v58  ;;  %v15383_v12 = vcombine.low %v621_v57, %v657_v58  ;;  %v18478_v57 = vld [vmem:[%s20382_s15 + $0x3e0] ss:$8 sps:$4 sm:$0xff]  }
 0x177   : > { %12991 = vmatprep.mubr.bf16.mxu0 %v15132_v4  ;;  %v18441_v2 = vld [vmem:[%s20382_s15 + $0x1574] ss:$8 sps:$4 sm:$0xff]   ;;  %v15420_v4 = vcombine.high %v639_v61, %v675_v62 }
 0x178   : > { %10956 = vmatpush1.bf16.msra.mxu1 %v18388_v5  ;;  %v18436_v5 = vld [vmem:[%s20382_s15 + $0x370] ss:$8 sps:$4 sm:$0xff]  }
 0x179   : > { %12990 = vmatpush1.bf16.msra.mxu0 %v18391_v6  ;;  %11038 = vmatprep.subr.bf16.mxu1 %v18396_v7  ;;  %v18439_v6 = vld [vmem:[%s20382_s15 + $0x1570] ss:$8 sps:$4 sm:$0xff]   ;;  %v18444_v7 = vld [vmem:[%s20382_s15 + $0x384] ss:$8 sps:$4 sm:$0xff]  }
 0x17a   : > { %13072 = vmatprep.subr.bf16.mxu0 %v18399_v8  ;;  %v18447_v8 = vld [vmem:[%s20382_s15 + $0x1584] ss:$8 sps:$4 sm:$0xff]   ;;  %v334_v58 = vld [vmem:[%s20374_s5 + $0x18] sm:$0xff] }
 0x17b   : > { %10958 = vmatmul.mubr.bf16.vlgmr.msra.gmra.mrb[0].mxu1 %v15095_v13  ;;  %v15419_v13 = vcombine.low %v639_v61, %v675_v62  ;;  %v352_v62 = vld [vmem:[%s20374_s5 + $0xa8] sm:$0xff] }
 0x17c   : > { %12992 = vmatmul.mubr.bf16.vlgmr.msra.gmra.mrb[0].mxu0 %v15131_v14  ;;  %11039 = vmatpush1.bf16.msra.mxu1 %v18394_v9  ;;  %v18442_v9 = vld [vmem:[%s20382_s15 + $0x380] ss:$8 sps:$4 sm:$0xff]   ;;  %v729_v14 = vld [vmem:[%s20374_s5 + $0xc70] sm:$0xff] }
 0x17d   : > { %13073 = vmatpush1.bf16.msra.mxu0 %v18397_v10  ;;  %11040 = vmatprep.subr.bf16.mxu1 %v18402_v17  ;;  %v18445_v10 = vld [vmem:[%s20382_s15 + $0x1580] ss:$8 sps:$4 sm:$0xff]   ;;  %v18450_v17 = vld [vmem:[%s20382_s15 + $0x394] ss:$8 sps:$4 sm:$0xff]  }
 0x17e   : > { %13074 = vmatprep.subr.bf16.mxu0 %v18405_v18  ;;  %10967 = vmatprep.mubr.bf16.mxu1 %v15168_v19  ;;  %v18453_v18 = vld [vmem:[%s20382_s15 + $0x1594] ss:$8 sps:$4 sm:$0xff]   ;;  %v15456_v19 = vcombine.high %v693_v11, %v729_v14 }
 0x17f   : > { %13001 = vmatprep.mubr.bf16.mxu0 %v15204_v20  ;;  %v15492_v20 = vcombine.high %v711_v15, %v747_v16 }
 0x180   : > { %11041 = vmatpush1.bf16.msra.mxu1 %v18400_v21  ;;  %v18448_v21 = vld [vmem:[%s20382_s15 + $0x390] ss:$8 sps:$4 sm:$0xff]  }
 0x181   : > { %13075 = vmatpush1.bf16.msra.mxu0 %v18403_v22  ;;  %11042 = vmatprep.subr.bf16.mxu1 %v18408_v23  ;;  %v18451_v22 = vld [vmem:[%s20382_s15 + $0x1590] ss:$8 sps:$4 sm:$0xff]   ;;  %v18456_v23 = vld [vmem:[%s20382_s15 + $0x3a4] ss:$8 sps:$4 sm:$0xff]  }
 0x182   : > { %13076 = vmatprep.subr.bf16.mxu0 %v18411_v24  ;;  %v18459_v24 = vld [vmem:[%s20382_s15 + $0x15a4] ss:$8 sps:$4 sm:$0xff]  }
 0x183   : > { %10968 = vmatmul.mubr.bf16.gmra.mrb[4].mxu1 %v15167_v29  ;;  %v15455_v29 = vcombine.low %v693_v11, %v729_v14  ;;  %v460_v14 = vld [vmem:[%s20374_s5 + $0x408] sm:$0xff] }
 0x184   : > { %13002 = vmatmul.mubr.bf16.gmra.mrb[4].mxu0 %v15203_v30  ;;  %11043 = vmatpush1.bf16.msra.mxu1 %v18406_v25  ;;  %v18454_v25 = vld [vmem:[%s20382_s15 + $0x3a0] ss:$8 sps:$4 sm:$0xff]   ;;  %v15491_v30 = vcombine.low %v711_v15, %v747_v16 }
 0x185   : > { %13077 = vmatpush1.bf16.msra.mxu0 %v18409_v26  ;;  %11044 = vmatprep.subr.bf16.mxu1 %v18414_v33  ;;  %v18457_v26 = vld [vmem:[%s20382_s15 + $0x15a0] ss:$8 sps:$4 sm:$0xff]   ;;  %v18462_v33 = vld [vmem:[%s20382_s15 + $0x3b4] ss:$8 sps:$4 sm:$0xff]  }
 0x186   : > { %13078 = vmatprep.subr.bf16.mxu0 %v18417_v34  ;;  %10977 = vmatprep.mubr.bf16.mxu1 %v15240_v35  ;;  %v18465_v34 = vld [vmem:[%s20382_s15 + $0x15b4] ss:$8 sps:$4 sm:$0xff]   ;;  %v15528_v35 = vcombine.high %v765_v27, %v801_v28  ;;  %v18490_v15 = vld [vmem:[%s20382_s15 + $0x400] ss:$8 sps:$4 sm:$0xff]  }
 0x187   : > { %13011 = vmatprep.mubr.bf16.mxu0 %v15276_v36  ;;  %v15564_v36 = vcombine.high %v783_v31, %v819_v32  ;;  %v18493_v16 = vld [vmem:[%s20382_s15 + $0x1600] ss:$8 sps:$4 sm:$0xff]  }
 0x188   : > { %11045 = vmatpush1.bf16.msra.mxu1 %v18412_v37  ;;  %v18460_v37 = vld [vmem:[%s20382_s15 + $0x3b0] ss:$8 sps:$4 sm:$0xff]   ;;  %v496_v31 = vld [vmem:[%s20374_s5 + $0x528] sm:$0xff] }
 0x189   : > { %13079 = vmatpush1.bf16.msra.mxu0 %v18415_v38  ;;  %11046 = vmatprep.subr.bf16.mxu1 %v18420_v39  ;;  %v18463_v38 = vld [vmem:[%s20382_s15 + $0x15b0] ss:$8 sps:$4 sm:$0xff]   ;;  %v18468_v39 = vld [vmem:[%s20382_s15 + $0x3c4] ss:$8 sps:$4 sm:$0xff]  }
 0x18a   : > { %13080 = vmatprep.subr.bf16.mxu0 %v18423_v40  ;;  %v18471_v40 = vld [vmem:[%s20382_s15 + $0x15c4] ss:$8 sps:$4 sm:$0xff]  }
 0x18b   : > { %10978 = vmatmul.mubr.bf16.gmra.mrb[8].mxu1 %v15239_v44  ;;  %v873_v44 = vld [vmem:[%s20374_s5 + $0x10f0] sm:$0xff]  ;;  %v532_v32 = vld [vmem:[%s20374_s5 + $0x648] sm:$0xff] }
 0x18c   : > { %13012 = vmatmul.mubr.bf16.gmra.mrb[8].mxu0 %v15275_v45  ;;  %11047 = vmatpush1.bf16.msra.mxu1 %v18418_v41  ;;  %v18466_v41 = vld [vmem:[%s20382_s15 + $0x3c0] ss:$8 sps:$4 sm:$0xff]   ;;  %v15527_v45 = vcombine.low %v765_v27, %v801_v28  ;;  %v478_v27 = vld [vmem:[%s20374_s5 + $0x498] sm:$0xff] }
 0x18d   : > { %13081 = vmatpush1.bf16.msra.mxu0 %v18421_v48  ;;  %11048 = vmatprep.subr.bf16.mxu1 %v18426_v49  ;;  %v891_v48 = vld [vmem:[%s20374_s5 + $0x1180] sm:$0xff]  ;;  %v18474_v49 = vld [vmem:[%s20382_s15 + $0x3d4] ss:$8 sps:$4 sm:$0xff]  }
 0x18e   : > { %13082 = vmatprep.subr.bf16.mxu0 %v18429_v50  ;;  %10987 = vmatprep.mubr.bf16.mxu1 %v15312_v51  ;;  %v18477_v50 = vld [vmem:[%s20382_s15 + $0x15d4] ss:$8 sps:$4 sm:$0xff]   ;;  %v15600_v51 = vcombine.high %v837_v43, %v873_v44  ;;  %v15635_v61 = vcombine.low %v855_v47, %v891_v48 }
 0x18f   : > { %13021 = vmatprep.mubr.bf16.mxu0 %v15348_v52  ;;  %v15636_v52 = vcombine.high %v855_v47, %v891_v48  ;;  %v568_v47 = vld [vmem:[%s20374_s5 + $0x768] sm:$0xff] }
 0x190   : > { %11049 = vmatpush1.bf16.msra.mxu1 %v18424_v53  ;;  %v18472_v53 = vld [vmem:[%s20382_s15 + $0x3d0] ss:$8 sps:$4 sm:$0xff]   ;;  %v604_v48 = vld [vmem:[%s20374_s5 + $0x888] sm:$0xff] }
 0x191   : > { %13083 = vmatpush1.bf16.msra.mxu0 %v18427_v54  ;;  %11050 = vmatprep.subr.bf16.mxu1 %v18432_v55  ;;  %v18475_v54 = vld [vmem:[%s20382_s15 + $0x15d0] ss:$8 sps:$4 sm:$0xff]   ;;  %v18480_v55 = vld [vmem:[%s20382_s15 + $0x3e4] ss:$8 sps:$4 sm:$0xff]  }
 0x192   : > { %13084 = vmatprep.subr.bf16.mxu0 %v18435_v56  ;;  %v18483_v56 = vld [vmem:[%s20382_s15 + $0x15e4] ss:$8 sps:$4 sm:$0xff]  }
 0x193   : > { %10988 = vmatmul.mubr.bf16.gmra.mrb[12].mxu1 %v15311_v59  ;;  %v370_v59 = vld [vmem:[%s20374_s5 + $0x138] sm:$0xff] }
 0x194   : > { %13022 = vmatmul.mubr.bf16.gmra.mrb[12].mxu0 %v15347_v60  ;;  %11051 = vmatpush1.bf16.msra.mxu1 %v18430_v63  ;;  %v15599_v60 = vcombine.low %v837_v43, %v873_v44  ;;  %v388_v63 = vld [vmem:[%s20374_s5 + $0x1c8] sm:$0xff]  ;;  %v15097_v11 = vcombine.low %v334_v58, %v370_v59  ;;  %v550_v43 = vld [vmem:[%s20374_s5 + $0x6d8] sm:$0xff] }
 0x195   : > { %13085 = vmatpush1.bf16.msra.mxu0 %v18433_v0  ;;  %11052 = vmatprep.subr.bf16.mxu1 %v18438_v1  ;;  %v18481_v0 = vld [vmem:[%s20382_s15 + $0x15e0] ss:$8 sps:$4 sm:$0xff]   ;;  %v18486_v1 = vld [vmem:[%s20382_s15 + $0x3f4] ss:$8 sps:$4 sm:$0xff]  }
 0x196   : > { %13086 = vmatprep.subr.bf16.mxu0 %v18441_v2  ;;  %10997 = vmatprep.mubr.bf16.mxu1 %v15384_v3  ;;  %v18489_v2 = vld [vmem:[%s20382_s15 + $0x15f4] ss:$8 sps:$4 sm:$0xff]   ;;  %v15098_v3 = vcombine.high %v334_v58, %v370_v59  ;;  %v18529_v58 = vld [vmem:[%s20382_s15 + $0x1660] ss:$8 sps:$4 sm:$0xff]  }
 0x197   : > { %13031 = vmatprep.mubr.bf16.mxu0 %v15420_v4  ;;  %v15134_v4 = vcombine.high %v352_v62, %v388_v63  ;;  %v586_v44 = vld [vmem:[%s20374_s5 + $0x7f8] sm:$0xff] }
 0x198   : > { %11053 = vmatpush1.bf16.msra.mxu1 %v18436_v5  ;;  %v18484_v5 = vld [vmem:[%s20382_s15 + $0x3f0] ss:$8 sps:$4 sm:$0xff]  }
 0x199   : > { %13087 = vmatpush1.bf16.msra.mxu0 %v18439_v6  ;;  %11054 = vmatprep.subr.bf16.mxu1 %v18444_v7  ;;  %v18487_v6 = vld [vmem:[%s20382_s15 + $0x15f0] ss:$8 sps:$4 sm:$0xff]   ;;  %v18492_v7 = vld [vmem:[%s20382_s15 + $0x404] ss:$8 sps:$4 sm:$0xff]  }
 0x19a   : > { %13088 = vmatprep.subr.bf16.mxu0 %v18447_v8  ;;  %v18495_v8 = vld [vmem:[%s20382_s15 + $0x1604] ss:$8 sps:$4 sm:$0xff]   ;;  %v622_v59 = vld [vmem:[%s20374_s5 + $0x918] sm:$0xff] }
 0x19b   : > { %10998 = vmatmul.mubr.bf16.gmra.mrb[16].mxu1 %v15383_v12  ;;  %v15133_v12 = vcombine.low %v352_v62, %v388_v63  ;;  %v15349_v62 = vcombine.low %v568_v47, %v604_v48  ;;  %v640_v63 = vld [vmem:[%s20374_s5 + $0x9a8] sm:$0xff] }
 0x19c   : > { %13032 = vmatmul.mubr.bf16.gmra.mrb[16].mxu0 %v15419_v13  ;;  %11055 = vmatpush1.bf16.msra.mxu1 %v18442_v9  ;;  %v406_v9 = vld [vmem:[%s20374_s5 + $0x258] sm:$0xff]  ;;  %v424_v13 = vld [vmem:[%s20374_s5 + $0x2e8] sm:$0xff] }
 0x19d   : > { %13089 = vmatpush1.bf16.msra.mxu0 %v18445_v10  ;;  %11056 = vmatprep.subr.bf16.mxu1 %v18450_v17  ;;  %v442_v10 = vld [vmem:[%s20374_s5 + $0x378] sm:$0xff] }
 0x19e   : > { %13090 = vmatprep.subr.bf16.mxu0 %v18453_v18  ;;  %11007 = vmatprep.mubr.bf16.mxu1 %v15456_v19  ;;  %v18498_v17 = vld [vmem:[%s20382_s15 + $0x414] ss:$8 sps:$4 sm:$0xff]   ;;  %v15170_v19 = vcombine.high %v406_v9, %v442_v10  ;;  %v15169_v28 = vcombine.low %v406_v9, %v442_v10  ;;  %v18538_v9 = vld [vmem:[%s20382_s15 + $0x480] ss:$8 sps:$4 sm:$0xff]  }
 0x19f   : > { %13041 = vmatprep.mubr.bf16.mxu0 %v15492_v20  ;;  %v18501_v18 = vld [vmem:[%s20382_s15 + $0x1614] ss:$8 sps:$4 sm:$0xff]   ;;  %v15206_v20 = vcombine.high %v424_v13, %v460_v14 }
 0x1a0   : > { %11057 = vmatpush1.bf16.msra.mxu1 %v18448_v21  ;;  %v18496_v21 = vld [vmem:[%s20382_s15 + $0x410] ss:$8 sps:$4 sm:$0xff]  }
 0x1a1   : > { %13091 = vmatpush1.bf16.msra.mxu0 %v18451_v22  ;;  %11058 = vmatprep.subr.bf16.mxu1 %v18456_v23  ;;  %v18499_v22 = vld [vmem:[%s20382_s15 + $0x1610] ss:$8 sps:$4 sm:$0xff]   ;;  %v18504_v23 = vld [vmem:[%s20382_s15 + $0x424] ss:$8 sps:$4 sm:$0xff]  }
 0x1a2   : > { %13092 = vmatprep.subr.bf16.mxu0 %v18459_v24  ;;  %v18507_v24 = vld [vmem:[%s20382_s15 + $0x1624] ss:$8 sps:$4 sm:$0xff]   ;;  %v694_v10 = vld [vmem:[%s20374_s5 + $0xb58] sm:$0xff] }
 0x1a3   : > { %11008 = vmatmul.mubr.bf16.gmra.mrb[20].mxu1 %v15455_v29  ;;  %v15205_v29 = vcombine.low %v424_v13, %v460_v14  ;;  %v712_v14 = vld [vmem:[%s20374_s5 + $0xbe8] sm:$0xff] }
 0x1a4   : > { %13042 = vmatmul.mubr.bf16.gmra.mrb[20].mxu0 %v15491_v30  ;;  %11059 = vmatpush1.bf16.msra.mxu1 %v18454_v25  ;;  %v18502_v25 = vld [vmem:[%s20382_s15 + $0x420] ss:$8 sps:$4 sm:$0xff]   ;;  %v514_v30 = vld [vmem:[%s20374_s5 + $0x5b8] sm:$0xff] }
 0x1a5   : > { %13093 = vmatpush1.bf16.msra.mxu0 %v18457_v26  ;;  %11060 = vmatprep.subr.bf16.mxu1 %v18462_v33  ;;  %v18505_v26 = vld [vmem:[%s20382_s15 + $0x1620] ss:$8 sps:$4 sm:$0xff]   ;;  %v18510_v33 = vld [vmem:[%s20382_s15 + $0x434] ss:$8 sps:$4 sm:$0xff]  }
 0x1a6   : > { %13094 = vmatprep.subr.bf16.mxu0 %v18465_v34  ;;  %11017 = vmatprep.mubr.bf16.mxu1 %v15528_v35  ;;  %v18513_v34 = vld [vmem:[%s20382_s15 + $0x1634] ss:$8 sps:$4 sm:$0xff]   ;;  %v15242_v35 = vcombine.high %v478_v27, %v514_v30 }
 0x1a7   : > { %13051 = vmatprep.mubr.bf16.mxu0 %v15564_v36  ;;  %v15278_v36 = vcombine.high %v496_v31, %v532_v32 }
 0x1a8   : > { %11061 = vmatpush1.bf16.msra.mxu1 %v18460_v37  ;;  %v18508_v37 = vld [vmem:[%s20382_s15 + $0x430] ss:$8 sps:$4 sm:$0xff]  }
 0x1a9   : > { %13095 = vmatpush1.bf16.msra.mxu0 %v18463_v38  ;;  %11062 = vmatprep.subr.bf16.mxu1 %v18468_v39  ;;  %v18511_v38 = vld [vmem:[%s20382_s15 + $0x1630] ss:$8 sps:$4 sm:$0xff]   ;;  %v18516_v39 = vld [vmem:[%s20382_s15 + $0x444] ss:$8 sps:$4 sm:$0xff]  }
 0x1aa   : > { %13096 = vmatprep.subr.bf16.mxu0 %v18471_v40  ;;  %v18519_v40 = vld [vmem:[%s20382_s15 + $0x1644] ss:$8 sps:$4 sm:$0xff]  }
 0x1ab   : > { %11018 = vmatmul.mubr.bf16.gmra.mrb[24].mxu1 %v15527_v45  ;;  %v15241_v45 = vcombine.low %v478_v27, %v514_v30  ;;  %v820_v30 = vld [vmem:[%s20374_s5 + $0xf48] sm:$0xff] }
 0x1ac   : > { %13052 = vmatmul.mubr.bf16.gmra.mrb[24].mxu0 %v15563_v46  ;;  %11063 = vmatpush1.bf16.msra.mxu1 %v18466_v41  ;;  %v18514_v41 = vld [vmem:[%s20382_s15 + $0x440] ss:$8 sps:$4 sm:$0xff]   ;;  %v15277_v46 = vcombine.low %v496_v31, %v532_v32 }
 0x1ad   : > { %13097 = vmatpush1.bf16.msra.mxu0 %v18469_v42  ;;  %11064 = vmatprep.subr.bf16.mxu1 %v18474_v49  ;;  %v18517_v42 = vld [vmem:[%s20382_s15 + $0x1640] ss:$8 sps:$4 sm:$0xff]   ;;  %v18522_v49 = vld [vmem:[%s20382_s15 + $0x454] ss:$8 sps:$4 sm:$0xff]  }
 0x1ae   : > { %13098 = vmatprep.subr.bf16.mxu0 %v18477_v50  ;;  %11027 = vmatprep.mubr.bf16.mxu1 %v15600_v51  ;;  %v18525_v50 = vld [vmem:[%s20382_s15 + $0x1654] ss:$8 sps:$4 sm:$0xff]   ;;  %v15314_v51 = vcombine.high %v550_v43, %v586_v44  ;;  %v18550_v31 = vld [vmem:[%s20382_s15 + $0x4a0] ss:$8 sps:$4 sm:$0xff]  }
 0x1af   : > { %13061 = vmatprep.mubr.bf16.mxu0 %v15636_v52  ;;  %v15350_v52 = vcombine.high %v568_v47, %v604_v48  ;;  %v18553_v32 = vld [vmem:[%s20382_s15 + $0x16a0] ss:$8 sps:$4 sm:$0xff]  }
 0x1b0   : > { %11065 = vmatpush1.bf16.msra.mxu1 %v18472_v53  ;;  %v18520_v53 = vld [vmem:[%s20382_s15 + $0x450] ss:$8 sps:$4 sm:$0xff]   ;;  %v856_v47 = vld [vmem:[%s20374_s5 + $0x1068] sm:$0xff] }
 0x1b1   : > { %13099 = vmatpush1.bf16.msra.mxu0 %v18475_v54  ;;  %11066 = vmatprep.subr.bf16.mxu1 %v18480_v55  ;;  %v18523_v54 = vld [vmem:[%s20382_s15 + $0x1650] ss:$8 sps:$4 sm:$0xff]   ;;  %v18528_v55 = vld [vmem:[%s20382_s15 + $0x464] ss:$8 sps:$4 sm:$0xff]  }
 0x1b2   : > { %13100 = vmatprep.subr.bf16.mxu0 %v18483_v56  ;;  %v18531_v56 = vld [vmem:[%s20382_s15 + $0x1664] ss:$8 sps:$4 sm:$0xff]  }
 0x1b3   : > { %11028 = vmatmul.mubr.bf16.gmra.mrb[28].mxu1 %v15599_v60  ;;  %v658_v60 = vld [vmem:[%s20374_s5 + $0xa38] sm:$0xff]  ;;  %v892_v48 = vld [vmem:[%s20374_s5 + $0x1188] sm:$0xff] }
 0x1b4   : > { %13062 = vmatmul.mubr.bf16.gmra.mrb[28].mxu0 %v15635_v61  ;;  %11067 = vmatpush1.bf16.msra.mxu1 %v18478_v57  ;;  %v18526_v57 = vld [vmem:[%s20382_s15 + $0x460] ss:$8 sps:$4 sm:$0xff]   ;;  %v15313_v61 = vcombine.low %v550_v43, %v586_v44  ;;  %v838_v43 = vld [vmem:[%s20374_s5 + $0xfd8] sm:$0xff] }
 0x1b5   : > { %13101 = vmatpush1.bf16.msra.mxu0 %v18481_v0  ;;  %11068 = vmatprep.subr.bf16.mxu1 %v18486_v1  ;;  %v676_v0 = vld [vmem:[%s20374_s5 + $0xac8] sm:$0xff]  ;;  %v18534_v1 = vld [vmem:[%s20382_s15 + $0x474] ss:$8 sps:$4 sm:$0xff]  }
 0x1b6   : > { %13102 = vmatprep.subr.bf16.mxu0 %v18489_v2  ;;  %11070 = vmatprep.mubr.bf16.mxu1 %v15098_v3  ;;  %v18537_v2 = vld [vmem:[%s20382_s15 + $0x1674] ss:$8 sps:$4 sm:$0xff]   ;;  %v15386_v3 = vcombine.high %v622_v59, %v658_v60  ;;  %v15421_v13 = vcombine.low %v640_v63, %v676_v0 }
 0x1b7   : > { %13104 = vmatprep.mubr.bf16.mxu0 %v15134_v4  ;;  %v15422_v4 = vcombine.high %v640_v63, %v676_v0  ;;  %v353_v63 = vld [vmem:[%s20374_s5 + $0xb0] sm:$0xff] }
 0x1b8   : > { %11069 = vmatpush1.bf16.msra.mxu1 %v18484_v5  ;;  %v18532_v5 = vld [vmem:[%s20382_s15 + $0x470] ss:$8 sps:$4 sm:$0xff]  }
 0x1b9   : > { %13103 = vmatpush1.bf16.msra.mxu0 %v18487_v6  ;;  %11151 = vmatprep.subr.bf16.mxu1 %v18492_v7  ;;  %v18535_v6 = vld [vmem:[%s20382_s15 + $0x1670] ss:$8 sps:$4 sm:$0xff]   ;;  %v18540_v7 = vld [vmem:[%s20382_s15 + $0x484] ss:$8 sps:$4 sm:$0xff]  }
 0x1ba   : > { %13185 = vmatprep.subr.bf16.mxu0 %v18495_v8  ;;  %v18543_v8 = vld [vmem:[%s20382_s15 + $0x1684] ss:$8 sps:$4 sm:$0xff]   ;;  %v389_v0 = vld [vmem:[%s20374_s5 + $0x1d0] sm:$0xff] }
 0x1bb   : > { %11071 = vmatmul.mubr.bf16.vlgmr.msra.gmra.mrb[0].mxu1 %v15097_v11  ;;  %v730_v11 = vld [vmem:[%s20374_s5 + $0xc78] sm:$0xff] }
 0x1bc   : > { %13105 = vmatmul.mubr.bf16.vlgmr.msra.gmra.mrb[0].mxu0 %v15133_v12  ;;  %11152 = vmatpush1.bf16.msra.mxu1 %v18490_v15  ;;  %v15385_v12 = vcombine.low %v622_v59, %v658_v60  ;;  %v748_v15 = vld [vmem:[%s20374_s5 + $0xd08] sm:$0xff]  ;;  %v15457_v27 = vcombine.low %v694_v10, %v730_v11  ;;  %v335_v59 = vld [vmem:[%s20374_s5 + $0x20] sm:$0xff] }
 0x1bd   : > { %13186 = vmatpush1.bf16.msra.mxu0 %v18493_v16  ;;  %11153 = vmatprep.subr.bf16.mxu1 %v18498_v17  ;;  %v18541_v16 = vld [vmem:[%s20382_s15 + $0x1680] ss:$8 sps:$4 sm:$0xff]   ;;  %v18546_v17 = vld [vmem:[%s20382_s15 + $0x494] ss:$8 sps:$4 sm:$0xff]  }
 0x1be   : > { %13187 = vmatprep.subr.bf16.mxu0 %v18501_v18  ;;  %11080 = vmatprep.mubr.bf16.mxu1 %v15170_v19  ;;  %v18549_v18 = vld [vmem:[%s20382_s15 + $0x1694] ss:$8 sps:$4 sm:$0xff]   ;;  %v15458_v19 = vcombine.high %v694_v10, %v730_v11  ;;  %v371_v60 = vld [vmem:[%s20374_s5 + $0x140] sm:$0xff] }
 0x1bf   : > { %13114 = vmatprep.mubr.bf16.mxu0 %v15206_v20  ;;  %v15494_v20 = vcombine.high %v712_v14, %v748_v15  ;;  %v18589_v10 = vld [vmem:[%s20382_s15 + $0x1700] ss:$8 sps:$4 sm:$0xff]  }
 0x1c0   : > { %11154 = vmatpush1.bf16.msra.mxu1 %v18496_v21  ;;  %v18544_v21 = vld [vmem:[%s20382_s15 + $0x490] ss:$8 sps:$4 sm:$0xff]   ;;  %v407_v11 = vld [vmem:[%s20374_s5 + $0x260] sm:$0xff] }
 0x1c1   : > { %13188 = vmatpush1.bf16.msra.mxu0 %v18499_v22  ;;  %11155 = vmatprep.subr.bf16.mxu1 %v18504_v23  ;;  %v18547_v22 = vld [vmem:[%s20382_s15 + $0x1690] ss:$8 sps:$4 sm:$0xff]   ;;  %v18552_v23 = vld [vmem:[%s20382_s15 + $0x4a4] ss:$8 sps:$4 sm:$0xff]  }
 0x1c2   : > { %13189 = vmatprep.subr.bf16.mxu0 %v18507_v24  ;;  %v18555_v24 = vld [vmem:[%s20382_s15 + $0x16a4] ss:$8 sps:$4 sm:$0xff]  }
 0x1c3   : > { %11081 = vmatmul.mubr.bf16.gmra.mrb[4].mxu1 %v15169_v28  ;;  %v15493_v28 = vcombine.low %v712_v14, %v748_v15  ;;  %v15135_v14 = vcombine.low %v353_v63, %v389_v0  ;;  %v425_v15 = vld [vmem:[%s20374_s5 + $0x2f0] sm:$0xff] }
 0x1c4   : > { %13115 = vmatmul.mubr.bf16.gmra.mrb[4].mxu0 %v15205_v29  ;;  %11156 = vmatpush1.bf16.msra.mxu1 %v18502_v25  ;;  %v766_v25 = vld [vmem:[%s20374_s5 + $0xd98] sm:$0xff]  ;;  %v784_v29 = vld [vmem:[%s20374_s5 + $0xe28] sm:$0xff] }
 0x1c5   : > { %13190 = vmatpush1.bf16.msra.mxu0 %v18505_v26  ;;  %11157 = vmatprep.subr.bf16.mxu1 %v18510_v33  ;;  %v802_v26 = vld [vmem:[%s20374_s5 + $0xeb8] sm:$0xff] }
 0x1c6   : > { %13191 = vmatprep.subr.bf16.mxu0 %v18513_v34  ;;  %11090 = vmatprep.mubr.bf16.mxu1 %v15242_v35  ;;  %v18558_v33 = vld [vmem:[%s20382_s15 + $0x4b4] ss:$8 sps:$4 sm:$0xff]   ;;  %v15530_v35 = vcombine.high %v766_v25, %v802_v26  ;;  %v15529_v44 = vcombine.low %v766_v25, %v802_v26  ;;  %v18598_v25 = vld [vmem:[%s20382_s15 + $0x520] ss:$8 sps:$4 sm:$0xff]  }
 0x1c7   : > { %13124 = vmatprep.mubr.bf16.mxu0 %v15278_v36  ;;  %v18561_v34 = vld [vmem:[%s20382_s15 + $0x16b4] ss:$8 sps:$4 sm:$0xff]   ;;  %v15566_v36 = vcombine.high %v784_v29, %v820_v30  ;;  %v479_v26 = vld [vmem:[%s20374_s5 + $0x4a0] sm:$0xff] }
 0x1c8   : > { %11158 = vmatpush1.bf16.msra.mxu1 %v18508_v37  ;;  %v18556_v37 = vld [vmem:[%s20382_s15 + $0x4b0] ss:$8 sps:$4 sm:$0xff]  }
 0x1c9   : > { %13192 = vmatpush1.bf16.msra.mxu0 %v18511_v38  ;;  %11159 = vmatprep.subr.bf16.mxu1 %v18516_v39  ;;  %v18559_v38 = vld [vmem:[%s20382_s15 + $0x16b0] ss:$8 sps:$4 sm:$0xff]   ;;  %v18564_v39 = vld [vmem:[%s20382_s15 + $0x4c4] ss:$8 sps:$4 sm:$0xff]  }
 0x1ca   : > { %13193 = vmatprep.subr.bf16.mxu0 %v18519_v40  ;;  %v18567_v40 = vld [vmem:[%s20382_s15 + $0x16c4] ss:$8 sps:$4 sm:$0xff]  }
 0x1cb   : > { %11091 = vmatmul.mubr.bf16.gmra.mrb[8].mxu1 %v15241_v45  ;;  %v15565_v45 = vcombine.low %v784_v29, %v820_v30  ;;  %v497_v30 = vld [vmem:[%s20374_s5 + $0x530] sm:$0xff] }
 0x1cc   : > { %13125 = vmatmul.mubr.bf16.gmra.mrb[8].mxu0 %v15277_v46  ;;  %11160 = vmatpush1.bf16.msra.mxu1 %v18514_v41  ;;  %v18562_v41 = vld [vmem:[%s20382_s15 + $0x4c0] ss:$8 sps:$4 sm:$0xff]   ;;  %v874_v46 = vld [vmem:[%s20374_s5 + $0x10f8] sm:$0xff] }
 0x1cd   : > { %13194 = vmatpush1.bf16.msra.mxu0 %v18517_v42  ;;  %11161 = vmatprep.subr.bf16.mxu1 %v18522_v49  ;;  %v18565_v42 = vld [vmem:[%s20382_s15 + $0x16c0] ss:$8 sps:$4 sm:$0xff]   ;;  %v18570_v49 = vld [vmem:[%s20382_s15 + $0x4d4] ss:$8 sps:$4 sm:$0xff]  }
 0x1ce   : > { %13195 = vmatprep.subr.bf16.mxu0 %v18525_v50  ;;  %11100 = vmatprep.mubr.bf16.mxu1 %v15314_v51  ;;  %v18573_v50 = vld [vmem:[%s20382_s15 + $0x16d4] ss:$8 sps:$4 sm:$0xff]   ;;  %v15602_v51 = vcombine.high %v838_v43, %v874_v46 }
 0x1cf   : > { %13134 = vmatprep.mubr.bf16.mxu0 %v15350_v52  ;;  %v15638_v52 = vcombine.high %v856_v47, %v892_v48 }
 0x1d0   : > { %11162 = vmatpush1.bf16.msra.mxu1 %v18520_v53  ;;  %v18568_v53 = vld [vmem:[%s20382_s15 + $0x4d0] ss:$8 sps:$4 sm:$0xff]  }
 0x1d1   : > { %13196 = vmatpush1.bf16.msra.mxu0 %v18523_v54  ;;  %11163 = vmatprep.subr.bf16.mxu1 %v18528_v55  ;;  %v18571_v54 = vld [vmem:[%s20382_s15 + $0x16d0] ss:$8 sps:$4 sm:$0xff]   ;;  %v18576_v55 = vld [vmem:[%s20382_s15 + $0x4e4] ss:$8 sps:$4 sm:$0xff]  }
 0x1d2   : > { %13197 = vmatprep.subr.bf16.mxu0 %v18531_v56  ;;  %v18579_v56 = vld [vmem:[%s20382_s15 + $0x16e4] ss:$8 sps:$4 sm:$0xff]  }
 0x1d3   : > { %11101 = vmatmul.mubr.bf16.gmra.mrb[12].mxu1 %v15313_v61  ;;  %v15601_v61 = vcombine.low %v838_v43, %v874_v46  ;;  %v605_v46 = vld [vmem:[%s20374_s5 + $0x890] sm:$0xff] }
 0x1d4   : > { %13135 = vmatmul.mubr.bf16.gmra.mrb[12].mxu0 %v15349_v62  ;;  %11164 = vmatpush1.bf16.msra.mxu1 %v18526_v57  ;;  %v18574_v57 = vld [vmem:[%s20382_s15 + $0x4e0] ss:$8 sps:$4 sm:$0xff]   ;;  %v15637_v62 = vcombine.low %v856_v47, %v892_v48 }
 0x1d5   : > { %13198 = vmatpush1.bf16.msra.mxu0 %v18529_v58  ;;  %11165 = vmatprep.subr.bf16.mxu1 %v18534_v1  ;;  %v18577_v58 = vld [vmem:[%s20382_s15 + $0x16e0] ss:$8 sps:$4 sm:$0xff]   ;;  %v18582_v1 = vld [vmem:[%s20382_s15 + $0x4f4] ss:$8 sps:$4 sm:$0xff]  }
 0x1d6   : > { %13199 = vmatprep.subr.bf16.mxu0 %v18537_v2  ;;  %11110 = vmatprep.mubr.bf16.mxu1 %v15386_v3  ;;  %v18585_v2 = vld [vmem:[%s20382_s15 + $0x16f4] ss:$8 sps:$4 sm:$0xff]   ;;  %v15100_v3 = vcombine.high %v335_v59, %v371_v60  ;;  %v18610_v47 = vld [vmem:[%s20382_s15 + $0x540] ss:$8 sps:$4 sm:$0xff]  }
 0x1d7   : > { %13144 = vmatprep.mubr.bf16.mxu0 %v15422_v4  ;;  %v15136_v4 = vcombine.high %v353_v63, %v389_v0  ;;  %v18613_v48 = vld [vmem:[%s20382_s15 + $0x1740] ss:$8 sps:$4 sm:$0xff]   ;;  %v641_v63 = vld [vmem:[%s20374_s5 + $0x9b0] sm:$0xff] }
 0x1d8   : > { %11166 = vmatpush1.bf16.msra.mxu1 %v18532_v5  ;;  %v18580_v5 = vld [vmem:[%s20382_s15 + $0x4f0] ss:$8 sps:$4 sm:$0xff]  }
 0x1d9   : > { %13200 = vmatpush1.bf16.msra.mxu0 %v18535_v6  ;;  %11167 = vmatprep.subr.bf16.mxu1 %v18540_v7  ;;  %v18583_v6 = vld [vmem:[%s20382_s15 + $0x16f0] ss:$8 sps:$4 sm:$0xff]   ;;  %v18588_v7 = vld [vmem:[%s20382_s15 + $0x504] ss:$8 sps:$4 sm:$0xff]  }
 0x1da   : > { %13201 = vmatprep.subr.bf16.mxu0 %v18543_v8  ;;  %v18591_v8 = vld [vmem:[%s20382_s15 + $0x1704] ss:$8 sps:$4 sm:$0xff]   ;;  %v677_v0 = vld [vmem:[%s20374_s5 + $0xad0] sm:$0xff] }
 0x1db   : > { %11111 = vmatmul.mubr.bf16.gmra.mrb[16].mxu1 %v15385_v12  ;;  %v443_v12 = vld [vmem:[%s20374_s5 + $0x380] sm:$0xff] }
 0x1dc   : > { %13145 = vmatmul.mubr.bf16.gmra.mrb[16].mxu0 %v15421_v13  ;;  %11168 = vmatpush1.bf16.msra.mxu1 %v18538_v9  ;;  %v18586_v9 = vld [vmem:[%s20382_s15 + $0x500] ss:$8 sps:$4 sm:$0xff]   ;;  %v15099_v13 = vcombine.low %v335_v59, %v371_v60 }
 0x1dd   : > { %13202 = vmatpush1.bf16.msra.mxu0 %v18541_v16  ;;  %11169 = vmatprep.subr.bf16.mxu1 %v18546_v17  ;;  %v461_v16 = vld [vmem:[%s20374_s5 + $0x410] sm:$0xff]  ;;  %v623_v59 = vld [vmem:[%s20374_s5 + $0x920] sm:$0xff] }
 0x1de   : > { %13203 = vmatprep.subr.bf16.mxu0 %v18549_v18  ;;  %11120 = vmatprep.mubr.bf16.mxu1 %v15458_v19  ;;  %v18594_v17 = vld [vmem:[%s20382_s15 + $0x514] ss:$8 sps:$4 sm:$0xff]   ;;  %v15172_v19 = vcombine.high %v407_v11, %v443_v12  ;;  %v15207_v29 = vcombine.low %v425_v15, %v461_v16 }
 0x1df   : > { %13154 = vmatprep.mubr.bf16.mxu0 %v15494_v20  ;;  %v18597_v18 = vld [vmem:[%s20382_s15 + $0x1714] ss:$8 sps:$4 sm:$0xff]   ;;  %v15208_v20 = vcombine.high %v425_v15, %v461_v16 }
 0x1e0   : > { %11170 = vmatpush1.bf16.msra.mxu1 %v18544_v21  ;;  %v18592_v21 = vld [vmem:[%s20382_s15 + $0x510] ss:$8 sps:$4 sm:$0xff]  }
 0x1e1   : > { %13204 = vmatpush1.bf16.msra.mxu0 %v18547_v22  ;;  %11171 = vmatprep.subr.bf16.mxu1 %v18552_v23  ;;  %v18595_v22 = vld [vmem:[%s20382_s15 + $0x1710] ss:$8 sps:$4 sm:$0xff]   ;;  %v18600_v23 = vld [vmem:[%s20382_s15 + $0x524] ss:$8 sps:$4 sm:$0xff]  }
 0x1e2   : > { %13205 = vmatprep.subr.bf16.mxu0 %v18555_v24  ;;  %v18603_v24 = vld [vmem:[%s20382_s15 + $0x1724] ss:$8 sps:$4 sm:$0xff]   ;;  %v713_v15 = vld [vmem:[%s20374_s5 + $0xbf0] sm:$0xff] }
 0x1e3   : > { %11121 = vmatmul.mubr.bf16.gmra.mrb[20].mxu1 %v15457_v27  ;;  %v515_v27 = vld [vmem:[%s20374_s5 + $0x5c0] sm:$0xff]  ;;  %v749_v16 = vld [vmem:[%s20374_s5 + $0xd10] sm:$0xff] }
 0x1e4   : > { %13155 = vmatmul.mubr.bf16.gmra.mrb[20].mxu0 %v15493_v28  ;;  %11172 = vmatpush1.bf16.msra.mxu1 %v18550_v31  ;;  %v15171_v28 = vcombine.low %v407_v11, %v443_v12  ;;  %v533_v31 = vld [vmem:[%s20374_s5 + $0x650] sm:$0xff]  ;;  %v15243_v43 = vcombine.low %v479_v26, %v515_v27  ;;  %v695_v11 = vld [vmem:[%s20374_s5 + $0xb60] sm:$0xff] }
 0x1e5   : > { %13206 = vmatpush1.bf16.msra.mxu0 %v18553_v32  ;;  %11173 = vmatprep.subr.bf16.mxu1 %v18558_v33  ;;  %v18601_v32 = vld [vmem:[%s20382_s15 + $0x1720] ss:$8 sps:$4 sm:$0xff]   ;;  %v18606_v33 = vld [vmem:[%s20382_s15 + $0x534] ss:$8 sps:$4 sm:$0xff]  }
 0x1e6   : > { %13207 = vmatprep.subr.bf16.mxu0 %v18561_v34  ;;  %11130 = vmatprep.mubr.bf16.mxu1 %v15530_v35  ;;  %v18609_v34 = vld [vmem:[%s20382_s15 + $0x1734] ss:$8 sps:$4 sm:$0xff]   ;;  %v15244_v35 = vcombine.high %v479_v26, %v515_v27  ;;  %v731_v12 = vld [vmem:[%s20374_s5 + $0xc80] sm:$0xff] }
 0x1e7   : > { %13164 = vmatprep.mubr.bf16.mxu0 %v15566_v36  ;;  %v15280_v36 = vcombine.high %v497_v30, %v533_v31  ;;  %v18649_v26 = vld [vmem:[%s20382_s15 + $0x17a0] ss:$8 sps:$4 sm:$0xff]  }
 0x1e8   : > { %11174 = vmatpush1.bf16.msra.mxu1 %v18556_v37  ;;  %v18604_v37 = vld [vmem:[%s20382_s15 + $0x530] ss:$8 sps:$4 sm:$0xff]   ;;  %v767_v27 = vld [vmem:[%s20374_s5 + $0xda0] sm:$0xff] }
 0x1e9   : > { %13208 = vmatpush1.bf16.msra.mxu0 %v18559_v38  ;;  %11175 = vmatprep.subr.bf16.mxu1 %v18564_v39  ;;  %v18607_v38 = vld [vmem:[%s20382_s15 + $0x1730] ss:$8 sps:$4 sm:$0xff]   ;;  %v18612_v39 = vld [vmem:[%s20382_s15 + $0x544] ss:$8 sps:$4 sm:$0xff]  }
 0x1ea   : > { %13209 = vmatprep.subr.bf16.mxu0 %v18567_v40  ;;  %v18615_v40 = vld [vmem:[%s20382_s15 + $0x1744] ss:$8 sps:$4 sm:$0xff]  }
 0x1eb   : > { %11131 = vmatmul.mubr.bf16.gmra.mrb[24].mxu1 %v15529_v44  ;;  %v15279_v44 = vcombine.low %v497_v30, %v533_v31  ;;  %v15495_v30 = vcombine.low %v713_v15, %v749_v16  ;;  %v785_v31 = vld [vmem:[%s20374_s5 + $0xe30] sm:$0xff] }
 0x1ec   : > { %13165 = vmatmul.mubr.bf16.gmra.mrb[24].mxu0 %v15565_v45  ;;  %11176 = vmatpush1.bf16.msra.mxu1 %v18562_v41  ;;  %v551_v41 = vld [vmem:[%s20374_s5 + $0x6e0] sm:$0xff]  ;;  %v569_v45 = vld [vmem:[%s20374_s5 + $0x770] sm:$0xff] }
 0x1ed   : > { %13210 = vmatpush1.bf16.msra.mxu0 %v18565_v42  ;;  %11177 = vmatprep.subr.bf16.mxu1 %v18570_v49  ;;  %v587_v42 = vld [vmem:[%s20374_s5 + $0x800] sm:$0xff]  ;;  %v18618_v49 = vld [vmem:[%s20382_s15 + $0x554] ss:$8 sps:$4 sm:$0xff]  }
 0x1ee   : > { %13211 = vmatprep.subr.bf16.mxu0 %v18573_v50  ;;  %11140 = vmatprep.mubr.bf16.mxu1 %v15602_v51  ;;  %v18621_v50 = vld [vmem:[%s20382_s15 + $0x1754] ss:$8 sps:$4 sm:$0xff]   ;;  %v15316_v51 = vcombine.high %v551_v41, %v587_v42  ;;  %v15315_v60 = vcombine.low %v551_v41, %v587_v42  ;;  %v18658_v41 = vld [vmem:[%s20382_s15 + $0x5c0] ss:$8 sps:$4 sm:$0xff]  }
 0x1ef   : > { %13174 = vmatprep.mubr.bf16.mxu0 %v15638_v52  ;;  %v15352_v52 = vcombine.high %v569_v45, %v605_v46  ;;  %v839_v42 = vld [vmem:[%s20374_s5 + $0xfe0] sm:$0xff] }
 0x1f0   : > { %11178 = vmatpush1.bf16.msra.mxu1 %v18568_v53  ;;  %v18616_v53 = vld [vmem:[%s20382_s15 + $0x550] ss:$8 sps:$4 sm:$0xff]  }
 0x1f1   : > { %13212 = vmatpush1.bf16.msra.mxu0 %v18571_v54  ;;  %11179 = vmatprep.subr.bf16.mxu1 %v18576_v55  ;;  %v18619_v54 = vld [vmem:[%s20382_s15 + $0x1750] ss:$8 sps:$4 sm:$0xff]   ;;  %v18624_v55 = vld [vmem:[%s20382_s15 + $0x564] ss:$8 sps:$4 sm:$0xff]  }
 0x1f2   : > { %13213 = vmatprep.subr.bf16.mxu0 %v18579_v56  ;;  %v18627_v56 = vld [vmem:[%s20382_s15 + $0x1764] ss:$8 sps:$4 sm:$0xff]  }
 0x1f3   : > { %11141 = vmatmul.mubr.bf16.gmra.mrb[28].mxu1 %v15601_v61  ;;  %v15351_v61 = vcombine.low %v569_v45, %v605_v46  ;;  %v857_v46 = vld [vmem:[%s20374_s5 + $0x1070] sm:$0xff] }
 0x1f4   : > { %13175 = vmatmul.mubr.bf16.gmra.mrb[28].mxu0 %v15637_v62  ;;  %11180 = vmatpush1.bf16.msra.mxu1 %v18574_v57  ;;  %v18622_v57 = vld [vmem:[%s20382_s15 + $0x560] ss:$8 sps:$4 sm:$0xff]  }
 0x1f5   : > { %13214 = vmatpush1.bf16.msra.mxu0 %v18577_v58  ;;  %11181 = vmatprep.subr.bf16.mxu1 %v18582_v1  ;;  %v18625_v58 = vld [vmem:[%s20382_s15 + $0x1760] ss:$8 sps:$4 sm:$0xff]   ;;  %v18630_v1 = vld [vmem:[%s20382_s15 + $0x574] ss:$8 sps:$4 sm:$0xff]  }
 0x1f6   : > { %13215 = vmatprep.subr.bf16.mxu0 %v18585_v2  ;;  %11183 = vmatprep.mubr.bf16.mxu1 %v15100_v3  ;;  %v659_v62 = vld [vmem:[%s20374_s5 + $0xa40] sm:$0xff]  ;;  %v18633_v2 = vld [vmem:[%s20382_s15 + $0x1774] ss:$8 sps:$4 sm:$0xff]  }
 0x1f7   : > { %13217 = vmatprep.mubr.bf16.mxu0 %v15136_v4  ;;  %v15388_v3 = vcombine.high %v623_v59, %v659_v62  ;;  %v15424_v4 = vcombine.high %v641_v63, %v677_v0 }
 0x1f8   : > { %11182 = vmatpush1.bf16.msra.mxu1 %v18580_v5  ;;  %v18628_v5 = vld [vmem:[%s20382_s15 + $0x570] ss:$8 sps:$4 sm:$0xff]  }
 0x1f9   : > { %13216 = vmatpush1.bf16.msra.mxu0 %v18583_v6  ;;  %11264 = vmatprep.subr.bf16.mxu1 %v18588_v7  ;;  %v18631_v6 = vld [vmem:[%s20382_s15 + $0x1770] ss:$8 sps:$4 sm:$0xff]   ;;  %v18636_v7 = vld [vmem:[%s20382_s15 + $0x584] ss:$8 sps:$4 sm:$0xff]  }
 0x1fa   : > { %13298 = vmatprep.subr.bf16.mxu0 %v18591_v8  ;;  %v18639_v8 = vld [vmem:[%s20382_s15 + $0x1784] ss:$8 sps:$4 sm:$0xff]  }
 0x1fb   : > { %11184 = vmatmul.mubr.bf16.vlgmr.msra.gmra.mrb[0].mxu1 %v15099_v13  ;;  %v15387_v13 = vcombine.low %v623_v59, %v659_v62  ;;  %v390_v62 = vld [vmem:[%s20374_s5 + $0x1d8] sm:$0xff] }
 0x1fc   : > { %13218 = vmatmul.mubr.bf16.vlgmr.msra.gmra.mrb[0].mxu0 %v15135_v14  ;;  %11265 = vmatpush1.bf16.msra.mxu1 %v18586_v9  ;;  %v18634_v9 = vld [vmem:[%s20382_s15 + $0x580] ss:$8 sps:$4 sm:$0xff]   ;;  %v15423_v14 = vcombine.low %v641_v63, %v677_v0 }
 0x1fd   : > { %13299 = vmatpush1.bf16.msra.mxu0 %v18589_v10  ;;  %11266 = vmatprep.subr.bf16.mxu1 %v18594_v17  ;;  %v18637_v10 = vld [vmem:[%s20382_s15 + $0x1780] ss:$8 sps:$4 sm:$0xff]   ;;  %v18642_v17 = vld [vmem:[%s20382_s15 + $0x594] ss:$8 sps:$4 sm:$0xff]  }
 0x1fe   : > { %13300 = vmatprep.subr.bf16.mxu0 %v18597_v18  ;;  %11193 = vmatprep.mubr.bf16.mxu1 %v15172_v19  ;;  %v18645_v18 = vld [vmem:[%s20382_s15 + $0x1794] ss:$8 sps:$4 sm:$0xff]   ;;  %v15460_v19 = vcombine.high %v695_v11, %v731_v12  ;;  %v18670_v63 = vld [vmem:[%s20382_s15 + $0x5e0] ss:$8 sps:$4 sm:$0xff]  }
 0x1ff   : > { %13227 = vmatprep.mubr.bf16.mxu0 %v15208_v20  ;;  %v15496_v20 = vcombine.high %v713_v15, %v749_v16  ;;  %v18673_v0 = vld [vmem:[%s20382_s15 + $0x17e0] ss:$8 sps:$4 sm:$0xff]   ;;  %v426_v15 = vld [vmem:[%s20374_s5 + $0x2f8] sm:$0xff] }
 0x200   : > { %11267 = vmatpush1.bf16.msra.mxu1 %v18592_v21  ;;  %v18640_v21 = vld [vmem:[%s20382_s15 + $0x590] ss:$8 sps:$4 sm:$0xff]  }
 0x201   : > { %13301 = vmatpush1.bf16.msra.mxu0 %v18595_v22  ;;  %11268 = vmatprep.subr.bf16.mxu1 %v18600_v23  ;;  %v18643_v22 = vld [vmem:[%s20382_s15 + $0x1790] ss:$8 sps:$4 sm:$0xff]   ;;  %v18648_v23 = vld [vmem:[%s20382_s15 + $0x5a4] ss:$8 sps:$4 sm:$0xff]  }
 0x202   : > { %13302 = vmatprep.subr.bf16.mxu0 %v18603_v24  ;;  %v18651_v24 = vld [vmem:[%s20382_s15 + $0x17a4] ss:$8 sps:$4 sm:$0xff]   ;;  %v462_v16 = vld [vmem:[%s20374_s5 + $0x418] sm:$0xff] }
 0x203   : > { %11194 = vmatmul.mubr.bf16.gmra.mrb[4].mxu1 %v15171_v28  ;;  %v803_v28 = vld [vmem:[%s20374_s5 + $0xec0] sm:$0xff] }
 0x204   : > { %13228 = vmatmul.mubr.bf16.gmra.mrb[4].mxu0 %v15207_v29  ;;  %11269 = vmatpush1.bf16.msra.mxu1 %v18598_v25  ;;  %v18646_v25 = vld [vmem:[%s20382_s15 + $0x5a0] ss:$8 sps:$4 sm:$0xff]   ;;  %v15459_v29 = vcombine.low %v695_v11, %v731_v12 }
 0x205   : > { %13303 = vmatpush1.bf16.msra.mxu0 %v18601_v32  ;;  %11270 = vmatprep.subr.bf16.mxu1 %v18606_v33  ;;  %v821_v32 = vld [vmem:[%s20374_s5 + $0xf50] sm:$0xff]  ;;  %v408_v11 = vld [vmem:[%s20374_s5 + $0x268] sm:$0xff] }
 0x206   : > { %13304 = vmatprep.subr.bf16.mxu0 %v18609_v34  ;;  %11203 = vmatprep.mubr.bf16.mxu1 %v15244_v35  ;;  %v18654_v33 = vld [vmem:[%s20382_s15 + $0x5b4] ss:$8 sps:$4 sm:$0xff]   ;;  %v15532_v35 = vcombine.high %v767_v27, %v803_v28  ;;  %v15567_v45 = vcombine.low %v785_v31, %v821_v32 }
 0x207   : > { %13237 = vmatprep.mubr.bf16.mxu0 %v15280_v36  ;;  %v18657_v34 = vld [vmem:[%s20382_s15 + $0x17b4] ss:$8 sps:$4 sm:$0xff]   ;;  %v15568_v36 = vcombine.high %v785_v31, %v821_v32 }
 0x208   : > { %11271 = vmatpush1.bf16.msra.mxu1 %v18604_v37  ;;  %v18652_v37 = vld [vmem:[%s20382_s15 + $0x5b0] ss:$8 sps:$4 sm:$0xff]  }
 0x209   : > { %13305 = vmatpush1.bf16.msra.mxu0 %v18607_v38  ;;  %11272 = vmatprep.subr.bf16.mxu1 %v18612_v39  ;;  %v18655_v38 = vld [vmem:[%s20382_s15 + $0x17b0] ss:$8 sps:$4 sm:$0xff]   ;;  %v18660_v39 = vld [vmem:[%s20382_s15 + $0x5c4] ss:$8 sps:$4 sm:$0xff]  }
 0x20a   : > { %13306 = vmatprep.subr.bf16.mxu0 %v18615_v40  ;;  %v18663_v40 = vld [vmem:[%s20382_s15 + $0x17c4] ss:$8 sps:$4 sm:$0xff]   ;;  %v498_v31 = vld [vmem:[%s20374_s5 + $0x538] sm:$0xff] }
 0x20b   : > { %11204 = vmatmul.mubr.bf16.gmra.mrb[8].mxu1 %v15243_v43  ;;  %v875_v43 = vld [vmem:[%s20374_s5 + $0x1100] sm:$0xff]  ;;  %v534_v32 = vld [vmem:[%s20374_s5 + $0x658] sm:$0xff] }
 0x20c   : > { %13238 = vmatmul.mubr.bf16.gmra.mrb[8].mxu0 %v15279_v44  ;;  %11273 = vmatpush1.bf16.msra.mxu1 %v18610_v47  ;;  %v15531_v44 = vcombine.low %v767_v27, %v803_v28  ;;  %v893_v47 = vld [vmem:[%s20374_s5 + $0x1190] sm:$0xff]  ;;  %v15603_v59 = vcombine.low %v839_v42, %v875_v43  ;;  %v480_v27 = vld [vmem:[%s20374_s5 + $0x4a8] sm:$0xff] }
 0x20d   : > { %13307 = vmatpush1.bf16.msra.mxu0 %v18613_v48  ;;  %11274 = vmatprep.subr.bf16.mxu1 %v18618_v49  ;;  %v18661_v48 = vld [vmem:[%s20382_s15 + $0x17c0] ss:$8 sps:$4 sm:$0xff]   ;;  %v18666_v49 = vld [vmem:[%s20382_s15 + $0x5d4] ss:$8 sps:$4 sm:$0xff]  }
 0x20e   : > { %13308 = vmatprep.subr.bf16.mxu0 %v18621_v50  ;;  %11213 = vmatprep.mubr.bf16.mxu1 %v15316_v51  ;;  %v18669_v50 = vld [vmem:[%s20382_s15 + $0x17d4] ss:$8 sps:$4 sm:$0xff]   ;;  %v15604_v51 = vcombine.high %v839_v42, %v875_v43  ;;  %v516_v28 = vld [vmem:[%s20374_s5 + $0x5c8] sm:$0xff] }
 0x20f   : > { %13247 = vmatprep.mubr.bf16.mxu0 %v15352_v52  ;;  %v15640_v52 = vcombine.high %v857_v46, %v893_v47  ;;  %v18709_v42 = vld [vmem:[%s20382_s15 + $0x1840] ss:$8 sps:$4 sm:$0xff]  }
 0x210   : > { %11275 = vmatpush1.bf16.msra.mxu1 %v18616_v53  ;;  %v18664_v53 = vld [vmem:[%s20382_s15 + $0x5d0] ss:$8 sps:$4 sm:$0xff]   ;;  %v552_v43 = vld [vmem:[%s20374_s5 + $0x6e8] sm:$0xff] }
 0x211   : > { %13309 = vmatpush1.bf16.msra.mxu0 %v18619_v54  ;;  %11276 = vmatprep.subr.bf16.mxu1 %v18624_v55  ;;  %v18667_v54 = vld [vmem:[%s20382_s15 + $0x17d0] ss:$8 sps:$4 sm:$0xff]   ;;  %v18672_v55 = vld [vmem:[%s20382_s15 + $0x5e4] ss:$8 sps:$4 sm:$0xff]  }
 0x212   : > { %13310 = vmatprep.subr.bf16.mxu0 %v18627_v56  ;;  %v18675_v56 = vld [vmem:[%s20382_s15 + $0x17e4] ss:$8 sps:$4 sm:$0xff]  }
 0x213   : > { %11214 = vmatmul.mubr.bf16.gmra.mrb[12].mxu1 %v15315_v60  ;;  %v15639_v60 = vcombine.low %v857_v46, %v893_v47  ;;  %v15281_v46 = vcombine.low %v498_v31, %v534_v32  ;;  %v570_v47 = vld [vmem:[%s20374_s5 + $0x778] sm:$0xff] }
 0x214   : > { %13248 = vmatmul.mubr.bf16.gmra.mrb[12].mxu0 %v15351_v61  ;;  %11277 = vmatpush1.bf16.msra.mxu1 %v18622_v57  ;;  %v336_v57 = vld [vmem:[%s20374_s5 + $0x28] sm:$0xff]  ;;  %v354_v61 = vld [vmem:[%s20374_s5 + $0xb8] sm:$0xff] }
 0x215   : > { %13311 = vmatpush1.bf16.msra.mxu0 %v18625_v58  ;;  %11278 = vmatprep.subr.bf16.mxu1 %v18630_v1  ;;  %v372_v58 = vld [vmem:[%s20374_s5 + $0x148] sm:$0xff]  ;;  %v18678_v1 = vld [vmem:[%s20382_s15 + $0x5f4] ss:$8 sps:$4 sm:$0xff]  }
 0x216   : > { %13312 = vmatprep.subr.bf16.mxu0 %v18633_v2  ;;  %11223 = vmatprep.mubr.bf16.mxu1 %v15388_v3  ;;  %v18681_v2 = vld [vmem:[%s20382_s15 + $0x17f4] ss:$8 sps:$4 sm:$0xff]   ;;  %v15102_v3 = vcombine.high %v336_v57, %v372_v58  ;;  %v15101_v12 = vcombine.low %v336_v57, %v372_v58  ;;  %v18718_v57 = vld [vmem:[%s20382_s15 + $0x660] ss:$8 sps:$4 sm:$0xff]  }
 0x217   : > { %13257 = vmatprep.mubr.bf16.mxu0 %v15424_v4  ;;  %v15138_v4 = vcombine.high %v354_v61, %v390_v62  ;;  %v624_v58 = vld [vmem:[%s20374_s5 + $0x928] sm:$0xff] }
 0x218   : > { %11279 = vmatpush1.bf16.msra.mxu1 %v18628_v5  ;;  %v18676_v5 = vld [vmem:[%s20382_s15 + $0x5f0] ss:$8 sps:$4 sm:$0xff]  }
 0x219   : > { %13313 = vmatpush1.bf16.msra.mxu0 %v18631_v6  ;;  %11280 = vmatprep.subr.bf16.mxu1 %v18636_v7  ;;  %v18679_v6 = vld [vmem:[%s20382_s15 + $0x17f0] ss:$8 sps:$4 sm:$0xff]   ;;  %v18684_v7 = vld [vmem:[%s20382_s15 + $0x604] ss:$8 sps:$4 sm:$0xff]  }
 0x21a   : > { %13314 = vmatprep.subr.bf16.mxu0 %v18639_v8  ;;  %v18687_v8 = vld [vmem:[%s20382_s15 + $0x1804] ss:$8 sps:$4 sm:$0xff]  }
 0x21b   : > { %11224 = vmatmul.mubr.bf16.gmra.mrb[16].mxu1 %v15387_v13  ;;  %v15137_v13 = vcombine.low %v354_v61, %v390_v62  ;;  %v642_v62 = vld [vmem:[%s20374_s5 + $0x9b8] sm:$0xff] }
 0x21c   : > { %13258 = vmatmul.mubr.bf16.gmra.mrb[16].mxu0 %v15423_v14  ;;  %11281 = vmatpush1.bf16.msra.mxu1 %v18634_v9  ;;  %v18682_v9 = vld [vmem:[%s20382_s15 + $0x600] ss:$8 sps:$4 sm:$0xff]  }
 0x21d   : > { %13315 = vmatpush1.bf16.msra.mxu0 %v18637_v10  ;;  %11282 = vmatprep.subr.bf16.mxu1 %v18642_v17  ;;  %v18685_v10 = vld [vmem:[%s20382_s15 + $0x1800] ss:$8 sps:$4 sm:$0xff]   ;;  %v18690_v17 = vld [vmem:[%s20382_s15 + $0x614] ss:$8 sps:$4 sm:$0xff]  }
 0x21e   : > { %13316 = vmatprep.subr.bf16.mxu0 %v18645_v18  ;;  %11233 = vmatprep.mubr.bf16.mxu1 %v15460_v19  ;;  %v444_v14 = vld [vmem:[%s20374_s5 + $0x388] sm:$0xff]  ;;  %v18693_v18 = vld [vmem:[%s20382_s15 + $0x1814] ss:$8 sps:$4 sm:$0xff]  }
 0x21f   : > { %13267 = vmatprep.mubr.bf16.mxu0 %v15496_v20  ;;  %v15174_v19 = vcombine.high %v408_v11, %v444_v14  ;;  %v15210_v20 = vcombine.high %v426_v15, %v462_v16 }
 0x220   : > { %11283 = vmatpush1.bf16.msra.mxu1 %v18640_v21  ;;  %v18688_v21 = vld [vmem:[%s20382_s15 + $0x610] ss:$8 sps:$4 sm:$0xff]  }
 0x221   : > { %13317 = vmatpush1.bf16.msra.mxu0 %v18643_v22  ;;  %11284 = vmatprep.subr.bf16.mxu1 %v18648_v23  ;;  %v18691_v22 = vld [vmem:[%s20382_s15 + $0x1810] ss:$8 sps:$4 sm:$0xff]   ;;  %v18696_v23 = vld [vmem:[%s20382_s15 + $0x624] ss:$8 sps:$4 sm:$0xff]  }
 0x222   : > { %13318 = vmatprep.subr.bf16.mxu0 %v18651_v24  ;;  %v18699_v24 = vld [vmem:[%s20382_s15 + $0x1824] ss:$8 sps:$4 sm:$0xff]  }
 0x223   : > { %11234 = vmatmul.mubr.bf16.gmra.mrb[20].mxu1 %v15459_v29  ;;  %v15173_v29 = vcombine.low %v408_v11, %v444_v14  ;;  %v750_v14 = vld [vmem:[%s20374_s5 + $0xd18] sm:$0xff] }
 0x224   : > { %13268 = vmatmul.mubr.bf16.gmra.mrb[20].mxu0 %v15495_v30  ;;  %11285 = vmatpush1.bf16.msra.mxu1 %v18646_v25  ;;  %v18694_v25 = vld [vmem:[%s20382_s15 + $0x620] ss:$8 sps:$4 sm:$0xff]   ;;  %v15209_v30 = vcombine.low %v426_v15, %v462_v16 }
 0x225   : > { %13319 = vmatpush1.bf16.msra.mxu0 %v18649_v26  ;;  %11286 = vmatprep.subr.bf16.mxu1 %v18654_v33  ;;  %v18697_v26 = vld [vmem:[%s20382_s15 + $0x1820] ss:$8 sps:$4 sm:$0xff]   ;;  %v18702_v33 = vld [vmem:[%s20382_s15 + $0x634] ss:$8 sps:$4 sm:$0xff]  }
 0x226   : > { %13320 = vmatprep.subr.bf16.mxu0 %v18657_v34  ;;  %11243 = vmatprep.mubr.bf16.mxu1 %v15532_v35  ;;  %v18705_v34 = vld [vmem:[%s20382_s15 + $0x1834] ss:$8 sps:$4 sm:$0xff]   ;;  %v15246_v35 = vcombine.high %v480_v27, %v516_v28  ;;  %v18730_v15 = vld [vmem:[%s20382_s15 + $0x680] ss:$8 sps:$4 sm:$0xff]  }
 0x227   : > { %13277 = vmatprep.mubr.bf16.mxu0 %v15568_v36  ;;  %v15282_v36 = vcombine.high %v498_v31, %v534_v32  ;;  %v18733_v16 = vld [vmem:[%s20382_s15 + $0x1880] ss:$8 sps:$4 sm:$0xff]   ;;  %v786_v31 = vld [vmem:[%s20374_s5 + $0xe38] sm:$0xff] }
 0x228   : > { %11287 = vmatpush1.bf16.msra.mxu1 %v18652_v37  ;;  %v18700_v37 = vld [vmem:[%s20382_s15 + $0x630] ss:$8 sps:$4 sm:$0xff]  }
 0x229   : > { %13321 = vmatpush1.bf16.msra.mxu0 %v18655_v38  ;;  %11288 = vmatprep.subr.bf16.mxu1 %v18660_v39  ;;  %v18703_v38 = vld [vmem:[%s20382_s15 + $0x1830] ss:$8 sps:$4 sm:$0xff]   ;;  %v18708_v39 = vld [vmem:[%s20382_s15 + $0x644] ss:$8 sps:$4 sm:$0xff]  }
 0x22a   : > { %13322 = vmatprep.subr.bf16.mxu0 %v18663_v40  ;;  %v18711_v40 = vld [vmem:[%s20382_s15 + $0x1844] ss:$8 sps:$4 sm:$0xff]   ;;  %v822_v32 = vld [vmem:[%s20374_s5 + $0xf58] sm:$0xff] }
 0x22b   : > { %11244 = vmatmul.mubr.bf16.gmra.mrb[24].mxu1 %v15531_v44  ;;  %v588_v44 = vld [vmem:[%s20374_s5 + $0x808] sm:$0xff] }
 0x22c   : > { %13278 = vmatmul.mubr.bf16.gmra.mrb[24].mxu0 %v15567_v45  ;;  %11289 = vmatpush1.bf16.msra.mxu1 %v18658_v41  ;;  %v18706_v41 = vld [vmem:[%s20382_s15 + $0x640] ss:$8 sps:$4 sm:$0xff]   ;;  %v15245_v45 = vcombine.low %v480_v27, %v516_v28 }
 0x22d   : > { %13323 = vmatpush1.bf16.msra.mxu0 %v18661_v48  ;;  %11290 = vmatprep.subr.bf16.mxu1 %v18666_v49  ;;  %v606_v48 = vld [vmem:[%s20374_s5 + $0x898] sm:$0xff]  ;;  %v768_v27 = vld [vmem:[%s20374_s5 + $0xda8] sm:$0xff] }
 0x22e   : > { %13324 = vmatprep.subr.bf16.mxu0 %v18669_v50  ;;  %11253 = vmatprep.mubr.bf16.mxu1 %v15604_v51  ;;  %v18714_v49 = vld [vmem:[%s20382_s15 + $0x654] ss:$8 sps:$4 sm:$0xff]   ;;  %v15318_v51 = vcombine.high %v552_v43, %v588_v44  ;;  %v15353_v61 = vcombine.low %v570_v47, %v606_v48 }
 0x22f   : > { %13287 = vmatprep.mubr.bf16.mxu0 %v15640_v52  ;;  %v18717_v50 = vld [vmem:[%s20382_s15 + $0x1854] ss:$8 sps:$4 sm:$0xff]   ;;  %v15354_v52 = vcombine.high %v570_v47, %v606_v48 }
 0x230   : > { %11291 = vmatpush1.bf16.msra.mxu1 %v18664_v53  ;;  %v18712_v53 = vld [vmem:[%s20382_s15 + $0x650] ss:$8 sps:$4 sm:$0xff]  }
 0x231   : > { %13325 = vmatpush1.bf16.msra.mxu0 %v18667_v54  ;;  %11292 = vmatprep.subr.bf16.mxu1 %v18672_v55  ;;  %v18715_v54 = vld [vmem:[%s20382_s15 + $0x1850] ss:$8 sps:$4 sm:$0xff]   ;;  %v18720_v55 = vld [vmem:[%s20382_s15 + $0x664] ss:$8 sps:$4 sm:$0xff]  }
 0x232   : > { %13326 = vmatprep.subr.bf16.mxu0 %v18675_v56  ;;  %v18723_v56 = vld [vmem:[%s20382_s15 + $0x1864] ss:$8 sps:$4 sm:$0xff]   ;;  %v858_v47 = vld [vmem:[%s20374_s5 + $0x1078] sm:$0xff] }
 0x233   : > { %11254 = vmatmul.mubr.bf16.gmra.mrb[28].mxu1 %v15603_v59  ;;  %v660_v59 = vld [vmem:[%s20374_s5 + $0xa48] sm:$0xff]  ;;  %v894_v48 = vld [vmem:[%s20374_s5 + $0x1198] sm:$0xff] }
 0x234   : > { %13288 = vmatmul.mubr.bf16.gmra.mrb[28].mxu0 %v15639_v60  ;;  %11293 = vmatpush1.bf16.msra.mxu1 %v18670_v63  ;;  %v15317_v60 = vcombine.low %v552_v43, %v588_v44  ;;  %v678_v63 = vld [vmem:[%s20374_s5 + $0xad8] sm:$0xff]  ;;  %v15389_v11 = vcombine.low %v624_v58, %v660_v59  ;;  %v840_v43 = vld [vmem:[%s20374_s5 + $0xfe8] sm:$0xff] }
 0x235   : > { %13327 = vmatpush1.bf16.msra.mxu0 %v18673_v0  ;;  %11294 = vmatprep.subr.bf16.mxu1 %v18678_v1  ;;  %v18721_v0 = vld [vmem:[%s20382_s15 + $0x1860] ss:$8 sps:$4 sm:$0xff]   ;;  %v18726_v1 = vld [vmem:[%s20382_s15 + $0x674] ss:$8 sps:$4 sm:$0xff]  }
 0x236   : > { %13328 = vmatprep.subr.bf16.mxu0 %v18681_v2  ;;  %11296 = vmatprep.mubr.bf16.mxu1 %v15102_v3  ;;  %v18729_v2 = vld [vmem:[%s20382_s15 + $0x1874] ss:$8 sps:$4 sm:$0xff]   ;;  %v15390_v3 = vcombine.high %v624_v58, %v660_v59  ;;  %v876_v44 = vld [vmem:[%s20374_s5 + $0x1108] sm:$0xff] }
 0x237   : > { %13330 = vmatprep.mubr.bf16.mxu0 %v15138_v4  ;;  %v15426_v4 = vcombine.high %v642_v62, %v678_v63  ;;  %v18769_v58 = vld [vmem:[%s20382_s15 + $0x18e0] ss:$8 sps:$4 sm:$0xff]   ;;  %v337_v59 = vld [vmem:[%s20374_s5 + $0x30] sm:$0xff] }
 0x238   : > { %11295 = vmatpush1.bf16.msra.mxu1 %v18676_v5  ;;  %v18724_v5 = vld [vmem:[%s20382_s15 + $0x670] ss:$8 sps:$4 sm:$0xff]  }
 0x239   : > { %13329 = vmatpush1.bf16.msra.mxu0 %v18679_v6  ;;  %11377 = vmatprep.subr.bf16.mxu1 %v18684_v7  ;;  %v18727_v6 = vld [vmem:[%s20382_s15 + $0x1870] ss:$8 sps:$4 sm:$0xff]   ;;  %v18732_v7 = vld [vmem:[%s20382_s15 + $0x684] ss:$8 sps:$4 sm:$0xff]  }
 0x23a   : > { %13411 = vmatprep.subr.bf16.mxu0 %v18687_v8  ;;  %v18735_v8 = vld [vmem:[%s20382_s15 + $0x1884] ss:$8 sps:$4 sm:$0xff]  }
 0x23b   : > { %11297 = vmatmul.mubr.bf16.vlgmr.msra.gmra.mrb[0].mxu1 %v15101_v12  ;;  %v15425_v12 = vcombine.low %v642_v62, %v678_v63  ;;  %v15641_v62 = vcombine.low %v858_v47, %v894_v48  ;;  %v355_v63 = vld [vmem:[%s20374_s5 + $0xc0] sm:$0xff] }
 0x23c   : > { %13331 = vmatmul.mubr.bf16.vlgmr.msra.gmra.mrb[0].mxu0 %v15137_v13  ;;  %11378 = vmatpush1.bf16.msra.mxu1 %v18682_v9  ;;  %v696_v9 = vld [vmem:[%s20374_s5 + $0xb68] sm:$0xff]  ;;  %v714_v13 = vld [vmem:[%s20374_s5 + $0xbf8] sm:$0xff] }
 0x23d   : > { %13412 = vmatpush1.bf16.msra.mxu0 %v18685_v10  ;;  %11379 = vmatprep.subr.bf16.mxu1 %v18690_v17  ;;  %v732_v10 = vld [vmem:[%s20374_s5 + $0xc88] sm:$0xff]  ;;  %v18738_v17 = vld [vmem:[%s20382_s15 + $0x694] ss:$8 sps:$4 sm:$0xff]  }
 0x23e   : > { %13413 = vmatprep.subr.bf16.mxu0 %v18693_v18  ;;  %11306 = vmatprep.mubr.bf16.mxu1 %v15174_v19  ;;  %v18741_v18 = vld [vmem:[%s20382_s15 + $0x1894] ss:$8 sps:$4 sm:$0xff]   ;;  %v15462_v19 = vcombine.high %v696_v9, %v732_v10  ;;  %v15461_v28 = vcombine.low %v696_v9, %v732_v10  ;;  %v18778_v9 = vld [vmem:[%s20382_s15 + $0x700] ss:$8 sps:$4 sm:$0xff]  }
 0x23f   : > { %13340 = vmatprep.mubr.bf16.mxu0 %v15210_v20  ;;  %v15498_v20 = vcombine.high %v714_v13, %v750_v14  ;;  %v409_v10 = vld [vmem:[%s20374_s5 + $0x270] sm:$0xff] }
 0x240   : > { %11380 = vmatpush1.bf16.msra.mxu1 %v18688_v21  ;;  %v18736_v21 = vld [vmem:[%s20382_s15 + $0x690] ss:$8 sps:$4 sm:$0xff]  }
 0x241   : > { %13414 = vmatpush1.bf16.msra.mxu0 %v18691_v22  ;;  %11381 = vmatprep.subr.bf16.mxu1 %v18696_v23  ;;  %v18739_v22 = vld [vmem:[%s20382_s15 + $0x1890] ss:$8 sps:$4 sm:$0xff]   ;;  %v18744_v23 = vld [vmem:[%s20382_s15 + $0x6a4] ss:$8 sps:$4 sm:$0xff]  }
 0x242   : > { %13415 = vmatprep.subr.bf16.mxu0 %v18699_v24  ;;  %v18747_v24 = vld [vmem:[%s20382_s15 + $0x18a4] ss:$8 sps:$4 sm:$0xff]  }
 0x243   : > { %11307 = vmatmul.mubr.bf16.gmra.mrb[4].mxu1 %v15173_v29  ;;  %v15497_v29 = vcombine.low %v714_v13, %v750_v14  ;;  %v427_v14 = vld [vmem:[%s20374_s5 + $0x300] sm:$0xff] }
 0x244   : > { %13341 = vmatmul.mubr.bf16.gmra.mrb[4].mxu0 %v15209_v30  ;;  %11382 = vmatpush1.bf16.msra.mxu1 %v18694_v25  ;;  %v18742_v25 = vld [vmem:[%s20382_s15 + $0x6a0] ss:$8 sps:$4 sm:$0xff]  }
 0x245   : > { %13416 = vmatpush1.bf16.msra.mxu0 %v18697_v26  ;;  %11383 = vmatprep.subr.bf16.mxu1 %v18702_v33  ;;  %v18745_v26 = vld [vmem:[%s20382_s15 + $0x18a0] ss:$8 sps:$4 sm:$0xff]   ;;  %v18750_v33 = vld [vmem:[%s20382_s15 + $0x6b4] ss:$8 sps:$4 sm:$0xff]  }
 0x246   : > { %13417 = vmatprep.subr.bf16.mxu0 %v18705_v34  ;;  %11316 = vmatprep.mubr.bf16.mxu1 %v15246_v35  ;;  %v804_v30 = vld [vmem:[%s20374_s5 + $0xec8] sm:$0xff]  ;;  %v18753_v34 = vld [vmem:[%s20382_s15 + $0x18b4] ss:$8 sps:$4 sm:$0xff]  }
 0x247   : > { %13350 = vmatprep.mubr.bf16.mxu0 %v15282_v36  ;;  %v15534_v35 = vcombine.high %v768_v27, %v804_v30  ;;  %v15570_v36 = vcombine.high %v786_v31, %v822_v32 }
 0x248   : > { %11384 = vmatpush1.bf16.msra.mxu1 %v18700_v37  ;;  %v18748_v37 = vld [vmem:[%s20382_s15 + $0x6b0] ss:$8 sps:$4 sm:$0xff]  }
 0x249   : > { %13418 = vmatpush1.bf16.msra.mxu0 %v18703_v38  ;;  %11385 = vmatprep.subr.bf16.mxu1 %v18708_v39  ;;  %v18751_v38 = vld [vmem:[%s20382_s15 + $0x18b0] ss:$8 sps:$4 sm:$0xff]   ;;  %v18756_v39 = vld [vmem:[%s20382_s15 + $0x6c4] ss:$8 sps:$4 sm:$0xff]  }
 0x24a   : > { %13419 = vmatprep.subr.bf16.mxu0 %v18711_v40  ;;  %v18759_v40 = vld [vmem:[%s20382_s15 + $0x18c4] ss:$8 sps:$4 sm:$0xff]  }
 0x24b   : > { %11317 = vmatmul.mubr.bf16.gmra.mrb[8].mxu1 %v15245_v45  ;;  %v15533_v45 = vcombine.low %v768_v27, %v804_v30  ;;  %v535_v30 = vld [vmem:[%s20374_s5 + $0x660] sm:$0xff] }
 0x24c   : > { %13351 = vmatmul.mubr.bf16.gmra.mrb[8].mxu0 %v15281_v46  ;;  %11386 = vmatpush1.bf16.msra.mxu1 %v18706_v41  ;;  %v18754_v41 = vld [vmem:[%s20382_s15 + $0x6c0] ss:$8 sps:$4 sm:$0xff]   ;;  %v15569_v46 = vcombine.low %v786_v31, %v822_v32 }
 0x24d   : > { %13420 = vmatpush1.bf16.msra.mxu0 %v18709_v42  ;;  %11387 = vmatprep.subr.bf16.mxu1 %v18714_v49  ;;  %v18757_v42 = vld [vmem:[%s20382_s15 + $0x18c0] ss:$8 sps:$4 sm:$0xff]   ;;  %v18762_v49 = vld [vmem:[%s20382_s15 + $0x6d4] ss:$8 sps:$4 sm:$0xff]  }
 0x24e   : > { %13421 = vmatprep.subr.bf16.mxu0 %v18717_v50  ;;  %11326 = vmatprep.mubr.bf16.mxu1 %v15318_v51  ;;  %v18765_v50 = vld [vmem:[%s20382_s15 + $0x18d4] ss:$8 sps:$4 sm:$0xff]   ;;  %v15606_v51 = vcombine.high %v840_v43, %v876_v44  ;;  %v18790_v31 = vld [vmem:[%s20382_s15 + $0x720] ss:$8 sps:$4 sm:$0xff]  }
 0x24f   : > { %13360 = vmatprep.mubr.bf16.mxu0 %v15354_v52  ;;  %v15642_v52 = vcombine.high %v858_v47, %v894_v48  ;;  %v18793_v32 = vld [vmem:[%s20382_s15 + $0x1920] ss:$8 sps:$4 sm:$0xff]  }
 0x250   : > { %11388 = vmatpush1.bf16.msra.mxu1 %v18712_v53  ;;  %v18760_v53 = vld [vmem:[%s20382_s15 + $0x6d0] ss:$8 sps:$4 sm:$0xff]   ;;  %v571_v47 = vld [vmem:[%s20374_s5 + $0x780] sm:$0xff] }
 0x251   : > { %13422 = vmatpush1.bf16.msra.mxu0 %v18715_v54  ;;  %11389 = vmatprep.subr.bf16.mxu1 %v18720_v55  ;;  %v18763_v54 = vld [vmem:[%s20382_s15 + $0x18d0] ss:$8 sps:$4 sm:$0xff]   ;;  %v18768_v55 = vld [vmem:[%s20382_s15 + $0x6e4] ss:$8 sps:$4 sm:$0xff]  }
 0x252   : > { %13423 = vmatprep.subr.bf16.mxu0 %v18723_v56  ;;  %v18771_v56 = vld [vmem:[%s20382_s15 + $0x18e4] ss:$8 sps:$4 sm:$0xff]  }
 0x253   : > { %11327 = vmatmul.mubr.bf16.gmra.mrb[12].mxu1 %v15317_v60  ;;  %v373_v60 = vld [vmem:[%s20374_s5 + $0x150] sm:$0xff]  ;;  %v607_v48 = vld [vmem:[%s20374_s5 + $0x8a0] sm:$0xff] }
 0x254   : > { %13361 = vmatmul.mubr.bf16.gmra.mrb[12].mxu0 %v15353_v61  ;;  %11390 = vmatpush1.bf16.msra.mxu1 %v18718_v57  ;;  %v18766_v57 = vld [vmem:[%s20382_s15 + $0x6e0] ss:$8 sps:$4 sm:$0xff]   ;;  %v15605_v61 = vcombine.low %v840_v43, %v876_v44  ;;  %v553_v43 = vld [vmem:[%s20374_s5 + $0x6f0] sm:$0xff] }
 0x255   : > { %13424 = vmatpush1.bf16.msra.mxu0 %v18721_v0  ;;  %11391 = vmatprep.subr.bf16.mxu1 %v18726_v1  ;;  %v391_v0 = vld [vmem:[%s20374_s5 + $0x1e0] sm:$0xff]  ;;  %v18774_v1 = vld [vmem:[%s20382_s15 + $0x6f4] ss:$8 sps:$4 sm:$0xff]  }
 0x256   : > { %13425 = vmatprep.subr.bf16.mxu0 %v18729_v2  ;;  %11336 = vmatprep.mubr.bf16.mxu1 %v15390_v3  ;;  %v18777_v2 = vld [vmem:[%s20382_s15 + $0x18f4] ss:$8 sps:$4 sm:$0xff]   ;;  %v15104_v3 = vcombine.high %v337_v59, %v373_v60  ;;  %v15139_v13 = vcombine.low %v355_v63, %v391_v0 }
 0x257   : > { %13370 = vmatprep.mubr.bf16.mxu0 %v15426_v4  ;;  %v15140_v4 = vcombine.high %v355_v63, %v391_v0  ;;  %v643_v63 = vld [vmem:[%s20374_s5 + $0x9c0] sm:$0xff] }
 0x258   : > { %11392 = vmatpush1.bf16.msra.mxu1 %v18724_v5  ;;  %v18772_v5 = vld [vmem:[%s20382_s15 + $0x6f0] ss:$8 sps:$4 sm:$0xff]   ;;  %v679_v0 = vld [vmem:[%s20374_s5 + $0xae0] sm:$0xff] }
 0x259   : > { %13426 = vmatpush1.bf16.msra.mxu0 %v18727_v6  ;;  %11393 = vmatprep.subr.bf16.mxu1 %v18732_v7  ;;  %v18775_v6 = vld [vmem:[%s20382_s15 + $0x18f0] ss:$8 sps:$4 sm:$0xff]   ;;  %v18780_v7 = vld [vmem:[%s20382_s15 + $0x704] ss:$8 sps:$4 sm:$0xff]  }
 0x25a   : > { %13427 = vmatprep.subr.bf16.mxu0 %v18735_v8  ;;  %v18783_v8 = vld [vmem:[%s20382_s15 + $0x1904] ss:$8 sps:$4 sm:$0xff]  }
 0x25b   : > { %11337 = vmatmul.mubr.bf16.gmra.mrb[16].mxu1 %v15389_v11  ;;  %v445_v11 = vld [vmem:[%s20374_s5 + $0x390] sm:$0xff] }
 0x25c   : > { %13371 = vmatmul.mubr.bf16.gmra.mrb[16].mxu0 %v15425_v12  ;;  %11394 = vmatpush1.bf16.msra.mxu1 %v18730_v15  ;;  %v15103_v12 = vcombine.low %v337_v59, %v373_v60  ;;  %v463_v15 = vld [vmem:[%s20374_s5 + $0x420] sm:$0xff]  ;;  %v15175_v27 = vcombine.low %v409_v10, %v445_v11  ;;  %v625_v59 = vld [vmem:[%s20374_s5 + $0x930] sm:$0xff] }
 0x25d   : > { %13428 = vmatpush1.bf16.msra.mxu0 %v18733_v16  ;;  %11395 = vmatprep.subr.bf16.mxu1 %v18738_v17  ;;  %v18781_v16 = vld [vmem:[%s20382_s15 + $0x1900] ss:$8 sps:$4 sm:$0xff]   ;;  %v18786_v17 = vld [vmem:[%s20382_s15 + $0x714] ss:$8 sps:$4 sm:$0xff]  }
 0x25e   : > { %13429 = vmatprep.subr.bf16.mxu0 %v18741_v18  ;;  %11346 = vmatprep.mubr.bf16.mxu1 %v15462_v19  ;;  %v18789_v18 = vld [vmem:[%s20382_s15 + $0x1914] ss:$8 sps:$4 sm:$0xff]   ;;  %v15176_v19 = vcombine.high %v409_v10, %v445_v11  ;;  %v18829_v10 = vld [vmem:[%s20382_s15 + $0x1980] ss:$8 sps:$4 sm:$0xff]  }
 0x25f   : > { %13380 = vmatprep.mubr.bf16.mxu0 %v15498_v20  ;;  %v15212_v20 = vcombine.high %v427_v14, %v463_v15  ;;  %v661_v60 = vld [vmem:[%s20374_s5 + $0xa50] sm:$0xff] }
 0x260   : > { %11396 = vmatpush1.bf16.msra.mxu1 %v18736_v21  ;;  %v18784_v21 = vld [vmem:[%s20382_s15 + $0x710] ss:$8 sps:$4 sm:$0xff]  }
 0x261   : > { %13430 = vmatpush1.bf16.msra.mxu0 %v18739_v22  ;;  %11397 = vmatprep.subr.bf16.mxu1 %v18744_v23  ;;  %v18787_v22 = vld [vmem:[%s20382_s15 + $0x1910] ss:$8 sps:$4 sm:$0xff]   ;;  %v18792_v23 = vld [vmem:[%s20382_s15 + $0x724] ss:$8 sps:$4 sm:$0xff]  }
 0x262   : > { %13431 = vmatprep.subr.bf16.mxu0 %v18747_v24  ;;  %v18795_v24 = vld [vmem:[%s20382_s15 + $0x1924] ss:$8 sps:$4 sm:$0xff]   ;;  %v697_v11 = vld [vmem:[%s20374_s5 + $0xb70] sm:$0xff] }
 0x263   : > { %11347 = vmatmul.mubr.bf16.gmra.mrb[20].mxu1 %v15461_v28  ;;  %v15211_v28 = vcombine.low %v427_v14, %v463_v15  ;;  %v15427_v14 = vcombine.low %v643_v63, %v679_v0  ;;  %v715_v15 = vld [vmem:[%s20374_s5 + $0xc00] sm:$0xff] }
 0x264   : > { %13381 = vmatmul.mubr.bf16.gmra.mrb[20].mxu0 %v15497_v29  ;;  %11398 = vmatpush1.bf16.msra.mxu1 %v18742_v25  ;;  %v481_v25 = vld [vmem:[%s20374_s5 + $0x4b0] sm:$0xff]  ;;  %v499_v29 = vld [vmem:[%s20374_s5 + $0x540] sm:$0xff] }
 0x265   : > { %13432 = vmatpush1.bf16.msra.mxu0 %v18745_v26  ;;  %11399 = vmatprep.subr.bf16.mxu1 %v18750_v33  ;;  %v517_v26 = vld [vmem:[%s20374_s5 + $0x5d0] sm:$0xff] }
 0x266   : > { %13433 = vmatprep.subr.bf16.mxu0 %v18753_v34  ;;  %11356 = vmatprep.mubr.bf16.mxu1 %v15534_v35  ;;  %v18798_v33 = vld [vmem:[%s20382_s15 + $0x734] ss:$8 sps:$4 sm:$0xff]   ;;  %v15248_v35 = vcombine.high %v481_v25, %v517_v26  ;;  %v15247_v44 = vcombine.low %v481_v25, %v517_v26  ;;  %v18838_v25 = vld [vmem:[%s20382_s15 + $0x7a0] ss:$8 sps:$4 sm:$0xff]  }
 0x267   : > { %13390 = vmatprep.mubr.bf16.mxu0 %v15570_v36  ;;  %v18801_v34 = vld [vmem:[%s20382_s15 + $0x1934] ss:$8 sps:$4 sm:$0xff]   ;;  %v15284_v36 = vcombine.high %v499_v29, %v535_v30 }
 0x268   : > { %11400 = vmatpush1.bf16.msra.mxu1 %v18748_v37  ;;  %v18796_v37 = vld [vmem:[%s20382_s15 + $0x730] ss:$8 sps:$4 sm:$0xff]  }
 0x269   : > { %13434 = vmatpush1.bf16.msra.mxu0 %v18751_v38  ;;  %11401 = vmatprep.subr.bf16.mxu1 %v18756_v39  ;;  %v18799_v38 = vld [vmem:[%s20382_s15 + $0x1930] ss:$8 sps:$4 sm:$0xff]   ;;  %v18804_v39 = vld [vmem:[%s20382_s15 + $0x744] ss:$8 sps:$4 sm:$0xff]  }
 0x26a   : > { %13435 = vmatprep.subr.bf16.mxu0 %v18759_v40  ;;  %v18807_v40 = vld [vmem:[%s20382_s15 + $0x1944] ss:$8 sps:$4 sm:$0xff]   ;;  %v769_v26 = vld [vmem:[%s20374_s5 + $0xdb0] sm:$0xff] }
 0x26b   : > { %11357 = vmatmul.mubr.bf16.gmra.mrb[24].mxu1 %v15533_v45  ;;  %v15283_v45 = vcombine.low %v499_v29, %v535_v30  ;;  %v787_v30 = vld [vmem:[%s20374_s5 + $0xe40] sm:$0xff] }
 0x26c   : > { %13391 = vmatmul.mubr.bf16.gmra.mrb[24].mxu0 %v15569_v46  ;;  %11402 = vmatpush1.bf16.msra.mxu1 %v18754_v41  ;;  %v18802_v41 = vld [vmem:[%s20382_s15 + $0x740] ss:$8 sps:$4 sm:$0xff]   ;;  %v589_v46 = vld [vmem:[%s20374_s5 + $0x810] sm:$0xff] }
 0x26d   : > { %13436 = vmatpush1.bf16.msra.mxu0 %v18757_v42  ;;  %11403 = vmatprep.subr.bf16.mxu1 %v18762_v49  ;;  %v18805_v42 = vld [vmem:[%s20382_s15 + $0x1940] ss:$8 sps:$4 sm:$0xff]   ;;  %v18810_v49 = vld [vmem:[%s20382_s15 + $0x754] ss:$8 sps:$4 sm:$0xff]  }
 0x26e   : > { %13437 = vmatprep.subr.bf16.mxu0 %v18765_v50  ;;  %11366 = vmatprep.mubr.bf16.mxu1 %v15606_v51  ;;  %v18813_v50 = vld [vmem:[%s20382_s15 + $0x1954] ss:$8 sps:$4 sm:$0xff]   ;;  %v15320_v51 = vcombine.high %v553_v43, %v589_v46 }
 0x26f   : > { %13400 = vmatprep.mubr.bf16.mxu0 %v15642_v52  ;;  %v15356_v52 = vcombine.high %v571_v47, %v607_v48 }
 0x270   : > { %11404 = vmatpush1.bf16.msra.mxu1 %v18760_v53  ;;  %v18808_v53 = vld [vmem:[%s20382_s15 + $0x750] ss:$8 sps:$4 sm:$0xff]  }
 0x271   : > { %13438 = vmatpush1.bf16.msra.mxu0 %v18763_v54  ;;  %11405 = vmatprep.subr.bf16.mxu1 %v18768_v55  ;;  %v18811_v54 = vld [vmem:[%s20382_s15 + $0x1950] ss:$8 sps:$4 sm:$0xff]   ;;  %v18816_v55 = vld [vmem:[%s20382_s15 + $0x764] ss:$8 sps:$4 sm:$0xff]  }
 0x272   : > { %13439 = vmatprep.subr.bf16.mxu0 %v18771_v56  ;;  %v18819_v56 = vld [vmem:[%s20382_s15 + $0x1964] ss:$8 sps:$4 sm:$0xff]  }
 0x273   : > { %11367 = vmatmul.mubr.bf16.gmra.mrb[28].mxu1 %v15605_v61  ;;  %v15319_v61 = vcombine.low %v553_v43, %v589_v46  ;;  %v895_v46 = vld [vmem:[%s20374_s5 + $0x11a0] sm:$0xff] }
 0x274   : > { %13401 = vmatmul.mubr.bf16.gmra.mrb[28].mxu0 %v15641_v62  ;;  %11406 = vmatpush1.bf16.msra.mxu1 %v18766_v57  ;;  %v18814_v57 = vld [vmem:[%s20382_s15 + $0x760] ss:$8 sps:$4 sm:$0xff]   ;;  %v15355_v62 = vcombine.low %v571_v47, %v607_v48 }
 0x275   : > { %13440 = vmatpush1.bf16.msra.mxu0 %v18769_v58  ;;  %11407 = vmatprep.subr.bf16.mxu1 %v18774_v1  ;;  %v18817_v58 = vld [vmem:[%s20382_s15 + $0x1960] ss:$8 sps:$4 sm:$0xff]   ;;  %v18822_v1 = vld [vmem:[%s20382_s15 + $0x774] ss:$8 sps:$4 sm:$0xff]  }
 0x276   : > { %13441 = vmatprep.subr.bf16.mxu0 %v18777_v2  ;;  %11409 = vmatprep.mubr.bf16.mxu1 %v15104_v3  ;;  %v18825_v2 = vld [vmem:[%s20382_s15 + $0x1974] ss:$8 sps:$4 sm:$0xff]   ;;  %v15392_v3 = vcombine.high %v625_v59, %v661_v60  ;;  %v18850_v47 = vld [vmem:[%s20382_s15 + $0x7c0] ss:$8 sps:$4 sm:$0xff]  }
 0x277   : > { %13443 = vmatprep.mubr.bf16.mxu0 %v15140_v4  ;;  %v15428_v4 = vcombine.high %v643_v63, %v679_v0  ;;  %v18853_v48 = vld [vmem:[%s20382_s15 + $0x19c0] ss:$8 sps:$4 sm:$0xff]  }
 0x278   : > { %11408 = vmatpush1.bf16.msra.mxu1 %v18772_v5  ;;  %v18820_v5 = vld [vmem:[%s20382_s15 + $0x770] ss:$8 sps:$4 sm:$0xff]   ;;  %v356_v63 = vld [vmem:[%s20374_s5 + $0xc8] sm:$0xff] }
 0x279   : > { %13442 = vmatpush1.bf16.msra.mxu0 %v18775_v6  ;;  %11490 = vmatprep.subr.bf16.mxu1 %v18780_v7  ;;  %v18823_v6 = vld [vmem:[%s20382_s15 + $0x1970] ss:$8 sps:$4 sm:$0xff]   ;;  %v18828_v7 = vld [vmem:[%s20382_s15 + $0x784] ss:$8 sps:$4 sm:$0xff]  }
 0x27a   : > { %13524 = vmatprep.subr.bf16.mxu0 %v18783_v8  ;;  %v18831_v8 = vld [vmem:[%s20382_s15 + $0x1984] ss:$8 sps:$4 sm:$0xff]  }
 0x27b   : > { %11410 = vmatmul.mubr.bf16.vlgmr.msra.gmra.mrb[0].mxu1 %v15103_v12  ;;  %v733_v12 = vld [vmem:[%s20374_s5 + $0xc90] sm:$0xff]  ;;  %v392_v0 = vld [vmem:[%s20374_s5 + $0x1e8] sm:$0xff] }
 0x27c   : > { %13444 = vmatmul.mubr.bf16.vlgmr.msra.gmra.mrb[0].mxu0 %v15139_v13  ;;  %11491 = vmatpush1.bf16.msra.mxu1 %v18778_v9  ;;  %v18826_v9 = vld [vmem:[%s20382_s15 + $0x780] ss:$8 sps:$4 sm:$0xff]   ;;  %v15391_v13 = vcombine.low %v625_v59, %v661_v60  ;;  %v338_v59 = vld [vmem:[%s20374_s5 + $0x38] sm:$0xff] }
 0x27d   : > { %13525 = vmatpush1.bf16.msra.mxu0 %v18781_v16  ;;  %11492 = vmatprep.subr.bf16.mxu1 %v18786_v17  ;;  %v751_v16 = vld [vmem:[%s20374_s5 + $0xd20] sm:$0xff]  ;;  %v18834_v17 = vld [vmem:[%s20382_s15 + $0x794] ss:$8 sps:$4 sm:$0xff]  }
 0x27e   : > { %13526 = vmatprep.subr.bf16.mxu0 %v18789_v18  ;;  %11419 = vmatprep.mubr.bf16.mxu1 %v15176_v19  ;;  %v18837_v18 = vld [vmem:[%s20382_s15 + $0x1994] ss:$8 sps:$4 sm:$0xff]   ;;  %v15464_v19 = vcombine.high %v697_v11, %v733_v12  ;;  %v15499_v29 = vcombine.low %v715_v15, %v751_v16 }
 0x27f   : > { %13453 = vmatprep.mubr.bf16.mxu0 %v15212_v20  ;;  %v15500_v20 = vcombine.high %v715_v15, %v751_v16  ;;  %v428_v15 = vld [vmem:[%s20374_s5 + $0x308] sm:$0xff] }
 0x280   : > { %11493 = vmatpush1.bf16.msra.mxu1 %v18784_v21  ;;  %v18832_v21 = vld [vmem:[%s20382_s15 + $0x790] ss:$8 sps:$4 sm:$0xff]   ;;  %v464_v16 = vld [vmem:[%s20374_s5 + $0x428] sm:$0xff] }
 0x281   : > { %13527 = vmatpush1.bf16.msra.mxu0 %v18787_v22  ;;  %11494 = vmatprep.subr.bf16.mxu1 %v18792_v23  ;;  %v18835_v22 = vld [vmem:[%s20382_s15 + $0x1990] ss:$8 sps:$4 sm:$0xff]   ;;  %v18840_v23 = vld [vmem:[%s20382_s15 + $0x7a4] ss:$8 sps:$4 sm:$0xff]  }
 0x282   : > { %13528 = vmatprep.subr.bf16.mxu0 %v18795_v24  ;;  %v18843_v24 = vld [vmem:[%s20382_s15 + $0x19a4] ss:$8 sps:$4 sm:$0xff]  }
 0x283   : > { %11420 = vmatmul.mubr.bf16.gmra.mrb[4].mxu1 %v15175_v27  ;;  %v805_v27 = vld [vmem:[%s20374_s5 + $0xed0] sm:$0xff] }
 0x284   : > { %13454 = vmatmul.mubr.bf16.gmra.mrb[4].mxu0 %v15211_v28  ;;  %11495 = vmatpush1.bf16.msra.mxu1 %v18790_v31  ;;  %v15463_v28 = vcombine.low %v697_v11, %v733_v12  ;;  %v823_v31 = vld [vmem:[%s20374_s5 + $0xf60] sm:$0xff]  ;;  %v15535_v43 = vcombine.low %v769_v26, %v805_v27  ;;  %v410_v11 = vld [vmem:[%s20374_s5 + $0x278] sm:$0xff] }
 0x285   : > { %13529 = vmatpush1.bf16.msra.mxu0 %v18793_v32  ;;  %11496 = vmatprep.subr.bf16.mxu1 %v18798_v33  ;;  %v18841_v32 = vld [vmem:[%s20382_s15 + $0x19a0] ss:$8 sps:$4 sm:$0xff]   ;;  %v18846_v33 = vld [vmem:[%s20382_s15 + $0x7b4] ss:$8 sps:$4 sm:$0xff]  }
 0x286   : > { %13530 = vmatprep.subr.bf16.mxu0 %v18801_v34  ;;  %11429 = vmatprep.mubr.bf16.mxu1 %v15248_v35  ;;  %v18849_v34 = vld [vmem:[%s20382_s15 + $0x19b4] ss:$8 sps:$4 sm:$0xff]   ;;  %v15536_v35 = vcombine.high %v769_v26, %v805_v27  ;;  %v18889_v26 = vld [vmem:[%s20382_s15 + $0x1a20] ss:$8 sps:$4 sm:$0xff]  }
 0x287   : > { %13463 = vmatprep.mubr.bf16.mxu0 %v15284_v36  ;;  %v15572_v36 = vcombine.high %v787_v30, %v823_v31  ;;  %v446_v12 = vld [vmem:[%s20374_s5 + $0x398] sm:$0xff] }
 0x288   : > { %11497 = vmatpush1.bf16.msra.mxu1 %v18796_v37  ;;  %v18844_v37 = vld [vmem:[%s20382_s15 + $0x7b0] ss:$8 sps:$4 sm:$0xff]  }
 0x289   : > { %13531 = vmatpush1.bf16.msra.mxu0 %v18799_v38  ;;  %11498 = vmatprep.subr.bf16.mxu1 %v18804_v39  ;;  %v18847_v38 = vld [vmem:[%s20382_s15 + $0x19b0] ss:$8 sps:$4 sm:$0xff]   ;;  %v18852_v39 = vld [vmem:[%s20382_s15 + $0x7c4] ss:$8 sps:$4 sm:$0xff]  }
 0x28a   : > { %13532 = vmatprep.subr.bf16.mxu0 %v18807_v40  ;;  %v18855_v40 = vld [vmem:[%s20382_s15 + $0x19c4] ss:$8 sps:$4 sm:$0xff]   ;;  %v482_v27 = vld [vmem:[%s20374_s5 + $0x4b8] sm:$0xff] }
 0x28b   : > { %11430 = vmatmul.mubr.bf16.gmra.mrb[8].mxu1 %v15247_v44  ;;  %v15571_v44 = vcombine.low %v787_v30, %v823_v31  ;;  %v15213_v30 = vcombine.low %v428_v15, %v464_v16  ;;  %v500_v31 = vld [vmem:[%s20374_s5 + $0x548] sm:$0xff] }
 0x28c   : > { %13464 = vmatmul.mubr.bf16.gmra.mrb[8].mxu0 %v15283_v45  ;;  %11499 = vmatpush1.bf16.msra.mxu1 %v18802_v41  ;;  %v841_v41 = vld [vmem:[%s20374_s5 + $0xff0] sm:$0xff]  ;;  %v859_v45 = vld [vmem:[%s20374_s5 + $0x1080] sm:$0xff] }
 0x28d   : > { %13533 = vmatpush1.bf16.msra.mxu0 %v18805_v42  ;;  %11500 = vmatprep.subr.bf16.mxu1 %v18810_v49  ;;  %v877_v42 = vld [vmem:[%s20374_s5 + $0x1110] sm:$0xff] }
 0x28e   : > { %13534 = vmatprep.subr.bf16.mxu0 %v18813_v50  ;;  %11439 = vmatprep.mubr.bf16.mxu1 %v15320_v51  ;;  %v18858_v49 = vld [vmem:[%s20382_s15 + $0x7d4] ss:$8 sps:$4 sm:$0xff]   ;;  %v15608_v51 = vcombine.high %v841_v41, %v877_v42  ;;  %v15607_v60 = vcombine.low %v841_v41, %v877_v42  ;;  %v18898_v41 = vld [vmem:[%s20382_s15 + $0x840] ss:$8 sps:$4 sm:$0xff]  }
 0x28f   : > { %13473 = vmatprep.mubr.bf16.mxu0 %v15356_v52  ;;  %v18861_v50 = vld [vmem:[%s20382_s15 + $0x19d4] ss:$8 sps:$4 sm:$0xff]   ;;  %v15644_v52 = vcombine.high %v859_v45, %v895_v46 }
 0x290   : > { %11501 = vmatpush1.bf16.msra.mxu1 %v18808_v53  ;;  %v18856_v53 = vld [vmem:[%s20382_s15 + $0x7d0] ss:$8 sps:$4 sm:$0xff]  }
 0x291   : > { %13535 = vmatpush1.bf16.msra.mxu0 %v18811_v54  ;;  %11502 = vmatprep.subr.bf16.mxu1 %v18816_v55  ;;  %v18859_v54 = vld [vmem:[%s20382_s15 + $0x19d0] ss:$8 sps:$4 sm:$0xff]   ;;  %v18864_v55 = vld [vmem:[%s20382_s15 + $0x7e4] ss:$8 sps:$4 sm:$0xff]  }
 0x292   : > { %13536 = vmatprep.subr.bf16.mxu0 %v18819_v56  ;;  %v18867_v56 = vld [vmem:[%s20382_s15 + $0x19e4] ss:$8 sps:$4 sm:$0xff]   ;;  %v554_v42 = vld [vmem:[%s20374_s5 + $0x6f8] sm:$0xff] }
 0x293   : > { %11440 = vmatmul.mubr.bf16.gmra.mrb[12].mxu1 %v15319_v61  ;;  %v15643_v61 = vcombine.low %v859_v45, %v895_v46  ;;  %v572_v46 = vld [vmem:[%s20374_s5 + $0x788] sm:$0xff] }
 0x294   : > { %13474 = vmatmul.mubr.bf16.gmra.mrb[12].mxu0 %v15355_v62  ;;  %11503 = vmatpush1.bf16.msra.mxu1 %v18814_v57  ;;  %v18862_v57 = vld [vmem:[%s20382_s15 + $0x7e0] ss:$8 sps:$4 sm:$0xff]   ;;  %v374_v62 = vld [vmem:[%s20374_s5 + $0x158] sm:$0xff] }
 0x295   : > { %13537 = vmatpush1.bf16.msra.mxu0 %v18817_v58  ;;  %11504 = vmatprep.subr.bf16.mxu1 %v18822_v1  ;;  %v18865_v58 = vld [vmem:[%s20382_s15 + $0x19e0] ss:$8 sps:$4 sm:$0xff]   ;;  %v18870_v1 = vld [vmem:[%s20382_s15 + $0x7f4] ss:$8 sps:$4 sm:$0xff]  }
 0x296   : > { %13538 = vmatprep.subr.bf16.mxu0 %v18825_v2  ;;  %11449 = vmatprep.mubr.bf16.mxu1 %v15392_v3  ;;  %v18873_v2 = vld [vmem:[%s20382_s15 + $0x19f4] ss:$8 sps:$4 sm:$0xff]   ;;  %v15106_v3 = vcombine.high %v338_v59, %v374_v62 }
 0x297   : > { %13483 = vmatprep.mubr.bf16.mxu0 %v15428_v4  ;;  %v15142_v4 = vcombine.high %v356_v63, %v392_v0 }
 0x298   : > { %11505 = vmatpush1.bf16.msra.mxu1 %v18820_v5  ;;  %v18868_v5 = vld [vmem:[%s20382_s15 + $0x7f0] ss:$8 sps:$4 sm:$0xff]  }
 0x299   : > { %13539 = vmatpush1.bf16.msra.mxu0 %v18823_v6  ;;  %11506 = vmatprep.subr.bf16.mxu1 %v18828_v7  ;;  %v18871_v6 = vld [vmem:[%s20382_s15 + $0x19f0] ss:$8 sps:$4 sm:$0xff]   ;;  %v18876_v7 = vld [vmem:[%s20382_s15 + $0x804] ss:$8 sps:$4 sm:$0xff]  }
 0x29a   : > { %13540 = vmatprep.subr.bf16.mxu0 %v18831_v8  ;;  %v18879_v8 = vld [vmem:[%s20382_s15 + $0x1a04] ss:$8 sps:$4 sm:$0xff]  }
 0x29b   : > { %11450 = vmatmul.mubr.bf16.gmra.mrb[16].mxu1 %v15391_v13  ;;  %v15105_v13 = vcombine.low %v338_v59, %v374_v62  ;;  %v680_v62 = vld [vmem:[%s20374_s5 + $0xae8] sm:$0xff] }
 0x29c   : > { %13484 = vmatmul.mubr.bf16.gmra.mrb[16].mxu0 %v15427_v14  ;;  %11507 = vmatpush1.bf16.msra.mxu1 %v18826_v9  ;;  %v18874_v9 = vld [vmem:[%s20382_s15 + $0x800] ss:$8 sps:$4 sm:$0xff]   ;;  %v15141_v14 = vcombine.low %v356_v63, %v392_v0 }
 0x29d   : > { %13541 = vmatpush1.bf16.msra.mxu0 %v18829_v10  ;;  %11508 = vmatprep.subr.bf16.mxu1 %v18834_v17  ;;  %v18877_v10 = vld [vmem:[%s20382_s15 + $0x1a00] ss:$8 sps:$4 sm:$0xff]   ;;  %v18882_v17 = vld [vmem:[%s20382_s15 + $0x814] ss:$8 sps:$4 sm:$0xff]  }
 0x29e   : > { %13542 = vmatprep.subr.bf16.mxu0 %v18837_v18  ;;  %11459 = vmatprep.mubr.bf16.mxu1 %v15464_v19  ;;  %v18885_v18 = vld [vmem:[%s20382_s15 + $0x1a14] ss:$8 sps:$4 sm:$0xff]   ;;  %v15178_v19 = vcombine.high %v410_v11, %v446_v12  ;;  %v18910_v63 = vld [vmem:[%s20382_s15 + $0x860] ss:$8 sps:$4 sm:$0xff]  }
 0x29f   : > { %13493 = vmatprep.mubr.bf16.mxu0 %v15500_v20  ;;  %v15214_v20 = vcombine.high %v428_v15, %v464_v16  ;;  %v18913_v0 = vld [vmem:[%s20382_s15 + $0x1a60] ss:$8 sps:$4 sm:$0xff]  }
 0x2a0   : > { %11509 = vmatpush1.bf16.msra.mxu1 %v18832_v21  ;;  %v18880_v21 = vld [vmem:[%s20382_s15 + $0x810] ss:$8 sps:$4 sm:$0xff]   ;;  %v716_v15 = vld [vmem:[%s20374_s5 + $0xc08] sm:$0xff] }
 0x2a1   : > { %13543 = vmatpush1.bf16.msra.mxu0 %v18835_v22  ;;  %11510 = vmatprep.subr.bf16.mxu1 %v18840_v23  ;;  %v18883_v22 = vld [vmem:[%s20382_s15 + $0x1a10] ss:$8 sps:$4 sm:$0xff]   ;;  %v18888_v23 = vld [vmem:[%s20382_s15 + $0x824] ss:$8 sps:$4 sm:$0xff]  }
 0x2a2   : > { %13544 = vmatprep.subr.bf16.mxu0 %v18843_v24  ;;  %v18891_v24 = vld [vmem:[%s20382_s15 + $0x1a24] ss:$8 sps:$4 sm:$0xff]  }
 0x2a3   : > { %11460 = vmatmul.mubr.bf16.gmra.mrb[20].mxu1 %v15463_v28  ;;  %v518_v28 = vld [vmem:[%s20374_s5 + $0x5d8] sm:$0xff]  ;;  %v752_v16 = vld [vmem:[%s20374_s5 + $0xd28] sm:$0xff] }
 0x2a4   : > { %13494 = vmatmul.mubr.bf16.gmra.mrb[20].mxu0 %v15499_v29  ;;  %11511 = vmatpush1.bf16.msra.mxu1 %v18838_v25  ;;  %v18886_v25 = vld [vmem:[%s20382_s15 + $0x820] ss:$8 sps:$4 sm:$0xff]   ;;  %v15177_v29 = vcombine.low %v410_v11, %v446_v12  ;;  %v698_v11 = vld [vmem:[%s20374_s5 + $0xb78] sm:$0xff] }
 0x2a5   : > { %13545 = vmatpush1.bf16.msra.mxu0 %v18841_v32  ;;  %11512 = vmatprep.subr.bf16.mxu1 %v18846_v33  ;;  %v536_v32 = vld [vmem:[%s20374_s5 + $0x668] sm:$0xff]  ;;  %v18894_v33 = vld [vmem:[%s20382_s15 + $0x834] ss:$8 sps:$4 sm:$0xff]  }
 0x2a6   : > { %13546 = vmatprep.subr.bf16.mxu0 %v18849_v34  ;;  %11469 = vmatprep.mubr.bf16.mxu1 %v15536_v35  ;;  %v18897_v34 = vld [vmem:[%s20382_s15 + $0x1a34] ss:$8 sps:$4 sm:$0xff]   ;;  %v15250_v35 = vcombine.high %v482_v27, %v518_v28  ;;  %v15285_v45 = vcombine.low %v500_v31, %v536_v32 }
 0x2a7   : > { %13503 = vmatprep.mubr.bf16.mxu0 %v15572_v36  ;;  %v15286_v36 = vcombine.high %v500_v31, %v536_v32  ;;  %v788_v31 = vld [vmem:[%s20374_s5 + $0xe48] sm:$0xff] }
 0x2a8   : > { %11513 = vmatpush1.bf16.msra.mxu1 %v18844_v37  ;;  %v18892_v37 = vld [vmem:[%s20382_s15 + $0x830] ss:$8 sps:$4 sm:$0xff]   ;;  %v824_v32 = vld [vmem:[%s20374_s5 + $0xf68] sm:$0xff] }
 0x2a9   : > { %13547 = vmatpush1.bf16.msra.mxu0 %v18847_v38  ;;  %11514 = vmatprep.subr.bf16.mxu1 %v18852_v39  ;;  %v18895_v38 = vld [vmem:[%s20382_s15 + $0x1a30] ss:$8 sps:$4 sm:$0xff]   ;;  %v18900_v39 = vld [vmem:[%s20382_s15 + $0x844] ss:$8 sps:$4 sm:$0xff]  }
 0x2aa   : > { %13548 = vmatprep.subr.bf16.mxu0 %v18855_v40  ;;  %v18903_v40 = vld [vmem:[%s20382_s15 + $0x1a44] ss:$8 sps:$4 sm:$0xff]  }
 0x2ab   : > { %11470 = vmatmul.mubr.bf16.gmra.mrb[24].mxu1 %v15535_v43  ;;  %v590_v43 = vld [vmem:[%s20374_s5 + $0x818] sm:$0xff] }
 0x2ac   : > { %13504 = vmatmul.mubr.bf16.gmra.mrb[24].mxu0 %v15571_v44  ;;  %11515 = vmatpush1.bf16.msra.mxu1 %v18850_v47  ;;  %v15249_v44 = vcombine.low %v482_v27, %v518_v28  ;;  %v608_v47 = vld [vmem:[%s20374_s5 + $0x8a8] sm:$0xff]  ;;  %v15321_v59 = vcombine.low %v554_v42, %v590_v43  ;;  %v770_v27 = vld [vmem:[%s20374_s5 + $0xdb8] sm:$0xff] }
 0x2ad   : > { %13549 = vmatpush1.bf16.msra.mxu0 %v18853_v48  ;;  %11516 = vmatprep.subr.bf16.mxu1 %v18858_v49  ;;  %v18901_v48 = vld [vmem:[%s20382_s15 + $0x1a40] ss:$8 sps:$4 sm:$0xff]   ;;  %v18906_v49 = vld [vmem:[%s20382_s15 + $0x854] ss:$8 sps:$4 sm:$0xff]  }
 0x2ae   : > { %13550 = vmatprep.subr.bf16.mxu0 %v18861_v50  ;;  %11479 = vmatprep.mubr.bf16.mxu1 %v15608_v51  ;;  %v18909_v50 = vld [vmem:[%s20382_s15 + $0x1a54] ss:$8 sps:$4 sm:$0xff]   ;;  %v15322_v51 = vcombine.high %v554_v42, %v590_v43  ;;  %v18949_v42 = vld [vmem:[%s20382_s15 + $0x1ac0] ss:$8 sps:$4 sm:$0xff]  }
 0x2af   : > { %13513 = vmatprep.mubr.bf16.mxu0 %v15644_v52  ;;  %v15358_v52 = vcombine.high %v572_v46, %v608_v47  ;;  %v806_v28 = vld [vmem:[%s20374_s5 + $0xed8] sm:$0xff] }
 0x2b0   : > { %11517 = vmatpush1.bf16.msra.mxu1 %v18856_v53  ;;  %v18904_v53 = vld [vmem:[%s20382_s15 + $0x850] ss:$8 sps:$4 sm:$0xff]  }
 0x2b1   : > { %13551 = vmatpush1.bf16.msra.mxu0 %v18859_v54  ;;  %11518 = vmatprep.subr.bf16.mxu1 %v18864_v55  ;;  %v18907_v54 = vld [vmem:[%s20382_s15 + $0x1a50] ss:$8 sps:$4 sm:$0xff]   ;;  %v18912_v55 = vld [vmem:[%s20382_s15 + $0x864] ss:$8 sps:$4 sm:$0xff]  }
 0x2b2   : > { %13552 = vmatprep.subr.bf16.mxu0 %v18867_v56  ;;  %v18915_v56 = vld [vmem:[%s20382_s15 + $0x1a64] ss:$8 sps:$4 sm:$0xff]   ;;  %v842_v43 = vld [vmem:[%s20374_s5 + $0xff8] sm:$0xff] }
 0x2b3   : > { %11480 = vmatmul.mubr.bf16.gmra.mrb[28].mxu1 %v15607_v60  ;;  %v15357_v60 = vcombine.low %v572_v46, %v608_v47  ;;  %v15573_v46 = vcombine.low %v788_v31, %v824_v32  ;;  %v860_v47 = vld [vmem:[%s20374_s5 + $0x1088] sm:$0xff] }
 0x2b4   : > { %13514 = vmatmul.mubr.bf16.gmra.mrb[28].mxu0 %v15643_v61  ;;  %11519 = vmatpush1.bf16.msra.mxu1 %v18862_v57  ;;  %v626_v57 = vld [vmem:[%s20374_s5 + $0x938] sm:$0xff]  ;;  %v644_v61 = vld [vmem:[%s20374_s5 + $0x9c8] sm:$0xff] }
 0x2b5   : > { %13553 = vmatpush1.bf16.msra.mxu0 %v18865_v58  ;;  %11520 = vmatprep.subr.bf16.mxu1 %v18870_v1  ;;  %v662_v58 = vld [vmem:[%s20374_s5 + $0xa58] sm:$0xff] }
 0x2b6   : > { %13554 = vmatprep.subr.bf16.mxu0 %v18873_v2  ;;  %11522 = vmatprep.mubr.bf16.mxu1 %v15106_v3  ;;  %v18918_v1 = vld [vmem:[%s20382_s15 + $0x874] ss:$8 sps:$4 sm:$0xff]   ;;  %v15394_v3 = vcombine.high %v626_v57, %v662_v58  ;;  %v15393_v12 = vcombine.low %v626_v57, %v662_v58  ;;  %v18958_v57 = vld [vmem:[%s20382_s15 + $0x8e0] ss:$8 sps:$4 sm:$0xff]  }
 0x2b7   : > { %13556 = vmatprep.mubr.bf16.mxu0 %v15142_v4  ;;  %v18921_v2 = vld [vmem:[%s20382_s15 + $0x1a74] ss:$8 sps:$4 sm:$0xff]   ;;  %v15430_v4 = vcombine.high %v644_v61, %v680_v62  ;;  %v339_v58 = vld [vmem:[%s20374_s5 + $0x40] sm:$0xff] }
 0x2b8   : > { %11521 = vmatpush1.bf16.msra.mxu1 %v18868_v5  ;;  %v18916_v5 = vld [vmem:[%s20382_s15 + $0x870] ss:$8 sps:$4 sm:$0xff]  }
 0x2b9   : > { %13555 = vmatpush1.bf16.msra.mxu0 %v18871_v6  ;;  %11603 = vmatprep.subr.bf16.mxu1 %v18876_v7  ;;  %v18919_v6 = vld [vmem:[%s20382_s15 + $0x1a70] ss:$8 sps:$4 sm:$0xff]   ;;  %v18924_v7 = vld [vmem:[%s20382_s15 + $0x884] ss:$8 sps:$4 sm:$0xff]  }
 0x2ba   : > { %13637 = vmatprep.subr.bf16.mxu0 %v18879_v8  ;;  %v18927_v8 = vld [vmem:[%s20382_s15 + $0x1a84] ss:$8 sps:$4 sm:$0xff]  }
 0x2bb   : > { %11523 = vmatmul.mubr.bf16.vlgmr.msra.gmra.mrb[0].mxu1 %v15105_v13  ;;  %v15429_v13 = vcombine.low %v644_v61, %v680_v62  ;;  %v357_v62 = vld [vmem:[%s20374_s5 + $0xd0] sm:$0xff] }
 0x2bc   : > { %13557 = vmatmul.mubr.bf16.vlgmr.msra.gmra.mrb[0].mxu0 %v15141_v14  ;;  %11604 = vmatpush1.bf16.msra.mxu1 %v18874_v9  ;;  %v18922_v9 = vld [vmem:[%s20382_s15 + $0x880] ss:$8 sps:$4 sm:$0xff]   ;;  %v734_v14 = vld [vmem:[%s20374_s5 + $0xc98] sm:$0xff] }
 0x2bd   : > { %13638 = vmatpush1.bf16.msra.mxu0 %v18877_v10  ;;  %11605 = vmatprep.subr.bf16.mxu1 %v18882_v17  ;;  %v18925_v10 = vld [vmem:[%s20382_s15 + $0x1a80] ss:$8 sps:$4 sm:$0xff]   ;;  %v18930_v17 = vld [vmem:[%s20382_s15 + $0x894] ss:$8 sps:$4 sm:$0xff]  }
 0x2be   : > { %13639 = vmatprep.subr.bf16.mxu0 %v18885_v18  ;;  %11532 = vmatprep.mubr.bf16.mxu1 %v15178_v19  ;;  %v18933_v18 = vld [vmem:[%s20382_s15 + $0x1a94] ss:$8 sps:$4 sm:$0xff]   ;;  %v15466_v19 = vcombine.high %v698_v11, %v734_v14 }
 0x2bf   : > { %13566 = vmatprep.mubr.bf16.mxu0 %v15214_v20  ;;  %v15502_v20 = vcombine.high %v716_v15, %v752_v16 }
 0x2c0   : > { %11606 = vmatpush1.bf16.msra.mxu1 %v18880_v21  ;;  %v18928_v21 = vld [vmem:[%s20382_s15 + $0x890] ss:$8 sps:$4 sm:$0xff]  }
 0x2c1   : > { %13640 = vmatpush1.bf16.msra.mxu0 %v18883_v22  ;;  %11607 = vmatprep.subr.bf16.mxu1 %v18888_v23  ;;  %v18931_v22 = vld [vmem:[%s20382_s15 + $0x1a90] ss:$8 sps:$4 sm:$0xff]   ;;  %v18936_v23 = vld [vmem:[%s20382_s15 + $0x8a4] ss:$8 sps:$4 sm:$0xff]  }
 0x2c2   : > { %13641 = vmatprep.subr.bf16.mxu0 %v18891_v24  ;;  %v18939_v24 = vld [vmem:[%s20382_s15 + $0x1aa4] ss:$8 sps:$4 sm:$0xff]  }
 0x2c3   : > { %11533 = vmatmul.mubr.bf16.gmra.mrb[4].mxu1 %v15177_v29  ;;  %v15465_v29 = vcombine.low %v698_v11, %v734_v14  ;;  %v465_v14 = vld [vmem:[%s20374_s5 + $0x430] sm:$0xff] }
 0x2c4   : > { %13567 = vmatmul.mubr.bf16.gmra.mrb[4].mxu0 %v15213_v30  ;;  %11608 = vmatpush1.bf16.msra.mxu1 %v18886_v25  ;;  %v18934_v25 = vld [vmem:[%s20382_s15 + $0x8a0] ss:$8 sps:$4 sm:$0xff]   ;;  %v15501_v30 = vcombine.low %v716_v15, %v752_v16 }
 0x2c5   : > { %13642 = vmatpush1.bf16.msra.mxu0 %v18889_v26  ;;  %11609 = vmatprep.subr.bf16.mxu1 %v18894_v33  ;;  %v18937_v26 = vld [vmem:[%s20382_s15 + $0x1aa0] ss:$8 sps:$4 sm:$0xff]   ;;  %v18942_v33 = vld [vmem:[%s20382_s15 + $0x8b4] ss:$8 sps:$4 sm:$0xff]  }
 0x2c6   : > { %13643 = vmatprep.subr.bf16.mxu0 %v18897_v34  ;;  %11542 = vmatprep.mubr.bf16.mxu1 %v15250_v35  ;;  %v18945_v34 = vld [vmem:[%s20382_s15 + $0x1ab4] ss:$8 sps:$4 sm:$0xff]   ;;  %v15538_v35 = vcombine.high %v770_v27, %v806_v28  ;;  %v18970_v15 = vld [vmem:[%s20382_s15 + $0x900] ss:$8 sps:$4 sm:$0xff]  }
 0x2c7   : > { %13576 = vmatprep.mubr.bf16.mxu0 %v15286_v36  ;;  %v15574_v36 = vcombine.high %v788_v31, %v824_v32  ;;  %v18973_v16 = vld [vmem:[%s20382_s15 + $0x1b00] ss:$8 sps:$4 sm:$0xff]   ;;  %v537_v31 = vld [vmem:[%s20374_s5 + $0x670] sm:$0xff] }
 0x2c8   : > { %11610 = vmatpush1.bf16.msra.mxu1 %v18892_v37  ;;  %v18940_v37 = vld [vmem:[%s20382_s15 + $0x8b0] ss:$8 sps:$4 sm:$0xff]   ;;  %v18985_v32 = vld [vmem:[%s20382_s15 + $0x1b20] ss:$8 sps:$4 sm:$0xff]  }
 0x2c9   : > { %13644 = vmatpush1.bf16.msra.mxu0 %v18895_v38  ;;  %11611 = vmatprep.subr.bf16.mxu1 %v18900_v39  ;;  %v18943_v38 = vld [vmem:[%s20382_s15 + $0x1ab0] ss:$8 sps:$4 sm:$0xff]   ;;  %v18948_v39 = vld [vmem:[%s20382_s15 + $0x8c4] ss:$8 sps:$4 sm:$0xff]  }
 0x2ca   : > { %13645 = vmatprep.subr.bf16.mxu0 %v18903_v40  ;;  %v18951_v40 = vld [vmem:[%s20382_s15 + $0x1ac4] ss:$8 sps:$4 sm:$0xff]  }
 0x2cb   : > { %11543 = vmatmul.mubr.bf16.gmra.mrb[8].mxu1 %v15249_v44  ;;  %v878_v44 = vld [vmem:[%s20374_s5 + $0x1118] sm:$0xff] }
 0x2cc   : > { %13577 = vmatmul.mubr.bf16.gmra.mrb[8].mxu0 %v15285_v45  ;;  %11612 = vmatpush1.bf16.msra.mxu1 %v18898_v41  ;;  %v18946_v41 = vld [vmem:[%s20382_s15 + $0x8c0] ss:$8 sps:$4 sm:$0xff]   ;;  %v15537_v45 = vcombine.low %v770_v27, %v806_v28 }
 0x2cd   : > { %13646 = vmatpush1.bf16.msra.mxu0 %v18901_v48  ;;  %11613 = vmatprep.subr.bf16.mxu1 %v18906_v49  ;;  %v896_v48 = vld [vmem:[%s20374_s5 + $0x11a8] sm:$0xff]  ;;  %v18954_v49 = vld [vmem:[%s20382_s15 + $0x8d4] ss:$8 sps:$4 sm:$0xff]  }
 0x2ce   : > { %13647 = vmatprep.subr.bf16.mxu0 %v18909_v50  ;;  %11552 = vmatprep.mubr.bf16.mxu1 %v15322_v51  ;;  %v18957_v50 = vld [vmem:[%s20382_s15 + $0x1ad4] ss:$8 sps:$4 sm:$0xff]   ;;  %v15610_v51 = vcombine.high %v842_v43, %v878_v44  ;;  %v15645_v61 = vcombine.low %v860_v47, %v896_v48 }
 0x2cf   : > { %13586 = vmatprep.mubr.bf16.mxu0 %v15358_v52  ;;  %v15646_v52 = vcombine.high %v860_v47, %v896_v48  ;;  %v609_v47 = vld [vmem:[%s20374_s5 + $0x8b0] sm:$0xff]  ;;  %v18997_v48 = vld [vmem:[%s20382_s15 + $0x1b40] ss:$8 sps:$4 sm:$0xff]  }
 0x2d0   : > { %11614 = vmatpush1.bf16.msra.mxu1 %v18904_v53  ;;  %v18952_v53 = vld [vmem:[%s20382_s15 + $0x8d0] ss:$8 sps:$4 sm:$0xff]  }
 0x2d1   : > { %13648 = vmatpush1.bf16.msra.mxu0 %v18907_v54  ;;  %11615 = vmatprep.subr.bf16.mxu1 %v18912_v55  ;;  %v18955_v54 = vld [vmem:[%s20382_s15 + $0x1ad0] ss:$8 sps:$4 sm:$0xff]   ;;  %v18960_v55 = vld [vmem:[%s20382_s15 + $0x8e4] ss:$8 sps:$4 sm:$0xff]  }
 0x2d2   : > { %13649 = vmatprep.subr.bf16.mxu0 %v18915_v56  ;;  %v18963_v56 = vld [vmem:[%s20382_s15 + $0x1ae4] ss:$8 sps:$4 sm:$0xff]  }
 0x2d3   : > { %11553 = vmatmul.mubr.bf16.gmra.mrb[12].mxu1 %v15321_v59  ;;  %v375_v59 = vld [vmem:[%s20374_s5 + $0x160] sm:$0xff] }
 0x2d4   : > { %13587 = vmatmul.mubr.bf16.gmra.mrb[12].mxu0 %v15357_v60  ;;  %11616 = vmatpush1.bf16.msra.mxu1 %v18910_v63  ;;  %v15609_v60 = vcombine.low %v842_v43, %v878_v44  ;;  %v393_v63 = vld [vmem:[%s20374_s5 + $0x1f0] sm:$0xff]  ;;  %v15107_v11 = vcombine.low %v339_v58, %v375_v59 }
 0x2d5   : > { %13650 = vmatpush1.bf16.msra.mxu0 %v18913_v0  ;;  %11617 = vmatprep.subr.bf16.mxu1 %v18918_v1  ;;  %v18961_v0 = vld [vmem:[%s20382_s15 + $0x1ae0] ss:$8 sps:$4 sm:$0xff]   ;;  %v18966_v1 = vld [vmem:[%s20382_s15 + $0x8f4] ss:$8 sps:$4 sm:$0xff]  }
 0x2d6   : > { %13651 = vmatprep.subr.bf16.mxu0 %v18921_v2  ;;  %11562 = vmatprep.mubr.bf16.mxu1 %v15394_v3  ;;  %v18969_v2 = vld [vmem:[%s20382_s15 + $0x1af4] ss:$8 sps:$4 sm:$0xff]   ;;  %v15108_v3 = vcombine.high %v339_v58, %v375_v59  ;;  %v19006_v58 = vld [vmem:[%s20382_s15 + $0x960] ss:$8 sps:$4 sm:$0xff]  }
 0x2d7   : > { %13596 = vmatprep.mubr.bf16.mxu0 %v15430_v4  ;;  %v15144_v4 = vcombine.high %v357_v62, %v393_v63 }
 0x2d8   : > { %11618 = vmatpush1.bf16.msra.mxu1 %v18916_v5  ;;  %v18964_v5 = vld [vmem:[%s20382_s15 + $0x8f0] ss:$8 sps:$4 sm:$0xff]  }
 0x2d9   : > { %13652 = vmatpush1.bf16.msra.mxu0 %v18919_v6  ;;  %11619 = vmatprep.subr.bf16.mxu1 %v18924_v7  ;;  %v18967_v6 = vld [vmem:[%s20382_s15 + $0x1af0] ss:$8 sps:$4 sm:$0xff]   ;;  %v18972_v7 = vld [vmem:[%s20382_s15 + $0x904] ss:$8 sps:$4 sm:$0xff]  }
 0x2da   : > { %13653 = vmatprep.subr.bf16.mxu0 %v18927_v8  ;;  %v18975_v8 = vld [vmem:[%s20382_s15 + $0x1b04] ss:$8 sps:$4 sm:$0xff]  }
 0x2db   : > { %11563 = vmatmul.mubr.bf16.gmra.mrb[16].mxu1 %v15393_v12  ;;  %v15143_v12 = vcombine.low %v357_v62, %v393_v63  ;;  %v645_v62 = vld [vmem:[%s20374_s5 + $0x9d0] sm:$0xff] }
 0x2dc   : > { %13597 = vmatmul.mubr.bf16.gmra.mrb[16].mxu0 %v15429_v13  ;;  %11620 = vmatpush1.bf16.msra.mxu1 %v18922_v9  ;;  %v411_v9 = vld [vmem:[%s20374_s5 + $0x280] sm:$0xff]  ;;  %v429_v13 = vld [vmem:[%s20374_s5 + $0x310] sm:$0xff] }
 0x2dd   : > { %13654 = vmatpush1.bf16.msra.mxu0 %v18925_v10  ;;  %11621 = vmatprep.subr.bf16.mxu1 %v18930_v17  ;;  %v447_v10 = vld [vmem:[%s20374_s5 + $0x3a0] sm:$0xff]  ;;  %v18978_v17 = vld [vmem:[%s20382_s15 + $0x914] ss:$8 sps:$4 sm:$0xff]   ;;  %v15215_v28 = vcombine.low %v429_v13, %v465_v14 }
 0x2de   : > { %13655 = vmatprep.subr.bf16.mxu0 %v18933_v18  ;;  %11572 = vmatprep.mubr.bf16.mxu1 %v15466_v19  ;;  %v18981_v18 = vld [vmem:[%s20382_s15 + $0x1b14] ss:$8 sps:$4 sm:$0xff]   ;;  %v15180_v19 = vcombine.high %v411_v9, %v447_v10  ;;  %v15179_v27 = vcombine.low %v411_v9, %v447_v10  ;;  %v699_v9 = vld [vmem:[%s20374_s5 + $0xb80] sm:$0xff] }
 0x2df   : > { %13606 = vmatprep.mubr.bf16.mxu0 %v15502_v20  ;;  %v15216_v20 = vcombine.high %v429_v13, %v465_v14  ;;  %v681_v63 = vld [vmem:[%s20374_s5 + $0xaf0] sm:$0xff]  ;;  %v19018_v10 = vld [vmem:[%s20382_s15 + $0x980] ss:$8 sps:$4 sm:$0xff]  }
 0x2e0   : > { %11622 = vmatpush1.bf16.msra.mxu1 %v18928_v21  ;;  %v18976_v21 = vld [vmem:[%s20382_s15 + $0x910] ss:$8 sps:$4 sm:$0xff]   ;;  %v735_v13 = vld [vmem:[%s20374_s5 + $0xca0] sm:$0xff] }
 0x2e1   : > { %13656 = vmatpush1.bf16.msra.mxu0 %v18931_v22  ;;  %11623 = vmatprep.subr.bf16.mxu1 %v18936_v23  ;;  %v18979_v22 = vld [vmem:[%s20382_s15 + $0x1b10] ss:$8 sps:$4 sm:$0xff]   ;;  %v18984_v23 = vld [vmem:[%s20382_s15 + $0x924] ss:$8 sps:$4 sm:$0xff]  }
 0x2e2   : > { %13657 = vmatprep.subr.bf16.mxu0 %v18939_v24  ;;  %v18987_v24 = vld [vmem:[%s20382_s15 + $0x1b24] ss:$8 sps:$4 sm:$0xff]   ;;  %v717_v14 = vld [vmem:[%s20374_s5 + $0xc10] sm:$0xff] }
 0x2e3   : > { %11573 = vmatmul.mubr.bf16.gmra.mrb[20].mxu1 %v15465_v29  ;;  %v519_v29 = vld [vmem:[%s20374_s5 + $0x5e0] sm:$0xff] }
 0x2e4   : > { %13607 = vmatmul.mubr.bf16.gmra.mrb[20].mxu0 %v15501_v30  ;;  %11624 = vmatpush1.bf16.msra.mxu1 %v18934_v25  ;;  %v18982_v25 = vld [vmem:[%s20382_s15 + $0x920] ss:$8 sps:$4 sm:$0xff]   ;;  %v501_v30 = vld [vmem:[%s20374_s5 + $0x550] sm:$0xff] }
 0x2e5   : > { %13658 = vmatpush1.bf16.msra.mxu0 %v18937_v26  ;;  %11625 = vmatprep.subr.bf16.mxu1 %v18942_v33  ;;  %v483_v26 = vld [vmem:[%s20374_s5 + $0x4c0] sm:$0xff]  ;;  %v18990_v33 = vld [vmem:[%s20382_s15 + $0x934] ss:$8 sps:$4 sm:$0xff]   ;;  %v15287_v44 = vcombine.low %v501_v30, %v537_v31 }
 0x2e6   : > { %13659 = vmatprep.subr.bf16.mxu0 %v18945_v34  ;;  %11582 = vmatprep.mubr.bf16.mxu1 %v15538_v35  ;;  %v18993_v34 = vld [vmem:[%s20382_s15 + $0x1b34] ss:$8 sps:$4 sm:$0xff]   ;;  %v18988_v35 = vld [vmem:[%s20382_s15 + $0x930] ss:$8 sps:$4 sm:$0xff]   ;;  %v15251_v43 = vcombine.low %v483_v26, %v519_v29 }
 0x2e7   : > { %13616 = vmatprep.mubr.bf16.mxu0 %v15574_v36  ;;  %v15252_v36 = vcombine.high %v483_v26, %v519_v29  ;;  %v19030_v26 = vld [vmem:[%s20382_s15 + $0x9a0] ss:$8 sps:$4 sm:$0xff]  }
 0x2e8   : > { %11626 = vmatpush1.bf16.msra.mxu1 %v18940_v37  ;;  %v15288_v37 = vcombine.high %v501_v30, %v537_v31  ;;  %v807_v29 = vld [vmem:[%s20374_s5 + $0xee0] sm:$0xff]  ;;  %v789_v30 = vld [vmem:[%s20374_s5 + $0xe50] sm:$0xff] }
 0x2e9   : > { %13660 = vmatpush1.bf16.msra.mxu0 %v18943_v38  ;;  %11627 = vmatprep.subr.bf16.mxu1 %v18948_v39  ;;  %v18991_v38 = vld [vmem:[%s20382_s15 + $0x1b30] ss:$8 sps:$4 sm:$0xff]   ;;  %v18996_v39 = vld [vmem:[%s20382_s15 + $0x944] ss:$8 sps:$4 sm:$0xff]  }
 0x2ea   : > { %13661 = vmatprep.subr.bf16.mxu0 %v18951_v40  ;;  %v18999_v40 = vld [vmem:[%s20382_s15 + $0x1b44] ss:$8 sps:$4 sm:$0xff]   ;;  %v825_v31 = vld [vmem:[%s20374_s5 + $0xf70] sm:$0xff] }
 0x2eb   : > { %11583 = vmatmul.mubr.bf16.gmra.mrb[24].mxu1 %v15537_v45  ;;  %v591_v45 = vld [vmem:[%s20374_s5 + $0x820] sm:$0xff] }
 0x2ec   : > { %13617 = vmatmul.mubr.bf16.gmra.mrb[24].mxu0 %v15573_v46  ;;  %11628 = vmatpush1.bf16.msra.mxu1 %v18946_v41  ;;  %v555_v41 = vld [vmem:[%s20374_s5 + $0x700] sm:$0xff]  ;;  %v573_v46 = vld [vmem:[%s20374_s5 + $0x790] sm:$0xff] }
 0x2ed   : > { %13662 = vmatpush1.bf16.msra.mxu0 %v18949_v42  ;;  %11629 = vmatprep.subr.bf16.mxu1 %v18954_v49  ;;  %v18994_v42 = vld [vmem:[%s20382_s15 + $0x940] ss:$8 sps:$4 sm:$0xff]   ;;  %v19002_v49 = vld [vmem:[%s20382_s15 + $0x954] ss:$8 sps:$4 sm:$0xff]   ;;  %v15323_v59 = vcombine.low %v555_v41, %v591_v45 }
 0x2ee   : > { %13663 = vmatprep.subr.bf16.mxu0 %v18957_v50  ;;  %11592 = vmatprep.mubr.bf16.mxu1 %v15610_v51  ;;  %v19005_v50 = vld [vmem:[%s20382_s15 + $0x1b54] ss:$8 sps:$4 sm:$0xff]   ;;  %v19000_v51 = vld [vmem:[%s20382_s15 + $0x950] ss:$8 sps:$4 sm:$0xff]  }
 0x2ef   : > { %13626 = vmatprep.mubr.bf16.mxu0 %v15646_v52  ;;  %v15324_v52 = vcombine.high %v555_v41, %v591_v45  ;;  %v843_v41 = vld [vmem:[%s20374_s5 + $0x1000] sm:$0xff] }
 0x2f0   : > { %11630 = vmatpush1.bf16.msra.mxu1 %v18952_v53  ;;  %v15360_v53 = vcombine.high %v573_v46, %v609_v47  ;;  %v879_v45 = vld [vmem:[%s20374_s5 + $0x1120] sm:$0xff] }
 0x2f1   : > { %13664 = vmatpush1.bf16.msra.mxu0 %v18955_v54  ;;  %11631 = vmatprep.subr.bf16.mxu1 %v18960_v55  ;;  %v19003_v54 = vld [vmem:[%s20382_s15 + $0x1b50] ss:$8 sps:$4 sm:$0xff]   ;;  %v19008_v55 = vld [vmem:[%s20382_s15 + $0x964] ss:$8 sps:$4 sm:$0xff]  }
 0x2f2   : > { %13665 = vmatprep.subr.bf16.mxu0 %v18963_v56  ;;  %v19011_v56 = vld [vmem:[%s20382_s15 + $0x1b64] ss:$8 sps:$4 sm:$0xff]  }
 0x2f3   : > { %11593 = vmatmul.mubr.bf16.gmra.mrb[28].mxu1 %v15609_v60  ;;  %v15359_v60 = vcombine.low %v573_v46, %v609_v47  ;;  %v861_v46 = vld [vmem:[%s20374_s5 + $0x1090] sm:$0xff] }
 0x2f4   : > { %13627 = vmatmul.mubr.bf16.gmra.mrb[28].mxu0 %v15645_v61  ;;  %11632 = vmatpush1.bf16.msra.mxu1 %v18958_v57  ;;  %v627_v57 = vld [vmem:[%s20374_s5 + $0x940] sm:$0xff]  ;;  %v897_v47 = vld [vmem:[%s20374_s5 + $0x11b0] sm:$0xff] }
 0x2f5   : > { %13666 = vmatpush1.bf16.msra.mxu0 %v18961_v0  ;;  %11633 = vmatprep.subr.bf16.mxu1 %v18966_v1  ;;  %v663_v61 = vld [vmem:[%s20374_s5 + $0xa60] sm:$0xff]  ;;  %v19014_v1 = vld [vmem:[%s20382_s15 + $0x974] ss:$8 sps:$4 sm:$0xff]  }
 0x2f6   : > { %13667 = vmatprep.subr.bf16.mxu0 %v18969_v2  ;;  %11635 = vmatprep.mubr.bf16.mxu1 %v15108_v3  ;;  %v19009_v0 = vld [vmem:[%s20382_s15 + $0x1b60] ss:$8 sps:$4 sm:$0xff]   ;;  %v19017_v2 = vld [vmem:[%s20382_s15 + $0x1b74] ss:$8 sps:$4 sm:$0xff]   ;;  %v19012_v3 = vld [vmem:[%s20382_s15 + $0x970] ss:$8 sps:$4 sm:$0xff]  }
 0x2f7   : > { %13669 = vmatprep.mubr.bf16.mxu0 %v15144_v4  ;;  %v15396_v4 = vcombine.high %v627_v57, %v663_v61 }
 0x2f8   : > { %11634 = vmatpush1.bf16.msra.mxu1 %v18964_v5  ;;  %v15432_v5 = vcombine.high %v645_v62, %v681_v63 }
 0x2f9   : > { %13668 = vmatpush1.bf16.msra.mxu0 %v18967_v6  ;;  %11716 = vmatprep.subr.bf16.mxu1 %v18972_v7  ;;  %v19015_v6 = vld [vmem:[%s20382_s15 + $0x1b70] ss:$8 sps:$4 sm:$0xff]   ;;  %v19020_v7 = vld [vmem:[%s20382_s15 + $0x984] ss:$8 sps:$4 sm:$0xff]  }
 0x2fa   : > { %13750 = vmatprep.subr.bf16.mxu0 %v18975_v8  ;;  %v19023_v8 = vld [vmem:[%s20382_s15 + $0x1b84] ss:$8 sps:$4 sm:$0xff]  }
 0x2fb   : > { %11636 = vmatmul.mubr.bf16.vlgmr.msra.gmra.mrb[0].mxu1 %v15107_v11  ;;  %v15395_v11 = vcombine.low %v627_v57, %v663_v61  ;;  %v340_v57 = vld [vmem:[%s20374_s5 + $0x48] sm:$0xff] }
 0x2fc   : > { %13670 = vmatmul.mubr.bf16.vlgmr.msra.gmra.mrb[0].mxu0 %v15143_v12  ;;  %11717 = vmatpush1.bf16.msra.mxu1 %v18970_v15  ;;  %v15431_v12 = vcombine.low %v645_v62, %v681_v63  ;;  %v753_v15 = vld [vmem:[%s20374_s5 + $0xd30] sm:$0xff]  ;;  %v376_v61 = vld [vmem:[%s20374_s5 + $0x168] sm:$0xff]  ;;  %v358_v62 = vld [vmem:[%s20374_s5 + $0xd8] sm:$0xff] }
 0x2fd   : > { %13751 = vmatpush1.bf16.msra.mxu0 %v18973_v16  ;;  %11718 = vmatprep.subr.bf16.mxu1 %v18978_v17  ;;  %v19021_v16 = vld [vmem:[%s20382_s15 + $0x1b80] ss:$8 sps:$4 sm:$0xff]   ;;  %v19026_v17 = vld [vmem:[%s20382_s15 + $0x994] ss:$8 sps:$4 sm:$0xff]  }
 0x2fe   : > { %13752 = vmatprep.subr.bf16.mxu0 %v18981_v18  ;;  %11645 = vmatprep.mubr.bf16.mxu1 %v15180_v19  ;;  %v19029_v18 = vld [vmem:[%s20382_s15 + $0x1b94] ss:$8 sps:$4 sm:$0xff]   ;;  %v19024_v19 = vld [vmem:[%s20382_s15 + $0x990] ss:$8 sps:$4 sm:$0xff]  }
 0x2ff   : > { %13679 = vmatprep.mubr.bf16.mxu0 %v15216_v20  ;;  %v15468_v20 = vcombine.high %v699_v9, %v735_v13  ;;  %v394_v63 = vld [vmem:[%s20374_s5 + $0x1f8] sm:$0xff] }
 0x300   : > { %11719 = vmatpush1.bf16.msra.mxu1 %v18976_v21  ;;  %v15504_v21 = vcombine.high %v717_v14, %v753_v15 }
 0x301   : > { %13753 = vmatpush1.bf16.msra.mxu0 %v18979_v22  ;;  %11720 = vmatprep.subr.bf16.mxu1 %v18984_v23  ;;  %v19027_v22 = vld [vmem:[%s20382_s15 + $0x1b90] ss:$8 sps:$4 sm:$0xff]   ;;  %v19032_v23 = vld [vmem:[%s20382_s15 + $0x9a4] ss:$8 sps:$4 sm:$0xff]  }
 0x302   : > { %13754 = vmatprep.subr.bf16.mxu0 %v18987_v24  ;;  %v19035_v24 = vld [vmem:[%s20382_s15 + $0x1ba4] ss:$8 sps:$4 sm:$0xff]  }
 0x303   : > { %11646 = vmatmul.mubr.bf16.gmra.mrb[4].mxu1 %v15179_v27  ;;  %v15467_v27 = vcombine.low %v699_v9, %v735_v13  ;;  %v412_v9 = vld [vmem:[%s20374_s5 + $0x288] sm:$0xff] }
 0x304   : > { %13680 = vmatmul.mubr.bf16.gmra.mrb[4].mxu0 %v15215_v28  ;;  %11721 = vmatpush1.bf16.msra.mxu1 %v18982_v25  ;;  %v771_v25 = vld [vmem:[%s20374_s5 + $0xdc0] sm:$0xff]  ;;  %v15503_v28 = vcombine.low %v717_v14, %v753_v15  ;;  %v448_v13 = vld [vmem:[%s20374_s5 + $0x3a8] sm:$0xff]  ;;  %v430_v14 = vld [vmem:[%s20374_s5 + $0x318] sm:$0xff] }
 0x305   : > { %13755 = vmatpush1.bf16.msra.mxu0 %v18985_v32  ;;  %11722 = vmatprep.subr.bf16.mxu1 %v18990_v33  ;;  %v19033_v32 = vld [vmem:[%s20382_s15 + $0x1ba0] ss:$8 sps:$4 sm:$0xff]   ;;  %v19038_v33 = vld [vmem:[%s20382_s15 + $0x9b4] ss:$8 sps:$4 sm:$0xff]  }
 0x306   : > { %13756 = vmatprep.subr.bf16.mxu0 %v18993_v34  ;;  %11655 = vmatprep.mubr.bf16.mxu1 %v15252_v36  ;;  %v19041_v34 = vld [vmem:[%s20382_s15 + $0x1bb4] ss:$8 sps:$4 sm:$0xff]   ;;  %v15540_v36 = vcombine.high %v771_v25, %v807_v29 }
 0x307   : > { %13689 = vmatprep.mubr.bf16.mxu0 %v15288_v37  ;;  %v15576_v37 = vcombine.high %v789_v30, %v825_v31  ;;  %v466_v15 = vld [vmem:[%s20374_s5 + $0x438] sm:$0xff] }
 0x308   : > { %11723 = vmatpush1.bf16.msra.mxu1 %v18988_v35  ;;  %v19036_v35 = vld [vmem:[%s20382_s15 + $0x9b0] ss:$8 sps:$4 sm:$0xff]  }
 0x309   : > { %13757 = vmatpush1.bf16.msra.mxu0 %v18991_v38  ;;  %11724 = vmatprep.subr.bf16.mxu1 %v18996_v39  ;;  %v19039_v38 = vld [vmem:[%s20382_s15 + $0x1bb0] ss:$8 sps:$4 sm:$0xff]   ;;  %v19044_v39 = vld [vmem:[%s20382_s15 + $0x9c4] ss:$8 sps:$4 sm:$0xff]  }
 0x30a   : > { %13758 = vmatprep.subr.bf16.mxu0 %v18999_v40  ;;  %v19047_v40 = vld [vmem:[%s20382_s15 + $0x1bc4] ss:$8 sps:$4 sm:$0xff]  }
 0x30b   : > { %11656 = vmatmul.mubr.bf16.gmra.mrb[8].mxu1 %v15251_v43  ;;  %v15539_v43 = vcombine.low %v771_v25, %v807_v29  ;;  %v484_v25 = vld [vmem:[%s20374_s5 + $0x4c8] sm:$0xff] }
 0x30c   : > { %13690 = vmatmul.mubr.bf16.gmra.mrb[8].mxu0 %v15287_v44  ;;  %11725 = vmatpush1.bf16.msra.mxu1 %v18994_v42  ;;  %v19042_v42 = vld [vmem:[%s20382_s15 + $0x9c0] ss:$8 sps:$4 sm:$0xff]   ;;  %v15575_v44 = vcombine.low %v789_v30, %v825_v31  ;;  %v502_v30 = vld [vmem:[%s20374_s5 + $0x558] sm:$0xff] }
 0x30d   : > { %13759 = vmatpush1.bf16.msra.mxu0 %v18997_v48  ;;  %11726 = vmatprep.subr.bf16.mxu1 %v19002_v49  ;;  %v19045_v48 = vld [vmem:[%s20382_s15 + $0x1bc0] ss:$8 sps:$4 sm:$0xff]   ;;  %v19050_v49 = vld [vmem:[%s20382_s15 + $0x9d4] ss:$8 sps:$4 sm:$0xff]  }
 0x30e   : > { %13760 = vmatprep.subr.bf16.mxu0 %v19005_v50  ;;  %11665 = vmatprep.mubr.bf16.mxu1 %v15324_v52  ;;  %v19053_v50 = vld [vmem:[%s20382_s15 + $0x1bd4] ss:$8 sps:$4 sm:$0xff]   ;;  %v15612_v52 = vcombine.high %v843_v41, %v879_v45  ;;  %v520_v29 = vld [vmem:[%s20374_s5 + $0x5e8] sm:$0xff] }
 0x30f   : > { %13699 = vmatprep.mubr.bf16.mxu0 %v15360_v53  ;;  %v15648_v53 = vcombine.high %v861_v46, %v897_v47  ;;  %v538_v31 = vld [vmem:[%s20374_s5 + $0x678] sm:$0xff] }
 0x310   : > { %11727 = vmatpush1.bf16.msra.mxu1 %v19000_v51  ;;  %v19048_v51 = vld [vmem:[%s20382_s15 + $0x9d0] ss:$8 sps:$4 sm:$0xff]  }
 0x311   : > { %13761 = vmatpush1.bf16.msra.mxu0 %v19003_v54  ;;  %11728 = vmatprep.subr.bf16.mxu1 %v19008_v55  ;;  %v19051_v54 = vld [vmem:[%s20382_s15 + $0x1bd0] ss:$8 sps:$4 sm:$0xff]   ;;  %v19056_v55 = vld [vmem:[%s20382_s15 + $0x9e4] ss:$8 sps:$4 sm:$0xff]  }
 0x312   : > { %13762 = vmatprep.subr.bf16.mxu0 %v19011_v56  ;;  %v19059_v56 = vld [vmem:[%s20382_s15 + $0x1be4] ss:$8 sps:$4 sm:$0xff]  }
 0x313   : > { %11666 = vmatmul.mubr.bf16.gmra.mrb[12].mxu1 %v15323_v59  ;;  %v15611_v59 = vcombine.low %v843_v41, %v879_v45  ;;  %v556_v41 = vld [vmem:[%s20374_s5 + $0x708] sm:$0xff] }
 0x314   : > { %13700 = vmatmul.mubr.bf16.gmra.mrb[12].mxu0 %v15359_v60  ;;  %11729 = vmatpush1.bf16.msra.mxu1 %v19006_v58  ;;  %v19054_v58 = vld [vmem:[%s20382_s15 + $0x9e0] ss:$8 sps:$4 sm:$0xff]   ;;  %v15647_v60 = vcombine.low %v861_v46, %v897_v47  ;;  %v574_v46 = vld [vmem:[%s20374_s5 + $0x798] sm:$0xff] }
 0x315   : > { %13763 = vmatpush1.bf16.msra.mxu0 %v19009_v0  ;;  %11730 = vmatprep.subr.bf16.mxu1 %v19014_v1  ;;  %v19057_v0 = vld [vmem:[%s20382_s15 + $0x1be0] ss:$8 sps:$4 sm:$0xff]   ;;  %v19062_v1 = vld [vmem:[%s20382_s15 + $0x9f4] ss:$8 sps:$4 sm:$0xff]  }
 0x316   : > { %13764 = vmatprep.subr.bf16.mxu0 %v19017_v2  ;;  %11675 = vmatprep.mubr.bf16.mxu1 %v15396_v4  ;;  %v19065_v2 = vld [vmem:[%s20382_s15 + $0x1bf4] ss:$8 sps:$4 sm:$0xff]   ;;  %v15110_v4 = vcombine.high %v340_v57, %v376_v61  ;;  %v592_v45 = vld [vmem:[%s20374_s5 + $0x828] sm:$0xff] }
 0x317   : > { %13709 = vmatprep.mubr.bf16.mxu0 %v15432_v5  ;;  %v15146_v5 = vcombine.high %v358_v62, %v394_v63  ;;  %v610_v47 = vld [vmem:[%s20374_s5 + $0x8b8] sm:$0xff] }
 0x318   : > { %11731 = vmatpush1.bf16.msra.mxu1 %v19012_v3  ;;  %v19060_v3 = vld [vmem:[%s20382_s15 + $0x9f0] ss:$8 sps:$4 sm:$0xff]  }
 0x319   : > { %13765 = vmatpush1.bf16.msra.mxu0 %v19015_v6  ;;  %11732 = vmatprep.subr.bf16.mxu1 %v19020_v7  ;;  %v19063_v6 = vld [vmem:[%s20382_s15 + $0x1bf0] ss:$8 sps:$4 sm:$0xff]   ;;  %v19068_v7 = vld [vmem:[%s20382_s15 + $0xa04] ss:$8 sps:$4 sm:$0xff]  }
 0x31a   : > { %13766 = vmatprep.subr.bf16.mxu0 %v19023_v8  ;;  %v19071_v8 = vld [vmem:[%s20382_s15 + $0x1c04] ss:$8 sps:$4 sm:$0xff]  }
 0x31b   : > { %11676 = vmatmul.mubr.bf16.gmra.mrb[16].mxu1 %v15395_v11  ;;  %v15109_v11 = vcombine.low %v340_v57, %v376_v61  ;;  %v628_v57 = vld [vmem:[%s20374_s5 + $0x948] sm:$0xff] }
 0x31c   : > { %13710 = vmatmul.mubr.bf16.gmra.mrb[16].mxu0 %v15431_v12  ;;  %11733 = vmatpush1.bf16.msra.mxu1 %v19018_v10  ;;  %v19066_v10 = vld [vmem:[%s20382_s15 + $0xa00] ss:$8 sps:$4 sm:$0xff]   ;;  %v15145_v12 = vcombine.low %v358_v62, %v394_v63  ;;  %v646_v62 = vld [vmem:[%s20374_s5 + $0x9d8] sm:$0xff] }
 0x31d   : > { %13767 = vmatpush1.bf16.msra.mxu0 %v19021_v16  ;;  %11734 = vmatprep.subr.bf16.mxu1 %v19026_v17  ;;  %v19069_v16 = vld [vmem:[%s20382_s15 + $0x1c00] ss:$8 sps:$4 sm:$0xff]   ;;  %v19074_v17 = vld [vmem:[%s20382_s15 + $0xa14] ss:$8 sps:$4 sm:$0xff]  }
 0x31e   : > { %13768 = vmatprep.subr.bf16.mxu0 %v19029_v18  ;;  %11685 = vmatprep.mubr.bf16.mxu1 %v15468_v20  ;;  %v19077_v18 = vld [vmem:[%s20382_s15 + $0x1c14] ss:$8 sps:$4 sm:$0xff]   ;;  %v15182_v20 = vcombine.high %v412_v9, %v448_v13  ;;  %v664_v61 = vld [vmem:[%s20374_s5 + $0xa68] sm:$0xff] }
 0x31f   : > { %13719 = vmatprep.mubr.bf16.mxu0 %v15504_v21  ;;  %v15218_v21 = vcombine.high %v430_v14, %v466_v15  ;;  %v682_v63 = vld [vmem:[%s20374_s5 + $0xaf8] sm:$0xff] }
 0x320   : > { %11735 = vmatpush1.bf16.msra.mxu1 %v19024_v19  ;;  %v19072_v19 = vld [vmem:[%s20382_s15 + $0xa10] ss:$8 sps:$4 sm:$0xff]  }
 0x321   : > { %13769 = vmatpush1.bf16.msra.mxu0 %v19027_v22  ;;  %11736 = vmatprep.subr.bf16.mxu1 %v19032_v23  ;;  %v19075_v22 = vld [vmem:[%s20382_s15 + $0x1c10] ss:$8 sps:$4 sm:$0xff]   ;;  %v19080_v23 = vld [vmem:[%s20382_s15 + $0xa24] ss:$8 sps:$4 sm:$0xff]  }
 0x322   : > { %13770 = vmatprep.subr.bf16.mxu0 %v19035_v24  ;;  %v19083_v24 = vld [vmem:[%s20382_s15 + $0x1c24] ss:$8 sps:$4 sm:$0xff]  }
 0x323   : > { %11686 = vmatmul.mubr.bf16.gmra.mrb[20].mxu1 %v15467_v27  ;;  %v15181_v27 = vcombine.low %v412_v9, %v448_v13  ;;  %v700_v9 = vld [vmem:[%s20374_s5 + $0xb88] sm:$0xff] }
 0x324   : > { %13720 = vmatmul.mubr.bf16.gmra.mrb[20].mxu0 %v15503_v28  ;;  %11737 = vmatpush1.bf16.msra.mxu1 %v19030_v26  ;;  %v19078_v26 = vld [vmem:[%s20382_s15 + $0xa20] ss:$8 sps:$4 sm:$0xff]   ;;  %v15217_v28 = vcombine.low %v430_v14, %v466_v15  ;;  %v718_v14 = vld [vmem:[%s20374_s5 + $0xc18] sm:$0xff] }
 0x325   : > { %13771 = vmatpush1.bf16.msra.mxu0 %v19033_v32  ;;  %11738 = vmatprep.subr.bf16.mxu1 %v19038_v33  ;;  %v19081_v32 = vld [vmem:[%s20382_s15 + $0x1c20] ss:$8 sps:$4 sm:$0xff]   ;;  %v19086_v33 = vld [vmem:[%s20382_s15 + $0xa34] ss:$8 sps:$4 sm:$0xff]  }
 0x326   : > { %13772 = vmatprep.subr.bf16.mxu0 %v19041_v34  ;;  %11695 = vmatprep.mubr.bf16.mxu1 %v15540_v36  ;;  %v19089_v34 = vld [vmem:[%s20382_s15 + $0x1c34] ss:$8 sps:$4 sm:$0xff]   ;;  %v15254_v36 = vcombine.high %v484_v25, %v520_v29  ;;  %v736_v13 = vld [vmem:[%s20374_s5 + $0xca8] sm:$0xff] }
 0x327   : > { %13729 = vmatprep.mubr.bf16.mxu0 %v15576_v37  ;;  %v15290_v37 = vcombine.high %v502_v30, %v538_v31  ;;  %v754_v15 = vld [vmem:[%s20374_s5 + $0xd38] sm:$0xff] }
 0x328   : > { %11739 = vmatpush1.bf16.msra.mxu1 %v19036_v35  ;;  %v19084_v35 = vld [vmem:[%s20382_s15 + $0xa30] ss:$8 sps:$4 sm:$0xff]  }
 0x329   : > { %13773 = vmatpush1.bf16.msra.mxu0 %v19039_v38  ;;  %11740 = vmatprep.subr.bf16.mxu1 %v19044_v39  ;;  %v19087_v38 = vld [vmem:[%s20382_s15 + $0x1c30] ss:$8 sps:$4 sm:$0xff]   ;;  %v19092_v39 = vld [vmem:[%s20382_s15 + $0xa44] ss:$8 sps:$4 sm:$0xff]  }
 0x32a   : > { %13774 = vmatprep.subr.bf16.mxu0 %v19047_v40  ;;  %v19095_v40 = vld [vmem:[%s20382_s15 + $0x1c44] ss:$8 sps:$4 sm:$0xff]  }
 0x32b   : > { %11696 = vmatmul.mubr.bf16.gmra.mrb[24].mxu1 %v15539_v43  ;;  %v15253_v43 = vcombine.low %v484_v25, %v520_v29  ;;  %v772_v25 = vld [vmem:[%s20374_s5 + $0xdc8] sm:$0xff] }
 0x32c   : > { %13730 = vmatmul.mubr.bf16.gmra.mrb[24].mxu0 %v15575_v44  ;;  %11741 = vmatpush1.bf16.msra.mxu1 %v19042_v42  ;;  %v19090_v42 = vld [vmem:[%s20382_s15 + $0xa40] ss:$8 sps:$4 sm:$0xff]   ;;  %v15289_v44 = vcombine.low %v502_v30, %v538_v31  ;;  %v790_v30 = vld [vmem:[%s20374_s5 + $0xe58] sm:$0xff] }
 0x32d   : > { %13775 = vmatpush1.bf16.msra.mxu0 %v19045_v48  ;;  %11742 = vmatprep.subr.bf16.mxu1 %v19050_v49  ;;  %v19093_v48 = vld [vmem:[%s20382_s15 + $0x1c40] ss:$8 sps:$4 sm:$0xff]   ;;  %v19098_v49 = vld [vmem:[%s20382_s15 + $0xa54] ss:$8 sps:$4 sm:$0xff]  }
 0x32e   : > { %13776 = vmatprep.subr.bf16.mxu0 %v19053_v50  ;;  %11705 = vmatprep.mubr.bf16.mxu1 %v15612_v52  ;;  %v19101_v50 = vld [vmem:[%s20382_s15 + $0x1c54] ss:$8 sps:$4 sm:$0xff]   ;;  %v15326_v52 = vcombine.high %v556_v41, %v592_v45  ;;  %v808_v29 = vld [vmem:[%s20374_s5 + $0xee8] sm:$0xff] }
 0x32f   : > { %13739 = vmatprep.mubr.bf16.mxu0 %v15648_v53  ;;  %v15362_v53 = vcombine.high %v574_v46, %v610_v47  ;;  %v826_v31 = vld [vmem:[%s20374_s5 + $0xf78] sm:$0xff] }
 0x330   : > { %11743 = vmatpush1.bf16.msra.mxu1 %v19048_v51  ;;  %v19096_v51 = vld [vmem:[%s20382_s15 + $0xa50] ss:$8 sps:$4 sm:$0xff]  }
 0x331   : > { %13777 = vmatpush1.bf16.msra.mxu0 %v19051_v54  ;;  %11744 = vmatprep.subr.bf16.mxu1 %v19056_v55  ;;  %v19099_v54 = vld [vmem:[%s20382_s15 + $0x1c50] ss:$8 sps:$4 sm:$0xff]   ;;  %v19104_v55 = vld [vmem:[%s20382_s15 + $0xa64] ss:$8 sps:$4 sm:$0xff]  }
 0x332   : > { %13778 = vmatprep.subr.bf16.mxu0 %v19059_v56  ;;  %v19107_v56 = vld [vmem:[%s20382_s15 + $0x1c64] ss:$8 sps:$4 sm:$0xff]  }
 0x333   : > { %11706 = vmatmul.mubr.bf16.gmra.mrb[28].mxu1 %v15611_v59  ;;  %v15325_v59 = vcombine.low %v556_v41, %v592_v45  ;;  %v844_v41 = vld [vmem:[%s20374_s5 + $0x1008] sm:$0xff] }
 0x334   : > { %13740 = vmatmul.mubr.bf16.gmra.mrb[28].mxu0 %v15647_v60  ;;  %11745 = vmatpush1.bf16.msra.mxu1 %v19054_v58  ;;  %v19102_v58 = vld [vmem:[%s20382_s15 + $0xa60] ss:$8 sps:$4 sm:$0xff]   ;;  %v15361_v60 = vcombine.low %v574_v46, %v610_v47  ;;  %v862_v46 = vld [vmem:[%s20374_s5 + $0x1098] sm:$0xff] }
 0x335   : > { %13779 = vmatpush1.bf16.msra.mxu0 %v19057_v0  ;;  %11746 = vmatprep.subr.bf16.mxu1 %v19062_v1  ;;  %v19105_v0 = vld [vmem:[%s20382_s15 + $0x1c60] ss:$8 sps:$4 sm:$0xff]   ;;  %v19110_v1 = vld [vmem:[%s20382_s15 + $0xa74] ss:$8 sps:$4 sm:$0xff]  }
 0x336   : > { %13780 = vmatprep.subr.bf16.mxu0 %v19065_v2  ;;  %11748 = vmatprep.mubr.bf16.mxu1 %v15110_v4  ;;  %v19113_v2 = vld [vmem:[%s20382_s15 + $0x1c74] ss:$8 sps:$4 sm:$0xff]   ;;  %v15398_v4 = vcombine.high %v628_v57, %v664_v61  ;;  %v880_v45 = vld [vmem:[%s20374_s5 + $0x1128] sm:$0xff] }
 0x337   : > { %13782 = vmatprep.mubr.bf16.mxu0 %v15146_v5  ;;  %v15434_v5 = vcombine.high %v646_v62, %v682_v63  ;;  %v898_v47 = vld [vmem:[%s20374_s5 + $0x11b8] sm:$0xff] }
 0x338   : > { %11747 = vmatpush1.bf16.msra.mxu1 %v19060_v3  ;;  %v19108_v3 = vld [vmem:[%s20382_s15 + $0xa70] ss:$8 sps:$4 sm:$0xff]  }
 0x339   : > { %13781 = vmatpush1.bf16.msra.mxu0 %v19063_v6  ;;  %11829 = vmatprep.subr.bf16.mxu1 %v19068_v7  ;;  %v19111_v6 = vld [vmem:[%s20382_s15 + $0x1c70] ss:$8 sps:$4 sm:$0xff]   ;;  %v19116_v7 = vld [vmem:[%s20382_s15 + $0xa84] ss:$8 sps:$4 sm:$0xff]  }
 0x33a   : > { %13863 = vmatprep.subr.bf16.mxu0 %v19071_v8  ;;  %v19119_v8 = vld [vmem:[%s20382_s15 + $0x1c84] ss:$8 sps:$4 sm:$0xff]  }
 0x33b   : > { %11749 = vmatmul.mubr.bf16.vlgmr.msra.gmra.mrb[0].mxu1 %v15109_v11  ;;  %v15397_v11 = vcombine.low %v628_v57, %v664_v61  ;;  %v341_v57 = vld [vmem:[%s20374_s5 + $0x50] sm:$0xff] }
 0x33c   : > { %13783 = vmatmul.mubr.bf16.vlgmr.msra.gmra.mrb[0].mxu0 %v15145_v12  ;;  %11830 = vmatpush1.bf16.msra.mxu1 %v19066_v10  ;;  %v19114_v10 = vld [vmem:[%s20382_s15 + $0xa80] ss:$8 sps:$4 sm:$0xff]   ;;  %v15433_v12 = vcombine.low %v646_v62, %v682_v63  ;;  %v377_v61 = vld [vmem:[%s20374_s5 + $0x170] sm:$0xff] }
 0x33d   : > { %13864 = vmatpush1.bf16.msra.mxu0 %v19069_v16  ;;  %11831 = vmatprep.subr.bf16.mxu1 %v19074_v17  ;;  %v19117_v16 = vld [vmem:[%s20382_s15 + $0x1c80] ss:$8 sps:$4 sm:$0xff]   ;;  %v19122_v17 = vld [vmem:[%s20382_s15 + $0xa94] ss:$8 sps:$4 sm:$0xff]  }
 0x33e   : > { %13865 = vmatprep.subr.bf16.mxu0 %v19077_v18  ;;  %11758 = vmatprep.mubr.bf16.mxu1 %v15182_v20  ;;  %v19125_v18 = vld [vmem:[%s20382_s15 + $0x1c94] ss:$8 sps:$4 sm:$0xff]   ;;  %v15470_v20 = vcombine.high %v700_v9, %v736_v13  ;;  %v359_v62 = vld [vmem:[%s20374_s5 + $0xe0] sm:$0xff] }
 0x33f   : > { %13792 = vmatprep.mubr.bf16.mxu0 %v15218_v21  ;;  %v15506_v21 = vcombine.high %v718_v14, %v754_v15  ;;  %v395_v63 = vld [vmem:[%s20374_s5 + $0x200] sm:$0xff] }
 0x340   : > { %11832 = vmatpush1.bf16.msra.mxu1 %v19072_v19  ;;  %v19120_v19 = vld [vmem:[%s20382_s15 + $0xa90] ss:$8 sps:$4 sm:$0xff]  }
 0x341   : > { %13866 = vmatpush1.bf16.msra.mxu0 %v19075_v22  ;;  %11833 = vmatprep.subr.bf16.mxu1 %v19080_v23  ;;  %v19123_v22 = vld [vmem:[%s20382_s15 + $0x1c90] ss:$8 sps:$4 sm:$0xff]   ;;  %v19128_v23 = vld [vmem:[%s20382_s15 + $0xaa4] ss:$8 sps:$4 sm:$0xff]  }
 0x342   : > { %13867 = vmatprep.subr.bf16.mxu0 %v19083_v24  ;;  %v19131_v24 = vld [vmem:[%s20382_s15 + $0x1ca4] ss:$8 sps:$4 sm:$0xff]  }
 0x343   : > { %11759 = vmatmul.mubr.bf16.gmra.mrb[4].mxu1 %v15181_v27  ;;  %v15469_v27 = vcombine.low %v700_v9, %v736_v13  ;;  %v413_v9 = vld [vmem:[%s20374_s5 + $0x290] sm:$0xff] }
 0x344   : > { %13793 = vmatmul.mubr.bf16.gmra.mrb[4].mxu0 %v15217_v28  ;;  %11834 = vmatpush1.bf16.msra.mxu1 %v19078_v26  ;;  %v19126_v26 = vld [vmem:[%s20382_s15 + $0xaa0] ss:$8 sps:$4 sm:$0xff]   ;;  %v15505_v28 = vcombine.low %v718_v14, %v754_v15  ;;  %v449_v13 = vld [vmem:[%s20374_s5 + $0x3b0] sm:$0xff] }
 0x345   : > { %13868 = vmatpush1.bf16.msra.mxu0 %v19081_v32  ;;  %11835 = vmatprep.subr.bf16.mxu1 %v19086_v33  ;;  %v19129_v32 = vld [vmem:[%s20382_s15 + $0x1ca0] ss:$8 sps:$4 sm:$0xff]   ;;  %v19134_v33 = vld [vmem:[%s20382_s15 + $0xab4] ss:$8 sps:$4 sm:$0xff]  }
 0x346   : > { %13869 = vmatprep.subr.bf16.mxu0 %v19089_v34  ;;  %11768 = vmatprep.mubr.bf16.mxu1 %v15254_v36  ;;  %v19137_v34 = vld [vmem:[%s20382_s15 + $0x1cb4] ss:$8 sps:$4 sm:$0xff]   ;;  %v15542_v36 = vcombine.high %v772_v25, %v808_v29  ;;  %v431_v14 = vld [vmem:[%s20374_s5 + $0x320] sm:$0xff] }
 0x347   : > { %13802 = vmatprep.mubr.bf16.mxu0 %v15290_v37  ;;  %v15578_v37 = vcombine.high %v790_v30, %v826_v31  ;;  %v467_v15 = vld [vmem:[%s20374_s5 + $0x440] sm:$0xff] }
 0x348   : > { %11836 = vmatpush1.bf16.msra.mxu1 %v19084_v35  ;;  %v19132_v35 = vld [vmem:[%s20382_s15 + $0xab0] ss:$8 sps:$4 sm:$0xff]  }
 0x349   : > { %13870 = vmatpush1.bf16.msra.mxu0 %v19087_v38  ;;  %11837 = vmatprep.subr.bf16.mxu1 %v19092_v39  ;;  %v19135_v38 = vld [vmem:[%s20382_s15 + $0x1cb0] ss:$8 sps:$4 sm:$0xff]   ;;  %v19140_v39 = vld [vmem:[%s20382_s15 + $0xac4] ss:$8 sps:$4 sm:$0xff]  }
 0x34a   : > { %13871 = vmatprep.subr.bf16.mxu0 %v19095_v40  ;;  %v19143_v40 = vld [vmem:[%s20382_s15 + $0x1cc4] ss:$8 sps:$4 sm:$0xff]  }
 0x34b   : > { %11769 = vmatmul.mubr.bf16.gmra.mrb[8].mxu1 %v15253_v43  ;;  %v15541_v43 = vcombine.low %v772_v25, %v808_v29  ;;  %v485_v25 = vld [vmem:[%s20374_s5 + $0x4d0] sm:$0xff] }
 0x34c   : > { %13803 = vmatmul.mubr.bf16.gmra.mrb[8].mxu0 %v15289_v44  ;;  %11838 = vmatpush1.bf16.msra.mxu1 %v19090_v42  ;;  %v19138_v42 = vld [vmem:[%s20382_s15 + $0xac0] ss:$8 sps:$4 sm:$0xff]   ;;  %v15577_v44 = vcombine.low %v790_v30, %v826_v31  ;;  %v521_v29 = vld [vmem:[%s20374_s5 + $0x5f0] sm:$0xff] }
 0x34d   : > { %13872 = vmatpush1.bf16.msra.mxu0 %v19093_v48  ;;  %11839 = vmatprep.subr.bf16.mxu1 %v19098_v49  ;;  %v19141_v48 = vld [vmem:[%s20382_s15 + $0x1cc0] ss:$8 sps:$4 sm:$0xff]   ;;  %v19146_v49 = vld [vmem:[%s20382_s15 + $0xad4] ss:$8 sps:$4 sm:$0xff]  }
 0x34e   : > { %13873 = vmatprep.subr.bf16.mxu0 %v19101_v50  ;;  %11778 = vmatprep.mubr.bf16.mxu1 %v15326_v52  ;;  %v19149_v50 = vld [vmem:[%s20382_s15 + $0x1cd4] ss:$8 sps:$4 sm:$0xff]   ;;  %v15614_v52 = vcombine.high %v844_v41, %v880_v45  ;;  %v503_v30 = vld [vmem:[%s20374_s5 + $0x560] sm:$0xff] }
 0x34f   : > { %13812 = vmatprep.mubr.bf16.mxu0 %v15362_v53  ;;  %v15650_v53 = vcombine.high %v862_v46, %v898_v47  ;;  %v539_v31 = vld [vmem:[%s20374_s5 + $0x680] sm:$0xff] }
 0x350   : > { %11840 = vmatpush1.bf16.msra.mxu1 %v19096_v51  ;;  %v19144_v51 = vld [vmem:[%s20382_s15 + $0xad0] ss:$8 sps:$4 sm:$0xff]  }
 0x351   : > { %13874 = vmatpush1.bf16.msra.mxu0 %v19099_v54  ;;  %11841 = vmatprep.subr.bf16.mxu1 %v19104_v55  ;;  %v19147_v54 = vld [vmem:[%s20382_s15 + $0x1cd0] ss:$8 sps:$4 sm:$0xff]   ;;  %v19152_v55 = vld [vmem:[%s20382_s15 + $0xae4] ss:$8 sps:$4 sm:$0xff]  }
 0x352   : > { %13875 = vmatprep.subr.bf16.mxu0 %v19107_v56  ;;  %v19155_v56 = vld [vmem:[%s20382_s15 + $0x1ce4] ss:$8 sps:$4 sm:$0xff]  }
 0x353   : > { %11779 = vmatmul.mubr.bf16.gmra.mrb[12].mxu1 %v15325_v59  ;;  %v15613_v59 = vcombine.low %v844_v41, %v880_v45  ;;  %v557_v41 = vld [vmem:[%s20374_s5 + $0x710] sm:$0xff] }
 0x354   : > { %13813 = vmatmul.mubr.bf16.gmra.mrb[12].mxu0 %v15361_v60  ;;  %11842 = vmatpush1.bf16.msra.mxu1 %v19102_v58  ;;  %v19150_v58 = vld [vmem:[%s20382_s15 + $0xae0] ss:$8 sps:$4 sm:$0xff]   ;;  %v15649_v60 = vcombine.low %v862_v46, %v898_v47  ;;  %v593_v45 = vld [vmem:[%s20374_s5 + $0x830] sm:$0xff] }
 0x355   : > { %13876 = vmatpush1.bf16.msra.mxu0 %v19105_v0  ;;  %11843 = vmatprep.subr.bf16.mxu1 %v19110_v1  ;;  %v19153_v0 = vld [vmem:[%s20382_s15 + $0x1ce0] ss:$8 sps:$4 sm:$0xff]   ;;  %v19158_v1 = vld [vmem:[%s20382_s15 + $0xaf4] ss:$8 sps:$4 sm:$0xff]  }
 0x356   : > { %13877 = vmatprep.subr.bf16.mxu0 %v19113_v2  ;;  %11788 = vmatprep.mubr.bf16.mxu1 %v15398_v4  ;;  %v19161_v2 = vld [vmem:[%s20382_s15 + $0x1cf4] ss:$8 sps:$4 sm:$0xff]   ;;  %v15112_v4 = vcombine.high %v341_v57, %v377_v61  ;;  %v575_v46 = vld [vmem:[%s20374_s5 + $0x7a0] sm:$0xff] }
 0x357   : > { %13822 = vmatprep.mubr.bf16.mxu0 %v15434_v5  ;;  %v15148_v5 = vcombine.high %v359_v62, %v395_v63  ;;  %v611_v47 = vld [vmem:[%s20374_s5 + $0x8c0] sm:$0xff] }
 0x358   : > { %11844 = vmatpush1.bf16.msra.mxu1 %v19108_v3  ;;  %v19156_v3 = vld [vmem:[%s20382_s15 + $0xaf0] ss:$8 sps:$4 sm:$0xff]  }
 0x359   : > { %13878 = vmatpush1.bf16.msra.mxu0 %v19111_v6  ;;  %11845 = vmatprep.subr.bf16.mxu1 %v19116_v7  ;;  %v19159_v6 = vld [vmem:[%s20382_s15 + $0x1cf0] ss:$8 sps:$4 sm:$0xff]   ;;  %v19164_v7 = vld [vmem:[%s20382_s15 + $0xb04] ss:$8 sps:$4 sm:$0xff]  }
 0x35a   : > { %13879 = vmatprep.subr.bf16.mxu0 %v19119_v8  ;;  %v19167_v8 = vld [vmem:[%s20382_s15 + $0x1d04] ss:$8 sps:$4 sm:$0xff]  }
 0x35b   : > { %11789 = vmatmul.mubr.bf16.gmra.mrb[16].mxu1 %v15397_v11  ;;  %v15111_v11 = vcombine.low %v341_v57, %v377_v61  ;;  %v629_v57 = vld [vmem:[%s20374_s5 + $0x950] sm:$0xff] }
 0x35c   : > { %13823 = vmatmul.mubr.bf16.gmra.mrb[16].mxu0 %v15433_v12  ;;  %11846 = vmatpush1.bf16.msra.mxu1 %v19114_v10  ;;  %v19162_v10 = vld [vmem:[%s20382_s15 + $0xb00] ss:$8 sps:$4 sm:$0xff]   ;;  %v15147_v12 = vcombine.low %v359_v62, %v395_v63  ;;  %v665_v61 = vld [vmem:[%s20374_s5 + $0xa70] sm:$0xff] }
 0x35d   : > { %13880 = vmatpush1.bf16.msra.mxu0 %v19117_v16  ;;  %11847 = vmatprep.subr.bf16.mxu1 %v19122_v17  ;;  %v19165_v16 = vld [vmem:[%s20382_s15 + $0x1d00] ss:$8 sps:$4 sm:$0xff]   ;;  %v19170_v17 = vld [vmem:[%s20382_s15 + $0xb14] ss:$8 sps:$4 sm:$0xff]  }
 0x35e   : > { %13881 = vmatprep.subr.bf16.mxu0 %v19125_v18  ;;  %11798 = vmatprep.mubr.bf16.mxu1 %v15470_v20  ;;  %v19173_v18 = vld [vmem:[%s20382_s15 + $0x1d14] ss:$8 sps:$4 sm:$0xff]   ;;  %v15184_v20 = vcombine.high %v413_v9, %v449_v13  ;;  %v647_v62 = vld [vmem:[%s20374_s5 + $0x9e0] sm:$0xff] }
 0x35f   : > { %13832 = vmatprep.mubr.bf16.mxu0 %v15506_v21  ;;  %v15220_v21 = vcombine.high %v431_v14, %v467_v15  ;;  %v683_v63 = vld [vmem:[%s20374_s5 + $0xb00] sm:$0xff] }
 0x360   : > { %11848 = vmatpush1.bf16.msra.mxu1 %v19120_v19  ;;  %v19168_v19 = vld [vmem:[%s20382_s15 + $0xb10] ss:$8 sps:$4 sm:$0xff]  }
 0x361   : > { %13882 = vmatpush1.bf16.msra.mxu0 %v19123_v22  ;;  %11849 = vmatprep.subr.bf16.mxu1 %v19128_v23  ;;  %v19171_v22 = vld [vmem:[%s20382_s15 + $0x1d10] ss:$8 sps:$4 sm:$0xff]   ;;  %v19176_v23 = vld [vmem:[%s20382_s15 + $0xb24] ss:$8 sps:$4 sm:$0xff]  }
 0x362   : > { %13883 = vmatprep.subr.bf16.mxu0 %v19131_v24  ;;  %v19179_v24 = vld [vmem:[%s20382_s15 + $0x1d24] ss:$8 sps:$4 sm:$0xff]  }
 0x363   : > { %11799 = vmatmul.mubr.bf16.gmra.mrb[20].mxu1 %v15469_v27  ;;  %v15183_v27 = vcombine.low %v413_v9, %v449_v13  ;;  %v701_v9 = vld [vmem:[%s20374_s5 + $0xb90] sm:$0xff] }
 0x364   : > { %13833 = vmatmul.mubr.bf16.gmra.mrb[20].mxu0 %v15505_v28  ;;  %11850 = vmatpush1.bf16.msra.mxu1 %v19126_v26  ;;  %v19174_v26 = vld [vmem:[%s20382_s15 + $0xb20] ss:$8 sps:$4 sm:$0xff]   ;;  %v15219_v28 = vcombine.low %v431_v14, %v467_v15  ;;  %v737_v13 = vld [vmem:[%s20374_s5 + $0xcb0] sm:$0xff] }
 0x365   : > { %13884 = vmatpush1.bf16.msra.mxu0 %v19129_v32  ;;  %11851 = vmatprep.subr.bf16.mxu1 %v19134_v33  ;;  %v19177_v32 = vld [vmem:[%s20382_s15 + $0x1d20] ss:$8 sps:$4 sm:$0xff]   ;;  %v19182_v33 = vld [vmem:[%s20382_s15 + $0xb34] ss:$8 sps:$4 sm:$0xff]  }
 0x366   : > { %13885 = vmatprep.subr.bf16.mxu0 %v19137_v34  ;;  %11808 = vmatprep.mubr.bf16.mxu1 %v15542_v36  ;;  %v19185_v34 = vld [vmem:[%s20382_s15 + $0x1d34] ss:$8 sps:$4 sm:$0xff]   ;;  %v15256_v36 = vcombine.high %v485_v25, %v521_v29  ;;  %v719_v14 = vld [vmem:[%s20374_s5 + $0xc20] sm:$0xff] }
 0x367   : > { %13842 = vmatprep.mubr.bf16.mxu0 %v15578_v37  ;;  %v15292_v37 = vcombine.high %v503_v30, %v539_v31  ;;  %v755_v15 = vld [vmem:[%s20374_s5 + $0xd40] sm:$0xff] }
 0x368   : > { %11852 = vmatpush1.bf16.msra.mxu1 %v19132_v35  ;;  %v19180_v35 = vld [vmem:[%s20382_s15 + $0xb30] ss:$8 sps:$4 sm:$0xff]  }
 0x369   : > { %13886 = vmatpush1.bf16.msra.mxu0 %v19135_v38  ;;  %11853 = vmatprep.subr.bf16.mxu1 %v19140_v39  ;;  %v19183_v38 = vld [vmem:[%s20382_s15 + $0x1d30] ss:$8 sps:$4 sm:$0xff]   ;;  %v19188_v39 = vld [vmem:[%s20382_s15 + $0xb44] ss:$8 sps:$4 sm:$0xff]  }
 0x36a   : > { %13887 = vmatprep.subr.bf16.mxu0 %v19143_v40  ;;  %v19191_v40 = vld [vmem:[%s20382_s15 + $0x1d44] ss:$8 sps:$4 sm:$0xff]  }
 0x36b   : > { %11809 = vmatmul.mubr.bf16.gmra.mrb[24].mxu1 %v15541_v43  ;;  %v15255_v43 = vcombine.low %v485_v25, %v521_v29  ;;  %v773_v25 = vld [vmem:[%s20374_s5 + $0xdd0] sm:$0xff] }
 0x36c   : > { %13843 = vmatmul.mubr.bf16.gmra.mrb[24].mxu0 %v15577_v44  ;;  %11854 = vmatpush1.bf16.msra.mxu1 %v19138_v42  ;;  %v19186_v42 = vld [vmem:[%s20382_s15 + $0xb40] ss:$8 sps:$4 sm:$0xff]   ;;  %v15291_v44 = vcombine.low %v503_v30, %v539_v31  ;;  %v809_v29 = vld [vmem:[%s20374_s5 + $0xef0] sm:$0xff] }
 0x36d   : > { %13888 = vmatpush1.bf16.msra.mxu0 %v19141_v48  ;;  %11855 = vmatprep.subr.bf16.mxu1 %v19146_v49  ;;  %v19189_v48 = vld [vmem:[%s20382_s15 + $0x1d40] ss:$8 sps:$4 sm:$0xff]   ;;  %v19194_v49 = vld [vmem:[%s20382_s15 + $0xb54] ss:$8 sps:$4 sm:$0xff]  }
 0x36e   : > { %13889 = vmatprep.subr.bf16.mxu0 %v19149_v50  ;;  %11818 = vmatprep.mubr.bf16.mxu1 %v15614_v52  ;;  %v19197_v50 = vld [vmem:[%s20382_s15 + $0x1d54] ss:$8 sps:$4 sm:$0xff]   ;;  %v15328_v52 = vcombine.high %v557_v41, %v593_v45  ;;  %v791_v30 = vld [vmem:[%s20374_s5 + $0xe60] sm:$0xff] }
 0x36f   : > { %13852 = vmatprep.mubr.bf16.mxu0 %v15650_v53  ;;  %v15364_v53 = vcombine.high %v575_v46, %v611_v47  ;;  %v827_v31 = vld [vmem:[%s20374_s5 + $0xf80] sm:$0xff] }
 0x370   : > { %11856 = vmatpush1.bf16.msra.mxu1 %v19144_v51  ;;  %v19192_v51 = vld [vmem:[%s20382_s15 + $0xb50] ss:$8 sps:$4 sm:$0xff]  }
 0x371   : > { %13890 = vmatpush1.bf16.msra.mxu0 %v19147_v54  ;;  %11857 = vmatprep.subr.bf16.mxu1 %v19152_v55  ;;  %v19195_v54 = vld [vmem:[%s20382_s15 + $0x1d50] ss:$8 sps:$4 sm:$0xff]   ;;  %v19200_v55 = vld [vmem:[%s20382_s15 + $0xb64] ss:$8 sps:$4 sm:$0xff]  }
 0x372   : > { %13891 = vmatprep.subr.bf16.mxu0 %v19155_v56  ;;  %v19203_v56 = vld [vmem:[%s20382_s15 + $0x1d64] ss:$8 sps:$4 sm:$0xff]  }
 0x373   : > { %11819 = vmatmul.mubr.bf16.gmra.mrb[28].mxu1 %v15613_v59  ;;  %v15327_v59 = vcombine.low %v557_v41, %v593_v45  ;;  %v845_v41 = vld [vmem:[%s20374_s5 + $0x1010] sm:$0xff] }
 0x374   : > { %13853 = vmatmul.mubr.bf16.gmra.mrb[28].mxu0 %v15649_v60  ;;  %11858 = vmatpush1.bf16.msra.mxu1 %v19150_v58  ;;  %v19198_v58 = vld [vmem:[%s20382_s15 + $0xb60] ss:$8 sps:$4 sm:$0xff]   ;;  %v15363_v60 = vcombine.low %v575_v46, %v611_v47  ;;  %v881_v45 = vld [vmem:[%s20374_s5 + $0x1130] sm:$0xff] }
 0x375   : > { %13892 = vmatpush1.bf16.msra.mxu0 %v19153_v0  ;;  %11859 = vmatprep.subr.bf16.mxu1 %v19158_v1  ;;  %v19201_v0 = vld [vmem:[%s20382_s15 + $0x1d60] ss:$8 sps:$4 sm:$0xff]   ;;  %v19206_v1 = vld [vmem:[%s20382_s15 + $0xb74] ss:$8 sps:$4 sm:$0xff]  }
 0x376   : > { %13893 = vmatprep.subr.bf16.mxu0 %v19161_v2  ;;  %11861 = vmatprep.mubr.bf16.mxu1 %v15112_v4  ;;  %v19209_v2 = vld [vmem:[%s20382_s15 + $0x1d74] ss:$8 sps:$4 sm:$0xff]   ;;  %v15400_v4 = vcombine.high %v629_v57, %v665_v61  ;;  %v863_v46 = vld [vmem:[%s20374_s5 + $0x10a0] sm:$0xff] }
 0x377   : > { %13895 = vmatprep.mubr.bf16.mxu0 %v15148_v5  ;;  %v15436_v5 = vcombine.high %v647_v62, %v683_v63  ;;  %v899_v47 = vld [vmem:[%s20374_s5 + $0x11c0] sm:$0xff] }
 0x378   : > { %11860 = vmatpush1.bf16.msra.mxu1 %v19156_v3  ;;  %v19204_v3 = vld [vmem:[%s20382_s15 + $0xb70] ss:$8 sps:$4 sm:$0xff]  }
 0x379   : > { %13894 = vmatpush1.bf16.msra.mxu0 %v19159_v6  ;;  %11942 = vmatprep.subr.bf16.mxu1 %v19164_v7  ;;  %v19207_v6 = vld [vmem:[%s20382_s15 + $0x1d70] ss:$8 sps:$4 sm:$0xff]   ;;  %v19212_v7 = vld [vmem:[%s20382_s15 + $0xb84] ss:$8 sps:$4 sm:$0xff]  }
 0x37a   : > { %13976 = vmatprep.subr.bf16.mxu0 %v19167_v8  ;;  %v19215_v8 = vld [vmem:[%s20382_s15 + $0x1d84] ss:$8 sps:$4 sm:$0xff]  }
 0x37b   : > { %11862 = vmatmul.mubr.bf16.vlgmr.msra.gmra.mrb[0].mxu1 %v15111_v11  ;;  %v15399_v11 = vcombine.low %v629_v57, %v665_v61  ;;  %v342_v57 = vld [vmem:[%s20374_s5 + $0x58] sm:$0xff] }
 0x37c   : > { %13896 = vmatmul.mubr.bf16.vlgmr.msra.gmra.mrb[0].mxu0 %v15147_v12  ;;  %11943 = vmatpush1.bf16.msra.mxu1 %v19162_v10  ;;  %v19210_v10 = vld [vmem:[%s20382_s15 + $0xb80] ss:$8 sps:$4 sm:$0xff]   ;;  %v15435_v12 = vcombine.low %v647_v62, %v683_v63  ;;  %v378_v61 = vld [vmem:[%s20374_s5 + $0x178] sm:$0xff] }
 0x37d   : > { %13977 = vmatpush1.bf16.msra.mxu0 %v19165_v16  ;;  %11944 = vmatprep.subr.bf16.mxu1 %v19170_v17  ;;  %v19213_v16 = vld [vmem:[%s20382_s15 + $0x1d80] ss:$8 sps:$4 sm:$0xff]   ;;  %v19218_v17 = vld [vmem:[%s20382_s15 + $0xb94] ss:$8 sps:$4 sm:$0xff]  }
 0x37e   : > { %13978 = vmatprep.subr.bf16.mxu0 %v19173_v18  ;;  %11871 = vmatprep.mubr.bf16.mxu1 %v15184_v20  ;;  %v19221_v18 = vld [vmem:[%s20382_s15 + $0x1d94] ss:$8 sps:$4 sm:$0xff]   ;;  %v15472_v20 = vcombine.high %v701_v9, %v737_v13  ;;  %v360_v62 = vld [vmem:[%s20374_s5 + $0xe8] sm:$0xff] }
 0x37f   : > { %13905 = vmatprep.mubr.bf16.mxu0 %v15220_v21  ;;  %v15508_v21 = vcombine.high %v719_v14, %v755_v15  ;;  %v396_v63 = vld [vmem:[%s20374_s5 + $0x208] sm:$0xff] }
 0x380   : > { %11945 = vmatpush1.bf16.msra.mxu1 %v19168_v19  ;;  %v19216_v19 = vld [vmem:[%s20382_s15 + $0xb90] ss:$8 sps:$4 sm:$0xff]  }
 0x381   : > { %13979 = vmatpush1.bf16.msra.mxu0 %v19171_v22  ;;  %11946 = vmatprep.subr.bf16.mxu1 %v19176_v23  ;;  %v19219_v22 = vld [vmem:[%s20382_s15 + $0x1d90] ss:$8 sps:$4 sm:$0xff]   ;;  %v19224_v23 = vld [vmem:[%s20382_s15 + $0xba4] ss:$8 sps:$4 sm:$0xff]  }
 0x382   : > { %13980 = vmatprep.subr.bf16.mxu0 %v19179_v24  ;;  %v19227_v24 = vld [vmem:[%s20382_s15 + $0x1da4] ss:$8 sps:$4 sm:$0xff]  }
 0x383   : > { %11872 = vmatmul.mubr.bf16.gmra.mrb[4].mxu1 %v15183_v27  ;;  %v15471_v27 = vcombine.low %v701_v9, %v737_v13  ;;  %v414_v9 = vld [vmem:[%s20374_s5 + $0x298] sm:$0xff] }
 0x384   : > { %13906 = vmatmul.mubr.bf16.gmra.mrb[4].mxu0 %v15219_v28  ;;  %11947 = vmatpush1.bf16.msra.mxu1 %v19174_v26  ;;  %v19222_v26 = vld [vmem:[%s20382_s15 + $0xba0] ss:$8 sps:$4 sm:$0xff]   ;;  %v15507_v28 = vcombine.low %v719_v14, %v755_v15  ;;  %v450_v13 = vld [vmem:[%s20374_s5 + $0x3b8] sm:$0xff] }
 0x385   : > { %13981 = vmatpush1.bf16.msra.mxu0 %v19177_v32  ;;  %11948 = vmatprep.subr.bf16.mxu1 %v19182_v33  ;;  %v19225_v32 = vld [vmem:[%s20382_s15 + $0x1da0] ss:$8 sps:$4 sm:$0xff]   ;;  %v19230_v33 = vld [vmem:[%s20382_s15 + $0xbb4] ss:$8 sps:$4 sm:$0xff]  }
 0x386   : > { %13982 = vmatprep.subr.bf16.mxu0 %v19185_v34  ;;  %11881 = vmatprep.mubr.bf16.mxu1 %v15256_v36  ;;  %v19233_v34 = vld [vmem:[%s20382_s15 + $0x1db4] ss:$8 sps:$4 sm:$0xff]   ;;  %v15544_v36 = vcombine.high %v773_v25, %v809_v29  ;;  %v432_v14 = vld [vmem:[%s20374_s5 + $0x328] sm:$0xff] }
 0x387   : > { %13915 = vmatprep.mubr.bf16.mxu0 %v15292_v37  ;;  %v15580_v37 = vcombine.high %v791_v30, %v827_v31  ;;  %v468_v15 = vld [vmem:[%s20374_s5 + $0x448] sm:$0xff] }
 0x388   : > { %11949 = vmatpush1.bf16.msra.mxu1 %v19180_v35  ;;  %v19228_v35 = vld [vmem:[%s20382_s15 + $0xbb0] ss:$8 sps:$4 sm:$0xff]  }
 0x389   : > { %13983 = vmatpush1.bf16.msra.mxu0 %v19183_v38  ;;  %11950 = vmatprep.subr.bf16.mxu1 %v19188_v39  ;;  %v19231_v38 = vld [vmem:[%s20382_s15 + $0x1db0] ss:$8 sps:$4 sm:$0xff]   ;;  %v19236_v39 = vld [vmem:[%s20382_s15 + $0xbc4] ss:$8 sps:$4 sm:$0xff]  }
 0x38a   : > { %13984 = vmatprep.subr.bf16.mxu0 %v19191_v40  ;;  %v19239_v40 = vld [vmem:[%s20382_s15 + $0x1dc4] ss:$8 sps:$4 sm:$0xff]  }
 0x38b   : > { %11882 = vmatmul.mubr.bf16.gmra.mrb[8].mxu1 %v15255_v43  ;;  %v15543_v43 = vcombine.low %v773_v25, %v809_v29  ;;  %v486_v25 = vld [vmem:[%s20374_s5 + $0x4d8] sm:$0xff] }
 0x38c   : > { %13916 = vmatmul.mubr.bf16.gmra.mrb[8].mxu0 %v15291_v44  ;;  %11951 = vmatpush1.bf16.msra.mxu1 %v19186_v42  ;;  %v19234_v42 = vld [vmem:[%s20382_s15 + $0xbc0] ss:$8 sps:$4 sm:$0xff]   ;;  %v15579_v44 = vcombine.low %v791_v30, %v827_v31  ;;  %v522_v29 = vld [vmem:[%s20374_s5 + $0x5f8] sm:$0xff] }
 0x38d   : > { %13985 = vmatpush1.bf16.msra.mxu0 %v19189_v48  ;;  %11952 = vmatprep.subr.bf16.mxu1 %v19194_v49  ;;  %v19237_v48 = vld [vmem:[%s20382_s15 + $0x1dc0] ss:$8 sps:$4 sm:$0xff]   ;;  %v19242_v49 = vld [vmem:[%s20382_s15 + $0xbd4] ss:$8 sps:$4 sm:$0xff]  }
 0x38e   : > { %13986 = vmatprep.subr.bf16.mxu0 %v19197_v50  ;;  %11891 = vmatprep.mubr.bf16.mxu1 %v15328_v52  ;;  %v19245_v50 = vld [vmem:[%s20382_s15 + $0x1dd4] ss:$8 sps:$4 sm:$0xff]   ;;  %v15616_v52 = vcombine.high %v845_v41, %v881_v45  ;;  %v504_v30 = vld [vmem:[%s20374_s5 + $0x568] sm:$0xff] }
 0x38f   : > { %13925 = vmatprep.mubr.bf16.mxu0 %v15364_v53  ;;  %v15652_v53 = vcombine.high %v863_v46, %v899_v47  ;;  %v540_v31 = vld [vmem:[%s20374_s5 + $0x688] sm:$0xff] }
 0x390   : > { %11953 = vmatpush1.bf16.msra.mxu1 %v19192_v51  ;;  %v19240_v51 = vld [vmem:[%s20382_s15 + $0xbd0] ss:$8 sps:$4 sm:$0xff]  }
 0x391   : > { %13987 = vmatpush1.bf16.msra.mxu0 %v19195_v54  ;;  %11954 = vmatprep.subr.bf16.mxu1 %v19200_v55  ;;  %v19243_v54 = vld [vmem:[%s20382_s15 + $0x1dd0] ss:$8 sps:$4 sm:$0xff]   ;;  %v19248_v55 = vld [vmem:[%s20382_s15 + $0xbe4] ss:$8 sps:$4 sm:$0xff]  }
 0x392   : > { %13988 = vmatprep.subr.bf16.mxu0 %v19203_v56  ;;  %v19251_v56 = vld [vmem:[%s20382_s15 + $0x1de4] ss:$8 sps:$4 sm:$0xff]  }
 0x393   : > { %11892 = vmatmul.mubr.bf16.gmra.mrb[12].mxu1 %v15327_v59  ;;  %v15615_v59 = vcombine.low %v845_v41, %v881_v45  ;;  %v558_v41 = vld [vmem:[%s20374_s5 + $0x718] sm:$0xff] }
 0x394   : > { %13926 = vmatmul.mubr.bf16.gmra.mrb[12].mxu0 %v15363_v60  ;;  %11955 = vmatpush1.bf16.msra.mxu1 %v19198_v58  ;;  %v19246_v58 = vld [vmem:[%s20382_s15 + $0xbe0] ss:$8 sps:$4 sm:$0xff]   ;;  %v15651_v60 = vcombine.low %v863_v46, %v899_v47  ;;  %v594_v45 = vld [vmem:[%s20374_s5 + $0x838] sm:$0xff] }
 0x395   : > { %13989 = vmatpush1.bf16.msra.mxu0 %v19201_v0  ;;  %11956 = vmatprep.subr.bf16.mxu1 %v19206_v1  ;;  %v19249_v0 = vld [vmem:[%s20382_s15 + $0x1de0] ss:$8 sps:$4 sm:$0xff]   ;;  %v19254_v1 = vld [vmem:[%s20382_s15 + $0xbf4] ss:$8 sps:$4 sm:$0xff]  }
 0x396   : > { %13990 = vmatprep.subr.bf16.mxu0 %v19209_v2  ;;  %11901 = vmatprep.mubr.bf16.mxu1 %v15400_v4  ;;  %v19257_v2 = vld [vmem:[%s20382_s15 + $0x1df4] ss:$8 sps:$4 sm:$0xff]   ;;  %v15114_v4 = vcombine.high %v342_v57, %v378_v61  ;;  %v576_v46 = vld [vmem:[%s20374_s5 + $0x7a8] sm:$0xff] }
 0x397   : > { %13935 = vmatprep.mubr.bf16.mxu0 %v15436_v5  ;;  %v15150_v5 = vcombine.high %v360_v62, %v396_v63  ;;  %v612_v47 = vld [vmem:[%s20374_s5 + $0x8c8] sm:$0xff] }
 0x398   : > { %11957 = vmatpush1.bf16.msra.mxu1 %v19204_v3  ;;  %v19252_v3 = vld [vmem:[%s20382_s15 + $0xbf0] ss:$8 sps:$4 sm:$0xff]  }
 0x399   : > { %13991 = vmatpush1.bf16.msra.mxu0 %v19207_v6  ;;  %11958 = vmatprep.subr.bf16.mxu1 %v19212_v7  ;;  %v19255_v6 = vld [vmem:[%s20382_s15 + $0x1df0] ss:$8 sps:$4 sm:$0xff]   ;;  %v19260_v7 = vld [vmem:[%s20382_s15 + $0xc04] ss:$8 sps:$4 sm:$0xff]  }
 0x39a   : > { %13992 = vmatprep.subr.bf16.mxu0 %v19215_v8  ;;  %v19263_v8 = vld [vmem:[%s20382_s15 + $0x1e04] ss:$8 sps:$4 sm:$0xff]  }
 0x39b   : > { %11902 = vmatmul.mubr.bf16.gmra.mrb[16].mxu1 %v15399_v11  ;;  %v15113_v11 = vcombine.low %v342_v57, %v378_v61  ;;  %v630_v57 = vld [vmem:[%s20374_s5 + $0x958] sm:$0xff] }
 0x39c   : > { %13936 = vmatmul.mubr.bf16.gmra.mrb[16].mxu0 %v15435_v12  ;;  %11959 = vmatpush1.bf16.msra.mxu1 %v19210_v10  ;;  %v19258_v10 = vld [vmem:[%s20382_s15 + $0xc00] ss:$8 sps:$4 sm:$0xff]   ;;  %v15149_v12 = vcombine.low %v360_v62, %v396_v63  ;;  %v666_v61 = vld [vmem:[%s20374_s5 + $0xa78] sm:$0xff] }
 0x39d   : > { %13993 = vmatpush1.bf16.msra.mxu0 %v19213_v16  ;;  %11960 = vmatprep.subr.bf16.mxu1 %v19218_v17  ;;  %v19261_v16 = vld [vmem:[%s20382_s15 + $0x1e00] ss:$8 sps:$4 sm:$0xff]   ;;  %v19266_v17 = vld [vmem:[%s20382_s15 + $0xc14] ss:$8 sps:$4 sm:$0xff]  }
 0x39e   : > { %13994 = vmatprep.subr.bf16.mxu0 %v19221_v18  ;;  %11911 = vmatprep.mubr.bf16.mxu1 %v15472_v20  ;;  %v19269_v18 = vld [vmem:[%s20382_s15 + $0x1e14] ss:$8 sps:$4 sm:$0xff]   ;;  %v15186_v20 = vcombine.high %v414_v9, %v450_v13  ;;  %v648_v62 = vld [vmem:[%s20374_s5 + $0x9e8] sm:$0xff] }
 0x39f   : > { %13945 = vmatprep.mubr.bf16.mxu0 %v15508_v21  ;;  %v15222_v21 = vcombine.high %v432_v14, %v468_v15  ;;  %v684_v63 = vld [vmem:[%s20374_s5 + $0xb08] sm:$0xff] }
 0x3a0   : > { %11961 = vmatpush1.bf16.msra.mxu1 %v19216_v19  ;;  %v19264_v19 = vld [vmem:[%s20382_s15 + $0xc10] ss:$8 sps:$4 sm:$0xff]  }
 0x3a1   : > { %13995 = vmatpush1.bf16.msra.mxu0 %v19219_v22  ;;  %11962 = vmatprep.subr.bf16.mxu1 %v19224_v23  ;;  %v19267_v22 = vld [vmem:[%s20382_s15 + $0x1e10] ss:$8 sps:$4 sm:$0xff]   ;;  %v19272_v23 = vld [vmem:[%s20382_s15 + $0xc24] ss:$8 sps:$4 sm:$0xff]  }
 0x3a2   : > { %13996 = vmatprep.subr.bf16.mxu0 %v19227_v24  ;;  %v19275_v24 = vld [vmem:[%s20382_s15 + $0x1e24] ss:$8 sps:$4 sm:$0xff]  }
 0x3a3   : > { %11912 = vmatmul.mubr.bf16.gmra.mrb[20].mxu1 %v15471_v27  ;;  %v15185_v27 = vcombine.low %v414_v9, %v450_v13  ;;  %v702_v9 = vld [vmem:[%s20374_s5 + $0xb98] sm:$0xff] }
 0x3a4   : > { %13946 = vmatmul.mubr.bf16.gmra.mrb[20].mxu0 %v15507_v28  ;;  %11963 = vmatpush1.bf16.msra.mxu1 %v19222_v26  ;;  %v19270_v26 = vld [vmem:[%s20382_s15 + $0xc20] ss:$8 sps:$4 sm:$0xff]   ;;  %v15221_v28 = vcombine.low %v432_v14, %v468_v15  ;;  %v738_v13 = vld [vmem:[%s20374_s5 + $0xcb8] sm:$0xff] }
 0x3a5   : > { %13997 = vmatpush1.bf16.msra.mxu0 %v19225_v32  ;;  %11964 = vmatprep.subr.bf16.mxu1 %v19230_v33  ;;  %v19273_v32 = vld [vmem:[%s20382_s15 + $0x1e20] ss:$8 sps:$4 sm:$0xff]   ;;  %v19278_v33 = vld [vmem:[%s20382_s15 + $0xc34] ss:$8 sps:$4 sm:$0xff]  }
 0x3a6   : > { %13998 = vmatprep.subr.bf16.mxu0 %v19233_v34  ;;  %11921 = vmatprep.mubr.bf16.mxu1 %v15544_v36  ;;  %v19281_v34 = vld [vmem:[%s20382_s15 + $0x1e34] ss:$8 sps:$4 sm:$0xff]   ;;  %v15258_v36 = vcombine.high %v486_v25, %v522_v29  ;;  %v720_v14 = vld [vmem:[%s20374_s5 + $0xc28] sm:$0xff] }
 0x3a7   : > { %13955 = vmatprep.mubr.bf16.mxu0 %v15580_v37  ;;  %v15294_v37 = vcombine.high %v504_v30, %v540_v31  ;;  %v756_v15 = vld [vmem:[%s20374_s5 + $0xd48] sm:$0xff] }
 0x3a8   : > { %11965 = vmatpush1.bf16.msra.mxu1 %v19228_v35  ;;  %v19276_v35 = vld [vmem:[%s20382_s15 + $0xc30] ss:$8 sps:$4 sm:$0xff]  }
 0x3a9   : > { %13999 = vmatpush1.bf16.msra.mxu0 %v19231_v38  ;;  %11966 = vmatprep.subr.bf16.mxu1 %v19236_v39  ;;  %v19279_v38 = vld [vmem:[%s20382_s15 + $0x1e30] ss:$8 sps:$4 sm:$0xff]   ;;  %v19284_v39 = vld [vmem:[%s20382_s15 + $0xc44] ss:$8 sps:$4 sm:$0xff]  }
 0x3aa   : > { %14000 = vmatprep.subr.bf16.mxu0 %v19239_v40  ;;  %v19287_v40 = vld [vmem:[%s20382_s15 + $0x1e44] ss:$8 sps:$4 sm:$0xff]  }
 0x3ab   : > { %11922 = vmatmul.mubr.bf16.gmra.mrb[24].mxu1 %v15543_v43  ;;  %v15257_v43 = vcombine.low %v486_v25, %v522_v29  ;;  %v774_v25 = vld [vmem:[%s20374_s5 + $0xdd8] sm:$0xff] }
 0x3ac   : > { %13956 = vmatmul.mubr.bf16.gmra.mrb[24].mxu0 %v15579_v44  ;;  %11967 = vmatpush1.bf16.msra.mxu1 %v19234_v42  ;;  %v19282_v42 = vld [vmem:[%s20382_s15 + $0xc40] ss:$8 sps:$4 sm:$0xff]   ;;  %v15293_v44 = vcombine.low %v504_v30, %v540_v31  ;;  %v810_v29 = vld [vmem:[%s20374_s5 + $0xef8] sm:$0xff] }
 0x3ad   : > { %14001 = vmatpush1.bf16.msra.mxu0 %v19237_v48  ;;  %11968 = vmatprep.subr.bf16.mxu1 %v19242_v49  ;;  %v19285_v48 = vld [vmem:[%s20382_s15 + $0x1e40] ss:$8 sps:$4 sm:$0xff]   ;;  %v19290_v49 = vld [vmem:[%s20382_s15 + $0xc54] ss:$8 sps:$4 sm:$0xff]  }
 0x3ae   : > { %14002 = vmatprep.subr.bf16.mxu0 %v19245_v50  ;;  %11931 = vmatprep.mubr.bf16.mxu1 %v15616_v52  ;;  %v19293_v50 = vld [vmem:[%s20382_s15 + $0x1e54] ss:$8 sps:$4 sm:$0xff]   ;;  %v15330_v52 = vcombine.high %v558_v41, %v594_v45  ;;  %v792_v30 = vld [vmem:[%s20374_s5 + $0xe68] sm:$0xff] }
 0x3af   : > { %13965 = vmatprep.mubr.bf16.mxu0 %v15652_v53  ;;  %v15366_v53 = vcombine.high %v576_v46, %v612_v47  ;;  %v828_v31 = vld [vmem:[%s20374_s5 + $0xf88] sm:$0xff] }
 0x3b0   : > { %11969 = vmatpush1.bf16.msra.mxu1 %v19240_v51  ;;  %v19288_v51 = vld [vmem:[%s20382_s15 + $0xc50] ss:$8 sps:$4 sm:$0xff]  }
 0x3b1   : > { %14003 = vmatpush1.bf16.msra.mxu0 %v19243_v54  ;;  %11970 = vmatprep.subr.bf16.mxu1 %v19248_v55  ;;  %v19291_v54 = vld [vmem:[%s20382_s15 + $0x1e50] ss:$8 sps:$4 sm:$0xff]   ;;  %v19296_v55 = vld [vmem:[%s20382_s15 + $0xc64] ss:$8 sps:$4 sm:$0xff]  }
 0x3b2   : > { %14004 = vmatprep.subr.bf16.mxu0 %v19251_v56  ;;  %v19299_v56 = vld [vmem:[%s20382_s15 + $0x1e64] ss:$8 sps:$4 sm:$0xff]  }
 0x3b3   : > { %11932 = vmatmul.mubr.bf16.gmra.mrb[28].mxu1 %v15615_v59  ;;  %v15329_v59 = vcombine.low %v558_v41, %v594_v45  ;;  %v846_v41 = vld [vmem:[%s20374_s5 + $0x1018] sm:$0xff] }
 0x3b4   : > { %13966 = vmatmul.mubr.bf16.gmra.mrb[28].mxu0 %v15651_v60  ;;  %11971 = vmatpush1.bf16.msra.mxu1 %v19246_v58  ;;  %v19294_v58 = vld [vmem:[%s20382_s15 + $0xc60] ss:$8 sps:$4 sm:$0xff]   ;;  %v15365_v60 = vcombine.low %v576_v46, %v612_v47  ;;  %v882_v45 = vld [vmem:[%s20374_s5 + $0x1138] sm:$0xff] }
 0x3b5   : > { %14005 = vmatpush1.bf16.msra.mxu0 %v19249_v0  ;;  %11972 = vmatprep.subr.bf16.mxu1 %v19254_v1  ;;  %v19297_v0 = vld [vmem:[%s20382_s15 + $0x1e60] ss:$8 sps:$4 sm:$0xff]   ;;  %v19302_v1 = vld [vmem:[%s20382_s15 + $0xc74] ss:$8 sps:$4 sm:$0xff]  }
 0x3b6   : > { %14006 = vmatprep.subr.bf16.mxu0 %v19257_v2  ;;  %11974 = vmatprep.mubr.bf16.mxu1 %v15114_v4  ;;  %v19305_v2 = vld [vmem:[%s20382_s15 + $0x1e74] ss:$8 sps:$4 sm:$0xff]   ;;  %v15402_v4 = vcombine.high %v630_v57, %v666_v61  ;;  %v864_v46 = vld [vmem:[%s20374_s5 + $0x10a8] sm:$0xff] }
 0x3b7   : > { %14008 = vmatprep.mubr.bf16.mxu0 %v15150_v5  ;;  %v15438_v5 = vcombine.high %v648_v62, %v684_v63  ;;  %v900_v47 = vld [vmem:[%s20374_s5 + $0x11c8] sm:$0xff] }
 0x3b8   : > { %11973 = vmatpush1.bf16.msra.mxu1 %v19252_v3  ;;  %v19300_v3 = vld [vmem:[%s20382_s15 + $0xc70] ss:$8 sps:$4 sm:$0xff]  }
 0x3b9   : > { %14007 = vmatpush1.bf16.msra.mxu0 %v19255_v6  ;;  %12055 = vmatprep.subr.bf16.mxu1 %v19260_v7  ;;  %v19303_v6 = vld [vmem:[%s20382_s15 + $0x1e70] ss:$8 sps:$4 sm:$0xff]   ;;  %v19308_v7 = vld [vmem:[%s20382_s15 + $0xc84] ss:$8 sps:$4 sm:$0xff]  }
 0x3ba   : > { %14089 = vmatprep.subr.bf16.mxu0 %v19263_v8  ;;  %v19311_v8 = vld [vmem:[%s20382_s15 + $0x1e84] ss:$8 sps:$4 sm:$0xff]  }
 0x3bb   : > { %11975 = vmatmul.mubr.bf16.vlgmr.msra.gmra.mrb[0].mxu1 %v15113_v11  ;;  %v15401_v11 = vcombine.low %v630_v57, %v666_v61  ;;  %v343_v57 = vld [vmem:[%s20374_s5 + $0x60] sm:$0xff] }
 0x3bc   : > { %14009 = vmatmul.mubr.bf16.vlgmr.msra.gmra.mrb[0].mxu0 %v15149_v12  ;;  %12056 = vmatpush1.bf16.msra.mxu1 %v19258_v10  ;;  %v19306_v10 = vld [vmem:[%s20382_s15 + $0xc80] ss:$8 sps:$4 sm:$0xff]   ;;  %v15437_v12 = vcombine.low %v648_v62, %v684_v63  ;;  %v361_v62 = vld [vmem:[%s20374_s5 + $0xf0] sm:$0xff] }
 0x3bd   : > { %14090 = vmatpush1.bf16.msra.mxu0 %v19261_v16  ;;  %12057 = vmatprep.subr.bf16.mxu1 %v19266_v17  ;;  %v19309_v16 = vld [vmem:[%s20382_s15 + $0x1e80] ss:$8 sps:$4 sm:$0xff]   ;;  %v19314_v17 = vld [vmem:[%s20382_s15 + $0xc94] ss:$8 sps:$4 sm:$0xff]  }
 0x3be   : > { %14091 = vmatprep.subr.bf16.mxu0 %v19269_v18  ;;  %11984 = vmatprep.mubr.bf16.mxu1 %v15186_v20  ;;  %v19317_v18 = vld [vmem:[%s20382_s15 + $0x1e94] ss:$8 sps:$4 sm:$0xff]   ;;  %v15474_v20 = vcombine.high %v702_v9, %v738_v13  ;;  %v379_v61 = vld [vmem:[%s20374_s5 + $0x180] sm:$0xff] }
 0x3bf   : > { %14018 = vmatprep.mubr.bf16.mxu0 %v15222_v21  ;;  %v15510_v21 = vcombine.high %v720_v14, %v756_v15  ;;  %v397_v63 = vld [vmem:[%s20374_s5 + $0x210] sm:$0xff] }
 0x3c0   : > { %12058 = vmatpush1.bf16.msra.mxu1 %v19264_v19  ;;  %v19312_v19 = vld [vmem:[%s20382_s15 + $0xc90] ss:$8 sps:$4 sm:$0xff]  }
 0x3c1   : > { %14092 = vmatpush1.bf16.msra.mxu0 %v19267_v22  ;;  %12059 = vmatprep.subr.bf16.mxu1 %v19272_v23  ;;  %v19315_v22 = vld [vmem:[%s20382_s15 + $0x1e90] ss:$8 sps:$4 sm:$0xff]   ;;  %v19320_v23 = vld [vmem:[%s20382_s15 + $0xca4] ss:$8 sps:$4 sm:$0xff]  }
 0x3c2   : > { %14093 = vmatprep.subr.bf16.mxu0 %v19275_v24  ;;  %v19323_v24 = vld [vmem:[%s20382_s15 + $0x1ea4] ss:$8 sps:$4 sm:$0xff]  }
 0x3c3   : > { %11985 = vmatmul.mubr.bf16.gmra.mrb[4].mxu1 %v15185_v27  ;;  %v15473_v27 = vcombine.low %v702_v9, %v738_v13  ;;  %v415_v9 = vld [vmem:[%s20374_s5 + $0x2a0] sm:$0xff] }
 0x3c4   : > { %14019 = vmatmul.mubr.bf16.gmra.mrb[4].mxu0 %v15221_v28  ;;  %12060 = vmatpush1.bf16.msra.mxu1 %v19270_v26  ;;  %v19318_v26 = vld [vmem:[%s20382_s15 + $0xca0] ss:$8 sps:$4 sm:$0xff]   ;;  %v15509_v28 = vcombine.low %v720_v14, %v756_v15  ;;  %v433_v14 = vld [vmem:[%s20374_s5 + $0x330] sm:$0xff] }
 0x3c5   : > { %14094 = vmatpush1.bf16.msra.mxu0 %v19273_v32  ;;  %12061 = vmatprep.subr.bf16.mxu1 %v19278_v33  ;;  %v19321_v32 = vld [vmem:[%s20382_s15 + $0x1ea0] ss:$8 sps:$4 sm:$0xff]   ;;  %v19326_v33 = vld [vmem:[%s20382_s15 + $0xcb4] ss:$8 sps:$4 sm:$0xff]  }
 0x3c6   : > { %14095 = vmatprep.subr.bf16.mxu0 %v19281_v34  ;;  %11994 = vmatprep.mubr.bf16.mxu1 %v15258_v36  ;;  %v19329_v34 = vld [vmem:[%s20382_s15 + $0x1eb4] ss:$8 sps:$4 sm:$0xff]   ;;  %v15546_v36 = vcombine.high %v774_v25, %v810_v29  ;;  %v451_v13 = vld [vmem:[%s20374_s5 + $0x3c0] sm:$0xff] }
 0x3c7   : > { %14028 = vmatprep.mubr.bf16.mxu0 %v15294_v37  ;;  %v15582_v37 = vcombine.high %v792_v30, %v828_v31  ;;  %v469_v15 = vld [vmem:[%s20374_s5 + $0x450] sm:$0xff] }
 0x3c8   : > { %12062 = vmatpush1.bf16.msra.mxu1 %v19276_v35  ;;  %v19324_v35 = vld [vmem:[%s20382_s15 + $0xcb0] ss:$8 sps:$4 sm:$0xff]  }
 0x3c9   : > { %14096 = vmatpush1.bf16.msra.mxu0 %v19279_v38  ;;  %12063 = vmatprep.subr.bf16.mxu1 %v19284_v39  ;;  %v19327_v38 = vld [vmem:[%s20382_s15 + $0x1eb0] ss:$8 sps:$4 sm:$0xff]   ;;  %v19332_v39 = vld [vmem:[%s20382_s15 + $0xcc4] ss:$8 sps:$4 sm:$0xff]  }
 0x3ca   : > { %14097 = vmatprep.subr.bf16.mxu0 %v19287_v40  ;;  %v19335_v40 = vld [vmem:[%s20382_s15 + $0x1ec4] ss:$8 sps:$4 sm:$0xff]  }
 0x3cb   : > { %11995 = vmatmul.mubr.bf16.gmra.mrb[8].mxu1 %v15257_v43  ;;  %v15545_v43 = vcombine.low %v774_v25, %v810_v29  ;;  %v487_v25 = vld [vmem:[%s20374_s5 + $0x4e0] sm:$0xff] }
 0x3cc   : > { %14029 = vmatmul.mubr.bf16.gmra.mrb[8].mxu0 %v15293_v44  ;;  %12064 = vmatpush1.bf16.msra.mxu1 %v19282_v42  ;;  %v19330_v42 = vld [vmem:[%s20382_s15 + $0xcc0] ss:$8 sps:$4 sm:$0xff]   ;;  %v15581_v44 = vcombine.low %v792_v30, %v828_v31  ;;  %v505_v30 = vld [vmem:[%s20374_s5 + $0x570] sm:$0xff] }
 0x3cd   : > { %14098 = vmatpush1.bf16.msra.mxu0 %v19285_v48  ;;  %12065 = vmatprep.subr.bf16.mxu1 %v19290_v49  ;;  %v19333_v48 = vld [vmem:[%s20382_s15 + $0x1ec0] ss:$8 sps:$4 sm:$0xff]   ;;  %v19338_v49 = vld [vmem:[%s20382_s15 + $0xcd4] ss:$8 sps:$4 sm:$0xff]  }
 0x3ce   : > { %14099 = vmatprep.subr.bf16.mxu0 %v19293_v50  ;;  %12004 = vmatprep.mubr.bf16.mxu1 %v15330_v52  ;;  %v19341_v50 = vld [vmem:[%s20382_s15 + $0x1ed4] ss:$8 sps:$4 sm:$0xff]   ;;  %v15618_v52 = vcombine.high %v846_v41, %v882_v45  ;;  %v523_v29 = vld [vmem:[%s20374_s5 + $0x600] sm:$0xff] }
 0x3cf   : > { %14038 = vmatprep.mubr.bf16.mxu0 %v15366_v53  ;;  %v15654_v53 = vcombine.high %v864_v46, %v900_v47  ;;  %v541_v31 = vld [vmem:[%s20374_s5 + $0x690] sm:$0xff] }
 0x3d0   : > { %12066 = vmatpush1.bf16.msra.mxu1 %v19288_v51  ;;  %v19336_v51 = vld [vmem:[%s20382_s15 + $0xcd0] ss:$8 sps:$4 sm:$0xff]  }
 0x3d1   : > { %14100 = vmatpush1.bf16.msra.mxu0 %v19291_v54  ;;  %12067 = vmatprep.subr.bf16.mxu1 %v19296_v55  ;;  %v19339_v54 = vld [vmem:[%s20382_s15 + $0x1ed0] ss:$8 sps:$4 sm:$0xff]   ;;  %v19344_v55 = vld [vmem:[%s20382_s15 + $0xce4] ss:$8 sps:$4 sm:$0xff]  }
 0x3d2   : > { %14101 = vmatprep.subr.bf16.mxu0 %v19299_v56  ;;  %v19347_v56 = vld [vmem:[%s20382_s15 + $0x1ee4] ss:$8 sps:$4 sm:$0xff]  }
 0x3d3   : > { %12005 = vmatmul.mubr.bf16.gmra.mrb[12].mxu1 %v15329_v59  ;;  %v15617_v59 = vcombine.low %v846_v41, %v882_v45  ;;  %v559_v41 = vld [vmem:[%s20374_s5 + $0x720] sm:$0xff] }
 0x3d4   : > { %14039 = vmatmul.mubr.bf16.gmra.mrb[12].mxu0 %v15365_v60  ;;  %12068 = vmatpush1.bf16.msra.mxu1 %v19294_v58  ;;  %v19342_v58 = vld [vmem:[%s20382_s15 + $0xce0] ss:$8 sps:$4 sm:$0xff]   ;;  %v15653_v60 = vcombine.low %v864_v46, %v900_v47  ;;  %v577_v46 = vld [vmem:[%s20374_s5 + $0x7b0] sm:$0xff] }
 0x3d5   : > { %14102 = vmatpush1.bf16.msra.mxu0 %v19297_v0  ;;  %12069 = vmatprep.subr.bf16.mxu1 %v19302_v1  ;;  %v19345_v0 = vld [vmem:[%s20382_s15 + $0x1ee0] ss:$8 sps:$4 sm:$0xff]   ;;  %v19350_v1 = vld [vmem:[%s20382_s15 + $0xcf4] ss:$8 sps:$4 sm:$0xff]  }
 0x3d6   : > { %14103 = vmatprep.subr.bf16.mxu0 %v19305_v2  ;;  %12014 = vmatprep.mubr.bf16.mxu1 %v15402_v4  ;;  %v19353_v2 = vld [vmem:[%s20382_s15 + $0x1ef4] ss:$8 sps:$4 sm:$0xff]   ;;  %v15116_v4 = vcombine.high %v343_v57, %v379_v61  ;;  %v595_v45 = vld [vmem:[%s20374_s5 + $0x840] sm:$0xff] }
 0x3d7   : > { %14048 = vmatprep.mubr.bf16.mxu0 %v15438_v5  ;;  %v15152_v5 = vcombine.high %v361_v62, %v397_v63  ;;  %v613_v47 = vld [vmem:[%s20374_s5 + $0x8d0] sm:$0xff] }
 0x3d8   : > { %12070 = vmatpush1.bf16.msra.mxu1 %v19300_v3  ;;  %v19348_v3 = vld [vmem:[%s20382_s15 + $0xcf0] ss:$8 sps:$4 sm:$0xff]  }
 0x3d9   : > { %14104 = vmatpush1.bf16.msra.mxu0 %v19303_v6  ;;  %12071 = vmatprep.subr.bf16.mxu1 %v19308_v7  ;;  %v19351_v6 = vld [vmem:[%s20382_s15 + $0x1ef0] ss:$8 sps:$4 sm:$0xff]   ;;  %v19356_v7 = vld [vmem:[%s20382_s15 + $0xd04] ss:$8 sps:$4 sm:$0xff]  }
 0x3da   : > { %14105 = vmatprep.subr.bf16.mxu0 %v19311_v8  ;;  %v19359_v8 = vld [vmem:[%s20382_s15 + $0x1f04] ss:$8 sps:$4 sm:$0xff]  }
 0x3db   : > { %12015 = vmatmul.mubr.bf16.gmra.mrb[16].mxu1 %v15401_v11  ;;  %v15115_v11 = vcombine.low %v343_v57, %v379_v61  ;;  %v631_v57 = vld [vmem:[%s20374_s5 + $0x960] sm:$0xff] }
 0x3dc   : > { %14049 = vmatmul.mubr.bf16.gmra.mrb[16].mxu0 %v15437_v12  ;;  %12072 = vmatpush1.bf16.msra.mxu1 %v19306_v10  ;;  %v19354_v10 = vld [vmem:[%s20382_s15 + $0xd00] ss:$8 sps:$4 sm:$0xff]   ;;  %v15151_v12 = vcombine.low %v361_v62, %v397_v63  ;;  %v649_v62 = vld [vmem:[%s20374_s5 + $0x9f0] sm:$0xff] }
 0x3dd   : > { %14106 = vmatpush1.bf16.msra.mxu0 %v19309_v16  ;;  %12073 = vmatprep.subr.bf16.mxu1 %v19314_v17  ;;  %v19357_v16 = vld [vmem:[%s20382_s15 + $0x1f00] ss:$8 sps:$4 sm:$0xff]   ;;  %v19362_v17 = vld [vmem:[%s20382_s15 + $0xd14] ss:$8 sps:$4 sm:$0xff]  }
 0x3de   : > { %14107 = vmatprep.subr.bf16.mxu0 %v19317_v18  ;;  %12024 = vmatprep.mubr.bf16.mxu1 %v15474_v20  ;;  %v19365_v18 = vld [vmem:[%s20382_s15 + $0x1f14] ss:$8 sps:$4 sm:$0xff]   ;;  %v15188_v20 = vcombine.high %v415_v9, %v451_v13  ;;  %v667_v61 = vld [vmem:[%s20374_s5 + $0xa80] sm:$0xff] }
 0x3df   : > { %14058 = vmatprep.mubr.bf16.mxu0 %v15510_v21  ;;  %v15224_v21 = vcombine.high %v433_v14, %v469_v15  ;;  %v685_v63 = vld [vmem:[%s20374_s5 + $0xb10] sm:$0xff] }
 0x3e0   : > { %12074 = vmatpush1.bf16.msra.mxu1 %v19312_v19  ;;  %v19360_v19 = vld [vmem:[%s20382_s15 + $0xd10] ss:$8 sps:$4 sm:$0xff]  }
 0x3e1   : > { %14108 = vmatpush1.bf16.msra.mxu0 %v19315_v22  ;;  %12075 = vmatprep.subr.bf16.mxu1 %v19320_v23  ;;  %v19363_v22 = vld [vmem:[%s20382_s15 + $0x1f10] ss:$8 sps:$4 sm:$0xff]   ;;  %v19368_v23 = vld [vmem:[%s20382_s15 + $0xd24] ss:$8 sps:$4 sm:$0xff]  }
 0x3e2   : > { %14109 = vmatprep.subr.bf16.mxu0 %v19323_v24  ;;  %v19371_v24 = vld [vmem:[%s20382_s15 + $0x1f24] ss:$8 sps:$4 sm:$0xff]  }
 0x3e3   : > { %12025 = vmatmul.mubr.bf16.gmra.mrb[20].mxu1 %v15473_v27  ;;  %v15187_v27 = vcombine.low %v415_v9, %v451_v13  ;;  %v703_v9 = vld [vmem:[%s20374_s5 + $0xba0] sm:$0xff] }
 0x3e4   : > { %14059 = vmatmul.mubr.bf16.gmra.mrb[20].mxu0 %v15509_v28  ;;  %12076 = vmatpush1.bf16.msra.mxu1 %v19318_v26  ;;  %v19366_v26 = vld [vmem:[%s20382_s15 + $0xd20] ss:$8 sps:$4 sm:$0xff]   ;;  %v15223_v28 = vcombine.low %v433_v14, %v469_v15  ;;  %v721_v14 = vld [vmem:[%s20374_s5 + $0xc30] sm:$0xff] }
 0x3e5   : > { %14110 = vmatpush1.bf16.msra.mxu0 %v19321_v32  ;;  %12077 = vmatprep.subr.bf16.mxu1 %v19326_v33  ;;  %v19369_v32 = vld [vmem:[%s20382_s15 + $0x1f20] ss:$8 sps:$4 sm:$0xff]   ;;  %v19374_v33 = vld [vmem:[%s20382_s15 + $0xd34] ss:$8 sps:$4 sm:$0xff]  }
 0x3e6   : > { %14111 = vmatprep.subr.bf16.mxu0 %v19329_v34  ;;  %12034 = vmatprep.mubr.bf16.mxu1 %v15546_v36  ;;  %v19377_v34 = vld [vmem:[%s20382_s15 + $0x1f34] ss:$8 sps:$4 sm:$0xff]   ;;  %v15260_v36 = vcombine.high %v487_v25, %v523_v29  ;;  %v739_v13 = vld [vmem:[%s20374_s5 + $0xcc0] sm:$0xff] }
 0x3e7   : > { %14068 = vmatprep.mubr.bf16.mxu0 %v15582_v37  ;;  %v15296_v37 = vcombine.high %v505_v30, %v541_v31  ;;  %v757_v15 = vld [vmem:[%s20374_s5 + $0xd50] sm:$0xff] }
 0x3e8   : > { %12078 = vmatpush1.bf16.msra.mxu1 %v19324_v35  ;;  %v19372_v35 = vld [vmem:[%s20382_s15 + $0xd30] ss:$8 sps:$4 sm:$0xff]  }
 0x3e9   : > { %14112 = vmatpush1.bf16.msra.mxu0 %v19327_v38  ;;  %12079 = vmatprep.subr.bf16.mxu1 %v19332_v39  ;;  %v19375_v38 = vld [vmem:[%s20382_s15 + $0x1f30] ss:$8 sps:$4 sm:$0xff]   ;;  %v19380_v39 = vld [vmem:[%s20382_s15 + $0xd44] ss:$8 sps:$4 sm:$0xff]  }
 0x3ea   : > { %14113 = vmatprep.subr.bf16.mxu0 %v19335_v40  ;;  %v19383_v40 = vld [vmem:[%s20382_s15 + $0x1f44] ss:$8 sps:$4 sm:$0xff]  }
 0x3eb   : > { %12035 = vmatmul.mubr.bf16.gmra.mrb[24].mxu1 %v15545_v43  ;;  %v15259_v43 = vcombine.low %v487_v25, %v523_v29  ;;  %v775_v25 = vld [vmem:[%s20374_s5 + $0xde0] sm:$0xff] }
 0x3ec   : > { %14069 = vmatmul.mubr.bf16.gmra.mrb[24].mxu0 %v15581_v44  ;;  %12080 = vmatpush1.bf16.msra.mxu1 %v19330_v42  ;;  %v19378_v42 = vld [vmem:[%s20382_s15 + $0xd40] ss:$8 sps:$4 sm:$0xff]   ;;  %v15295_v44 = vcombine.low %v505_v30, %v541_v31  ;;  %v793_v30 = vld [vmem:[%s20374_s5 + $0xe70] sm:$0xff] }
 0x3ed   : > { %14114 = vmatpush1.bf16.msra.mxu0 %v19333_v48  ;;  %12081 = vmatprep.subr.bf16.mxu1 %v19338_v49  ;;  %v19381_v48 = vld [vmem:[%s20382_s15 + $0x1f40] ss:$8 sps:$4 sm:$0xff]   ;;  %v19386_v49 = vld [vmem:[%s20382_s15 + $0xd54] ss:$8 sps:$4 sm:$0xff]  }
 0x3ee   : > { %14115 = vmatprep.subr.bf16.mxu0 %v19341_v50  ;;  %12044 = vmatprep.mubr.bf16.mxu1 %v15618_v52  ;;  %v19389_v50 = vld [vmem:[%s20382_s15 + $0x1f54] ss:$8 sps:$4 sm:$0xff]   ;;  %v15332_v52 = vcombine.high %v559_v41, %v595_v45  ;;  %v811_v29 = vld [vmem:[%s20374_s5 + $0xf00] sm:$0xff] }
 0x3ef   : > { %14078 = vmatprep.mubr.bf16.mxu0 %v15654_v53  ;;  %v15368_v53 = vcombine.high %v577_v46, %v613_v47  ;;  %v829_v31 = vld [vmem:[%s20374_s5 + $0xf90] sm:$0xff] }
 0x3f0   : > { %12082 = vmatpush1.bf16.msra.mxu1 %v19336_v51  ;;  %v19384_v51 = vld [vmem:[%s20382_s15 + $0xd50] ss:$8 sps:$4 sm:$0xff]  }
 0x3f1   : > { %14116 = vmatpush1.bf16.msra.mxu0 %v19339_v54  ;;  %12083 = vmatprep.subr.bf16.mxu1 %v19344_v55  ;;  %v19387_v54 = vld [vmem:[%s20382_s15 + $0x1f50] ss:$8 sps:$4 sm:$0xff]   ;;  %v19392_v55 = vld [vmem:[%s20382_s15 + $0xd64] ss:$8 sps:$4 sm:$0xff]  }
 0x3f2   : > { %14117 = vmatprep.subr.bf16.mxu0 %v19347_v56  ;;  %v19395_v56 = vld [vmem:[%s20382_s15 + $0x1f64] ss:$8 sps:$4 sm:$0xff]  }
 0x3f3   : > { %12045 = vmatmul.mubr.bf16.gmra.mrb[28].mxu1 %v15617_v59  ;;  %v15331_v59 = vcombine.low %v559_v41, %v595_v45  ;;  %v847_v41 = vld [vmem:[%s20374_s5 + $0x1020] sm:$0xff]  ;;  %v865_v45 = vld [vmem:[%s20374_s5 + $0x10b0] sm:$0xff] }
 0x3f4   : > { %14079 = vmatmul.mubr.bf16.gmra.mrb[28].mxu0 %v15653_v60  ;;  %12084 = vmatpush1.bf16.msra.mxu1 %v19342_v58  ;;  %v19390_v58 = vld [vmem:[%s20382_s15 + $0xd60] ss:$8 sps:$4 sm:$0xff]   ;;  %v15367_v60 = vcombine.low %v577_v46, %v613_v47  ;;  %v901_v46 = vld [vmem:[%s20374_s5 + $0x11d0] sm:$0xff] }
 0x3f5   : > { %14118 = vmatpush1.bf16.msra.mxu0 %v19345_v0  ;;  %12085 = vmatprep.subr.bf16.mxu1 %v19350_v1  ;;  %v19393_v0 = vld [vmem:[%s20382_s15 + $0x1f60] ss:$8 sps:$4 sm:$0xff]   ;;  %v19398_v1 = vld [vmem:[%s20382_s15 + $0xd74] ss:$8 sps:$4 sm:$0xff]  }
 0x3f6   : > { %14119 = vmatprep.subr.bf16.mxu0 %v19353_v2  ;;  %12087 = vmatprep.mubr.bf16.mxu1 %v15116_v4  ;;  %v19401_v2 = vld [vmem:[%s20382_s15 + $0x1f74] ss:$8 sps:$4 sm:$0xff]   ;;  %v15404_v4 = vcombine.high %v631_v57, %v667_v61  ;;  %v19426_v47 = vld [vmem:[%s20382_s15 + $0xdc0] ss:$8 sps:$4 sm:$0xff]  }
 0x3f7   : > { %14121 = vmatprep.mubr.bf16.mxu0 %v15152_v5  ;;  %v15440_v5 = vcombine.high %v649_v62, %v685_v63 }
 0x3f8   : > { %12086 = vmatpush1.bf16.msra.mxu1 %v19348_v3  ;;  %v19396_v3 = vld [vmem:[%s20382_s15 + $0xd70] ss:$8 sps:$4 sm:$0xff]  }
 0x3f9   : > { %14120 = vmatpush1.bf16.msra.mxu0 %v19351_v6  ;;  %12168 = vmatprep.subr.bf16.mxu1 %v19356_v7  ;;  %v19399_v6 = vld [vmem:[%s20382_s15 + $0x1f70] ss:$8 sps:$4 sm:$0xff]   ;;  %v19404_v7 = vld [vmem:[%s20382_s15 + $0xd84] ss:$8 sps:$4 sm:$0xff]  }
 0x3fa   : > { %14202 = vmatprep.subr.bf16.mxu0 %v19359_v8  ;;  %v19407_v8 = vld [vmem:[%s20382_s15 + $0x1f84] ss:$8 sps:$4 sm:$0xff]  }
 0x3fb   : > { %12088 = vmatmul.mubr.bf16.vlgmr.msra.gmra.mrb[0].mxu1 %v15115_v11  ;;  %v15403_v11 = vcombine.low %v631_v57, %v667_v61  ;;  %v344_v57 = vld [vmem:[%s20374_s5 + $0x68] sm:$0xff]  ;;  %v362_v61 = vld [vmem:[%s20374_s5 + $0xf8] sm:$0xff] }
 0x3fc   : > { %14122 = vmatmul.mubr.bf16.vlgmr.msra.gmra.mrb[0].mxu0 %v15151_v12  ;;  %12169 = vmatpush1.bf16.msra.mxu1 %v19354_v10  ;;  %v19402_v10 = vld [vmem:[%s20382_s15 + $0xd80] ss:$8 sps:$4 sm:$0xff]   ;;  %v15439_v12 = vcombine.low %v649_v62, %v685_v63  ;;  %v398_v62 = vld [vmem:[%s20374_s5 + $0x218] sm:$0xff] }
 0x3fd   : > { %14203 = vmatpush1.bf16.msra.mxu0 %v19357_v16  ;;  %12170 = vmatprep.subr.bf16.mxu1 %v19362_v17  ;;  %v19405_v16 = vld [vmem:[%s20382_s15 + $0x1f80] ss:$8 sps:$4 sm:$0xff]   ;;  %v19410_v17 = vld [vmem:[%s20382_s15 + $0xd94] ss:$8 sps:$4 sm:$0xff]  }
 0x3fe   : > { %14204 = vmatprep.subr.bf16.mxu0 %v19365_v18  ;;  %12097 = vmatprep.mubr.bf16.mxu1 %v15188_v20  ;;  %v19413_v18 = vld [vmem:[%s20382_s15 + $0x1f94] ss:$8 sps:$4 sm:$0xff]   ;;  %v15476_v20 = vcombine.high %v703_v9, %v739_v13  ;;  %v19438_v63 = vld [vmem:[%s20382_s15 + $0xde0] ss:$8 sps:$4 sm:$0xff]  }
 0x3ff   : > { %14131 = vmatprep.mubr.bf16.mxu0 %v15224_v21  ;;  %v15512_v21 = vcombine.high %v721_v14, %v757_v15 }
 0x400   : > { %12171 = vmatpush1.bf16.msra.mxu1 %v19360_v19  ;;  %v19408_v19 = vld [vmem:[%s20382_s15 + $0xd90] ss:$8 sps:$4 sm:$0xff]  }
 0x401   : > { %14205 = vmatpush1.bf16.msra.mxu0 %v19363_v22  ;;  %12172 = vmatprep.subr.bf16.mxu1 %v19368_v23  ;;  %v19411_v22 = vld [vmem:[%s20382_s15 + $0x1f90] ss:$8 sps:$4 sm:$0xff]   ;;  %v19416_v23 = vld [vmem:[%s20382_s15 + $0xda4] ss:$8 sps:$4 sm:$0xff]  }
 0x402   : > { %14206 = vmatprep.subr.bf16.mxu0 %v19371_v24  ;;  %v19419_v24 = vld [vmem:[%s20382_s15 + $0x1fa4] ss:$8 sps:$4 sm:$0xff]  }
 0x403   : > { %12098 = vmatmul.mubr.bf16.gmra.mrb[4].mxu1 %v15187_v27  ;;  %v15475_v27 = vcombine.low %v703_v9, %v739_v13  ;;  %v416_v9 = vld [vmem:[%s20374_s5 + $0x2a8] sm:$0xff]  ;;  %v434_v13 = vld [vmem:[%s20374_s5 + $0x338] sm:$0xff] }
 0x404   : > { %14132 = vmatmul.mubr.bf16.gmra.mrb[4].mxu0 %v15223_v28  ;;  %12173 = vmatpush1.bf16.msra.mxu1 %v19366_v26  ;;  %v19414_v26 = vld [vmem:[%s20382_s15 + $0xda0] ss:$8 sps:$4 sm:$0xff]   ;;  %v15511_v28 = vcombine.low %v721_v14, %v757_v15  ;;  %v470_v14 = vld [vmem:[%s20374_s5 + $0x458] sm:$0xff] }
 0x405   : > { %14207 = vmatpush1.bf16.msra.mxu0 %v19369_v32  ;;  %12174 = vmatprep.subr.bf16.mxu1 %v19374_v33  ;;  %v19417_v32 = vld [vmem:[%s20382_s15 + $0x1fa0] ss:$8 sps:$4 sm:$0xff]   ;;  %v19422_v33 = vld [vmem:[%s20382_s15 + $0xdb4] ss:$8 sps:$4 sm:$0xff]  }
 0x406   : > { %14208 = vmatprep.subr.bf16.mxu0 %v19377_v34  ;;  %12107 = vmatprep.mubr.bf16.mxu1 %v15260_v36  ;;  %v19425_v34 = vld [vmem:[%s20382_s15 + $0x1fb4] ss:$8 sps:$4 sm:$0xff]   ;;  %v15584_v36 = vcombine.high %v793_v30, %v829_v31  ;;  %v19450_v15 = vld [vmem:[%s20382_s15 + $0xe00] ss:$8 sps:$4 sm:$0xff]  }
 0x407   : > { %14141 = vmatprep.mubr.bf16.mxu0 %v15296_v37  ;;  %v19420_v37 = vld [vmem:[%s20382_s15 + $0xdb0] ss:$8 sps:$4 sm:$0xff]  }
 0x408   : > { %12175 = vmatpush1.bf16.msra.mxu1 %v19372_v35  ;;  %v15548_v35 = vcombine.high %v775_v25, %v811_v29 }
 0x409   : > { %14209 = vmatpush1.bf16.msra.mxu0 %v19375_v38  ;;  %12176 = vmatprep.subr.bf16.mxu1 %v19380_v39  ;;  %v19423_v38 = vld [vmem:[%s20382_s15 + $0x1fb0] ss:$8 sps:$4 sm:$0xff]   ;;  %v19428_v39 = vld [vmem:[%s20382_s15 + $0xdc4] ss:$8 sps:$4 sm:$0xff]  }
 0x40a   : > { %14210 = vmatprep.subr.bf16.mxu0 %v19383_v40  ;;  %v19431_v40 = vld [vmem:[%s20382_s15 + $0x1fc4] ss:$8 sps:$4 sm:$0xff]  }
 0x40b   : > { %12108 = vmatmul.mubr.bf16.gmra.mrb[8].mxu1 %v15259_v43  ;;  %v15583_v43 = vcombine.low %v793_v30, %v829_v31  ;;  %v542_v30 = vld [vmem:[%s20374_s5 + $0x698] sm:$0xff]  ;;  %v19462_v31 = vld [vmem:[%s20382_s15 + $0xe20] ss:$8 sps:$4 sm:$0xff]  }
 0x40c   : > { %14142 = vmatmul.mubr.bf16.gmra.mrb[8].mxu0 %v15295_v44  ;;  %12177 = vmatpush1.bf16.msra.mxu1 %v19378_v42  ;;  %v15547_v42 = vcombine.low %v775_v25, %v811_v29  ;;  %v883_v44 = vld [vmem:[%s20374_s5 + $0x1140] sm:$0xff]  ;;  %v488_v25 = vld [vmem:[%s20374_s5 + $0x4e8] sm:$0xff]  ;;  %v506_v29 = vld [vmem:[%s20374_s5 + $0x578] sm:$0xff] }
 0x40d   : > { %14211 = vmatpush1.bf16.msra.mxu0 %v19381_v48  ;;  %12178 = vmatprep.subr.bf16.mxu1 %v19386_v49  ;;  %v19429_v48 = vld [vmem:[%s20382_s15 + $0x1fc0] ss:$8 sps:$4 sm:$0xff]   ;;  %v19434_v49 = vld [vmem:[%s20382_s15 + $0xdd4] ss:$8 sps:$4 sm:$0xff]  }
 0x40e   : > { %14212 = vmatprep.subr.bf16.mxu0 %v19389_v50  ;;  %12117 = vmatprep.mubr.bf16.mxu1 %v15332_v52  ;;  %v19437_v50 = vld [vmem:[%s20382_s15 + $0x1fd4] ss:$8 sps:$4 sm:$0xff]   ;;  %v15656_v52 = vcombine.high %v865_v45, %v901_v46 }
 0x40f   : > { %14151 = vmatprep.mubr.bf16.mxu0 %v15368_v53  ;;  %v19432_v53 = vld [vmem:[%s20382_s15 + $0xdd0] ss:$8 sps:$4 sm:$0xff]  }
 0x410   : > { %12179 = vmatpush1.bf16.msra.mxu1 %v19384_v51  ;;  %v15620_v51 = vcombine.high %v847_v41, %v883_v44 }
 0x411   : > { %14213 = vmatpush1.bf16.msra.mxu0 %v19387_v54  ;;  %12180 = vmatprep.subr.bf16.mxu1 %v19392_v55  ;;  %v19435_v54 = vld [vmem:[%s20382_s15 + $0x1fd0] ss:$8 sps:$4 sm:$0xff]   ;;  %v19440_v55 = vld [vmem:[%s20382_s15 + $0xde4] ss:$8 sps:$4 sm:$0xff]  }
 0x412   : > { %14214 = vmatprep.subr.bf16.mxu0 %v19395_v56  ;;  %v19443_v56 = vld [vmem:[%s20382_s15 + $0x1fe4] ss:$8 sps:$4 sm:$0xff]  }
 0x413   : > { %12118 = vmatmul.mubr.bf16.gmra.mrb[12].mxu1 %v15331_v59  ;;  %v15655_v59 = vcombine.low %v865_v45, %v901_v46  ;;  %v578_v45 = vld [vmem:[%s20374_s5 + $0x7b8] sm:$0xff] }
 0x414   : > { %14152 = vmatmul.mubr.bf16.gmra.mrb[12].mxu0 %v15367_v60  ;;  %12181 = vmatpush1.bf16.msra.mxu1 %v19390_v58  ;;  %v15619_v58 = vcombine.low %v847_v41, %v883_v44  ;;  %v380_v60 = vld [vmem:[%s20374_s5 + $0x188] sm:$0xff]  ;;  %v614_v46 = vld [vmem:[%s20374_s5 + $0x8d8] sm:$0xff] }
 0x415   : > { %14215 = vmatpush1.bf16.msra.mxu0 %v19393_v0  ;;  %12182 = vmatprep.subr.bf16.mxu1 %v19398_v1  ;;  %v19441_v0 = vld [vmem:[%s20382_s15 + $0x1fe0] ss:$8 sps:$4 sm:$0xff]   ;;  %v19446_v1 = vld [vmem:[%s20382_s15 + $0xdf4] ss:$8 sps:$4 sm:$0xff]  }
 0x416   : > { %14216 = vmatprep.subr.bf16.mxu0 %v19401_v2  ;;  %12127 = vmatprep.mubr.bf16.mxu1 %v15404_v4  ;;  %v19449_v2 = vld [vmem:[%s20382_s15 + $0x1ff4] ss:$8 sps:$4 sm:$0xff]   ;;  %v15154_v4 = vcombine.high %v362_v61, %v398_v62  ;;  %v560_v41 = vld [vmem:[%s20374_s5 + $0x728] sm:$0xff] }
 0x417   : > { %14161 = vmatprep.mubr.bf16.mxu0 %v15440_v5  ;;  %v19444_v5 = vld [vmem:[%s20382_s15 + $0xdf0] ss:$8 sps:$4 sm:$0xff]   ;;  %v596_v44 = vld [vmem:[%s20374_s5 + $0x848] sm:$0xff] }
 0x418   : > { %12183 = vmatpush1.bf16.msra.mxu1 %v19396_v3  ;;  %v15118_v3 = vcombine.high %v344_v57, %v380_v60 }
 0x419   : > { %14217 = vmatpush1.bf16.msra.mxu0 %v19399_v6  ;;  %12184 = vmatprep.subr.bf16.mxu1 %v19404_v7  ;;  %v19447_v6 = vld [vmem:[%s20382_s15 + $0x1ff0] ss:$8 sps:$4 sm:$0xff]   ;;  %v19452_v7 = vld [vmem:[%s20382_s15 + $0xe04] ss:$8 sps:$4 sm:$0xff]  }
 0x41a   : > { %14218 = vmatprep.subr.bf16.mxu0 %v19407_v8  ;;  %v19455_v8 = vld [vmem:[%s20382_s15 + $0x2004] ss:$8 sps:$4 sm:$0xff]  }
 0x41b   : > { %12128 = vmatmul.mubr.bf16.gmra.mrb[16].mxu1 %v15403_v11  ;;  %v15153_v11 = vcombine.low %v362_v61, %v398_v62  ;;  %v650_v61 = vld [vmem:[%s20374_s5 + $0x9f8] sm:$0xff] }
 0x41c   : > { %14162 = vmatmul.mubr.bf16.gmra.mrb[16].mxu0 %v15439_v12  ;;  %12185 = vmatpush1.bf16.msra.mxu1 %v19402_v10  ;;  %v15117_v10 = vcombine.low %v344_v57, %v380_v60  ;;  %v452_v12 = vld [vmem:[%s20374_s5 + $0x3c8] sm:$0xff]  ;;  %v686_v62 = vld [vmem:[%s20374_s5 + $0xb18] sm:$0xff] }
 0x41d   : > { %14219 = vmatpush1.bf16.msra.mxu0 %v19405_v16  ;;  %12186 = vmatprep.subr.bf16.mxu1 %v19410_v17  ;;  %v19453_v16 = vld [vmem:[%s20382_s15 + $0x2000] ss:$8 sps:$4 sm:$0xff]   ;;  %v19458_v17 = vld [vmem:[%s20382_s15 + $0xe14] ss:$8 sps:$4 sm:$0xff]  }
 0x41e   : > { %14220 = vmatprep.subr.bf16.mxu0 %v19413_v18  ;;  %12137 = vmatprep.mubr.bf16.mxu1 %v15476_v20  ;;  %v19461_v18 = vld [vmem:[%s20382_s15 + $0x2014] ss:$8 sps:$4 sm:$0xff]   ;;  %v15226_v20 = vcombine.high %v434_v13, %v470_v14  ;;  %v632_v57 = vld [vmem:[%s20374_s5 + $0x968] sm:$0xff] }
 0x41f   : > { %14171 = vmatprep.mubr.bf16.mxu0 %v15512_v21  ;;  %v19456_v21 = vld [vmem:[%s20382_s15 + $0xe10] ss:$8 sps:$4 sm:$0xff]   ;;  %v668_v60 = vld [vmem:[%s20374_s5 + $0xa88] sm:$0xff] }
 0x420   : > { %12187 = vmatpush1.bf16.msra.mxu1 %v19408_v19  ;;  %v15190_v19 = vcombine.high %v416_v9, %v452_v12 }
 0x421   : > { %14221 = vmatpush1.bf16.msra.mxu0 %v19411_v22  ;;  %12188 = vmatprep.subr.bf16.mxu1 %v19416_v23  ;;  %v19459_v22 = vld [vmem:[%s20382_s15 + $0x2010] ss:$8 sps:$4 sm:$0xff]   ;;  %v19464_v23 = vld [vmem:[%s20382_s15 + $0xe24] ss:$8 sps:$4 sm:$0xff]  }
 0x422   : > { %14222 = vmatprep.subr.bf16.mxu0 %v19419_v24  ;;  %v19467_v24 = vld [vmem:[%s20382_s15 + $0x2024] ss:$8 sps:$4 sm:$0xff]  }
 0x423   : > { %12138 = vmatmul.mubr.bf16.gmra.mrb[20].mxu1 %v15475_v27  ;;  %v15225_v27 = vcombine.low %v434_v13, %v470_v14  ;;  %v722_v13 = vld [vmem:[%s20374_s5 + $0xc38] sm:$0xff] }
 0x424   : > { %14172 = vmatmul.mubr.bf16.gmra.mrb[20].mxu0 %v15511_v28  ;;  %12189 = vmatpush1.bf16.msra.mxu1 %v19414_v26  ;;  %v15189_v26 = vcombine.low %v416_v9, %v452_v12  ;;  %v524_v28 = vld [vmem:[%s20374_s5 + $0x608] sm:$0xff]  ;;  %v758_v14 = vld [vmem:[%s20374_s5 + $0xd58] sm:$0xff] }
 0x425   : > { %14223 = vmatpush1.bf16.msra.mxu0 %v19417_v32  ;;  %12190 = vmatprep.subr.bf16.mxu1 %v19422_v33  ;;  %v19465_v32 = vld [vmem:[%s20382_s15 + $0x2020] ss:$8 sps:$4 sm:$0xff]   ;;  %v19470_v33 = vld [vmem:[%s20382_s15 + $0xe34] ss:$8 sps:$4 sm:$0xff]  }
 0x426   : > { %14224 = vmatprep.subr.bf16.mxu0 %v19425_v34  ;;  %12147 = vmatprep.mubr.bf16.mxu1 %v15548_v35  ;;  %v19473_v34 = vld [vmem:[%s20382_s15 + $0x2034] ss:$8 sps:$4 sm:$0xff]   ;;  %v15262_v35 = vcombine.high %v488_v25, %v524_v28  ;;  %v704_v9 = vld [vmem:[%s20374_s5 + $0xba8] sm:$0xff] }
 0x427   : > { %14181 = vmatprep.mubr.bf16.mxu0 %v15584_v36  ;;  %v15298_v36 = vcombine.high %v506_v29, %v542_v30  ;;  %v740_v12 = vld [vmem:[%s20374_s5 + $0xcc8] sm:$0xff] }
 0x428   : > { %12191 = vmatpush1.bf16.msra.mxu1 %v19420_v37  ;;  %v19468_v37 = vld [vmem:[%s20382_s15 + $0xe30] ss:$8 sps:$4 sm:$0xff]  }
 0x429   : > { %14225 = vmatpush1.bf16.msra.mxu0 %v19423_v38  ;;  %12192 = vmatprep.subr.bf16.mxu1 %v19428_v39  ;;  %v19471_v38 = vld [vmem:[%s20382_s15 + $0x2030] ss:$8 sps:$4 sm:$0xff]   ;;  %v19476_v39 = vld [vmem:[%s20382_s15 + $0xe44] ss:$8 sps:$4 sm:$0xff]  }
 0x42a   : > { %14226 = vmatprep.subr.bf16.mxu0 %v19431_v40  ;;  %v19479_v40 = vld [vmem:[%s20382_s15 + $0x2044] ss:$8 sps:$4 sm:$0xff]  }
 0x42b   : > { %12148 = vmatmul.mubr.bf16.gmra.mrb[24].mxu1 %v15547_v42  ;;  %v15261_v42 = vcombine.low %v488_v25, %v524_v28  ;;  %v776_v25 = vld [vmem:[%s20374_s5 + $0xde8] sm:$0xff] }
 0x42c   : > { %14182 = vmatmul.mubr.bf16.gmra.mrb[24].mxu0 %v15583_v43  ;;  %12193 = vmatpush1.bf16.msra.mxu1 %v19426_v47  ;;  %v15297_v43 = vcombine.low %v506_v29, %v542_v30  ;;  %v19474_v47 = vld [vmem:[%s20382_s15 + $0xe40] ss:$8 sps:$4 sm:$0xff]   ;;  %v794_v29 = vld [vmem:[%s20374_s5 + $0xe78] sm:$0xff] }
 0x42d   : > { %14227 = vmatpush1.bf16.msra.mxu0 %v19429_v48  ;;  %12194 = vmatprep.subr.bf16.mxu1 %v19434_v49  ;;  %v19477_v48 = vld [vmem:[%s20382_s15 + $0x2040] ss:$8 sps:$4 sm:$0xff]   ;;  %v19482_v49 = vld [vmem:[%s20382_s15 + $0xe54] ss:$8 sps:$4 sm:$0xff]  }
 0x42e   : > { %14228 = vmatprep.subr.bf16.mxu0 %v19437_v50  ;;  %12157 = vmatprep.mubr.bf16.mxu1 %v15620_v51  ;;  %v19485_v50 = vld [vmem:[%s20382_s15 + $0x2054] ss:$8 sps:$4 sm:$0xff]   ;;  %v15334_v51 = vcombine.high %v560_v41, %v596_v44  ;;  %v812_v28 = vld [vmem:[%s20374_s5 + $0xf08] sm:$0xff] }
 0x42f   : > { %14191 = vmatprep.mubr.bf16.mxu0 %v15656_v52  ;;  %v15370_v52 = vcombine.high %v578_v45, %v614_v46  ;;  %v830_v30 = vld [vmem:[%s20374_s5 + $0xf98] sm:$0xff] }
 0x430   : > { %12195 = vmatpush1.bf16.msra.mxu1 %v19432_v53  ;;  %v19480_v53 = vld [vmem:[%s20382_s15 + $0xe50] ss:$8 sps:$4 sm:$0xff]  }
 0x431   : > { %14229 = vmatpush1.bf16.msra.mxu0 %v19435_v54  ;;  %12196 = vmatprep.subr.bf16.mxu1 %v19440_v55  ;;  %v19483_v54 = vld [vmem:[%s20382_s15 + $0x2050] ss:$8 sps:$4 sm:$0xff]   ;;  %v19488_v55 = vld [vmem:[%s20382_s15 + $0xe64] ss:$8 sps:$4 sm:$0xff]  }
 0x432   : > { %14230 = vmatprep.subr.bf16.mxu0 %v19443_v56  ;;  %v19491_v56 = vld [vmem:[%s20382_s15 + $0x2064] ss:$8 sps:$4 sm:$0xff]  }
 0x433   : > { %12158 = vmatmul.mubr.bf16.gmra.mrb[28].mxu1 %v15619_v58  ;;  %v15333_v58 = vcombine.low %v560_v41, %v596_v44  ;;  %v848_v41 = vld [vmem:[%s20374_s5 + $0x1028] sm:$0xff] }
 0x434   : > { %14192 = vmatmul.mubr.bf16.gmra.mrb[28].mxu0 %v15655_v59  ;;  %12197 = vmatpush1.bf16.msra.mxu1 %v19438_v63  ;;  %v15369_v59 = vcombine.low %v578_v45, %v614_v46  ;;  %v19486_v63 = vld [vmem:[%s20382_s15 + $0xe60] ss:$8 sps:$4 sm:$0xff]   ;;  %v866_v45 = vld [vmem:[%s20374_s5 + $0x10b8] sm:$0xff] }
 0x435   : > { %14231 = vmatpush1.bf16.msra.mxu0 %v19441_v0  ;;  %12198 = vmatprep.subr.bf16.mxu1 %v19446_v1  ;;  %v19489_v0 = vld [vmem:[%s20382_s15 + $0x2060] ss:$8 sps:$4 sm:$0xff]   ;;  %v19494_v1 = vld [vmem:[%s20382_s15 + $0xe74] ss:$8 sps:$4 sm:$0xff]  }
 0x436   : > { %14232 = vmatprep.subr.bf16.mxu0 %v19449_v2  ;;  %12200 = vmatprep.mubr.bf16.mxu1 %v15118_v3  ;;  %v19497_v2 = vld [vmem:[%s20382_s15 + $0x2074] ss:$8 sps:$4 sm:$0xff]   ;;  %v15406_v3 = vcombine.high %v632_v57, %v668_v60  ;;  %v884_v44 = vld [vmem:[%s20374_s5 + $0x1148] sm:$0xff] }
 0x437   : > { %14234 = vmatprep.mubr.bf16.mxu0 %v15154_v4  ;;  %v15442_v4 = vcombine.high %v650_v61, %v686_v62  ;;  %v902_v46 = vld [vmem:[%s20374_s5 + $0x11d8] sm:$0xff] }
 0x438   : > { %12199 = vmatpush1.bf16.msra.mxu1 %v19444_v5  ;;  %v19492_v5 = vld [vmem:[%s20382_s15 + $0xe70] ss:$8 sps:$4 sm:$0xff]  }
 0x439   : > { %14233 = vmatpush1.bf16.msra.mxu0 %v19447_v6  ;;  %12281 = vmatprep.subr.bf16.mxu1 %v19452_v7  ;;  %v19495_v6 = vld [vmem:[%s20382_s15 + $0x2070] ss:$8 sps:$4 sm:$0xff]   ;;  %v19500_v7 = vld [vmem:[%s20382_s15 + $0xe84] ss:$8 sps:$4 sm:$0xff]  }
 0x43a   : > { %14315 = vmatprep.subr.bf16.mxu0 %v19455_v8  ;;  %v19503_v8 = vld [vmem:[%s20382_s15 + $0x2084] ss:$8 sps:$4 sm:$0xff]  }
 0x43b   : > { %12201 = vmatmul.mubr.bf16.vlgmr.msra.gmra.mrb[0].mxu1 %v15117_v10  ;;  %v15405_v10 = vcombine.low %v632_v57, %v668_v60  ;;  %v345_v57 = vld [vmem:[%s20374_s5 + $0x70] sm:$0xff] }
 0x43c   : > { %14235 = vmatmul.mubr.bf16.vlgmr.msra.gmra.mrb[0].mxu0 %v15153_v11  ;;  %12282 = vmatpush1.bf16.msra.mxu1 %v19450_v15  ;;  %v15441_v11 = vcombine.low %v650_v61, %v686_v62  ;;  %v19498_v15 = vld [vmem:[%s20382_s15 + $0xe80] ss:$8 sps:$4 sm:$0xff]   ;;  %v381_v60 = vld [vmem:[%s20374_s5 + $0x190] sm:$0xff] }
 0x43d   : > { %14316 = vmatpush1.bf16.msra.mxu0 %v19453_v16  ;;  %12283 = vmatprep.subr.bf16.mxu1 %v19458_v17  ;;  %v19501_v16 = vld [vmem:[%s20382_s15 + $0x2080] ss:$8 sps:$4 sm:$0xff]   ;;  %v19506_v17 = vld [vmem:[%s20382_s15 + $0xe94] ss:$8 sps:$4 sm:$0xff]  }
 0x43e   : > { %14317 = vmatprep.subr.bf16.mxu0 %v19461_v18  ;;  %12210 = vmatprep.mubr.bf16.mxu1 %v15190_v19  ;;  %v19509_v18 = vld [vmem:[%s20382_s15 + $0x2094] ss:$8 sps:$4 sm:$0xff]   ;;  %v15478_v19 = vcombine.high %v704_v9, %v740_v12  ;;  %v363_v61 = vld [vmem:[%s20374_s5 + $0x100] sm:$0xff] }
 0x43f   : > { %14244 = vmatprep.mubr.bf16.mxu0 %v15226_v20  ;;  %v15514_v20 = vcombine.high %v722_v13, %v758_v14  ;;  %v399_v62 = vld [vmem:[%s20374_s5 + $0x220] sm:$0xff] }
 0x440   : > { %12284 = vmatpush1.bf16.msra.mxu1 %v19456_v21  ;;  %v19504_v21 = vld [vmem:[%s20382_s15 + $0xe90] ss:$8 sps:$4 sm:$0xff]  }
 0x441   : > { %14318 = vmatpush1.bf16.msra.mxu0 %v19459_v22  ;;  %12285 = vmatprep.subr.bf16.mxu1 %v19464_v23  ;;  %v19507_v22 = vld [vmem:[%s20382_s15 + $0x2090] ss:$8 sps:$4 sm:$0xff]   ;;  %v19512_v23 = vld [vmem:[%s20382_s15 + $0xea4] ss:$8 sps:$4 sm:$0xff]  }
 0x442   : > { %14319 = vmatprep.subr.bf16.mxu0 %v19467_v24  ;;  %v19515_v24 = vld [vmem:[%s20382_s15 + $0x20a4] ss:$8 sps:$4 sm:$0xff]  }
 0x443   : > { %12211 = vmatmul.mubr.bf16.gmra.mrb[4].mxu1 %v15189_v26  ;;  %v15477_v26 = vcombine.low %v704_v9, %v740_v12  ;;  %v417_v9 = vld [vmem:[%s20374_s5 + $0x2b0] sm:$0xff] }
 0x444   : > { %14245 = vmatmul.mubr.bf16.gmra.mrb[4].mxu0 %v15225_v27  ;;  %12286 = vmatpush1.bf16.msra.mxu1 %v19462_v31  ;;  %v15513_v27 = vcombine.low %v722_v13, %v758_v14  ;;  %v19510_v31 = vld [vmem:[%s20382_s15 + $0xea0] ss:$8 sps:$4 sm:$0xff]   ;;  %v453_v12 = vld [vmem:[%s20374_s5 + $0x3d0] sm:$0xff] }
 0x445   : > { %14320 = vmatpush1.bf16.msra.mxu0 %v19465_v32  ;;  %12287 = vmatprep.subr.bf16.mxu1 %v19470_v33  ;;  %v19513_v32 = vld [vmem:[%s20382_s15 + $0x20a0] ss:$8 sps:$4 sm:$0xff]   ;;  %v19518_v33 = vld [vmem:[%s20382_s15 + $0xeb4] ss:$8 sps:$4 sm:$0xff]  }
 0x446   : > { %14321 = vmatprep.subr.bf16.mxu0 %v19473_v34  ;;  %12220 = vmatprep.mubr.bf16.mxu1 %v15262_v35  ;;  %v19521_v34 = vld [vmem:[%s20382_s15 + $0x20b4] ss:$8 sps:$4 sm:$0xff]   ;;  %v15550_v35 = vcombine.high %v776_v25, %v812_v28  ;;  %v435_v13 = vld [vmem:[%s20374_s5 + $0x340] sm:$0xff] }
 0x447   : > { %14254 = vmatprep.mubr.bf16.mxu0 %v15298_v36  ;;  %v15586_v36 = vcombine.high %v794_v29, %v830_v30  ;;  %v471_v14 = vld [vmem:[%s20374_s5 + $0x460] sm:$0xff] }
 0x448   : > { %12288 = vmatpush1.bf16.msra.mxu1 %v19468_v37  ;;  %v19516_v37 = vld [vmem:[%s20382_s15 + $0xeb0] ss:$8 sps:$4 sm:$0xff]  }
 0x449   : > { %14322 = vmatpush1.bf16.msra.mxu0 %v19471_v38  ;;  %12289 = vmatprep.subr.bf16.mxu1 %v19476_v39  ;;  %v19519_v38 = vld [vmem:[%s20382_s15 + $0x20b0] ss:$8 sps:$4 sm:$0xff]   ;;  %v19524_v39 = vld [vmem:[%s20382_s15 + $0xec4] ss:$8 sps:$4 sm:$0xff]  }
 0x44a   : > { %14323 = vmatprep.subr.bf16.mxu0 %v19479_v40  ;;  %v19527_v40 = vld [vmem:[%s20382_s15 + $0x20c4] ss:$8 sps:$4 sm:$0xff]  }
 0x44b   : > { %12221 = vmatmul.mubr.bf16.gmra.mrb[8].mxu1 %v15261_v42  ;;  %v15549_v42 = vcombine.low %v776_v25, %v812_v28  ;;  %v489_v25 = vld [vmem:[%s20374_s5 + $0x4f0] sm:$0xff] }
 0x44c   : > { %14255 = vmatmul.mubr.bf16.gmra.mrb[8].mxu0 %v15297_v43  ;;  %12290 = vmatpush1.bf16.msra.mxu1 %v19474_v47  ;;  %v15585_v43 = vcombine.low %v794_v29, %v830_v30  ;;  %v19522_v47 = vld [vmem:[%s20382_s15 + $0xec0] ss:$8 sps:$4 sm:$0xff]   ;;  %v525_v28 = vld [vmem:[%s20374_s5 + $0x610] sm:$0xff] }
 0x44d   : > { %14324 = vmatpush1.bf16.msra.mxu0 %v19477_v48  ;;  %12291 = vmatprep.subr.bf16.mxu1 %v19482_v49  ;;  %v19525_v48 = vld [vmem:[%s20382_s15 + $0x20c0] ss:$8 sps:$4 sm:$0xff]   ;;  %v19530_v49 = vld [vmem:[%s20382_s15 + $0xed4] ss:$8 sps:$4 sm:$0xff]  }
 0x44e   : > { %14325 = vmatprep.subr.bf16.mxu0 %v19485_v50  ;;  %12230 = vmatprep.mubr.bf16.mxu1 %v15334_v51  ;;  %v19533_v50 = vld [vmem:[%s20382_s15 + $0x20d4] ss:$8 sps:$4 sm:$0xff]   ;;  %v15622_v51 = vcombine.high %v848_v41, %v884_v44  ;;  %v507_v29 = vld [vmem:[%s20374_s5 + $0x580] sm:$0xff] }
 0x44f   : > { %14264 = vmatprep.mubr.bf16.mxu0 %v15370_v52  ;;  %v15658_v52 = vcombine.high %v866_v45, %v902_v46  ;;  %v543_v30 = vld [vmem:[%s20374_s5 + $0x6a0] sm:$0xff] }
 0x450   : > { %12292 = vmatpush1.bf16.msra.mxu1 %v19480_v53  ;;  %v19528_v53 = vld [vmem:[%s20382_s15 + $0xed0] ss:$8 sps:$4 sm:$0xff]  }
 0x451   : > { %14326 = vmatpush1.bf16.msra.mxu0 %v19483_v54  ;;  %12293 = vmatprep.subr.bf16.mxu1 %v19488_v55  ;;  %v19531_v54 = vld [vmem:[%s20382_s15 + $0x20d0] ss:$8 sps:$4 sm:$0xff]   ;;  %v19536_v55 = vld [vmem:[%s20382_s15 + $0xee4] ss:$8 sps:$4 sm:$0xff]  }
 0x452   : > { %14327 = vmatprep.subr.bf16.mxu0 %v19491_v56  ;;  %v19539_v56 = vld [vmem:[%s20382_s15 + $0x20e4] ss:$8 sps:$4 sm:$0xff]  }
 0x453   : > { %12231 = vmatmul.mubr.bf16.gmra.mrb[12].mxu1 %v15333_v58  ;;  %v15621_v58 = vcombine.low %v848_v41, %v884_v44  ;;  %v561_v41 = vld [vmem:[%s20374_s5 + $0x730] sm:$0xff] }
 0x454   : > { %14265 = vmatmul.mubr.bf16.gmra.mrb[12].mxu0 %v15369_v59  ;;  %12294 = vmatpush1.bf16.msra.mxu1 %v19486_v63  ;;  %v15657_v59 = vcombine.low %v866_v45, %v902_v46  ;;  %v19534_v63 = vld [vmem:[%s20382_s15 + $0xee0] ss:$8 sps:$4 sm:$0xff]   ;;  %v597_v44 = vld [vmem:[%s20374_s5 + $0x850] sm:$0xff] }
 0x455   : > { %14328 = vmatpush1.bf16.msra.mxu0 %v19489_v0  ;;  %12295 = vmatprep.subr.bf16.mxu1 %v19494_v1  ;;  %v19537_v0 = vld [vmem:[%s20382_s15 + $0x20e0] ss:$8 sps:$4 sm:$0xff]   ;;  %v19542_v1 = vld [vmem:[%s20382_s15 + $0xef4] ss:$8 sps:$4 sm:$0xff]  }
 0x456   : > { %14329 = vmatprep.subr.bf16.mxu0 %v19497_v2  ;;  %12240 = vmatprep.mubr.bf16.mxu1 %v15406_v3  ;;  %v19545_v2 = vld [vmem:[%s20382_s15 + $0x20f4] ss:$8 sps:$4 sm:$0xff]   ;;  %v15120_v3 = vcombine.high %v345_v57, %v381_v60  ;;  %v579_v45 = vld [vmem:[%s20374_s5 + $0x7c0] sm:$0xff] }
 0x457   : > { %14274 = vmatprep.mubr.bf16.mxu0 %v15442_v4  ;;  %v15156_v4 = vcombine.high %v363_v61, %v399_v62  ;;  %v615_v46 = vld [vmem:[%s20374_s5 + $0x8e0] sm:$0xff] }
 0x458   : > { %12296 = vmatpush1.bf16.msra.mxu1 %v19492_v5  ;;  %v19540_v5 = vld [vmem:[%s20382_s15 + $0xef0] ss:$8 sps:$4 sm:$0xff]  }
 0x459   : > { %14330 = vmatpush1.bf16.msra.mxu0 %v19495_v6  ;;  %12297 = vmatprep.subr.bf16.mxu1 %v19500_v7  ;;  %v19543_v6 = vld [vmem:[%s20382_s15 + $0x20f0] ss:$8 sps:$4 sm:$0xff]   ;;  %v19548_v7 = vld [vmem:[%s20382_s15 + $0xf04] ss:$8 sps:$4 sm:$0xff]  }
 0x45a   : > { %14331 = vmatprep.subr.bf16.mxu0 %v19503_v8  ;;  %v19551_v8 = vld [vmem:[%s20382_s15 + $0x2104] ss:$8 sps:$4 sm:$0xff]  }
 0x45b   : > { %12241 = vmatmul.mubr.bf16.gmra.mrb[16].mxu1 %v15405_v10  ;;  %v15119_v10 = vcombine.low %v345_v57, %v381_v60  ;;  %v633_v57 = vld [vmem:[%s20374_s5 + $0x970] sm:$0xff] }
 0x45c   : > { %14275 = vmatmul.mubr.bf16.gmra.mrb[16].mxu0 %v15441_v11  ;;  %12298 = vmatpush1.bf16.msra.mxu1 %v19498_v15  ;;  %v15155_v11 = vcombine.low %v363_v61, %v399_v62  ;;  %v19546_v15 = vld [vmem:[%s20382_s15 + $0xf00] ss:$8 sps:$4 sm:$0xff]   ;;  %v669_v60 = vld [vmem:[%s20374_s5 + $0xa90] sm:$0xff] }
 0x45d   : > { %14332 = vmatpush1.bf16.msra.mxu0 %v19501_v16  ;;  %12299 = vmatprep.subr.bf16.mxu1 %v19506_v17  ;;  %v19549_v16 = vld [vmem:[%s20382_s15 + $0x2100] ss:$8 sps:$4 sm:$0xff]   ;;  %v19554_v17 = vld [vmem:[%s20382_s15 + $0xf14] ss:$8 sps:$4 sm:$0xff]  }
 0x45e   : > { %14333 = vmatprep.subr.bf16.mxu0 %v19509_v18  ;;  %12250 = vmatprep.mubr.bf16.mxu1 %v15478_v19  ;;  %v19557_v18 = vld [vmem:[%s20382_s15 + $0x2114] ss:$8 sps:$4 sm:$0xff]   ;;  %v15192_v19 = vcombine.high %v417_v9, %v453_v12  ;;  %v651_v61 = vld [vmem:[%s20374_s5 + $0xa00] sm:$0xff] }
 0x45f   : > { %14284 = vmatprep.mubr.bf16.mxu0 %v15514_v20  ;;  %v15228_v20 = vcombine.high %v435_v13, %v471_v14  ;;  %v687_v62 = vld [vmem:[%s20374_s5 + $0xb20] sm:$0xff] }
 0x460   : > { %12300 = vmatpush1.bf16.msra.mxu1 %v19504_v21  ;;  %v19552_v21 = vld [vmem:[%s20382_s15 + $0xf10] ss:$8 sps:$4 sm:$0xff]  }
 0x461   : > { %14334 = vmatpush1.bf16.msra.mxu0 %v19507_v22  ;;  %12301 = vmatprep.subr.bf16.mxu1 %v19512_v23  ;;  %v19555_v22 = vld [vmem:[%s20382_s15 + $0x2110] ss:$8 sps:$4 sm:$0xff]   ;;  %v19560_v23 = vld [vmem:[%s20382_s15 + $0xf24] ss:$8 sps:$4 sm:$0xff]  }
 0x462   : > { %14335 = vmatprep.subr.bf16.mxu0 %v19515_v24  ;;  %v19563_v24 = vld [vmem:[%s20382_s15 + $0x2124] ss:$8 sps:$4 sm:$0xff]  }
 0x463   : > { %12251 = vmatmul.mubr.bf16.gmra.mrb[20].mxu1 %v15477_v26  ;;  %v15191_v26 = vcombine.low %v417_v9, %v453_v12  ;;  %v705_v9 = vld [vmem:[%s20374_s5 + $0xbb0] sm:$0xff] }
 0x464   : > { %14285 = vmatmul.mubr.bf16.gmra.mrb[20].mxu0 %v15513_v27  ;;  %12302 = vmatpush1.bf16.msra.mxu1 %v19510_v31  ;;  %v15227_v27 = vcombine.low %v435_v13, %v471_v14  ;;  %v19558_v31 = vld [vmem:[%s20382_s15 + $0xf20] ss:$8 sps:$4 sm:$0xff]   ;;  %v741_v12 = vld [vmem:[%s20374_s5 + $0xcd0] sm:$0xff] }
 0x465   : > { %14336 = vmatpush1.bf16.msra.mxu0 %v19513_v32  ;;  %12303 = vmatprep.subr.bf16.mxu1 %v19518_v33  ;;  %v19561_v32 = vld [vmem:[%s20382_s15 + $0x2120] ss:$8 sps:$4 sm:$0xff]   ;;  %v19566_v33 = vld [vmem:[%s20382_s15 + $0xf34] ss:$8 sps:$4 sm:$0xff]  }
 0x466   : > { %14337 = vmatprep.subr.bf16.mxu0 %v19521_v34  ;;  %12260 = vmatprep.mubr.bf16.mxu1 %v15550_v35  ;;  %v19569_v34 = vld [vmem:[%s20382_s15 + $0x2134] ss:$8 sps:$4 sm:$0xff]   ;;  %v15264_v35 = vcombine.high %v489_v25, %v525_v28  ;;  %v723_v13 = vld [vmem:[%s20374_s5 + $0xc40] sm:$0xff] }
 0x467   : > { %14294 = vmatprep.mubr.bf16.mxu0 %v15586_v36  ;;  %v15300_v36 = vcombine.high %v507_v29, %v543_v30  ;;  %v759_v14 = vld [vmem:[%s20374_s5 + $0xd60] sm:$0xff] }
 0x468   : > { %12304 = vmatpush1.bf16.msra.mxu1 %v19516_v37  ;;  %v19564_v37 = vld [vmem:[%s20382_s15 + $0xf30] ss:$8 sps:$4 sm:$0xff]  }
 0x469   : > { %14338 = vmatpush1.bf16.msra.mxu0 %v19519_v38  ;;  %12305 = vmatprep.subr.bf16.mxu1 %v19524_v39  ;;  %v19567_v38 = vld [vmem:[%s20382_s15 + $0x2130] ss:$8 sps:$4 sm:$0xff]   ;;  %v19572_v39 = vld [vmem:[%s20382_s15 + $0xf44] ss:$8 sps:$4 sm:$0xff]  }
 0x46a   : > { %14339 = vmatprep.subr.bf16.mxu0 %v19527_v40  ;;  %v19575_v40 = vld [vmem:[%s20382_s15 + $0x2144] ss:$8 sps:$4 sm:$0xff]  }
 0x46b   : > { %12261 = vmatmul.mubr.bf16.gmra.mrb[24].mxu1 %v15549_v42  ;;  %v15263_v42 = vcombine.low %v489_v25, %v525_v28  ;;  %v777_v25 = vld [vmem:[%s20374_s5 + $0xdf0] sm:$0xff] }
 0x46c   : > { %14295 = vmatmul.mubr.bf16.gmra.mrb[24].mxu0 %v15585_v43  ;;  %12306 = vmatpush1.bf16.msra.mxu1 %v19522_v47  ;;  %v15299_v43 = vcombine.low %v507_v29, %v543_v30  ;;  %v19570_v47 = vld [vmem:[%s20382_s15 + $0xf40] ss:$8 sps:$4 sm:$0xff]   ;;  %v813_v28 = vld [vmem:[%s20374_s5 + $0xf10] sm:$0xff] }
 0x46d   : > { %14340 = vmatpush1.bf16.msra.mxu0 %v19525_v48  ;;  %12307 = vmatprep.subr.bf16.mxu1 %v19530_v49  ;;  %v19573_v48 = vld [vmem:[%s20382_s15 + $0x2140] ss:$8 sps:$4 sm:$0xff]   ;;  %v19578_v49 = vld [vmem:[%s20382_s15 + $0xf54] ss:$8 sps:$4 sm:$0xff]  }
 0x46e   : > { %14341 = vmatprep.subr.bf16.mxu0 %v19533_v50  ;;  %12270 = vmatprep.mubr.bf16.mxu1 %v15622_v51  ;;  %v19581_v50 = vld [vmem:[%s20382_s15 + $0x2154] ss:$8 sps:$4 sm:$0xff]   ;;  %v15336_v51 = vcombine.high %v561_v41, %v597_v44  ;;  %v795_v29 = vld [vmem:[%s20374_s5 + $0xe80] sm:$0xff] }
 0x46f   : > { %14304 = vmatprep.mubr.bf16.mxu0 %v15658_v52  ;;  %v15372_v52 = vcombine.high %v579_v45, %v615_v46  ;;  %v831_v30 = vld [vmem:[%s20374_s5 + $0xfa0] sm:$0xff] }
 0x470   : > { %12308 = vmatpush1.bf16.msra.mxu1 %v19528_v53  ;;  %v19576_v53 = vld [vmem:[%s20382_s15 + $0xf50] ss:$8 sps:$4 sm:$0xff]  }
 0x471   : > { %14342 = vmatpush1.bf16.msra.mxu0 %v19531_v54  ;;  %12309 = vmatprep.subr.bf16.mxu1 %v19536_v55  ;;  %v19579_v54 = vld [vmem:[%s20382_s15 + $0x2150] ss:$8 sps:$4 sm:$0xff]   ;;  %v19584_v55 = vld [vmem:[%s20382_s15 + $0xf64] ss:$8 sps:$4 sm:$0xff]  }
 0x472   : > { %14343 = vmatprep.subr.bf16.mxu0 %v19539_v56  ;;  %v19587_v56 = vld [vmem:[%s20382_s15 + $0x2164] ss:$8 sps:$4 sm:$0xff]  }
 0x473   : > { %12271 = vmatmul.mubr.bf16.gmra.mrb[28].mxu1 %v15621_v58  ;;  %v15335_v58 = vcombine.low %v561_v41, %v597_v44  ;;  %v849_v41 = vld [vmem:[%s20374_s5 + $0x1030] sm:$0xff] }
 0x474   : > { %14305 = vmatmul.mubr.bf16.gmra.mrb[28].mxu0 %v15657_v59  ;;  %12310 = vmatpush1.bf16.msra.mxu1 %v19534_v63  ;;  %v15371_v59 = vcombine.low %v579_v45, %v615_v46  ;;  %v19582_v63 = vld [vmem:[%s20382_s15 + $0xf60] ss:$8 sps:$4 sm:$0xff]   ;;  %v885_v44 = vld [vmem:[%s20374_s5 + $0x1150] sm:$0xff] }
 0x475   : > { %14344 = vmatpush1.bf16.msra.mxu0 %v19537_v0  ;;  %12311 = vmatprep.subr.bf16.mxu1 %v19542_v1  ;;  %v19585_v0 = vld [vmem:[%s20382_s15 + $0x2160] ss:$8 sps:$4 sm:$0xff]   ;;  %v19590_v1 = vld [vmem:[%s20382_s15 + $0xf74] ss:$8 sps:$4 sm:$0xff]  }
 0x476   : > { %14345 = vmatprep.subr.bf16.mxu0 %v19545_v2  ;;  %12313 = vmatprep.mubr.bf16.mxu1 %v15120_v3  ;;  %v19593_v2 = vld [vmem:[%s20382_s15 + $0x2174] ss:$8 sps:$4 sm:$0xff]   ;;  %v15408_v3 = vcombine.high %v633_v57, %v669_v60  ;;  %v867_v45 = vld [vmem:[%s20374_s5 + $0x10c0] sm:$0xff] }
 0x477   : > { %14347 = vmatprep.mubr.bf16.mxu0 %v15156_v4  ;;  %v15444_v4 = vcombine.high %v651_v61, %v687_v62  ;;  %v903_v46 = vld [vmem:[%s20374_s5 + $0x11e0] sm:$0xff] }
 0x478   : > { %12312 = vmatpush1.bf16.msra.mxu1 %v19540_v5  ;;  %v19588_v5 = vld [vmem:[%s20382_s15 + $0xf70] ss:$8 sps:$4 sm:$0xff]  }
 0x479   : > { %14346 = vmatpush1.bf16.msra.mxu0 %v19543_v6  ;;  %12394 = vmatprep.subr.bf16.mxu1 %v19548_v7  ;;  %v19591_v6 = vld [vmem:[%s20382_s15 + $0x2170] ss:$8 sps:$4 sm:$0xff]   ;;  %v19596_v7 = vld [vmem:[%s20382_s15 + $0xf84] ss:$8 sps:$4 sm:$0xff]  }
 0x47a   : > { %14428 = vmatprep.subr.bf16.mxu0 %v19551_v8  ;;  %v19599_v8 = vld [vmem:[%s20382_s15 + $0x2184] ss:$8 sps:$4 sm:$0xff]  }
 0x47b   : > { %12314 = vmatmul.mubr.bf16.vlgmr.msra.gmra.mrb[0].mxu1 %v15119_v10  ;;  %v15407_v10 = vcombine.low %v633_v57, %v669_v60  ;;  %v346_v57 = vld [vmem:[%s20374_s5 + $0x78] sm:$0xff] }
 0x47c   : > { %14348 = vmatmul.mubr.bf16.vlgmr.msra.gmra.mrb[0].mxu0 %v15155_v11  ;;  %12395 = vmatpush1.bf16.msra.mxu1 %v19546_v15  ;;  %v15443_v11 = vcombine.low %v651_v61, %v687_v62  ;;  %v19594_v15 = vld [vmem:[%s20382_s15 + $0xf80] ss:$8 sps:$4 sm:$0xff]   ;;  %v382_v60 = vld [vmem:[%s20374_s5 + $0x198] sm:$0xff] }
 0x47d   : > { %14429 = vmatpush1.bf16.msra.mxu0 %v19549_v16  ;;  %12396 = vmatprep.subr.bf16.mxu1 %v19554_v17  ;;  %v19597_v16 = vld [vmem:[%s20382_s15 + $0x2180] ss:$8 sps:$4 sm:$0xff]   ;;  %v19602_v17 = vld [vmem:[%s20382_s15 + $0xf94] ss:$8 sps:$4 sm:$0xff]  }
 0x47e   : > { %14430 = vmatprep.subr.bf16.mxu0 %v19557_v18  ;;  %12323 = vmatprep.mubr.bf16.mxu1 %v15192_v19  ;;  %v19605_v18 = vld [vmem:[%s20382_s15 + $0x2194] ss:$8 sps:$4 sm:$0xff]   ;;  %v15480_v19 = vcombine.high %v705_v9, %v741_v12  ;;  %v364_v61 = vld [vmem:[%s20374_s5 + $0x108] sm:$0xff] }
 0x47f   : > { %14357 = vmatprep.mubr.bf16.mxu0 %v15228_v20  ;;  %v15516_v20 = vcombine.high %v723_v13, %v759_v14  ;;  %v400_v62 = vld [vmem:[%s20374_s5 + $0x228] sm:$0xff] }
 0x480   : > { %12397 = vmatpush1.bf16.msra.mxu1 %v19552_v21  ;;  %v19600_v21 = vld [vmem:[%s20382_s15 + $0xf90] ss:$8 sps:$4 sm:$0xff]  }
 0x481   : > { %14431 = vmatpush1.bf16.msra.mxu0 %v19555_v22  ;;  %12398 = vmatprep.subr.bf16.mxu1 %v19560_v23  ;;  %v19603_v22 = vld [vmem:[%s20382_s15 + $0x2190] ss:$8 sps:$4 sm:$0xff]   ;;  %v19608_v23 = vld [vmem:[%s20382_s15 + $0xfa4] ss:$8 sps:$4 sm:$0xff]  }
 0x482   : > { %14432 = vmatprep.subr.bf16.mxu0 %v19563_v24  ;;  %v19611_v24 = vld [vmem:[%s20382_s15 + $0x21a4] ss:$8 sps:$4 sm:$0xff]  }
 0x483   : > { %12324 = vmatmul.mubr.bf16.gmra.mrb[4].mxu1 %v15191_v26  ;;  %v15479_v26 = vcombine.low %v705_v9, %v741_v12  ;;  %v418_v9 = vld [vmem:[%s20374_s5 + $0x2b8] sm:$0xff] }
 0x484   : > { %14358 = vmatmul.mubr.bf16.gmra.mrb[4].mxu0 %v15227_v27  ;;  %12399 = vmatpush1.bf16.msra.mxu1 %v19558_v31  ;;  %v15515_v27 = vcombine.low %v723_v13, %v759_v14  ;;  %v19606_v31 = vld [vmem:[%s20382_s15 + $0xfa0] ss:$8 sps:$4 sm:$0xff]   ;;  %v454_v12 = vld [vmem:[%s20374_s5 + $0x3d8] sm:$0xff] }
 0x485   : > { %14433 = vmatpush1.bf16.msra.mxu0 %v19561_v32  ;;  %12400 = vmatprep.subr.bf16.mxu1 %v19566_v33  ;;  %v19609_v32 = vld [vmem:[%s20382_s15 + $0x21a0] ss:$8 sps:$4 sm:$0xff]   ;;  %v19614_v33 = vld [vmem:[%s20382_s15 + $0xfb4] ss:$8 sps:$4 sm:$0xff]  }
 0x486   : > { %14434 = vmatprep.subr.bf16.mxu0 %v19569_v34  ;;  %12333 = vmatprep.mubr.bf16.mxu1 %v15264_v35  ;;  %v19617_v34 = vld [vmem:[%s20382_s15 + $0x21b4] ss:$8 sps:$4 sm:$0xff]   ;;  %v15552_v35 = vcombine.high %v777_v25, %v813_v28  ;;  %v436_v13 = vld [vmem:[%s20374_s5 + $0x348] sm:$0xff] }
 0x487   : > { %14367 = vmatprep.mubr.bf16.mxu0 %v15300_v36  ;;  %v15588_v36 = vcombine.high %v795_v29, %v831_v30  ;;  %v472_v14 = vld [vmem:[%s20374_s5 + $0x468] sm:$0xff] }
 0x488   : > { %12401 = vmatpush1.bf16.msra.mxu1 %v19564_v37  ;;  %v19612_v37 = vld [vmem:[%s20382_s15 + $0xfb0] ss:$8 sps:$4 sm:$0xff]  }
 0x489   : > { %14435 = vmatpush1.bf16.msra.mxu0 %v19567_v38  ;;  %12402 = vmatprep.subr.bf16.mxu1 %v19572_v39  ;;  %v19615_v38 = vld [vmem:[%s20382_s15 + $0x21b0] ss:$8 sps:$4 sm:$0xff]   ;;  %v19620_v39 = vld [vmem:[%s20382_s15 + $0xfc4] ss:$8 sps:$4 sm:$0xff]  }
 0x48a   : > { %14436 = vmatprep.subr.bf16.mxu0 %v19575_v40  ;;  %v19623_v40 = vld [vmem:[%s20382_s15 + $0x21c4] ss:$8 sps:$4 sm:$0xff]  }
 0x48b   : > { %12334 = vmatmul.mubr.bf16.gmra.mrb[8].mxu1 %v15263_v42  ;;  %v15551_v42 = vcombine.low %v777_v25, %v813_v28  ;;  %v490_v25 = vld [vmem:[%s20374_s5 + $0x4f8] sm:$0xff] }
 0x48c   : > { %14368 = vmatmul.mubr.bf16.gmra.mrb[8].mxu0 %v15299_v43  ;;  %12403 = vmatpush1.bf16.msra.mxu1 %v19570_v47  ;;  %v15587_v43 = vcombine.low %v795_v29, %v831_v30  ;;  %v19618_v47 = vld [vmem:[%s20382_s15 + $0xfc0] ss:$8 sps:$4 sm:$0xff]   ;;  %v526_v28 = vld [vmem:[%s20374_s5 + $0x618] sm:$0xff] }
 0x48d   : > { %14437 = vmatpush1.bf16.msra.mxu0 %v19573_v48  ;;  %12404 = vmatprep.subr.bf16.mxu1 %v19578_v49  ;;  %v19621_v48 = vld [vmem:[%s20382_s15 + $0x21c0] ss:$8 sps:$4 sm:$0xff]   ;;  %v19626_v49 = vld [vmem:[%s20382_s15 + $0xfd4] ss:$8 sps:$4 sm:$0xff]  }
 0x48e   : > { %14438 = vmatprep.subr.bf16.mxu0 %v19581_v50  ;;  %12343 = vmatprep.mubr.bf16.mxu1 %v15336_v51  ;;  %v19629_v50 = vld [vmem:[%s20382_s15 + $0x21d4] ss:$8 sps:$4 sm:$0xff]   ;;  %v15624_v51 = vcombine.high %v849_v41, %v885_v44  ;;  %v508_v29 = vld [vmem:[%s20374_s5 + $0x588] sm:$0xff] }
 0x48f   : > { %14377 = vmatprep.mubr.bf16.mxu0 %v15372_v52  ;;  %v15660_v52 = vcombine.high %v867_v45, %v903_v46  ;;  %v544_v30 = vld [vmem:[%s20374_s5 + $0x6a8] sm:$0xff] }
 0x490   : > { %12405 = vmatpush1.bf16.msra.mxu1 %v19576_v53  ;;  %v19624_v53 = vld [vmem:[%s20382_s15 + $0xfd0] ss:$8 sps:$4 sm:$0xff]  }
 0x491   : > { %14439 = vmatpush1.bf16.msra.mxu0 %v19579_v54  ;;  %12406 = vmatprep.subr.bf16.mxu1 %v19584_v55  ;;  %v19627_v54 = vld [vmem:[%s20382_s15 + $0x21d0] ss:$8 sps:$4 sm:$0xff]   ;;  %v19632_v55 = vld [vmem:[%s20382_s15 + $0xfe4] ss:$8 sps:$4 sm:$0xff]  }
 0x492   : > { %14440 = vmatprep.subr.bf16.mxu0 %v19587_v56  ;;  %v19635_v56 = vld [vmem:[%s20382_s15 + $0x21e4] ss:$8 sps:$4 sm:$0xff]  }
 0x493   : > { %12344 = vmatmul.mubr.bf16.gmra.mrb[12].mxu1 %v15335_v58  ;;  %v15623_v58 = vcombine.low %v849_v41, %v885_v44  ;;  %v562_v41 = vld [vmem:[%s20374_s5 + $0x738] sm:$0xff] }
 0x494   : > { %14378 = vmatmul.mubr.bf16.gmra.mrb[12].mxu0 %v15371_v59  ;;  %12407 = vmatpush1.bf16.msra.mxu1 %v19582_v63  ;;  %v15659_v59 = vcombine.low %v867_v45, %v903_v46  ;;  %v19630_v63 = vld [vmem:[%s20382_s15 + $0xfe0] ss:$8 sps:$4 sm:$0xff]   ;;  %v598_v44 = vld [vmem:[%s20374_s5 + $0x858] sm:$0xff] }
 0x495   : > { %14441 = vmatpush1.bf16.msra.mxu0 %v19585_v0  ;;  %12408 = vmatprep.subr.bf16.mxu1 %v19590_v1  ;;  %v19633_v0 = vld [vmem:[%s20382_s15 + $0x21e0] ss:$8 sps:$4 sm:$0xff]   ;;  %v19638_v1 = vld [vmem:[%s20382_s15 + $0xff4] ss:$8 sps:$4 sm:$0xff]  }
 0x496   : > { %14442 = vmatprep.subr.bf16.mxu0 %v19593_v2  ;;  %12353 = vmatprep.mubr.bf16.mxu1 %v15408_v3  ;;  %v19641_v2 = vld [vmem:[%s20382_s15 + $0x21f4] ss:$8 sps:$4 sm:$0xff]   ;;  %v15122_v3 = vcombine.high %v346_v57, %v382_v60  ;;  %v580_v45 = vld [vmem:[%s20374_s5 + $0x7c8] sm:$0xff] }
 0x497   : > { %14387 = vmatprep.mubr.bf16.mxu0 %v15444_v4  ;;  %v15158_v4 = vcombine.high %v364_v61, %v400_v62  ;;  %v616_v46 = vld [vmem:[%s20374_s5 + $0x8e8] sm:$0xff] }
 0x498   : > { %12409 = vmatpush1.bf16.msra.mxu1 %v19588_v5  ;;  %v19636_v5 = vld [vmem:[%s20382_s15 + $0xff0] ss:$8 sps:$4 sm:$0xff]  }
 0x499   : > { %14443 = vmatpush1.bf16.msra.mxu0 %v19591_v6  ;;  %12410 = vmatprep.subr.bf16.mxu1 %v19596_v7  ;;  %v19639_v6 = vld [vmem:[%s20382_s15 + $0x21f0] ss:$8 sps:$4 sm:$0xff]   ;;  %v19644_v7 = vld [vmem:[%s20382_s15 + $0x1004] ss:$8 sps:$4 sm:$0xff]  }
 0x49a   : > { %14444 = vmatprep.subr.bf16.mxu0 %v19599_v8  ;;  %v19647_v8 = vld [vmem:[%s20382_s15 + $0x2204] ss:$8 sps:$4 sm:$0xff]  }
 0x49b   : > { %12354 = vmatmul.mubr.bf16.gmra.mrb[16].mxu1 %v15407_v10  ;;  %v15121_v10 = vcombine.low %v346_v57, %v382_v60  ;;  %v634_v57 = vld [vmem:[%s20374_s5 + $0x978] sm:$0xff] }
 0x49c   : > { %14388 = vmatmul.mubr.bf16.gmra.mrb[16].mxu0 %v15443_v11  ;;  %12411 = vmatpush1.bf16.msra.mxu1 %v19594_v15  ;;  %v15157_v11 = vcombine.low %v364_v61, %v400_v62  ;;  %v19642_v15 = vld [vmem:[%s20382_s15 + $0x1000] ss:$8 sps:$4 sm:$0xff]   ;;  %v670_v60 = vld [vmem:[%s20374_s5 + $0xa98] sm:$0xff] }
 0x49d   : > { %14445 = vmatpush1.bf16.msra.mxu0 %v19597_v16  ;;  %12412 = vmatprep.subr.bf16.mxu1 %v19602_v17  ;;  %v19645_v16 = vld [vmem:[%s20382_s15 + $0x2200] ss:$8 sps:$4 sm:$0xff]   ;;  %v19650_v17 = vld [vmem:[%s20382_s15 + $0x1014] ss:$8 sps:$4 sm:$0xff]  }
 0x49e   : > { %14446 = vmatprep.subr.bf16.mxu0 %v19605_v18  ;;  %12363 = vmatprep.mubr.bf16.mxu1 %v15480_v19  ;;  %v19653_v18 = vld [vmem:[%s20382_s15 + $0x2214] ss:$8 sps:$4 sm:$0xff]   ;;  %v15194_v19 = vcombine.high %v418_v9, %v454_v12  ;;  %v652_v61 = vld [vmem:[%s20374_s5 + $0xa08] sm:$0xff] }
 0x49f   : > { %14397 = vmatprep.mubr.bf16.mxu0 %v15516_v20  ;;  %v15230_v20 = vcombine.high %v436_v13, %v472_v14  ;;  %v688_v62 = vld [vmem:[%s20374_s5 + $0xb28] sm:$0xff] }
 0x4a0   : > { %12413 = vmatpush1.bf16.msra.mxu1 %v19600_v21  ;;  %v19648_v21 = vld [vmem:[%s20382_s15 + $0x1010] ss:$8 sps:$4 sm:$0xff]  }
 0x4a1   : > { %14447 = vmatpush1.bf16.msra.mxu0 %v19603_v22  ;;  %12414 = vmatprep.subr.bf16.mxu1 %v19608_v23  ;;  %v19651_v22 = vld [vmem:[%s20382_s15 + $0x2210] ss:$8 sps:$4 sm:$0xff]   ;;  %v19656_v23 = vld [vmem:[%s20382_s15 + $0x1024] ss:$8 sps:$4 sm:$0xff]  }
 0x4a2   : > { %14448 = vmatprep.subr.bf16.mxu0 %v19611_v24  ;;  %v19659_v24 = vld [vmem:[%s20382_s15 + $0x2224] ss:$8 sps:$4 sm:$0xff]  }
 0x4a3   : > { %12364 = vmatmul.mubr.bf16.gmra.mrb[20].mxu1 %v15479_v26  ;;  %v15193_v26 = vcombine.low %v418_v9, %v454_v12  ;;  %v706_v9 = vld [vmem:[%s20374_s5 + $0xbb8] sm:$0xff] }
 0x4a4   : > { %14398 = vmatmul.mubr.bf16.gmra.mrb[20].mxu0 %v15515_v27  ;;  %12415 = vmatpush1.bf16.msra.mxu1 %v19606_v31  ;;  %v15229_v27 = vcombine.low %v436_v13, %v472_v14  ;;  %v19654_v31 = vld [vmem:[%s20382_s15 + $0x1020] ss:$8 sps:$4 sm:$0xff]   ;;  %v742_v12 = vld [vmem:[%s20374_s5 + $0xcd8] sm:$0xff] }
 0x4a5   : > { %14449 = vmatpush1.bf16.msra.mxu0 %v19609_v32  ;;  %12416 = vmatprep.subr.bf16.mxu1 %v19614_v33  ;;  %v19657_v32 = vld [vmem:[%s20382_s15 + $0x2220] ss:$8 sps:$4 sm:$0xff]   ;;  %v19662_v33 = vld [vmem:[%s20382_s15 + $0x1034] ss:$8 sps:$4 sm:$0xff]  }
 0x4a6   : > { %14450 = vmatprep.subr.bf16.mxu0 %v19617_v34  ;;  %12373 = vmatprep.mubr.bf16.mxu1 %v15552_v35  ;;  %v19665_v34 = vld [vmem:[%s20382_s15 + $0x2234] ss:$8 sps:$4 sm:$0xff]   ;;  %v15266_v35 = vcombine.high %v490_v25, %v526_v28  ;;  %v724_v13 = vld [vmem:[%s20374_s5 + $0xc48] sm:$0xff] }
 0x4a7   : > { %14407 = vmatprep.mubr.bf16.mxu0 %v15588_v36  ;;  %v15302_v36 = vcombine.high %v508_v29, %v544_v30  ;;  %v760_v14 = vld [vmem:[%s20374_s5 + $0xd68] sm:$0xff] }
 0x4a8   : > { %12417 = vmatpush1.bf16.msra.mxu1 %v19612_v37  ;;  %v19660_v37 = vld [vmem:[%s20382_s15 + $0x1030] ss:$8 sps:$4 sm:$0xff]  }
 0x4a9   : > { %14451 = vmatpush1.bf16.msra.mxu0 %v19615_v38  ;;  %12418 = vmatprep.subr.bf16.mxu1 %v19620_v39  ;;  %v19663_v38 = vld [vmem:[%s20382_s15 + $0x2230] ss:$8 sps:$4 sm:$0xff]   ;;  %v19668_v39 = vld [vmem:[%s20382_s15 + $0x1044] ss:$8 sps:$4 sm:$0xff]  }
 0x4aa   : > { %14452 = vmatprep.subr.bf16.mxu0 %v19623_v40  ;;  %v19671_v40 = vld [vmem:[%s20382_s15 + $0x2244] ss:$8 sps:$4 sm:$0xff]  }
 0x4ab   : > { %12374 = vmatmul.mubr.bf16.gmra.mrb[24].mxu1 %v15551_v42  ;;  %v15265_v42 = vcombine.low %v490_v25, %v526_v28  ;;  %v778_v25 = vld [vmem:[%s20374_s5 + $0xdf8] sm:$0xff] }
 0x4ac   : > { %14408 = vmatmul.mubr.bf16.gmra.mrb[24].mxu0 %v15587_v43  ;;  %12419 = vmatpush1.bf16.msra.mxu1 %v19618_v47  ;;  %v15301_v43 = vcombine.low %v508_v29, %v544_v30  ;;  %v19666_v47 = vld [vmem:[%s20382_s15 + $0x1040] ss:$8 sps:$4 sm:$0xff]   ;;  %v814_v28 = vld [vmem:[%s20374_s5 + $0xf18] sm:$0xff] }
 0x4ad   : > { %14453 = vmatpush1.bf16.msra.mxu0 %v19621_v48  ;;  %12420 = vmatprep.subr.bf16.mxu1 %v19626_v49  ;;  %v19669_v48 = vld [vmem:[%s20382_s15 + $0x2240] ss:$8 sps:$4 sm:$0xff]   ;;  %v19674_v49 = vld [vmem:[%s20382_s15 + $0x1054] ss:$8 sps:$4 sm:$0xff]  }
 0x4ae   : > { %14454 = vmatprep.subr.bf16.mxu0 %v19629_v50  ;;  %12383 = vmatprep.mubr.bf16.mxu1 %v15624_v51  ;;  %v19677_v50 = vld [vmem:[%s20382_s15 + $0x2254] ss:$8 sps:$4 sm:$0xff]   ;;  %v15338_v51 = vcombine.high %v562_v41, %v598_v44  ;;  %v796_v29 = vld [vmem:[%s20374_s5 + $0xe88] sm:$0xff] }
 0x4af   : > { %14417 = vmatprep.mubr.bf16.mxu0 %v15660_v52  ;;  %v15374_v52 = vcombine.high %v580_v45, %v616_v46  ;;  %v832_v30 = vld [vmem:[%s20374_s5 + $0xfa8] sm:$0xff] }
 0x4b0   : > { %12421 = vmatpush1.bf16.msra.mxu1 %v19624_v53  ;;  %v19672_v53 = vld [vmem:[%s20382_s15 + $0x1050] ss:$8 sps:$4 sm:$0xff]  }
 0x4b1   : > { %14455 = vmatpush1.bf16.msra.mxu0 %v19627_v54  ;;  %12422 = vmatprep.subr.bf16.mxu1 %v19632_v55  ;;  %v19675_v54 = vld [vmem:[%s20382_s15 + $0x2250] ss:$8 sps:$4 sm:$0xff]   ;;  %v19680_v55 = vld [vmem:[%s20382_s15 + $0x1064] ss:$8 sps:$4 sm:$0xff]  }
 0x4b2   : > { %14456 = vmatprep.subr.bf16.mxu0 %v19635_v56  ;;  %v19683_v56 = vld [vmem:[%s20382_s15 + $0x2264] ss:$8 sps:$4 sm:$0xff]  }
 0x4b3   : > { %12384 = vmatmul.mubr.bf16.gmra.mrb[28].mxu1 %v15623_v58  ;;  %v15337_v58 = vcombine.low %v562_v41, %v598_v44  ;;  %v850_v41 = vld [vmem:[%s20374_s5 + $0x1038] sm:$0xff] }
 0x4b4   : > { %14418 = vmatmul.mubr.bf16.gmra.mrb[28].mxu0 %v15659_v59  ;;  %12423 = vmatpush1.bf16.msra.mxu1 %v19630_v63  ;;  %v15373_v59 = vcombine.low %v580_v45, %v616_v46  ;;  %v19678_v63 = vld [vmem:[%s20382_s15 + $0x1060] ss:$8 sps:$4 sm:$0xff]   ;;  %v886_v44 = vld [vmem:[%s20374_s5 + $0x1158] sm:$0xff] }
 0x4b5   : > { %14457 = vmatpush1.bf16.msra.mxu0 %v19633_v0  ;;  %12424 = vmatprep.subr.bf16.mxu1 %v19638_v1  ;;  %v19681_v0 = vld [vmem:[%s20382_s15 + $0x2260] ss:$8 sps:$4 sm:$0xff]   ;;  %v19686_v1 = vld [vmem:[%s20382_s15 + $0x1074] ss:$8 sps:$4 sm:$0xff]  }
 0x4b6   : > { %14458 = vmatprep.subr.bf16.mxu0 %v19641_v2  ;;  %12426 = vmatprep.mubr.bf16.mxu1 %v15122_v3  ;;  %v19689_v2 = vld [vmem:[%s20382_s15 + $0x2274] ss:$8 sps:$4 sm:$0xff]   ;;  %v15410_v3 = vcombine.high %v634_v57, %v670_v60  ;;  %v868_v45 = vld [vmem:[%s20374_s5 + $0x10c8] sm:$0xff] }
 0x4b7   : > { %14460 = vmatprep.mubr.bf16.mxu0 %v15158_v4  ;;  %v15446_v4 = vcombine.high %v652_v61, %v688_v62  ;;  %v904_v46 = vld [vmem:[%s20374_s5 + $0x11e8] sm:$0xff] }
 0x4b8   : > { %12425 = vmatpush1.bf16.msra.mxu1 %v19636_v5  ;;  %v19684_v5 = vld [vmem:[%s20382_s15 + $0x1070] ss:$8 sps:$4 sm:$0xff]  }
 0x4b9   : > { %14459 = vmatpush1.bf16.msra.mxu0 %v19639_v6  ;;  %12507 = vmatprep.subr.bf16.mxu1 %v19644_v7  ;;  %v19687_v6 = vld [vmem:[%s20382_s15 + $0x2270] ss:$8 sps:$4 sm:$0xff]   ;;  %v19692_v7 = vld [vmem:[%s20382_s15 + $0x1084] ss:$8 sps:$4 sm:$0xff]  }
 0x4ba   : > { %14541 = vmatprep.subr.bf16.mxu0 %v19647_v8  ;;  %v19695_v8 = vld [vmem:[%s20382_s15 + $0x2284] ss:$8 sps:$4 sm:$0xff]  }
 0x4bb   : > { %12427 = vmatmul.mubr.bf16.vlgmr.msra.gmra.mrb[0].mxu1 %v15121_v10  ;;  %v15409_v10 = vcombine.low %v634_v57, %v670_v60  ;;  %v347_v57 = vld [vmem:[%s20374_s5 + $0x80] sm:$0xff] }
 0x4bc   : > { %14461 = vmatmul.mubr.bf16.vlgmr.msra.gmra.mrb[0].mxu0 %v15157_v11  ;;  %12508 = vmatpush1.bf16.msra.mxu1 %v19642_v15  ;;  %v15445_v11 = vcombine.low %v652_v61, %v688_v62  ;;  %v19690_v15 = vld [vmem:[%s20382_s15 + $0x1080] ss:$8 sps:$4 sm:$0xff]   ;;  %v365_v61 = vld [vmem:[%s20374_s5 + $0x110] sm:$0xff] }
 0x4bd   : > { %14542 = vmatpush1.bf16.msra.mxu0 %v19645_v16  ;;  %12509 = vmatprep.subr.bf16.mxu1 %v19650_v17  ;;  %v19693_v16 = vld [vmem:[%s20382_s15 + $0x2280] ss:$8 sps:$4 sm:$0xff]   ;;  %v19698_v17 = vld [vmem:[%s20382_s15 + $0x1094] ss:$8 sps:$4 sm:$0xff]  }
 0x4be   : > { %14543 = vmatprep.subr.bf16.mxu0 %v19653_v18  ;;  %12436 = vmatprep.mubr.bf16.mxu1 %v15194_v19  ;;  %v19701_v18 = vld [vmem:[%s20382_s15 + $0x2294] ss:$8 sps:$4 sm:$0xff]   ;;  %v15482_v19 = vcombine.high %v706_v9, %v742_v12  ;;  %v383_v60 = vld [vmem:[%s20374_s5 + $0x1a0] sm:$0xff] }
 0x4bf   : > { %14470 = vmatprep.mubr.bf16.mxu0 %v15230_v20  ;;  %v15518_v20 = vcombine.high %v724_v13, %v760_v14  ;;  %v401_v62 = vld [vmem:[%s20374_s5 + $0x230] sm:$0xff] }
 0x4c0   : > { %12510 = vmatpush1.bf16.msra.mxu1 %v19648_v21  ;;  %v19696_v21 = vld [vmem:[%s20382_s15 + $0x1090] ss:$8 sps:$4 sm:$0xff]  }
 0x4c1   : > { %14544 = vmatpush1.bf16.msra.mxu0 %v19651_v22  ;;  %12511 = vmatprep.subr.bf16.mxu1 %v19656_v23  ;;  %v19699_v22 = vld [vmem:[%s20382_s15 + $0x2290] ss:$8 sps:$4 sm:$0xff]   ;;  %v19704_v23 = vld [vmem:[%s20382_s15 + $0x10a4] ss:$8 sps:$4 sm:$0xff]  }
 0x4c2   : > { %14545 = vmatprep.subr.bf16.mxu0 %v19659_v24  ;;  %v19707_v24 = vld [vmem:[%s20382_s15 + $0x22a4] ss:$8 sps:$4 sm:$0xff]  }
 0x4c3   : > { %12437 = vmatmul.mubr.bf16.gmra.mrb[4].mxu1 %v15193_v26  ;;  %v15481_v26 = vcombine.low %v706_v9, %v742_v12  ;;  %v419_v9 = vld [vmem:[%s20374_s5 + $0x2c0] sm:$0xff] }
 0x4c4   : > { %14471 = vmatmul.mubr.bf16.gmra.mrb[4].mxu0 %v15229_v27  ;;  %12512 = vmatpush1.bf16.msra.mxu1 %v19654_v31  ;;  %v15517_v27 = vcombine.low %v724_v13, %v760_v14  ;;  %v19702_v31 = vld [vmem:[%s20382_s15 + $0x10a0] ss:$8 sps:$4 sm:$0xff]   ;;  %v437_v13 = vld [vmem:[%s20374_s5 + $0x350] sm:$0xff] }
 0x4c5   : > { %14546 = vmatpush1.bf16.msra.mxu0 %v19657_v32  ;;  %12513 = vmatprep.subr.bf16.mxu1 %v19662_v33  ;;  %v19705_v32 = vld [vmem:[%s20382_s15 + $0x22a0] ss:$8 sps:$4 sm:$0xff]   ;;  %v19710_v33 = vld [vmem:[%s20382_s15 + $0x10b4] ss:$8 sps:$4 sm:$0xff]  }
 0x4c6   : > { %14547 = vmatprep.subr.bf16.mxu0 %v19665_v34  ;;  %12446 = vmatprep.mubr.bf16.mxu1 %v15266_v35  ;;  %v19713_v34 = vld [vmem:[%s20382_s15 + $0x22b4] ss:$8 sps:$4 sm:$0xff]   ;;  %v15554_v35 = vcombine.high %v778_v25, %v814_v28  ;;  %v455_v12 = vld [vmem:[%s20374_s5 + $0x3e0] sm:$0xff] }
 0x4c7   : > { %14480 = vmatprep.mubr.bf16.mxu0 %v15302_v36  ;;  %v15590_v36 = vcombine.high %v796_v29, %v832_v30  ;;  %v473_v14 = vld [vmem:[%s20374_s5 + $0x470] sm:$0xff] }
 0x4c8   : > { %12514 = vmatpush1.bf16.msra.mxu1 %v19660_v37  ;;  %v19708_v37 = vld [vmem:[%s20382_s15 + $0x10b0] ss:$8 sps:$4 sm:$0xff]  }
 0x4c9   : > { %14548 = vmatpush1.bf16.msra.mxu0 %v19663_v38  ;;  %12515 = vmatprep.subr.bf16.mxu1 %v19668_v39  ;;  %v19711_v38 = vld [vmem:[%s20382_s15 + $0x22b0] ss:$8 sps:$4 sm:$0xff]   ;;  %v19716_v39 = vld [vmem:[%s20382_s15 + $0x10c4] ss:$8 sps:$4 sm:$0xff]  }
 0x4ca   : > { %14549 = vmatprep.subr.bf16.mxu0 %v19671_v40  ;;  %v19719_v40 = vld [vmem:[%s20382_s15 + $0x22c4] ss:$8 sps:$4 sm:$0xff]  }
 0x4cb   : > { %12447 = vmatmul.mubr.bf16.gmra.mrb[8].mxu1 %v15265_v42  ;;  %v15553_v42 = vcombine.low %v778_v25, %v814_v28  ;;  %v491_v25 = vld [vmem:[%s20374_s5 + $0x500] sm:$0xff] }
 0x4cc   : > { %14481 = vmatmul.mubr.bf16.gmra.mrb[8].mxu0 %v15301_v43  ;;  %12516 = vmatpush1.bf16.msra.mxu1 %v19666_v47  ;;  %v15589_v43 = vcombine.low %v796_v29, %v832_v30  ;;  %v19714_v47 = vld [vmem:[%s20382_s15 + $0x10c0] ss:$8 sps:$4 sm:$0xff]   ;;  %v509_v29 = vld [vmem:[%s20374_s5 + $0x590] sm:$0xff] }
 0x4cd   : > { %14550 = vmatpush1.bf16.msra.mxu0 %v19669_v48  ;;  %12517 = vmatprep.subr.bf16.mxu1 %v19674_v49  ;;  %v19717_v48 = vld [vmem:[%s20382_s15 + $0x22c0] ss:$8 sps:$4 sm:$0xff]   ;;  %v19722_v49 = vld [vmem:[%s20382_s15 + $0x10d4] ss:$8 sps:$4 sm:$0xff]  }
 0x4ce   : > { %14551 = vmatprep.subr.bf16.mxu0 %v19677_v50  ;;  %12456 = vmatprep.mubr.bf16.mxu1 %v15338_v51  ;;  %v19725_v50 = vld [vmem:[%s20382_s15 + $0x22d4] ss:$8 sps:$4 sm:$0xff]   ;;  %v15626_v51 = vcombine.high %v850_v41, %v886_v44  ;;  %v527_v28 = vld [vmem:[%s20374_s5 + $0x620] sm:$0xff] }
 0x4cf   : > { %14490 = vmatprep.mubr.bf16.mxu0 %v15374_v52  ;;  %v15662_v52 = vcombine.high %v868_v45, %v904_v46  ;;  %v545_v30 = vld [vmem:[%s20374_s5 + $0x6b0] sm:$0xff] }
 0x4d0   : > { %12518 = vmatpush1.bf16.msra.mxu1 %v19672_v53  ;;  %v19720_v53 = vld [vmem:[%s20382_s15 + $0x10d0] ss:$8 sps:$4 sm:$0xff]  }
 0x4d1   : > { %14552 = vmatpush1.bf16.msra.mxu0 %v19675_v54  ;;  %12519 = vmatprep.subr.bf16.mxu1 %v19680_v55  ;;  %v19723_v54 = vld [vmem:[%s20382_s15 + $0x22d0] ss:$8 sps:$4 sm:$0xff]   ;;  %v19728_v55 = vld [vmem:[%s20382_s15 + $0x10e4] ss:$8 sps:$4 sm:$0xff]  }
 0x4d2   : > { %14553 = vmatprep.subr.bf16.mxu0 %v19683_v56  ;;  %v19731_v56 = vld [vmem:[%s20382_s15 + $0x22e4] ss:$8 sps:$4 sm:$0xff]  }
 0x4d3   : > { %12457 = vmatmul.mubr.bf16.gmra.mrb[12].mxu1 %v15337_v58  ;;  %v15625_v58 = vcombine.low %v850_v41, %v886_v44  ;;  %v563_v41 = vld [vmem:[%s20374_s5 + $0x740] sm:$0xff] }
 0x4d4   : > { %14491 = vmatmul.mubr.bf16.gmra.mrb[12].mxu0 %v15373_v59  ;;  %12520 = vmatpush1.bf16.msra.mxu1 %v19678_v63  ;;  %v15661_v59 = vcombine.low %v868_v45, %v904_v46  ;;  %v19726_v63 = vld [vmem:[%s20382_s15 + $0x10e0] ss:$8 sps:$4 sm:$0xff]   ;;  %v581_v45 = vld [vmem:[%s20374_s5 + $0x7d0] sm:$0xff] }
 0x4d5   : > { %14554 = vmatpush1.bf16.msra.mxu0 %v19681_v0  ;;  %12521 = vmatprep.subr.bf16.mxu1 %v19686_v1  ;;  %v19729_v0 = vld [vmem:[%s20382_s15 + $0x22e0] ss:$8 sps:$4 sm:$0xff]   ;;  %v19734_v1 = vld [vmem:[%s20382_s15 + $0x10f4] ss:$8 sps:$4 sm:$0xff]  }
 0x4d6   : > { %14555 = vmatprep.subr.bf16.mxu0 %v19689_v2  ;;  %12466 = vmatprep.mubr.bf16.mxu1 %v15410_v3  ;;  %v19737_v2 = vld [vmem:[%s20382_s15 + $0x22f4] ss:$8 sps:$4 sm:$0xff]   ;;  %v15124_v3 = vcombine.high %v347_v57, %v383_v60  ;;  %v599_v44 = vld [vmem:[%s20374_s5 + $0x860] sm:$0xff] }
 0x4d7   : > { %14500 = vmatprep.mubr.bf16.mxu0 %v15446_v4  ;;  %v15160_v4 = vcombine.high %v365_v61, %v401_v62  ;;  %v617_v46 = vld [vmem:[%s20374_s5 + $0x8f0] sm:$0xff] }
 0x4d8   : > { %12522 = vmatpush1.bf16.msra.mxu1 %v19684_v5  ;;  %v19732_v5 = vld [vmem:[%s20382_s15 + $0x10f0] ss:$8 sps:$4 sm:$0xff]  }
 0x4d9   : > { %14556 = vmatpush1.bf16.msra.mxu0 %v19687_v6  ;;  %12523 = vmatprep.subr.bf16.mxu1 %v19692_v7  ;;  %v19735_v6 = vld [vmem:[%s20382_s15 + $0x22f0] ss:$8 sps:$4 sm:$0xff]   ;;  %v19740_v7 = vld [vmem:[%s20382_s15 + $0x1104] ss:$8 sps:$4 sm:$0xff]  }
 0x4da   : > { %14557 = vmatprep.subr.bf16.mxu0 %v19695_v8  ;;  %v19743_v8 = vld [vmem:[%s20382_s15 + $0x2304] ss:$8 sps:$4 sm:$0xff]  }
 0x4db   : > { %12467 = vmatmul.mubr.bf16.gmra.mrb[16].mxu1 %v15409_v10  ;;  %v15123_v10 = vcombine.low %v347_v57, %v383_v60  ;;  %v635_v57 = vld [vmem:[%s20374_s5 + $0x980] sm:$0xff] }
 0x4dc   : > { %14501 = vmatmul.mubr.bf16.gmra.mrb[16].mxu0 %v15445_v11  ;;  %12524 = vmatpush1.bf16.msra.mxu1 %v19690_v15  ;;  %v15159_v11 = vcombine.low %v365_v61, %v401_v62  ;;  %v19738_v15 = vld [vmem:[%s20382_s15 + $0x1100] ss:$8 sps:$4 sm:$0xff]   ;;  %v653_v61 = vld [vmem:[%s20374_s5 + $0xa10] sm:$0xff] }
 0x4dd   : > { %14558 = vmatpush1.bf16.msra.mxu0 %v19693_v16  ;;  %12525 = vmatprep.subr.bf16.mxu1 %v19698_v17  ;;  %v19741_v16 = vld [vmem:[%s20382_s15 + $0x2300] ss:$8 sps:$4 sm:$0xff]   ;;  %v19746_v17 = vld [vmem:[%s20382_s15 + $0x1114] ss:$8 sps:$4 sm:$0xff]  }
 0x4de   : > { %14559 = vmatprep.subr.bf16.mxu0 %v19701_v18  ;;  %12476 = vmatprep.mubr.bf16.mxu1 %v15482_v19  ;;  %v19749_v18 = vld [vmem:[%s20382_s15 + $0x2314] ss:$8 sps:$4 sm:$0xff]   ;;  %v15196_v19 = vcombine.high %v419_v9, %v455_v12  ;;  %v671_v60 = vld [vmem:[%s20374_s5 + $0xaa0] sm:$0xff] }
 0x4df   : > { %14510 = vmatprep.mubr.bf16.mxu0 %v15518_v20  ;;  %v15232_v20 = vcombine.high %v437_v13, %v473_v14  ;;  %v689_v62 = vld [vmem:[%s20374_s5 + $0xb30] sm:$0xff] }
 0x4e0   : > { %12526 = vmatpush1.bf16.msra.mxu1 %v19696_v21  ;;  %v19744_v21 = vld [vmem:[%s20382_s15 + $0x1110] ss:$8 sps:$4 sm:$0xff]  }
 0x4e1   : > { %14560 = vmatpush1.bf16.msra.mxu0 %v19699_v22  ;;  %12527 = vmatprep.subr.bf16.mxu1 %v19704_v23  ;;  %v19747_v22 = vld [vmem:[%s20382_s15 + $0x2310] ss:$8 sps:$4 sm:$0xff]   ;;  %v19752_v23 = vld [vmem:[%s20382_s15 + $0x1124] ss:$8 sps:$4 sm:$0xff]  }
 0x4e2   : > { %14561 = vmatprep.subr.bf16.mxu0 %v19707_v24  ;;  %v19755_v24 = vld [vmem:[%s20382_s15 + $0x2324] ss:$8 sps:$4 sm:$0xff]  }
 0x4e3   : > { %12477 = vmatmul.mubr.bf16.gmra.mrb[20].mxu1 %v15481_v26  ;;  %v15195_v26 = vcombine.low %v419_v9, %v455_v12  ;;  %v707_v9 = vld [vmem:[%s20374_s5 + $0xbc0] sm:$0xff] }
 0x4e4   : > { %14511 = vmatmul.mubr.bf16.gmra.mrb[20].mxu0 %v15517_v27  ;;  %12528 = vmatpush1.bf16.msra.mxu1 %v19702_v31  ;;  %v15231_v27 = vcombine.low %v437_v13, %v473_v14  ;;  %v19750_v31 = vld [vmem:[%s20382_s15 + $0x1120] ss:$8 sps:$4 sm:$0xff]   ;;  %v725_v13 = vld [vmem:[%s20374_s5 + $0xc50] sm:$0xff] }
 0x4e5   : > { %14562 = vmatpush1.bf16.msra.mxu0 %v19705_v32  ;;  %12529 = vmatprep.subr.bf16.mxu1 %v19710_v33  ;;  %v19753_v32 = vld [vmem:[%s20382_s15 + $0x2320] ss:$8 sps:$4 sm:$0xff]   ;;  %v19758_v33 = vld [vmem:[%s20382_s15 + $0x1134] ss:$8 sps:$4 sm:$0xff]  }
 0x4e6   : > { %14563 = vmatprep.subr.bf16.mxu0 %v19713_v34  ;;  %12486 = vmatprep.mubr.bf16.mxu1 %v15554_v35  ;;  %v19761_v34 = vld [vmem:[%s20382_s15 + $0x2334] ss:$8 sps:$4 sm:$0xff]   ;;  %v15268_v35 = vcombine.high %v491_v25, %v527_v28  ;;  %v743_v12 = vld [vmem:[%s20374_s5 + $0xce0] sm:$0xff] }
 0x4e7   : > { %14520 = vmatprep.mubr.bf16.mxu0 %v15590_v36  ;;  %v15304_v36 = vcombine.high %v509_v29, %v545_v30  ;;  %v761_v14 = vld [vmem:[%s20374_s5 + $0xd70] sm:$0xff] }
 0x4e8   : > { %12530 = vmatpush1.bf16.msra.mxu1 %v19708_v37  ;;  %v19756_v37 = vld [vmem:[%s20382_s15 + $0x1130] ss:$8 sps:$4 sm:$0xff]  }
 0x4e9   : > { %14564 = vmatpush1.bf16.msra.mxu0 %v19711_v38  ;;  %12531 = vmatprep.subr.bf16.mxu1 %v19716_v39  ;;  %v19759_v38 = vld [vmem:[%s20382_s15 + $0x2330] ss:$8 sps:$4 sm:$0xff]   ;;  %v19764_v39 = vld [vmem:[%s20382_s15 + $0x1144] ss:$8 sps:$4 sm:$0xff]  }
 0x4ea   : > { %14565 = vmatprep.subr.bf16.mxu0 %v19719_v40  ;;  %v19767_v40 = vld [vmem:[%s20382_s15 + $0x2344] ss:$8 sps:$4 sm:$0xff]  }
 0x4eb   : > { %12487 = vmatmul.mubr.bf16.gmra.mrb[24].mxu1 %v15553_v42  ;;  %v15267_v42 = vcombine.low %v491_v25, %v527_v28  ;;  %v779_v25 = vld [vmem:[%s20374_s5 + $0xe00] sm:$0xff] }
 0x4ec   : > { %14521 = vmatmul.mubr.bf16.gmra.mrb[24].mxu0 %v15589_v43  ;;  %12532 = vmatpush1.bf16.msra.mxu1 %v19714_v47  ;;  %v15303_v43 = vcombine.low %v509_v29, %v545_v30  ;;  %v19762_v47 = vld [vmem:[%s20382_s15 + $0x1140] ss:$8 sps:$4 sm:$0xff]   ;;  %v797_v29 = vld [vmem:[%s20374_s5 + $0xe90] sm:$0xff] }
 0x4ed   : > { %14566 = vmatpush1.bf16.msra.mxu0 %v19717_v48  ;;  %12533 = vmatprep.subr.bf16.mxu1 %v19722_v49  ;;  %v19765_v48 = vld [vmem:[%s20382_s15 + $0x2340] ss:$8 sps:$4 sm:$0xff]   ;;  %v19770_v49 = vld [vmem:[%s20382_s15 + $0x1154] ss:$8 sps:$4 sm:$0xff]  }
 0x4ee   : > { %14567 = vmatprep.subr.bf16.mxu0 %v19725_v50  ;;  %12496 = vmatprep.mubr.bf16.mxu1 %v15626_v51  ;;  %v19773_v50 = vld [vmem:[%s20382_s15 + $0x2354] ss:$8 sps:$4 sm:$0xff]   ;;  %v15340_v51 = vcombine.high %v563_v41, %v599_v44  ;;  %v815_v28 = vld [vmem:[%s20374_s5 + $0xf20] sm:$0xff] }
 0x4ef   : > { %14530 = vmatprep.mubr.bf16.mxu0 %v15662_v52  ;;  %v15376_v52 = vcombine.high %v581_v45, %v617_v46  ;;  %v833_v30 = vld [vmem:[%s20374_s5 + $0xfb0] sm:$0xff] }
 0x4f0   : > { %12534 = vmatpush1.bf16.msra.mxu1 %v19720_v53  ;;  %v19768_v53 = vld [vmem:[%s20382_s15 + $0x1150] ss:$8 sps:$4 sm:$0xff]  }
 0x4f1   : > { %14568 = vmatpush1.bf16.msra.mxu0 %v19723_v54  ;;  %12535 = vmatprep.subr.bf16.mxu1 %v19728_v55  ;;  %v19771_v54 = vld [vmem:[%s20382_s15 + $0x2350] ss:$8 sps:$4 sm:$0xff]   ;;  %v19776_v55 = vld [vmem:[%s20382_s15 + $0x1164] ss:$8 sps:$4 sm:$0xff]  }
 0x4f2   : > { %14569 = vmatprep.subr.bf16.mxu0 %v19731_v56  ;;  %v19779_v56 = vld [vmem:[%s20382_s15 + $0x2364] ss:$8 sps:$4 sm:$0xff]  }
 0x4f3   : > { %12497 = vmatmul.mubr.bf16.gmra.mrb[28].mxu1 %v15625_v58  ;;  %v15339_v58 = vcombine.low %v563_v41, %v599_v44  ;;  %v851_v41 = vld [vmem:[%s20374_s5 + $0x1040] sm:$0xff] }
 0x4f4   : > { %14531 = vmatmul.mubr.bf16.gmra.mrb[28].mxu0 %v15661_v59  ;;  %12536 = vmatpush1.bf16.msra.mxu1 %v19726_v63  ;;  %v15375_v59 = vcombine.low %v581_v45, %v617_v46  ;;  %v19774_v63 = vld [vmem:[%s20382_s15 + $0x1160] ss:$8 sps:$4 sm:$0xff]   ;;  %v869_v45 = vld [vmem:[%s20374_s5 + $0x10d0] sm:$0xff] }
 0x4f5   : > { %14570 = vmatpush1.bf16.msra.mxu0 %v19729_v0  ;;  %12537 = vmatprep.subr.bf16.mxu1 %v19734_v1  ;;  %v19777_v0 = vld [vmem:[%s20382_s15 + $0x2360] ss:$8 sps:$4 sm:$0xff]   ;;  %v19782_v1 = vld [vmem:[%s20382_s15 + $0x1174] ss:$8 sps:$4 sm:$0xff]  }
 0x4f6   : > { %14571 = vmatprep.subr.bf16.mxu0 %v19737_v2  ;;  %12539 = vmatprep.mubr.bf16.mxu1 %v15124_v3  ;;  %v19785_v2 = vld [vmem:[%s20382_s15 + $0x2374] ss:$8 sps:$4 sm:$0xff]   ;;  %v15412_v3 = vcombine.high %v635_v57, %v671_v60  ;;  %v887_v44 = vld [vmem:[%s20374_s5 + $0x1160] sm:$0xff] }
 0x4f7   : > { %14573 = vmatprep.mubr.bf16.mxu0 %v15160_v4  ;;  %v15448_v4 = vcombine.high %v653_v61, %v689_v62  ;;  %v905_v46 = vld [vmem:[%s20374_s5 + $0x11f0] sm:$0xff] }
 0x4f8   : > { %12538 = vmatpush1.bf16.msra.mxu1 %v19732_v5  ;;  %v19780_v5 = vld [vmem:[%s20382_s15 + $0x1170] ss:$8 sps:$4 sm:$0xff]  }
 0x4f9   : > { %14572 = vmatpush1.bf16.msra.mxu0 %v19735_v6  ;;  %12620 = vmatprep.subr.bf16.mxu1 %v19740_v7  ;;  %v19783_v6 = vld [vmem:[%s20382_s15 + $0x2370] ss:$8 sps:$4 sm:$0xff]   ;;  %v19788_v7 = vld [vmem:[%s20382_s15 + $0x1184] ss:$8 sps:$4 sm:$0xff]  }
 0x4fa   : > { %14654 = vmatprep.subr.bf16.mxu0 %v19743_v8  ;;  %v19791_v8 = vld [vmem:[%s20382_s15 + $0x2384] ss:$8 sps:$4 sm:$0xff]  }
 0x4fb   : > { %12540 = vmatmul.mubr.bf16.vlgmr.msra.gmra.mrb[0].mxu1 %v15123_v10  ;;  %v15411_v10 = vcombine.low %v635_v57, %v671_v60  ;;  %v348_v57 = vld [vmem:[%s20374_s5 + $0x88] sm:$0xff] }
 0x4fc   : > { %14574 = vmatmul.mubr.bf16.vlgmr.msra.gmra.mrb[0].mxu0 %v15159_v11  ;;  %12621 = vmatpush1.bf16.msra.mxu1 %v19738_v15  ;;  %v15447_v11 = vcombine.low %v653_v61, %v689_v62  ;;  %v19786_v15 = vld [vmem:[%s20382_s15 + $0x1180] ss:$8 sps:$4 sm:$0xff]   ;;  %v366_v61 = vld [vmem:[%s20374_s5 + $0x118] sm:$0xff] }
 0x4fd   : > { %14655 = vmatpush1.bf16.msra.mxu0 %v19741_v16  ;;  %12622 = vmatprep.subr.bf16.mxu1 %v19746_v17  ;;  %v19789_v16 = vld [vmem:[%s20382_s15 + $0x2380] ss:$8 sps:$4 sm:$0xff]   ;;  %v19794_v17 = vld [vmem:[%s20382_s15 + $0x1194] ss:$8 sps:$4 sm:$0xff]  }
 0x4fe   : > { %14656 = vmatprep.subr.bf16.mxu0 %v19749_v18  ;;  %12549 = vmatprep.mubr.bf16.mxu1 %v15196_v19  ;;  %v19797_v18 = vld [vmem:[%s20382_s15 + $0x2394] ss:$8 sps:$4 sm:$0xff]   ;;  %v15484_v19 = vcombine.high %v707_v9, %v743_v12  ;;  %v384_v60 = vld [vmem:[%s20374_s5 + $0x1a8] sm:$0xff] }
 0x4ff   : > { %14583 = vmatprep.mubr.bf16.mxu0 %v15232_v20  ;;  %v15520_v20 = vcombine.high %v725_v13, %v761_v14  ;;  %v402_v62 = vld [vmem:[%s20374_s5 + $0x238] sm:$0xff] }
 0x500   : > { %12623 = vmatpush1.bf16.msra.mxu1 %v19744_v21  ;;  %v19792_v21 = vld [vmem:[%s20382_s15 + $0x1190] ss:$8 sps:$4 sm:$0xff]  }
 0x501   : > { %14657 = vmatpush1.bf16.msra.mxu0 %v19747_v22  ;;  %12624 = vmatprep.subr.bf16.mxu1 %v19752_v23  ;;  %v19795_v22 = vld [vmem:[%s20382_s15 + $0x2390] ss:$8 sps:$4 sm:$0xff]   ;;  %v19800_v23 = vld [vmem:[%s20382_s15 + $0x11a4] ss:$8 sps:$4 sm:$0xff]  }
 0x502   : > { %14658 = vmatprep.subr.bf16.mxu0 %v19755_v24  ;;  %v19803_v24 = vld [vmem:[%s20382_s15 + $0x23a4] ss:$8 sps:$4 sm:$0xff]  }
 0x503   : > { %12550 = vmatmul.mubr.bf16.gmra.mrb[4].mxu1 %v15195_v26  ;;  %v15483_v26 = vcombine.low %v707_v9, %v743_v12  ;;  %v438_v9 = vld [vmem:[%s20374_s5 + $0x358] sm:$0xff]  ;;  %v15161_v12 = vcombine.low %v366_v61, %v402_v62 }
 0x504   : > { %14584 = vmatmul.mubr.bf16.gmra.mrb[4].mxu0 %v15231_v27  ;;  %12625 = vmatpush1.bf16.msra.mxu1 %v19750_v31  ;;  %v15519_v27 = vcombine.low %v725_v13, %v761_v14  ;;  %v19798_v31 = vld [vmem:[%s20382_s15 + $0x11a0] ss:$8 sps:$4 sm:$0xff]  }
 0x505   : > { %14659 = vmatpush1.bf16.msra.mxu0 %v19753_v32  ;;  %12626 = vmatprep.subr.bf16.mxu1 %v19758_v33  ;;  %v19801_v32 = vld [vmem:[%s20382_s15 + $0x23a0] ss:$8 sps:$4 sm:$0xff]   ;;  %v19806_v33 = vld [vmem:[%s20382_s15 + $0x11b4] ss:$8 sps:$4 sm:$0xff]  }
 0x506   : > { %14660 = vmatprep.subr.bf16.mxu0 %v19761_v34  ;;  %12559 = vmatprep.mubr.bf16.mxu1 %v15268_v35  ;;  %v19809_v34 = vld [vmem:[%s20382_s15 + $0x23b4] ss:$8 sps:$4 sm:$0xff]   ;;  %v15556_v35 = vcombine.high %v779_v25, %v815_v28 }
 0x507   : > { %14593 = vmatprep.mubr.bf16.mxu0 %v15304_v36  ;;  %v15592_v36 = vcombine.high %v797_v29, %v833_v30 }
 0x508   : > { %12627 = vmatpush1.bf16.msra.mxu1 %v19756_v37  ;;  %v19804_v37 = vld [vmem:[%s20382_s15 + $0x11b0] ss:$8 sps:$4 sm:$0xff]  }
 0x509   : > { %14661 = vmatpush1.bf16.msra.mxu0 %v19759_v38  ;;  %12628 = vmatprep.subr.bf16.mxu1 %v19764_v39  ;;  %v19807_v38 = vld [vmem:[%s20382_s15 + $0x23b0] ss:$8 sps:$4 sm:$0xff]   ;;  %v19812_v39 = vld [vmem:[%s20382_s15 + $0x11c4] ss:$8 sps:$4 sm:$0xff]  }
 0x50a   : > { %14662 = vmatprep.subr.bf16.mxu0 %v19767_v40  ;;  %v19815_v40 = vld [vmem:[%s20382_s15 + $0x23c4] ss:$8 sps:$4 sm:$0xff]  }
 0x50b   : > { %12560 = vmatmul.mubr.bf16.gmra.mrb[8].mxu1 %v15267_v42  ;;  %v15555_v42 = vcombine.low %v779_v25, %v815_v28  ;;  %v582_v25 = vld [vmem:[%s20374_s5 + $0x7d8] sm:$0xff] }
 0x50c   : > { %14594 = vmatmul.mubr.bf16.gmra.mrb[8].mxu0 %v15303_v43  ;;  %12629 = vmatpush1.bf16.msra.mxu1 %v19762_v47  ;;  %v15591_v43 = vcombine.low %v797_v29, %v833_v30  ;;  %v19810_v47 = vld [vmem:[%s20382_s15 + $0x11c0] ss:$8 sps:$4 sm:$0xff]  }
 0x50d   : > { %14663 = vmatpush1.bf16.msra.mxu0 %v19765_v48  ;;  %12630 = vmatprep.subr.bf16.mxu1 %v19770_v49  ;;  %v19813_v48 = vld [vmem:[%s20382_s15 + $0x23c0] ss:$8 sps:$4 sm:$0xff]   ;;  %v19818_v49 = vld [vmem:[%s20382_s15 + $0x11d4] ss:$8 sps:$4 sm:$0xff]  }
 0x50e   : > { %14664 = vmatprep.subr.bf16.mxu0 %v19773_v50  ;;  %12569 = vmatprep.mubr.bf16.mxu1 %v15340_v51  ;;  %v19821_v50 = vld [vmem:[%s20382_s15 + $0x23d4] ss:$8 sps:$4 sm:$0xff]   ;;  %v15628_v51 = vcombine.high %v851_v41, %v887_v44 }
 0x50f   : > { %14603 = vmatprep.mubr.bf16.mxu0 %v15376_v52  ;;  %v15664_v52 = vcombine.high %v869_v45, %v905_v46 }
 0x510   : > { %12631 = vmatpush1.bf16.msra.mxu1 %v19768_v53  ;;  %v19816_v53 = vld [vmem:[%s20382_s15 + $0x11d0] ss:$8 sps:$4 sm:$0xff]  }
 0x511   : > { %14665 = vmatpush1.bf16.msra.mxu0 %v19771_v54  ;;  %12632 = vmatprep.subr.bf16.mxu1 %v19776_v55  ;;  %v19819_v54 = vld [vmem:[%s20382_s15 + $0x23d0] ss:$8 sps:$4 sm:$0xff]   ;;  %v19824_v55 = vld [vmem:[%s20382_s15 + $0x11e4] ss:$8 sps:$4 sm:$0xff]  }
 0x512   : > { %14666 = vmatprep.subr.bf16.mxu0 %v19779_v56  ;;  %v19827_v56 = vld [vmem:[%s20382_s15 + $0x23e4] ss:$8 sps:$4 sm:$0xff]  }
 0x513   : > { %12570 = vmatmul.mubr.bf16.gmra.mrb[12].mxu1 %v15339_v58  ;;  %v15627_v58 = vcombine.low %v851_v41, %v887_v44  ;;  %v726_v41 = vld [vmem:[%s20374_s5 + $0xc58] sm:$0xff] }
 0x514   : > { %14604 = vmatmul.mubr.bf16.gmra.mrb[12].mxu0 %v15375_v59  ;;  %12633 = vmatpush1.bf16.msra.mxu1 %v19774_v63  ;;  %v15663_v59 = vcombine.low %v869_v45, %v905_v46  ;;  %v19822_v63 = vld [vmem:[%s20382_s15 + $0x11e0] ss:$8 sps:$4 sm:$0xff]  }
 0x515   : > { %14667 = vmatpush1.bf16.msra.mxu0 %v19777_v0  ;;  %12634 = vmatprep.subr.bf16.mxu1 %v19782_v1  ;;  %v19825_v0 = vld [vmem:[%s20382_s15 + $0x23e0] ss:$8 sps:$4 sm:$0xff]   ;;  %v19830_v1 = vld [vmem:[%s20382_s15 + $0x11f4] ss:$8 sps:$4 sm:$0xff]  }
 0x516   : > { %14668 = vmatprep.subr.bf16.mxu0 %v19785_v2  ;;  %12579 = vmatprep.mubr.bf16.mxu1 %v15412_v3  ;;  %v19833_v2 = vld [vmem:[%s20382_s15 + $0x23f4] ss:$8 sps:$4 sm:$0xff]   ;;  %v15126_v3 = vcombine.high %v348_v57, %v384_v60 }
 0x517   : > { %14613 = vmatprep.mubr.bf16.mxu0 %v15448_v4  ;;  %v15162_v4 = vcombine.high %v366_v61, %v402_v62 }
 0x518   : > { %12635 = vmatpush1.bf16.msra.mxu1 %v19780_v5  ;;  %v19828_v5 = vld [vmem:[%s20382_s15 + $0x11f0] ss:$8 sps:$4 sm:$0xff]  }
 0x519   : > { %14669 = vmatpush1.bf16.msra.mxu0 %v19783_v6  ;;  %12636 = vmatprep.subr.bf16.mxu1 %v19788_v7  ;;  %v19831_v6 = vld [vmem:[%s20382_s15 + $0x23f0] ss:$8 sps:$4 sm:$0xff]   ;;  %v420_v7 = vld [vmem:[%s20374_s5 + $0x2c8] sm:$0xff] }
 0x51a   : > { %14670 = vmatprep.subr.bf16.mxu0 %v19791_v8  ;;  %v456_v8 = vld [vmem:[%s20374_s5 + $0x3e8] sm:$0xff] }
 0x51b   : > { %12580 = vmatmul.mubr.bf16.gmra.mrb[16].mxu1 %v15411_v10  ;;  %v474_v10 = vld [vmem:[%s20374_s5 + $0x478] sm:$0xff]  ;;  %v15198_v13 = vcombine.high %v420_v7, %v456_v8 }
 0x51c   : > { %14614 = vmatmul.mubr.bf16.gmra.mrb[16].mxu0 %v15447_v11  ;;  %12637 = vmatpush1.bf16.msra.mxu1 %v19786_v15  ;;  %v15125_v11 = vcombine.low %v348_v57, %v384_v60  ;;  %v15234_v14 = vcombine.high %v438_v9, %v474_v10  ;;  %v492_v15 = vld [vmem:[%s20374_s5 + $0x508] sm:$0xff]  ;;  %v870_v57 = vld [vmem:[%s20374_s5 + $0x10d8] sm:$0xff] }
 0x51d   : > { %14671 = vmatpush1.bf16.msra.mxu0 %v19789_v16  ;;  %12638 = vmatprep.subr.bf16.mxu1 %v19794_v17  ;;  %v528_v16 = vld [vmem:[%s20374_s5 + $0x628] sm:$0xff]  ;;  %v510_v17 = vld [vmem:[%s20374_s5 + $0x598] sm:$0xff] }
 0x51e   : > { %14672 = vmatprep.subr.bf16.mxu0 %v19797_v18  ;;  %12589 = vmatprep.mubr.bf16.mxu1 %v15484_v19  ;;  %v546_v18 = vld [vmem:[%s20374_s5 + $0x6b8] sm:$0xff]  ;;  %v15197_v19 = vcombine.low %v420_v7, %v456_v8 }
 0x51f   : > { %14623 = vmatprep.mubr.bf16.mxu0 %v15520_v20  ;;  %v15233_v20 = vcombine.low %v438_v9, %v474_v10  ;;  %v15305_v28 = vcombine.low %v510_v17, %v546_v18  ;;  %v301_v10 = vld [vmem:[#allocation2 + $0x10] sm:$0xff] }
 0x520   : > { %12639 = vmatpush1.bf16.msra.mxu1 %v19792_v21  ;;  %v15270_v21 = vcombine.high %v492_v15, %v528_v16 }
 0x521   : > { %14673 = vmatpush1.bf16.msra.mxu0 %v19795_v22  ;;  %12640 = vmatprep.subr.bf16.mxu1 %v19800_v23  ;;  %v15306_v22 = vcombine.high %v510_v17, %v546_v18  ;;  %v564_v23 = vld [vmem:[%s20374_s5 + $0x748] sm:$0xff] }
 0x522   : > { %14674 = vmatprep.subr.bf16.mxu0 %v19803_v24  ;;  %v600_v24 = vld [vmem:[%s20374_s5 + $0x868] sm:$0xff] }
 0x523   : > { %12590 = vmatmul.mubr.bf16.gmra.mrb[20].mxu1 %v15483_v26  ;;  %v618_v26 = vld [vmem:[%s20374_s5 + $0x8f8] sm:$0xff]  ;;  %v15342_v29 = vcombine.high %v564_v23, %v600_v24 }
 0x524   : > { %14624 = vmatmul.mubr.bf16.gmra.mrb[20].mxu0 %v15519_v27  ;;  %12641 = vmatpush1.bf16.msra.mxu1 %v19798_v31  ;;  %v15269_v27 = vcombine.low %v492_v15, %v528_v16  ;;  %v15378_v30 = vcombine.high %v582_v25, %v618_v26  ;;  %v636_v31 = vld [vmem:[%s20374_s5 + $0x988] sm:$0xff]  ;;  %v302_v15 = vld [vmem:[#allocation2 + $0x18] sm:$0xff] }
 0x525   : > { %14675 = vmatpush1.bf16.msra.mxu0 %v19801_v32  ;;  %12642 = vmatprep.subr.bf16.mxu1 %v19806_v33  ;;  %v672_v32 = vld [vmem:[%s20374_s5 + $0xaa8] sm:$0xff]  ;;  %v654_v33 = vld [vmem:[%s20374_s5 + $0xa18] sm:$0xff] }
 0x526   : > { %14676 = vmatprep.subr.bf16.mxu0 %v19809_v34  ;;  %12599 = vmatprep.mubr.bf16.mxu1 %v15556_v35  ;;  %v690_v34 = vld [vmem:[%s20374_s5 + $0xb38] sm:$0xff]  ;;  %v15341_v35 = vcombine.low %v564_v23, %v600_v24 }
 0x527   : > { %14633 = vmatprep.mubr.bf16.mxu0 %v15592_v36  ;;  %v15377_v36 = vcombine.low %v582_v25, %v618_v26  ;;  %v15449_v44 = vcombine.low %v654_v33, %v690_v34  ;;  %v304_v26 = vld [vmem:[#allocation2 + $0x28] sm:$0xff] }
 0x528   : > { %12643 = vmatpush1.bf16.msra.mxu1 %v19804_v37  ;;  %v15414_v37 = vcombine.high %v636_v31, %v672_v32 }
 0x529   : > { %14677 = vmatpush1.bf16.msra.mxu0 %v19807_v38  ;;  %12644 = vmatprep.subr.bf16.mxu1 %v19812_v39  ;;  %v15450_v38 = vcombine.high %v654_v33, %v690_v34  ;;  %v708_v39 = vld [vmem:[%s20374_s5 + $0xbc8] sm:$0xff] }
 0x52a   : > { %14678 = vmatprep.subr.bf16.mxu0 %v19815_v40  ;;  %v744_v40 = vld [vmem:[%s20374_s5 + $0xce8] sm:$0xff] }
 0x52b   : > { %12600 = vmatmul.mubr.bf16.gmra.mrb[24].mxu1 %v15555_v42  ;;  %v762_v42 = vld [vmem:[%s20374_s5 + $0xd78] sm:$0xff]  ;;  %v15486_v45 = vcombine.high %v708_v39, %v744_v40 }
 0x52c   : > { %14634 = vmatmul.mubr.bf16.gmra.mrb[24].mxu0 %v15591_v43  ;;  %12645 = vmatpush1.bf16.msra.mxu1 %v19810_v47  ;;  %v15413_v43 = vcombine.low %v636_v31, %v672_v32  ;;  %v15522_v46 = vcombine.high %v726_v41, %v762_v42  ;;  %v780_v47 = vld [vmem:[%s20374_s5 + $0xe08] sm:$0xff] }
 0x52d   : > { %14679 = vmatpush1.bf16.msra.mxu0 %v19813_v48  ;;  %12646 = vmatprep.subr.bf16.mxu1 %v19818_v49  ;;  %v816_v48 = vld [vmem:[%s20374_s5 + $0xf28] sm:$0xff]  ;;  %v798_v49 = vld [vmem:[%s20374_s5 + $0xe98] sm:$0xff] }
 0x52e   : > { %14680 = vmatprep.subr.bf16.mxu0 %v19821_v50  ;;  %12609 = vmatprep.mubr.bf16.mxu1 %v15628_v51  ;;  %v834_v50 = vld [vmem:[%s20374_s5 + $0xfb8] sm:$0xff]  ;;  %v15485_v51 = vcombine.low %v708_v39, %v744_v40 }
 0x52f   : > { %14643 = vmatprep.mubr.bf16.mxu0 %v15664_v52  ;;  %v15521_v52 = vcombine.low %v726_v41, %v762_v42  ;;  %v15593_v60 = vcombine.low %v798_v49, %v834_v50  ;;  %v307_v42 = vld [vmem:[#allocation2 + $0x40] sm:$0xff] }
 0x530   : > { %12647 = vmatpush1.bf16.msra.mxu1 %v19816_v53  ;;  %v15558_v53 = vcombine.high %v780_v47, %v816_v48 }
 0x531   : > { %14681 = vmatpush1.bf16.msra.mxu0 %v19819_v54  ;;  %12648 = vmatprep.subr.bf16.mxu1 %v19824_v55  ;;  %v15594_v54 = vcombine.high %v798_v49, %v834_v50  ;;  %v852_v55 = vld [vmem:[%s20374_s5 + $0x1048] sm:$0xff]  ;;  %v309_v50 = vld [vmem:[#allocation2 + $0x50] sm:$0xff] }
 0x532   : > { %14682 = vmatprep.subr.bf16.mxu0 %v19827_v56  ;;  %v888_v56 = vld [vmem:[%s20374_s5 + $0x1168] sm:$0xff] }
 0x533   : > { %12610 = vmatmul.mubr.bf16.gmra.mrb[28].mxu1 %v15627_v58  ;;  %v906_v58 = vld [vmem:[%s20374_s5 + $0x11f8] sm:$0xff]  ;;  %v15630_v61 = vcombine.high %v852_v55, %v888_v56 }
 0x534   : > { %14644 = vmatmul.mubr.bf16.gmra.mrb[28].mxu0 %v15663_v59  ;;  %12649 = vmatpush1.bf16.msra.mxu1 %v19822_v63  ;;  %v15557_v59 = vcombine.low %v780_v47, %v816_v48  ;;  %v15666_v62 = vcombine.high %v870_v57, %v906_v58  ;;  %v15629_v63 = vcombine.low %v852_v55, %v888_v56  ;;  %v310_v55 = vld [vmem:[#allocation2 + $0x58] sm:$0xff] }
 0x535   : > { %14683 = vmatpush1.bf16.msra.mxu0 %v19825_v0  ;;  %12650 = vmatprep.subr.bf16.mxu1 %v19830_v1  ;;  %v15665_v0 = vcombine.low %v870_v57, %v906_v58 }
 0x536   : > { %14684 = vmatprep.subr.bf16.mxu0 %v19833_v2  ;;  %12652 = vmatprep.mubr.bf16.mxu1 %v15126_v3  ;;  %v299_v2 = vld [vmem:[#allocation2] sm:$0xff] }
 0x537   : > { %14686 = vmatprep.mubr.bf16.mxu0 %v15162_v4 }
 0x538   : > { %12651 = vmatpush1.bf16.msra.mxu1 %v19828_v5 }
 0x539   : > { %14685 = vmatpush1.bf16.msra.mxu0 %v19831_v6  ;;  %v300_v6 = vld [vmem:[#allocation2 + $0x8] sm:$0xff] }
 0x53b   : > { %12653 = vmatmul.mubr.bf16.vlgmr.msra.gmra.mrb[0].mxu1 %v15125_v11 }
 0x53c   : > { %14687 = vmatmul.mubr.bf16.vlgmr.msra.gmra.mrb[0].mxu0 %v15161_v12  ;;  %12662 = vmatprep.mubr.bf16.mxu1 %v15198_v13 }
 0x53d   : > { %14696 = vmatprep.mubr.bf16.mxu0 %v15234_v14 }
 0x543   : > { %12663 = vmatmul.mubr.bf16.gmra.mrb[4].mxu1 %v15197_v19 }
 0x544   : > { %14697 = vmatmul.mubr.bf16.gmra.mrb[4].mxu0 %v15233_v20  ;;  %12672 = vmatprep.mubr.bf16.mxu1 %v15270_v21 }
 0x545   : > { %14706 = vmatprep.mubr.bf16.mxu0 %v15306_v22  ;;  %v303_v22 = vld [vmem:[#allocation2 + $0x20] sm:$0xff] }
 0x54b   : > { %12673 = vmatmul.mubr.bf16.gmra.mrb[8].mxu1 %v15269_v27 }
 0x54c   : > { %14707 = vmatmul.mubr.bf16.gmra.mrb[8].mxu0 %v15305_v28  ;;  %12682 = vmatprep.mubr.bf16.mxu1 %v15342_v29 }
 0x54d   : > { %14716 = vmatprep.mubr.bf16.mxu0 %v15378_v30  ;;  %v305_v30 = vld [vmem:[#allocation2 + $0x30] sm:$0xff] }
 0x553   : > { %12683 = vmatmul.mubr.bf16.gmra.mrb[12].mxu1 %v15341_v35  ;;  %v306_v35 = vld [vmem:[#allocation2 + $0x38] sm:$0xff] }
 0x554   : > { %14717 = vmatmul.mubr.bf16.gmra.mrb[12].mxu0 %v15377_v36  ;;  %12692 = vmatprep.mubr.bf16.mxu1 %v15414_v37 }
 0x555   : > { %14726 = vmatprep.mubr.bf16.mxu0 %v15450_v38 }
 0x55b   : > { %12693 = vmatmul.mubr.bf16.gmra.mrb[16].mxu1 %v15413_v43 }
 0x55c   : > { %14727 = vmatmul.mubr.bf16.gmra.mrb[16].mxu0 %v15449_v44  ;;  %12702 = vmatprep.mubr.bf16.mxu1 %v15486_v45 }
 0x55d   : > { %14736 = vmatprep.mubr.bf16.mxu0 %v15522_v46  ;;  %v308_v46 = vld [vmem:[#allocation2 + $0x48] sm:$0xff] }
 0x563   : > { %12703 = vmatmul.mubr.bf16.gmra.mrb[20].mxu1 %v15485_v51 }
 0x564   : > { %14737 = vmatmul.mubr.bf16.gmra.mrb[20].mxu0 %v15521_v52  ;;  %12712 = vmatprep.mubr.bf16.mxu1 %v15558_v53 }
 0x565   : > { %14746 = vmatprep.mubr.bf16.mxu0 %v15594_v54 }
 0x56b   : > { %12713 = vmatmul.mubr.bf16.gmra.mrb[24].mxu1 %v15557_v59 }
 0x56c   : > { %14747 = vmatmul.mubr.bf16.gmra.mrb[24].mxu0 %v15593_v60  ;;  %12722 = vmatprep.mubr.bf16.mxu1 %v15630_v61 }
 0x56d   : > { %14756 = vmatprep.mubr.bf16.mxu0 %v15666_v62  ;;  %v311_v62 = vld [vmem:[#allocation2 + $0x60] sm:$0xff] }
 0x573   : > { %12723 = vmatmul.mubr.bf16.gmra.mrb[28].mxu1 %v15629_v63 }
 0x574   : > { %14757 = vmatmul.mubr.bf16.gmra.mrb[28].mxu0 %v15665_v0 }
 0x60e   : > { %v12654_v1 = vpop.f32.mrb[0].mxu1 }
 0x60f   : > { %v14688_v3 = vpop.f32.mrb[0].mxu0  ;;  %v12656_v5 = vpop.f32.mrb[1].mxu1 }
 0x610   : > { %v16831_v4 = vadd.f32 %v14688_v3, %v12654_v1  ;;  %v14690_v7 = vpop.f32.mrb[1].mxu0  ;;  %v12658_v9 = vpop.f32.mrb[2].mxu1 }
 0x611   : > { %v16832_v8 = vadd.f32 %v14690_v7, %v12656_v5  ;;  %v14692_v11 = vpop.f32.mrb[2].mxu0  ;;  %v12660_v14 = vpop.f32.mrb[3].mxu1 }
 0x612   : > { %v14767_v12 = vadd.f32 %v16831_v4, %v299_v2  ;;  %v16833_v13 = vadd.f32 %v14692_v11, %v12658_v9  ;;  %v14694_v16 = vpop.f32.mrb[3].mxu0  ;;  %v312_v2 = vld [vmem:[#allocation2 + $0x68] sm:$0xff]  ;;  %v314_v11 = vld [vmem:[#allocation2 + $0x78] sm:$0xff] }
 0x613   : > { %v14768_v17 = vadd.f32 %v16832_v8, %v300_v6  ;;  %v16834_v18 = vadd.f32 %v14694_v16, %v12660_v14  ;;  %v313_v6 = vld [vmem:[#allocation2 + $0x70] sm:$0xff] }
 0x614   : > { %14799 = vst [vmem:[#allocation2] sm:$0xff] %v14767_v12  ;;  %v14769_v19 = vadd.f32 %v16833_v13, %v301_v10 }
 0x615   : > { %14800 = vst [vmem:[#allocation2 + $0x8] sm:$0xff] %v14768_v17  ;;  %v14770_v20 = vadd.f32 %v16834_v18, %v302_v15  ;;  %v315_v18 = vld [vmem:[#allocation2 + $0x80] sm:$0xff] }
 0x616   : > { %14801 = vst [vmem:[#allocation2 + $0x10] sm:$0xff] %v14769_v19  ;;  %v12664_v21 = vpop.f32.mrb[4].mxu1 }
 0x617   : > { %14802 = vst [vmem:[#allocation2 + $0x18] sm:$0xff] %v14770_v20  ;;  %v14698_v23 = vpop.f32.mrb[4].mxu0  ;;  %v12666_v25 = vpop.f32.mrb[5].mxu1 }
 0x618   : > { %v16835_v24 = vadd.f32 %v14698_v23, %v12664_v21  ;;  %v14700_v27 = vpop.f32.mrb[5].mxu0  ;;  %v12668_v29 = vpop.f32.mrb[6].mxu1 }
 0x619   : > { %v16836_v28 = vadd.f32 %v14700_v27, %v12666_v25  ;;  %v14702_v31 = vpop.f32.mrb[6].mxu0  ;;  %v12670_v34 = vpop.f32.mrb[7].mxu1 }
 0x61a   : > { %v14771_v32 = vadd.f32 %v16835_v24, %v303_v22  ;;  %v16837_v33 = vadd.f32 %v14702_v31, %v12668_v29  ;;  %v14704_v36 = vpop.f32.mrb[7].mxu0  ;;  %v316_v22 = vld [vmem:[#allocation2 + $0x88] sm:$0xff]  ;;  %v318_v31 = vld [vmem:[#allocation2 + $0x98] sm:$0xff] }
 0x61b   : > { %v14772_v37 = vadd.f32 %v16836_v28, %v304_v26  ;;  %v16838_v38 = vadd.f32 %v14704_v36, %v12670_v34  ;;  %v317_v26 = vld [vmem:[#allocation2 + $0x90] sm:$0xff] }
 0x61c   : > { %14803 = vst [vmem:[#allocation2 + $0x20] sm:$0xff] %v14771_v32  ;;  %v14773_v39 = vadd.f32 %v16837_v33, %v305_v30 }
 0x61d   : > { %14804 = vst [vmem:[#allocation2 + $0x28] sm:$0xff] %v14772_v37  ;;  %v14774_v40 = vadd.f32 %v16838_v38, %v306_v35  ;;  %v319_v38 = vld [vmem:[#allocation2 + $0xa0] sm:$0xff] }
 0x61e   : > { %14805 = vst [vmem:[#allocation2 + $0x30] sm:$0xff] %v14773_v39  ;;  %v12674_v41 = vpop.f32.mrb[8].mxu1 }
 0x61f   : > { %14806 = vst [vmem:[#allocation2 + $0x38] sm:$0xff] %v14774_v40  ;;  %v14708_v43 = vpop.f32.mrb[8].mxu0  ;;  %v12676_v45 = vpop.f32.mrb[9].mxu1 }
 0x620   : > { %v16839_v44 = vadd.f32 %v14708_v43, %v12674_v41  ;;  %v14710_v47 = vpop.f32.mrb[9].mxu0  ;;  %v12678_v49 = vpop.f32.mrb[10].mxu1 }
 0x621   : > { %v16840_v48 = vadd.f32 %v14710_v47, %v12676_v45  ;;  %v14712_v51 = vpop.f32.mrb[10].mxu0  ;;  %v12680_v54 = vpop.f32.mrb[11].mxu1 }
 0x622   : > { %v14775_v52 = vadd.f32 %v16839_v44, %v307_v42  ;;  %v16841_v53 = vadd.f32 %v14712_v51, %v12678_v49  ;;  %v14714_v56 = vpop.f32.mrb[11].mxu0  ;;  %v320_v42 = vld [vmem:[#allocation2 + $0xa8] sm:$0xff]  ;;  %v322_v51 = vld [vmem:[#allocation2 + $0xb8] sm:$0xff] }
 0x623   : > { %v14776_v57 = vadd.f32 %v16840_v48, %v308_v46  ;;  %v16842_v58 = vadd.f32 %v14714_v56, %v12680_v54  ;;  %v321_v46 = vld [vmem:[#allocation2 + $0xb0] sm:$0xff] }
 0x624   : > { %14807 = vst [vmem:[#allocation2 + $0x40] sm:$0xff] %v14775_v52  ;;  %v14777_v59 = vadd.f32 %v16841_v53, %v309_v50 }
 0x625   : > { %14808 = vst [vmem:[#allocation2 + $0x48] sm:$0xff] %v14776_v57  ;;  %v14778_v60 = vadd.f32 %v16842_v58, %v310_v55  ;;  %v323_v58 = vld [vmem:[#allocation2 + $0xc0] sm:$0xff] }
 0x626   : > { %14809 = vst [vmem:[#allocation2 + $0x50] sm:$0xff] %v14777_v59  ;;  %v12684_v61 = vpop.f32.mrb[12].mxu1 }
 0x627   : > { %14810 = vst [vmem:[#allocation2 + $0x58] sm:$0xff] %v14778_v60  ;;  %v14718_v63 = vpop.f32.mrb[12].mxu0  ;;  %v12686_v1 = vpop.f32.mrb[13].mxu1 }
 0x628   : > { %v16843_v0 = vadd.f32 %v14718_v63, %v12684_v61  ;;  %v14720_v3 = vpop.f32.mrb[13].mxu0  ;;  %v12688_v5 = vpop.f32.mrb[14].mxu1 }
 0x629   : > { %v16844_v4 = vadd.f32 %v14720_v3, %v12686_v1  ;;  %v14722_v7 = vpop.f32.mrb[14].mxu0  ;;  %v12690_v10 = vpop.f32.mrb[15].mxu1 }
 0x62a   : > { %v14779_v8 = vadd.f32 %v16843_v0, %v311_v62  ;;  %v16845_v9 = vadd.f32 %v14722_v7, %v12688_v5  ;;  %v14724_v12 = vpop.f32.mrb[15].mxu0  ;;  %v324_v62 = vld [vmem:[#allocation2 + $0xc8] sm:$0xff]  ;;  %v326_v7 = vld [vmem:[#allocation2 + $0xd8] sm:$0xff] }
 0x62b   : > { %v14780_v13 = vadd.f32 %v16844_v4, %v312_v2  ;;  %v16846_v14 = vadd.f32 %v14724_v12, %v12690_v10  ;;  %v325_v2 = vld [vmem:[#allocation2 + $0xd0] sm:$0xff] }
 0x62c   : > { %14811 = vst [vmem:[#allocation2 + $0x60] sm:$0xff] %v14779_v8  ;;  %v14781_v15 = vadd.f32 %v16845_v9, %v313_v6 }
 0x62d   : > { %14812 = vst [vmem:[#allocation2 + $0x68] sm:$0xff] %v14780_v13  ;;  %v14782_v16 = vadd.f32 %v16846_v14, %v314_v11  ;;  %v327_v14 = vld [vmem:[#allocation2 + $0xe0] sm:$0xff] }
 0x62e   : > { %14813 = vst [vmem:[#allocation2 + $0x70] sm:$0xff] %v14781_v15  ;;  %v12694_v17 = vpop.f32.mrb[16].mxu1 }
 0x62f   : > { %14814 = vst [vmem:[#allocation2 + $0x78] sm:$0xff] %v14782_v16  ;;  %v14728_v19 = vpop.f32.mrb[16].mxu0  ;;  %v12696_v21 = vpop.f32.mrb[17].mxu1 }
 0x630   : > { %v16847_v20 = vadd.f32 %v14728_v19, %v12694_v17  ;;  %v14730_v23 = vpop.f32.mrb[17].mxu0  ;;  %v12698_v25 = vpop.f32.mrb[18].mxu1 }
 0x631   : > { %v16848_v24 = vadd.f32 %v14730_v23, %v12696_v21  ;;  %v14732_v27 = vpop.f32.mrb[18].mxu0  ;;  %v12700_v30 = vpop.f32.mrb[19].mxu1 }
 0x632   : > { %v14783_v28 = vadd.f32 %v16847_v20, %v315_v18  ;;  %v16849_v29 = vadd.f32 %v14732_v27, %v12698_v25  ;;  %v14734_v32 = vpop.f32.mrb[19].mxu0  ;;  %v328_v18 = vld [vmem:[#allocation2 + $0xe8] sm:$0xff]  ;;  %v330_v27 = vld [vmem:[#allocation2 + $0xf8] sm:$0xff] }
 0x633   : > { %v14784_v33 = vadd.f32 %v16848_v24, %v316_v22  ;;  %v16850_v34 = vadd.f32 %v14734_v32, %v12700_v30  ;;  %v329_v22 = vld [vmem:[#allocation2 + $0xf0] sm:$0xff] }
 0x634   : > { %14815 = vst [vmem:[#allocation2 + $0x80] sm:$0xff] %v14783_v28  ;;  %v14785_v35 = vadd.f32 %v16849_v29, %v317_v26 }
 0x635   : > { %14816 = vst [vmem:[#allocation2 + $0x88] sm:$0xff] %v14784_v33  ;;  %v14786_v36 = vadd.f32 %v16850_v34, %v318_v31  ;;  %v14869_v33 = vlaneseq (!%p16819_p12)  ;;  %v14867_v34 = vld [vmem:[#allocation8] sm:$0x3] (!%p16819_p12) }
 0x636   : > { %14817 = vst [vmem:[#allocation2 + $0x90] sm:$0xff] %v14785_v35  ;;  %v12704_v37 = vpop.f32.mrb[20].mxu1 }
 0x637   : > { %14818 = vst [vmem:[#allocation2 + $0x98] sm:$0xff] %v14786_v36  ;;  %v14738_v39 = vpop.f32.mrb[20].mxu0  ;;  %v12706_v41 = vpop.f32.mrb[21].mxu1  ;;  %v14870_v35 = vshrl.u32 (!%p16819_p12), %v14869_v33, 7  ;;  %v14835_v36 = vld [vmem:[#allocation2] sm:$0xff] (!%p16819_p12) }
 0x638   : > { %v16851_v40 = vadd.f32 %v14738_v39, %v12704_v37  ;;  %v14740_v43 = vpop.f32.mrb[21].mxu0  ;;  %v12708_v45 = vpop.f32.mrb[22].mxu1  ;;  %v14836_v37 = vld [vmem:[#allocation2 + $0x8] sm:$0xff] (!%p16819_p12)  ;;  %v14838_v39 = vld [vmem:[#allocation2 + $0x18] sm:$0xff] (!%p16819_p12) }
 0x639   : > { %v16852_v44 = vadd.f32 %v14740_v43, %v12706_v41  ;;  %v14742_v47 = vpop.f32.mrb[22].mxu0  ;;  %v12710_v50 = vpop.f32.mrb[23].mxu1  ;;  %v14875_v41 = vsub.s32 (!%p16819_p12), 1, %v14870_v35  ;;  %v14840_v43 = vld [vmem:[#allocation2 + $0x28] sm:$0xff] (!%p16819_p12) }
 0x63a   : > { %v14787_v48 = vadd.f32 %v16851_v40, %v319_v38  ;;  %v16853_v49 = vadd.f32 %v14742_v47, %v12708_v45  ;;  %v14744_v52 = vpop.f32.mrb[23].mxu0  ;;  %v14837_v38 = vld [vmem:[#allocation2 + $0x10] sm:$0xff] (!%p16819_p12)  ;;  %v14871_v40 = vsub.s32 (!%p16819_p12), 0, %v14870_v35  ;;  %v14842_v45 = vld [vmem:[#allocation2 + $0x38] sm:$0xff] (!%p16819_p12)  ;;  %v14844_v47 = vld [vmem:[#allocation2 + $0x48] sm:$0xff] (!%p16819_p12) }
 0x63b   : > { %v14788_v53 = vadd.f32 %v16852_v44, %v320_v42  ;;  %v16854_v54 = vadd.f32 %v14744_v52, %v12710_v50  ;;  %v14839_v42 = vld [vmem:[#allocation2 + $0x20] sm:$0xff] (!%p16819_p12)  ;;  %v14841_v44 = vld [vmem:[#allocation2 + $0x30] sm:$0xff] (!%p16819_p12)  ;;  %v22129_v50 = vrot.slane (!%p16819_p12), %v14867_v34, %v14875_v41 }
 0x63c   : > { %14819 = vst [vmem:[#allocation2 + $0xa0] sm:$0xff] %v14787_v48  ;;  %v14789_v55 = vadd.f32 %v16853_v49, %v321_v46  ;;  %v14843_v46 = vld [vmem:[#allocation2 + $0x40] sm:$0xff] (!%p16819_p12)  ;;  %v14845_v48 = vld [vmem:[#allocation2 + $0x50] sm:$0xff] (!%p16819_p12)  ;;  %v22127_v49 = vrot.slane (!%p16819_p12), %v14867_v34, %v14871_v40 }
 0x63d   : > { %14820 = vst [vmem:[#allocation2 + $0xa8] sm:$0xff] %v14788_v53  ;;  %v14790_v56 = vadd.f32 %v16854_v54, %v322_v51  ;;  %v14846_v51 = vld [vmem:[#allocation2 + $0x58] sm:$0xff] (!%p16819_p12)  ;;  %v14847_v52 = vld [vmem:[#allocation2 + $0x60] sm:$0xff] (!%p16819_p12)  ;;  %v14848_v53 = vld [vmem:[#allocation2 + $0x68] sm:$0xff] (!%p16819_p12) }
 0x63e   : > { %14821 = vst [vmem:[#allocation2 + $0xb0] sm:$0xff] %v14789_v55  ;;  %v12714_v57 = vpop.f32.mrb[24].mxu1  ;;  %v14849_v54 = vld [vmem:[#allocation2 + $0x70] sm:$0xff] (!%p16819_p12)  ;;  %v14850_v55 = vld [vmem:[#allocation2 + $0x78] sm:$0xff] (!%p16819_p12) }
 0x63f   : > { %14822 = vst [vmem:[#allocation2 + $0xb8] sm:$0xff] %v14790_v56  ;;  %v14748_v59 = vpop.f32.mrb[24].mxu0  ;;  %v12716_v61 = vpop.f32.mrb[25].mxu1  ;;  %v14851_v56 = vld [vmem:[#allocation2 + $0x80] sm:$0xff] (!%p16819_p12) }
 0x640   : > { %v16855_v60 = vadd.f32 %v14748_v59, %v12714_v57  ;;  %v14750_v63 = vpop.f32.mrb[25].mxu0  ;;  %v12718_v1 = vpop.f32.mrb[26].mxu1  ;;  %v14879_v57 = vadd.f32 (!%p16819_p12), %v22127_v49, %v14835_v36  ;;  %v14881_v59 = vadd.f32 (!%p16819_p12), %v22127_v49, %v14837_v38 }
 0x641   : > { %v16856_v0 = vadd.f32 %v14750_v63, %v12716_v61  ;;  %v14752_v3 = vpop.f32.mrb[26].mxu0  ;;  %v12720_v6 = vpop.f32.mrb[27].mxu1  ;;  %v14852_v61 = vld [vmem:[#allocation2 + $0x88] sm:$0xff] (!%p16819_p12)  ;;  %v14854_v63 = vld [vmem:[#allocation2 + $0x98] sm:$0xff] (!%p16819_p12) }
 0x642   : > { %v14791_v4 = vadd.f32 %v16855_v60, %v323_v58  ;;  %v16857_v5 = vadd.f32 %v14752_v3, %v12718_v1  ;;  %v14754_v8 = vpop.f32.mrb[27].mxu0  ;;  %v14880_v58 = vadd.f32 (!%p16819_p12), %v22129_v50, %v14836_v37  ;;  %v14882_v60 = vadd.f32 (!%p16819_p12), %v22129_v50, %v14838_v39  ;;  %14911 = vst [vmem:[%s20395_s0] sm:$0xff] (!%p16819_p12), %v14879_v57 }
 0x643   : > { %v14792_v9 = vadd.f32 %v16856_v0, %v324_v62  ;;  %v16858_v10 = vadd.f32 %v14754_v8, %v12720_v6  ;;  %v14853_v62 = vld [vmem:[#allocation2 + $0x90] sm:$0xff] (!%p16819_p12)  ;;  %v14883_v0 = vadd.f32 (!%p16819_p12), %v22127_v49, %v14839_v42  ;;  %v14884_v1 = vadd.f32 (!%p16819_p12), %v22129_v50, %v14840_v43  ;;  %14913 = vst [vmem:[%s20395_s0 + $0x10] sm:$0xff] (!%p16819_p12), %v14881_v59 }
 0x644   : > { %14823 = vst [vmem:[#allocation2 + $0xc0] sm:$0xff] %v14791_v4  ;;  %v14793_v11 = vadd.f32 %v16857_v5, %v325_v2  ;;  %v14885_v2 = vadd.f32 (!%p16819_p12), %v22127_v49, %v14841_v44  ;;  %v14886_v3 = vadd.f32 (!%p16819_p12), %v22129_v50, %v14842_v45  ;;  %v14855_v4 = vld [vmem:[#allocation2 + $0xa0] sm:$0xff] (!%p16819_p12)  ;;  %v14856_v5 = vld [vmem:[#allocation2 + $0xa8] sm:$0xff] (!%p16819_p12)  ;;  %14912 = vst [vmem:[%s20395_s0 + $0x8] sm:$0xff] (!%p16819_p12), %v14880_v58 }
 0x645   : > { %14824 = vst [vmem:[#allocation2 + $0xc8] sm:$0xff] %v14792_v9  ;;  %v14794_v12 = vadd.f32 %v16858_v10, %v326_v7  ;;  %v14857_v6 = vld [vmem:[#allocation2 + $0xb0] sm:$0xff] (!%p16819_p12)  ;;  %14914 = vst [vmem:[%s20395_s0 + $0x18] sm:$0xff] (!%p16819_p12), %v14882_v60  ;;  %v14887_v7 = vadd.f32 (!%p16819_p12), %v22127_v49, %v14843_v46  ;;  %v14888_v8 = vadd.f32 (!%p16819_p12), %v22129_v50, %v14844_v47 }
 0x646   : > { %14825 = vst [vmem:[#allocation2 + $0xd0] sm:$0xff] %v14793_v11  ;;  %v12724_v13 = vpop.f32.mrb[28].mxu1  ;;  %v14889_v9 = vadd.f32 (!%p16819_p12), %v22127_v49, %v14845_v48  ;;  %v14890_v10 = vadd.f32 (!%p16819_p12), %v22129_v50, %v14846_v51  ;;  %v14858_v11 = vld [vmem:[#allocation2 + $0xb8] sm:$0xff] (!%p16819_p12)  ;;  %14915 = vst [vmem:[%s20395_s0 + $0x20] sm:$0xff] (!%p16819_p12), %v14883_v0 }
 0x647   : > { %14826 = vst [vmem:[#allocation2 + $0xd8] sm:$0xff] %v14794_v12  ;;  %v14758_v15 = vpop.f32.mrb[28].mxu0  ;;  %v12726_v17 = vpop.f32.mrb[29].mxu1  ;;  %14916 = vst [vmem:[%s20395_s0 + $0x28] sm:$0xff] (!%p16819_p12), %v14884_v1 }
 0x648   : > { %v16859_v16 = vadd.f32 %v14758_v15, %v12724_v13  ;;  %v14760_v19 = vpop.f32.mrb[29].mxu0  ;;  %v12728_v21 = vpop.f32.mrb[30].mxu1  ;;  %14917 = vst [vmem:[%s20395_s0 + $0x30] sm:$0xff] (!%p16819_p12), %v14885_v2  ;;  %14918 = vst [vmem:[%s20395_s0 + $0x38] sm:$0xff] (!%p16819_p12), %v14886_v3  ;;  %v14892_v15 = vadd.f32 (!%p16819_p12), %v22129_v50, %v14848_v53 }
 0x649   : > { %v16860_v20 = vadd.f32 %v14760_v19, %v12726_v17  ;;  %v14762_v23 = vpop.f32.mrb[30].mxu0  ;;  %v12730_v26 = vpop.f32.mrb[31].mxu1  ;;  %14834 = sbr.rel (%p16819_p12) target bundleno = 1626 (0x65a), region = 52  ;;  %v14894_v17 = vadd.f32 (!%p16819_p12), %v22129_v50, %v14850_v55  ;;  %14919 = vst [vmem:[%s20395_s0 + $0x40] sm:$0xff] (!%p16819_p12), %v14887_v7  ;;  %14920 = vst [vmem:[%s20395_s0 + $0x48] sm:$0xff] (!%p16819_p12), %v14888_v8 }
 0x64a   : > { %v14795_v24 = vadd.f32 %v16859_v16, %v327_v14  ;;  %v16861_v25 = vadd.f32 %v14762_v23, %v12728_v21  ;;  %v14764_v28 = vpop.f32.mrb[31].mxu0  ;;  %v14891_v14 = vadd.f32 (!%p16819_p12), %v22127_v49, %v14847_v52  ;;  %v14893_v16 = vadd.f32 (!%p16819_p12), %v22127_v49, %v14849_v54  ;;  %14921 = vst [vmem:[%s20395_s0 + $0x50] sm:$0xff] (!%p16819_p12), %v14889_v9 }
 0x64b   : > { %v14796_v29 = vadd.f32 %v16860_v20, %v328_v18  ;;  %v16862_v30 = vadd.f32 %v14764_v28, %v12730_v26  ;;  %v14859_v12 = vld [vmem:[#allocation2 + $0xc0] sm:$0xff] (!%p16819_p12)  ;;  %14922 = vst [vmem:[%s20395_s0 + $0x58] sm:$0xff] (!%p16819_p12), %v14890_v10  ;;  %v14895_v21 = vadd.f32 (!%p16819_p12), %v22127_v49, %v14851_v56  ;;  %v14897_v23 = vadd.f32 (!%p16819_p12), %v22127_v49, %v14853_v62 }
 0x64c   : > { %14827 = vst [vmem:[#allocation2 + $0xe0] sm:$0xff] %v14795_v24  ;;  %v14797_v31 = vadd.f32 %v16861_v25, %v329_v22  ;;  %v14860_v13 = vld [vmem:[#allocation2 + $0xc8] sm:$0xff] (!%p16819_p12)  ;;  %v14896_v22 = vadd.f32 (!%p16819_p12), %v22129_v50, %v14852_v61  ;;  %v14898_v24 = vadd.f32 (!%p16819_p12), %v22129_v50, %v14854_v63  ;;  %14923 = vst [vmem:[%s20395_s0 + $0x60] sm:$0xff] (!%p16819_p12), %v14891_v14 }
 0x64d   : > { %14828 = vst [vmem:[#allocation2 + $0xe8] sm:$0xff] %v14796_v29  ;;  %v14798_v32 = vadd.f32 %v16862_v30, %v330_v27  ;;  %v14861_v18 = vld [vmem:[#allocation2 + $0xd0] sm:$0xff] (!%p16819_p12)  ;;  %14924 = vst [vmem:[%s20395_s0 + $0x68] sm:$0xff] (!%p16819_p12), %v14892_v15  ;;  %v14899_v28 = vadd.f32 (!%p16819_p12), %v22127_v49, %v14855_v4  ;;  %v14900_v29 = vadd.f32 (!%p16819_p12), %v22129_v50, %v14856_v5 }
 0x64e   : > { %14829 = vst [vmem:[#allocation2 + $0xf0] sm:$0xff] %v14797_v31  ;;  %v14862_v19 = vld [vmem:[#allocation2 + $0xd8] sm:$0xff] (!%p16819_p12)  ;;  %14925 = vst [vmem:[%s20395_s0 + $0x70] sm:$0xff] (!%p16819_p12), %v14893_v16  ;;  %v14901_v30 = vadd.f32 (!%p16819_p12), %v22127_v49, %v14857_v6  ;;  %v14902_v31 = vadd.f32 (!%p16819_p12), %v22129_v50, %v14858_v11  ;;  %v14904_v33 = vadd.f32 (!%p16819_p12), %v22129_v50, %v14860_v13 }
 0x64f   : > { %14830 = vst [vmem:[#allocation2 + $0xf8] sm:$0xff] %v14798_v32  ;;  %14926 = vst [vmem:[%s20395_s0 + $0x78] sm:$0xff] (!%p16819_p12), %v14894_v17  ;;  %v14903_v32 = vadd.f32 (!%p16819_p12), %v22127_v49, %v14859_v12  ;;  %v14905_v34 = vadd.f32 (!%p16819_p12), %v22127_v49, %v14861_v18  ;;  %v14906_v35 = vadd.f32 (!%p16819_p12), %v22129_v50, %v14862_v19 }
 0x650   : > { %14927 = vst [vmem:[%s20395_s0 + $0x80] sm:$0xff] %v14895_v21  ;;  %14928 = vst [vmem:[%s20395_s0 + $0x88] sm:$0xff] %v14896_v22 }
 0x651   : > { %14929 = vst [vmem:[%s20395_s0 + $0x90] sm:$0xff] %v14897_v23  ;;  %14930 = vst [vmem:[%s20395_s0 + $0x98] sm:$0xff] %v14898_v24 }
 0x652   : > { %14931 = vst [vmem:[%s20395_s0 + $0xa0] sm:$0xff] %v14899_v28  ;;  %14932 = vst [vmem:[%s20395_s0 + $0xa8] sm:$0xff] %v14900_v29 }
 0x653   : > { %v14863_v20 = vld [vmem:[#allocation2 + $0xe0] sm:$0xff]  ;;  %14933 = vst [vmem:[%s20395_s0 + $0xb0] sm:$0xff] %v14901_v30  ;;  %14934 = vst [vmem:[%s20395_s0 + $0xb8] sm:$0xff] %v14902_v31 }
 0x654   : > { %v14864_v25 = vld [vmem:[#allocation2 + $0xe8] sm:$0xff]  ;;  %v14907_v36 = vadd.f32 %v22127_v49, %v14863_v20  ;;  %14935 = vst [vmem:[%s20395_s0 + $0xc0] sm:$0xff] %v14903_v32  ;;  %14936 = vst [vmem:[%s20395_s0 + $0xc8] sm:$0xff] %v14904_v33 }
 0x655   : > { %v14865_v26 = vld [vmem:[#allocation2 + $0xf0] sm:$0xff]  ;;  %v14908_v37 = vadd.f32 %v22129_v50, %v14864_v25  ;;  %14937 = vst [vmem:[%s20395_s0 + $0xd0] sm:$0xff] %v14905_v34  ;;  %14938 = vst [vmem:[%s20395_s0 + $0xd8] sm:$0xff] %v14906_v35 }
 0x656   : > { %v14866_v27 = vld [vmem:[#allocation2 + $0xf8] sm:$0xff]  ;;  %v14909_v38 = vadd.f32 %v22127_v49, %v14865_v26  ;;  %14939 = vst [vmem:[%s20395_s0 + $0xe0] sm:$0xff] %v14907_v36 }
 0x657   : > { %v14910_v39 = vadd.f32 %v22129_v50, %v14866_v27  ;;  %14940 = vst [vmem:[%s20395_s0 + $0xe8] sm:$0xff] %v14908_v37 }
 0x658   : > { %14941 = vst [vmem:[%s20395_s0 + $0xf0] sm:$0xff] %v14909_v38 }
 0x659   : > { %14942 = vst [vmem:[%s20395_s0 + $0xf8] sm:$0xff] %v14910_v39 }
 0x65a PF: > { %s22348_s16 = sld [smem:[#allocation18_spill]]  ;;  %s22350_s18 = sld [smem:[#allocation20_spill]] }
 0x65b   : > { %s22351_s27 = sld [smem:[#allocation27_spill]]  ;;  %s14958_s6 = sshll.u32 %s20395_s0, 4  ;;  %s22202_s6 = int_to_ptr.vmem [resolvable:$true] %s14958_s6 }
 0x65c   : > { %s22206_s22 = scalar_lea.sflag [#allocation5], %s256_s21  ;;  %s19922_s28 = scalar_lea.vmem %s22202_s6, 4096 }
 0x65d   : > { %p19923_p0 = scmp.ne.s32.totalorder %s22202_s6, %s19922_s28  ;;  %s20087_s3 = smov [#allocation9]  }
 0x65e   : > { %s19926_s2 = sshll.u32 %s20087_s3, 4  ;;  %s19927_s2 = int_to_ptr.vmem [resolvable:$false] %s19926_s2 }
 0x65f   : > { %s19928_s10 = scalar_lea.vmem %s19927_s2, 8192  ;;  %p19929_p8 = scmp.lt.s32.totalorder %s22202_s6, %s19927_s2 }
 0x660   : > { %s16829_s9 = sshll.u32 %s22348_s16, 12  ;;  %p22352_p4 = scmp.ne.s32.totalorder %s22350_s18, 0 }
 0x661   : > { %s22199_s5 = scalar_lea.hbm %s22351_s27, %s16829_s9  ;;  %p19930_p6 = scmp.lt.s32.totalorder %s19928_s10, %s19922_s28 }
 0x662   : > { %p19924_p10 = pnand %p19923_p0, %p22352_p4 }
 0x663   : > { %p19931_p2 = por %p19930_p6, %p19929_p8 }
 0x664   : > { %p19925_p13 = pneg %p19924_p10 }
 0x666   : > { %p19932_p1 = pnand %p19931_p2, %p19925_p13 }
 0x668   : > { %19935 = shalt.err (!%p19932_p1)
}
 0x669   : > { %s19936_s15 = scalar_lea.hbm %s22199_s5, 4096  ;;  %s19940_s7 = scalar_lea.hbm %s22351_s27, 8192 }
 0x66a   : > { %p19937_p9 = scmp.ne.s32.totalorder %s22199_s5, %s19936_s15  ;;  %p19941_p7 = scmp.lt.u32.totalorder %s22199_s5, %s22351_s27 }
 0x66b   : > { %p19942_p11 = scmp.lt.u32.totalorder %s19940_s7, %s19936_s15  ;;  %p19944_p0 = scmp.lt.u32.totalorder %s19936_s15, %s22199_s5 }
 0x66c   : > { %p19938_p3 = pnand %p19937_p9, %p22352_p4 }
 0x66d   : > { %p19943_p12 = por %p19942_p11, %p19941_p7 }
 0x66e   : > { %p19939_p5 = pneg %p19938_p3 }
 0x66f   : > { %p19945_p10 = por %p19944_p0, %p19943_p12 }
 0x671   : > { %p19946_p13 = pnand %p19945_p10, %p19939_p5 }
 0x673   : > { %19949 = shalt.err (!%p19946_p13)
}
 0x674   : > { %s20088_s26 = smov 256   ;;  %s20089_s16 = smov 16  }
 0x675   : > { %17964 = dma.vmem_to_hbm [thread:$0]  (%p22352_p4), %s22202_s6, 4096, %s22199_s5, %s22206_s22, %s20088_s26, %s20088_s26, %s20089_s16  }
 0x676 PF: > { %s22353_s29 = sld [smem:[#allocation14_spill]]  ;;  %s22354_s9 = sld [smem:[#allocation21_spill]] }
 0x677   : > { %p17984_p8 = scmp.ge.s32.totalorder %s20076_s25, 2 }
 0x67c   : > { %s14973_s30 = sand.u32 1, %s22353_s29   ;;  %p22355_p6 = scmp.ne.s32.totalorder %s22354_s9, 0 }
 0x67d   : > { %s14974_s12 = scalar_lea.sflag [#allocation5], %s14973_s30 }
 0x67e   : > { %p17978_p2 = pnand %p17984_p8, %p22355_p6 }
 0x680   : > { %20019 = dma.done.wait (!%p17978_p2), %s14974_s12, 4096  }
 0x681   : > { %20021 = vsyncadd (!%p17978_p2), %s14974_s12, 4294963200  ;;  %s22_s25 = sadd.s32 1, %s20076_s25   ;;  %s22357_s12 = sld [smem:[#allocation15_spill]] }
 0x682   : > { %p22235_p1 = scmp.ge.s32.totalorder %s22_s25, 6   ;;  %s22358_s18 = smov %s20289_s13 }
 0x683   : > { %s22359_s15 = sld [smem:[#allocation16_spill]]  ;;  %s22360_s5 = sld [smem:[#allocation24_spill]] }
 0x684   : > { %s22361_s6 = sld [smem:[#allocation22_spill]]  ;;  %s22362_s3 = sld [smem:[#allocation23_spill]] }
 0x685   : > { %s22363_s13 = smov %s20032_s14  ;;  %s22364_s14 = smov %s22358_s18 }
 0x686   : > { %s22365_s16 = smov %s20044_s17  ;;  %s22367_s18 = smov %s20052_s19 }
 0x687   : > { %s22368_s19 = smov %s20056_s20  ;;  %s22369_s20 = smov %s20294_s11 }
 0x688   : > { %s22370_s21 = smov %s20068_s23  ;;  %s22371_s22 = smov %s20072_s24 }
 0x689   : > { %s22366_s17 = smov %s22360_s5  ;;  %21 = sbr.rel (!%p22235_p1) target bundleno = 16 (0x10), region = 102 }
 0x68a   : > { %s22372_s23 = smov %s22361_s6  ;;  %s22373_s24 = smov %s22362_s3 }
 0x690   :  { %14979 = vsyncpa [#allocation4], 1 }
 0x691   :  { %14981 = vsyncpa [#allocation4 + $0x1], 1 }
 0x692   :  { %14982 = vsyncpa [#allocation7], 1 }
 0x693   :  { %14984 = vsyncpa [#allocation7 + $0x1], 1 }
 0x694   :  { %14985 = vsyncpa [#allocation5], 1 }
 0x695   :  { %14987 = vsyncpa [#allocation5 + $0x1], 1 }

</bundles_post_ra>
